<compile_context>
chip_gen: v7x
topology: tpu7x:2x2x1
jax: 0.10.0
libtpu: 0.0.40
codegen_flags: <defaults>
</compile_context>

<pallas_src>
import functools

import jax
import jax.numpy as jnp
from jax.experimental import pallas as pl
from jax.experimental.pallas import tpu as pltpu


_VMEM_LIMIT = 48 * 1024 * 1024     # safe on v5e/v6e (128 MiB phys) and v7x (64 MiB phys)


def _round_up(x, m):
    return ((x + m - 1) // m) * m


def _pick_tile_m(M, tile_m):
    """Row-tile size that avoids padding M by (almost) a whole extra tile."""
    M8 = _round_up(M, 8)
    if M8 <= tile_m:
        return M8
    n_tiles = -(-M // tile_m)
    return _round_up(-(-M // n_tiles), 8)


def _pick_time_block(T):
    """Recurrence steps per grid iteration (amortise per-step pipeline cost)."""
    if T <= 8:
        return T
    best_tb, best_pad = 8, _round_up(T, 8)
    for tb in range(8, 3, -1):
        p = _round_up(T, tb)
        if p < best_pad:
            best_pad, best_tb = p, tb
    return best_tb


def _num_batch_chunks(n):
    """Split independent batch rows across TensorCores only on multi-TC chips."""
    try:
        kind = jax.devices()[0].device_kind.lower()
    except Exception:
        kind = ""
    multi_tc = "v7" in kind          # v5e / v6e: single TensorCore per chip
    if multi_tc and n % 2 == 0 and (n // 2) % 8 == 0:
        return 2
    return 1


# --------------------------------------------------------------------------
# Fused multi-input matmul kernel: y = sum_i x_i @ w_i + b, optionally split
# into n_out equal lane chunks (e.g. fwd/bwd gate pre-activations from one
# lane-dense MXU op).
# --------------------------------------------------------------------------
def _fused_matmul_kernel(*refs, n_in, n_out, relu):
    xs = refs[:n_in]
    ws = refs[n_in:2 * n_in]
    b_ref = refs[2 * n_in]
    outs = refs[2 * n_in + 1:2 * n_in + 1 + n_out]

    acc = b_ref[...].astype(jnp.float32)
    for x_ref, w_ref in zip(xs, ws):
        acc = acc + jnp.dot(x_ref[...].astype(w_ref.dtype), w_ref[...],
                            preferred_element_type=jnp.float32)
    if relu:
        acc = jnp.maximum(acc, 0.0)
    if n_out == 1:
        outs[0][...] = acc.astype(outs[0].dtype)
    else:
        no = acc.shape[-1] // n_out
        for idx in range(n_out):
            outs[idx][...] = acc[:, idx * no:(idx + 1) * no].astype(outs[idx].dtype)


def fused_matmul(xs, ws, b, *, relu=False, n_out=1, tile_m=512,
                 out_dtype=jnp.float32):
    n_in = len(xs)
    M = xs[0].shape[0]
    Nout = ws[0].shape[1]
    tm = _pick_tile_m(M, tile_m)
    Mp = _round_up(M, tm)
    xs_p = [jnp.pad(x, ((0, Mp - M), (0, 0))) if Mp != M else x for x in xs]

    in_specs = ([pl.BlockSpec((tm, x.shape[1]), lambda i: (i, 0)) for x in xs]
                + [pl.BlockSpec(w.shape, lambda i: (0, 0)) for w in ws]
                + [pl.BlockSpec((1, Nout), lambda i: (0, 0))])
    No = Nout // n_out
    if n_out == 1:
        out_shape = jax.ShapeDtypeStruct((Mp, Nout), out_dtype)
        out_specs = pl.BlockSpec((tm, Nout), lambda i: (i, 0))
    else:
        out_shape = tuple(jax.ShapeDtypeStruct((Mp, No), out_dtype)
                          for _ in range(n_out))
        out_specs = tuple(pl.BlockSpec((tm, No), lambda i: (i, 0))
                          for _ in range(n_out))

    outs = pl.pallas_call(
        functools.partial(_fused_matmul_kernel, n_in=n_in, n_out=n_out, relu=relu),
        out_shape=out_shape,
        grid=(Mp // tm,),
        in_specs=in_specs,
        out_specs=out_specs,
        compiler_params=pltpu.CompilerParams(
            dimension_semantics=("parallel",), vmem_limit_bytes=_VMEM_LIMIT),
    )(*xs_p, *ws, b)

    if n_out == 1:
        return outs[:M] if Mp != M else outs
    return tuple((o[:M] if Mp != M else o) for o in outs)


# --------------------------------------------------------------------------
# ngram 'same' conv + ReLU fused with the char-BiLSTM input projection.
# No im2col: k shifted views of the padded char embedding are read directly
# via row-offset index maps.  Outputs = gate pre-activations (bf16) for both
# directions, shape (C, Mp, 4*Hc) each.
# --------------------------------------------------------------------------
def _conv_gates_kernel(*refs, k):
    xs = refs[:k]
    ws = refs[k:2 * k]
    cb_ref, wf_ref, wb_ref, bgf_ref, bgb_ref, outf_ref, outb_ref = refs[2 * k:]

    acc = cb_ref[...].astype(jnp.float32)
    for x_ref, w_ref in zip(xs, ws):
        acc = acc + jnp.dot(x_ref[0], w_ref[...],
                            preferred_element_type=jnp.float32)
    feat = jnp.maximum(acc, 0.0).astype(wf_ref.dtype)              # ReLU, bf16
    outf_ref[0] = (jnp.dot(feat, wf_ref[...], preferred_element_type=jnp.float32)
                   + bgf_ref[...]).astype(outf_ref.dtype)
    outb_ref[0] = (jnp.dot(feat, wb_ref[...], preferred_element_type=jnp.float32)
                   + bgb_ref[...]).astype(outb_ref.dtype)


def conv_char_gates(char_emb_tm, conv_w, conv_b, wih_f, wih_b, bg_f, bg_b,
                    *, ngram, tile_m=512):
    C, M, E = char_emb_tm.shape
    G = wih_f.shape[1]
    tm = _pick_tile_m(M, tile_m)
    Mp = _round_up(M, tm)
    pad_l = (ngram - 1) // 2
    pad_r = ngram - 1 - pad_l
    xp = jnp.pad(char_emb_tm, ((pad_l, pad_r), (0, Mp - M), (0, 0)))
    w_taps = [conv_w[j * E:(j + 1) * E] for j in range(ngram)]

    in_specs = (
        [pl.BlockSpec((1, tm, E), lambda m, c, j=j: (c + j, m, 0))
         for j in range(ngram)]
        + [pl.BlockSpec(w.shape, lambda m, c: (0, 0)) for w in w_taps]
        + [pl.BlockSpec(conv_b.shape, lambda m, c: (0, 0)),
           pl.BlockSpec(wih_f.shape, lambda m, c: (0, 0)),
           pl.BlockSpec(wih_b.shape, lambda m, c: (0, 0)),
           pl.BlockSpec(bg_f.shape, lambda m, c: (0, 0)),
           pl.BlockSpec(bg_b.shape, lambda m, c: (0, 0))])

    gx_f, gx_b = pl.pallas_call(
        functools.partial(_conv_gates_kernel, k=ngram),
        out_shape=(jax.ShapeDtypeStruct((C, Mp, G), jnp.bfloat16),
                   jax.ShapeDtypeStruct((C, Mp, G), jnp.bfloat16)),
        grid=(Mp // tm, C),
        in_specs=in_specs,
        out_specs=(pl.BlockSpec((1, tm, G), lambda m, c: (c, m, 0)),
                   pl.BlockSpec((1, tm, G), lambda m, c: (c, m, 0))),
        compiler_params=pltpu.CompilerParams(
            dimension_semantics=("parallel", "parallel"),
            vmem_limit_bytes=_VMEM_LIMIT),
    )(*([xp] * ngram), *w_taps, conv_b, wih_f, wih_b, bg_f, bg_b)
    return gx_f, gx_b, Mp


# --------------------------------------------------------------------------
# Fused bidirectional LSTM recurrence with precomputed (hoisted) input
# projections, time-blocked grid, resident lengths, split per-direction bf16
# recurrent matmuls, per-direction h/c scratch.
# --------------------------------------------------------------------------
def _bilstm_steps(gxf_ref, gxb_ref, len_ref, whhf_ref, whhb_ref,
                  hf_sc, cf_sc, hb_sc, cb_sc, *, hd, tb_steps, t_total, emit):
    tb = pl.program_id(1)

    @pl.when(tb == 0)
    def _():
        hf_sc[...] = jnp.zeros_like(hf_sc)
        cf_sc[...] = jnp.zeros_like(cf_sc)
        hb_sc[...] = jnp.zeros_like(hb_sc)
        cb_sc[...] = jnp.zeros_like(cb_sc)

    lens = len_ref[...]                                    # (rows, 1) int32
    t0 = tb * tb_steps

    def one_dir(gates, h_sc, c_sc, valid):
        i = jax.nn.sigmoid(gates[:, 0 * hd:1 * hd])
        f = jax.nn.sigmoid(gates[:, 1 * hd:2 * hd])
        g = jnp.tanh(gates[:, 2 * hd:3 * hd])
        o = jax.nn.sigmoid(gates[:, 3 * hd:4 * hd])
        c_new = f * c_sc[...] + i * g
        h_new = o * jnp.tanh(c_new)
        h_sc[...] = jnp.where(valid, h_new, h_sc[...])
        c_sc[...] = jnp.where(valid, c_new, c_sc[...])
        return h_new

    for s in range(tb_steps):
        t_f = t0 + s
        t_b = (t_total - 1) - t_f

        gf = gxf_ref[s].astype(jnp.float32) + jnp.dot(
            hf_sc[...].astype(whhf_ref.dtype), whhf_ref[...],
            preferred_element_type=jnp.float32)
        gb = gxb_ref[tb_steps - 1 - s].astype(jnp.float32) + jnp.dot(
            hb_sc[...].astype(whhb_ref.dtype), whhb_ref[...],
            preferred_element_type=jnp.float32)

        vf = lens > t_f
        vb = lens > t_b
        hf_new = one_dir(gf, hf_sc, cf_sc, vf)
        hb_new = one_dir(gb, hb_sc, cb_sc, vb)
        if emit is not None:
            emit(s, hf_new, hb_new, vf, vb)


def _bilstm_final_kernel(gxf_ref, gxb_ref, len_ref, whhf_ref, whhb_ref,
                         hfin_ref, hf_sc, cf_sc, hb_sc, cb_sc,
                         *, hd, tb_steps, t_total):
    _bilstm_steps(gxf_ref, gxb_ref, len_ref, whhf_ref, whhb_ref,
                  hf_sc, cf_sc, hb_sc, cb_sc,
                  hd=hd, tb_steps=tb_steps, t_total=t_total, emit=None)

    @pl.when(pl.program_id(1) == pl.num_programs(1) - 1)
    def _():
        hfin_ref[:, :hd] = hf_sc[...]
        hfin_ref[:, hd:] = hb_sc[...]


def _bilstm_seq_kernel(gxf_ref, gxb_ref, len_ref, whhf_ref, whhb_ref,
                       outf_ref, outb_ref, hf_sc, cf_sc, hb_sc, cb_sc,
                       *, hd, tb_steps, t_total):
    def emit(s, hf_new, hb_new, vf, vb):
        outf_ref[s] = jnp.where(vf, hf_new, 0.0).astype(outf_ref.dtype)
        outb_ref[tb_steps - 1 - s] = jnp.where(vb, hb_new, 0.0).astype(outb_ref.dtype)

    _bilstm_steps(gxf_ref, gxb_ref, len_ref, whhf_ref, whhb_ref,
                  hf_sc, cf_sc, hb_sc, cb_sc,
                  hd=hd, tb_steps=tb_steps, t_total=t_total, emit=emit)


def _bilstm_prep(gx_f, gx_b):
    T, N, _ = gx_f.shape
    TB = _pick_time_block(T)
    Tp = _round_up(T, TB)
    if Tp != T:
        pad = ((0, Tp - T), (0, 0), (0, 0))
        gx_f = jnp.pad(gx_f, pad)
        gx_b = jnp.pad(gx_b, pad)
    nb = _num_batch_chunks(N)
    rows = N // nb
    Tb = Tp // TB
    return gx_f, gx_b, TB, Tp, Tb, nb, rows


def _bilstm_in_specs(TB, Tb, rows, hd, whh_f, whh_b):
    return [
        pl.BlockSpec((TB, rows, 4 * hd), lambda b, t: (t, b, 0)),
        pl.BlockSpec((TB, rows, 4 * hd), lambda b, t: (Tb - 1 - t, b, 0)),
        pl.BlockSpec((rows, 1), lambda b, t: (b, 0)),
        pl.BlockSpec(whh_f.shape, lambda b, t: (0, 0)),
        pl.BlockSpec(whh_b.shape, lambda b, t: (0, 0)),
    ]


def bilstm_final(gx_f, gx_b, lens, whh_f, whh_b, hd):
    """Returns only the concatenated final states (N, 2*hd), f32."""
    N = gx_f.shape[1]
    gx_f, gx_b, TB, Tp, Tb, nb, rows = _bilstm_prep(gx_f, gx_b)
    scratch = [pltpu.VMEM((rows, hd), jnp.float32) for _ in range(4)]
    return pl.pallas_call(
        functools.partial(_bilstm_final_kernel, hd=hd, tb_steps=TB, t_total=Tp),
        out_shape=jax.ShapeDtypeStruct((N, 2 * hd), jnp.float32),
        grid=(nb, Tb),
        in_specs=_bilstm_in_specs(TB, Tb, rows, hd, whh_f, whh_b),
        out_specs=pl.BlockSpec((rows, 2 * hd), lambda b, t: (b, 0)),
        scratch_shapes=scratch,
        compiler_params=pltpu.CompilerParams(
            dimension_semantics=("parallel", "arbitrary")),
    )(gx_f, gx_b, lens, whh_f, whh_b)


def bilstm_seq(gx_f, gx_b, lens, whh_f, whh_b, hd):
    """Returns per-step outputs (fwd, bwd), each (T, N, hd) bf16, time-major."""
    T, N, _ = gx_f.shape
    gx_f, gx_b, TB, Tp, Tb, nb, rows = _bilstm_prep(gx_f, gx_b)
    scratch = [pltpu.VMEM((rows, hd), jnp.float32) for _ in range(4)]
    o_f, o_b = pl.pallas_call(
        functools.partial(_bilstm_seq_kernel, hd=hd, tb_steps=TB, t_total=Tp),
        out_shape=(jax.ShapeDtypeStruct((Tp, N, hd), jnp.bfloat16),
                   jax.ShapeDtypeStruct((Tp, N, hd), jnp.bfloat16)),
        grid=(nb, Tb),
        in_specs=_bilstm_in_specs(TB, Tb, rows, hd, whh_f, whh_b),
        out_specs=(pl.BlockSpec((TB, rows, hd), lambda b, t: (t, b, 0)),
                   pl.BlockSpec((TB, rows, hd), lambda b, t: (Tb - 1 - t, b, 0))),
        scratch_shapes=scratch,
        compiler_params=pltpu.CompilerParams(
            dimension_semantics=("parallel", "arbitrary")),
    )(gx_f, gx_b, lens, whh_f, whh_b)
    if Tp != T:
        o_f, o_b = o_f[:T], o_b[:T]
    return o_f, o_b


# --------------------------------------------------------------------------
# Fused MLP head: downsample mlp(3H,H,2) + residual add + ResidualMLP(H,2).
# --------------------------------------------------------------------------
def _head_kernel(nc_ref, cf_ref, cb_ref,
                 w1a_ref, w1b_ref, w1c_ref, b1_ref, w2_ref, b2_ref,
                 p1_ref, pb1_ref, p2_ref, pb2_ref, o_ref):
    nc = nc_ref[...]
    d = (jnp.dot(nc.astype(w1a_ref.dtype), w1a_ref[...],
                 preferred_element_type=jnp.float32)
         + jnp.dot(cf_ref[...].astype(w1b_ref.dtype), w1b_ref[...],
                   preferred_element_type=jnp.float32)
         + jnp.dot(cb_ref[...].astype(w1c_ref.dtype), w1c_ref[...],
                   preferred_element_type=jnp.float32)
         + b1_ref[...])
    d = jnp.maximum(d, 0.0)
    d = jnp.dot(d.astype(w2_ref.dtype), w2_ref[...],
                preferred_element_type=jnp.float32) + b2_ref[...]
    y = d + nc
    y = y + jnp.maximum(
        jnp.dot(y.astype(p1_ref.dtype), p1_ref[...],
                preferred_element_type=jnp.float32) + pb1_ref[...], 0.0)
    y = y + jnp.maximum(
        jnp.dot(y.astype(p2_ref.dtype), p2_ref[...],
                preferred_element_type=jnp.float32) + pb2_ref[...], 0.0)
    o_ref[...] = y


def fused_head(nc, cf, cb, wp, *, tile_m=512):
    M, H = nc.shape
    tm = _pick_tile_m(M, tile_m)
    Mp = _round_up(M, tm)

    def padm(x):
        return jnp.pad(x, ((0, Mp - M), (0, 0))) if Mp != M else x

    weights = [wp["w1a"], wp["w1b"], wp["w1c"], wp["b1"], wp["w2"], wp["b2"],
               wp["p1"], wp["pb1"], wp["p2"], wp["pb2"]]
    out = pl.pallas_call(
        _head_kernel,
        out_shape=jax.ShapeDtypeStruct((Mp, H), jnp.float32),
        grid=(Mp // tm,),
        in_specs=([pl.BlockSpec((tm, H), lambda i: (i, 0))] * 3
                  + [pl.BlockSpec(w.shape, lambda i: (0, 0)) for w in weights]),
        out_specs=pl.BlockSpec((tm, H), lambda i: (i, 0)),
        compiler_params=pltpu.CompilerParams(
            dimension_semantics=("parallel",), vmem_limit_bytes=_VMEM_LIMIT),
    )(padm(nc), padm(cf), padm(cb), *weights)
    return out[:M] if Mp != M else out


# --------------------------------------------------------------------------
# Full encoder forward
# --------------------------------------------------------------------------
def encoder_forward(params, inputs, *, ngram):
    B, T, C = inputs.shape
    H = params["conv_w"].shape[1]
    Hc = H // 2
    M = B * T
    bf16 = lambda x: x.astype(jnp.bfloat16)

    token_lengths = (inputs != 0).sum(axis=-1).astype(jnp.int32)          # (B, T)
    sent_lengths = (token_lengths != 0).sum(axis=-1).astype(jnp.int32)    # (B,)

    # ---- packed / casted parameters (bf16 MXU operands, f32 biases/states) ----
    conv_w = bf16(params["conv_w"])
    wih_c_f, wih_c_b = bf16(params["c2t_f_wih"]), bf16(params["c2t_b_wih"])
    whh_c_f, whh_c_b = bf16(params["c2t_f_whh"]), bf16(params["c2t_b_whh"])
    wih1 = bf16(jnp.concatenate([params["ctx1_f_wih"], params["ctx1_b_wih"]], axis=1))
    b1 = jnp.concatenate([params["ctx1_f_b"], params["ctx1_b_b"]], axis=1)
    whh1_f, whh1_b = bf16(params["ctx1_f_whh"]), bf16(params["ctx1_b_whh"])
    wih2 = jnp.concatenate([params["ctx2_f_wih"], params["ctx2_b_wih"]], axis=1)   # (2H, 8H)
    wih2_top, wih2_bot = bf16(wih2[:H]), bf16(wih2[H:])
    b2 = jnp.concatenate([params["ctx2_f_b"], params["ctx2_b_b"]], axis=1)
    whh2_f, whh2_b = bf16(params["ctx2_f_whh"]), bf16(params["ctx2_b_whh"])
    head_w = {
        "w1a": bf16(params["ds_w1"][:H]), "w1b": bf16(params["ds_w1"][H:2 * H]),
        "w1c": bf16(params["ds_w1"][2 * H:]), "b1": params["ds_b1"],
        "w2": bf16(params["ds_w2"]), "b2": params["ds_b2"],
        "p1": bf16(params["proj_w1"]), "pb1": params["proj_b1"],
        "p2": bf16(params["proj_w2"]), "pb2": params["proj_b2"],
    }

    # ---- char embedding (bf16, time-major) ----
    char_emb = bf16(params["embedding"])[inputs].reshape(M, C, -1)        # (M, C, E)
    char_emb = jnp.transpose(char_emb, (1, 0, 2))                         # (C, M, E)

    # ---- ngram conv + ReLU fused with the char-BiLSTM input projection ----
    gxc_f, gxc_b, Mp = conv_char_gates(
        char_emb, conv_w, params["conv_b"], wih_c_f, wih_c_b,
        params["c2t_f_b"], params["c2t_b_b"], ngram=ngram)                # (C, Mp, 4Hc) bf16

    lens_char = jnp.pad(token_lengths.reshape(-1), (0, Mp - M)).reshape(Mp, 1)
    noncontextual = bilstm_final(gxc_f, gxc_b, lens_char,
                                 whh_c_f, whh_c_b, Hc)[:M]                # (M, H) f32

    # ---- context 2-layer BiLSTM over tokens (time-major) ----
    nc_tm = jnp.transpose(noncontextual.reshape(B, T, H), (1, 0, 2))      # (T, B, H)
    nc_tm2d = nc_tm.reshape(T * B, H)
    lens_ctx = sent_lengths.reshape(B, 1)

    gx1_f, gx1_b = fused_matmul([nc_tm2d], [wih1], b1, n_out=2,
                                out_dtype=jnp.bfloat16)
    o1f, o1b = bilstm_seq(gx1_f.reshape(T, B, 4 * H), gx1_b.reshape(T, B, 4 * H),
                          lens_ctx, whh1_f, whh1_b, H)                    # (T, B, H) bf16 x2

    gx2_f, gx2_b = fused_matmul([o1f.reshape(T * B, H), o1b.reshape(T * B, H)],
                                [wih2_top, wih2_bot], b2, n_out=2,
                                out_dtype=jnp.bfloat16)
    o2f, o2b = bilstm_seq(gx2_f.reshape(T, B, 4 * H), gx2_b.reshape(T, B, 4 * H),
                          lens_ctx, whh2_f, whh2_b, H)                    # (T, B, H) bf16 x2

    # ---- fused MLP head on time-major rows, then back to (batch, token) order ----
    tok_tm = fused_head(nc_tm2d, o2f.reshape(T * B, H), o2b.reshape(T * B, H), head_w)
    tok_emb = jnp.transpose(tok_tm.reshape(T, B, H), (1, 0, 2)).reshape(M, H)

    return tok_emb, token_lengths


# --------------------------------------------------------------------------
# Deterministic parameter construction
# --------------------------------------------------------------------------
def init_params(key, vocab, E, H, ngram):
    Hc = H // 2
    ks = jax.random.split(key, 32)
    n = iter(range(32))

    def w(shape, scale=0.1):
        return scale * jax.random.normal(ks[next(n)], shape, dtype=jnp.float32)

    emb = w((vocab, E))
    emb = emb.at[0].set(0.0)  # padding_idx=0
    return {
        "embedding": emb,
        "conv_w": w((ngram * E, H)), "conv_b": w((1, H)),
        # char -> token BiLSTM (hidden Hc per direction)
        "c2t_f_wih": w((H, 4 * Hc)), "c2t_f_whh": w((Hc, 4 * Hc)), "c2t_f_b": w((1, 4 * Hc)),
        "c2t_b_wih": w((H, 4 * Hc)), "c2t_b_whh": w((Hc, 4 * Hc)), "c2t_b_b": w((1, 4 * Hc)),
        # context BiLSTM layer 1 (input H)
        "ctx1_f_wih": w((H, 4 * H)), "ctx1_f_whh": w((H, 4 * H)), "ctx1_f_b": w((1, 4 * H)),
        "ctx1_b_wih": w((H, 4 * H)), "ctx1_b_whh": w((H, 4 * H)), "ctx1_b_b": w((1, 4 * H)),
        # context BiLSTM layer 2 (input 2H)
        "ctx2_f_wih": w((2 * H, 4 * H)), "ctx2_f_whh": w((H, 4 * H)), "ctx2_f_b": w((1, 4 * H)),
        "ctx2_b_wih": w((2 * H, 4 * H)), "ctx2_b_whh": w((H, 4 * H)), "ctx2_b_b": w((1, 4 * H)),
        # downsample mlp(3H, H, 2)
        "ds_w1": w((3 * H, H)), "ds_b1": w((1, H)),
        "ds_w2": w((H, H)), "ds_b2": w((1, H)),
        # ResidualMLP(H, 2)
        "proj_w1": w((H, H)), "proj_b1": w((1, H)),
        "proj_w2": w((H, H)), "proj_b2": w((1, H)),
    }


if __name__ == "__main__":
    key = jax.random.PRNGKey(0)
    B, T, C = 2, 6, 10            # batch, num_tokens, num_chars
    VOCAB, E, H, NGRAM = 20, 16, 32, 3

    kp, kx = jax.random.split(key)
    params = init_params(kp, VOCAB, E, H, NGRAM)

    # deterministic inputs with variable token / sentence lengths (0 = padding)
    tok_lengths = jnp.array([[5, 3, 7, 0, 0, 0],
                             [10, 2, 4, 6, 1, 0]], dtype=jnp.int32)
    vals = jax.random.randint(kx, (B, T, C), 1, VOCAB)
    char_pos = jnp.arange(C)[None, None, :]
    inputs = jnp.where(char_pos < tok_lengths[..., None], vals, 0).astype(jnp.int32)

    fwd = jax.jit(functools.partial(encoder_forward, ngram=NGRAM))
    all_tok_emb, token_lengths = fwd(params, inputs)

    # dynamic-shape gather of valid tokens (torch: token_embeddings[token_indices]);
    # done eagerly outside the kernels since TPU kernels need static shapes.
    token_indices = jnp.nonzero(token_lengths.reshape(-1) != 0)[0]
    token_embeddings = all_tok_emb[token_indices]

    jax.block_until_ready(token_embeddings)
    assert token_embeddings.shape == (int((tok_lengths != 0).sum()), H)
    print("KERNEL_OK")
</pallas_src>

<mosaic_0001>
module attributes {stable_mosaic.version = 11 : i64} {
  func.func @_conv_gates_kernel(%arg0: i32, %arg1: i32, %arg2: memref<1x16x16xbf16, #tpu.memory_space<vmem>>, %arg3: memref<1x16x16xbf16, #tpu.memory_space<vmem>>, %arg4: memref<1x16x16xbf16, #tpu.memory_space<vmem>>, %arg5: memref<16x32xbf16, #tpu.memory_space<vmem>>, %arg6: memref<16x32xbf16, #tpu.memory_space<vmem>>, %arg7: memref<16x32xbf16, #tpu.memory_space<vmem>>, %arg8: memref<1x32xf32, #tpu.memory_space<vmem>>, %arg9: memref<32x64xbf16, #tpu.memory_space<vmem>>, %arg10: memref<32x64xbf16, #tpu.memory_space<vmem>>, %arg11: memref<1x64xf32, #tpu.memory_space<vmem>>, %arg12: memref<1x64xf32, #tpu.memory_space<vmem>>, %arg13: memref<1x16x64xbf16, #tpu.memory_space<vmem>>, %arg14: memref<1x16x64xbf16, #tpu.memory_space<vmem>>) attributes {dimension_semantics = [#tpu.dimension_semantics<parallel>, #tpu.dimension_semantics<parallel>], iteration_bounds = array<i64: 1, 10>, scalar_prefetch = 0 : i64, scratch_operands = 0 : i64, tpu.core_type = #tpu.core_type<tc>, window_params = [{transform_indices = @transform_0, window_bounds = array<i64: 1, 16, 16>}, {transform_indices = @transform_1, window_bounds = array<i64: 1, 16, 16>}, {transform_indices = @transform_2, window_bounds = array<i64: 1, 16, 16>}, {pipeline_mode = #tpu.pipeline_mode<synchronous>, transform_indices = @transform_3, window_bounds = array<i64: 16, 32>}, {pipeline_mode = #tpu.pipeline_mode<synchronous>, transform_indices = @transform_4, window_bounds = array<i64: 16, 32>}, {pipeline_mode = #tpu.pipeline_mode<synchronous>, transform_indices = @transform_5, window_bounds = array<i64: 16, 32>}, {pipeline_mode = #tpu.pipeline_mode<synchronous>, transform_indices = @transform_6, window_bounds = array<i64: 1, 32>}, {pipeline_mode = #tpu.pipeline_mode<synchronous>, transform_indices = @transform_7, window_bounds = array<i64: 32, 64>}, {pipeline_mode = #tpu.pipeline_mode<synchronous>, transform_indices = @transform_8, window_bounds = array<i64: 32, 64>}, {pipeline_mode = #tpu.pipeline_mode<synchronous>, transform_indices = @transform_9, window_bounds = array<i64: 1, 64>}, {pipeline_mode = #tpu.pipeline_mode<synchronous>, transform_indices = @transform_10, window_bounds = array<i64: 1, 64>}, {transform_indices = @transform_11, window_bounds = array<i64: 1, 16, 64>}, {transform_indices = @transform_12, window_bounds = array<i64: 1, 16, 64>}]} {
    %c0 = arith.constant 0 : index
    %c0_0 = arith.constant 0 : index
    %0 = vector.load %arg8[%c0, %c0_0] : memref<1x32xf32, #tpu.memory_space<vmem>>, vector<1x32xf32>
    %c0_1 = arith.constant 0 : index
    %c0_2 = arith.constant 0 : index
    %c0_3 = arith.constant 0 : index
    %1 = vector.load %arg2[%c0_1, %c0_2, %c0_3] : memref<1x16x16xbf16, #tpu.memory_space<vmem>>, vector<1x16x16xbf16>
    %2 = vector.shape_cast %1 : vector<1x16x16xbf16> to vector<16x16xbf16>
    %c0_4 = arith.constant 0 : index
    %c0_5 = arith.constant 0 : index
    %3 = vector.load %arg5[%c0_4, %c0_5] : memref<16x32xbf16, #tpu.memory_space<vmem>>, vector<16x32xbf16>
    %cst = arith.constant dense<0.000000e+00> : vector<16x32xf32>
    %4 = tpu.matmul %2, %3, %cst {dimension_numbers = #tpu.dot_dimension_numbers<[1], [0], [0], [1], [0, 0, 1, 1], [], []>} : vector<16x16xbf16>, vector<16x32xbf16>, vector<16x32xf32> -> vector<16x32xf32>
    %5 = vector.broadcast %0 : vector<1x32xf32> to vector<16x32xf32>
    %6 = arith.addf %5, %4 : vector<16x32xf32>
    %c0_6 = arith.constant 0 : index
    %c0_7 = arith.constant 0 : index
    %c0_8 = arith.constant 0 : index
    %7 = vector.load %arg3[%c0_6, %c0_7, %c0_8] : memref<1x16x16xbf16, #tpu.memory_space<vmem>>, vector<1x16x16xbf16>
    %8 = vector.shape_cast %7 : vector<1x16x16xbf16> to vector<16x16xbf16>
    %c0_9 = arith.constant 0 : index
    %c0_10 = arith.constant 0 : index
    %9 = vector.load %arg6[%c0_9, %c0_10] : memref<16x32xbf16, #tpu.memory_space<vmem>>, vector<16x32xbf16>
    %cst_11 = arith.constant dense<0.000000e+00> : vector<16x32xf32>
    %10 = tpu.matmul %8, %9, %cst_11 {dimension_numbers = #tpu.dot_dimension_numbers<[1], [0], [0], [1], [0, 0, 1, 1], [], []>} : vector<16x16xbf16>, vector<16x32xbf16>, vector<16x32xf32> -> vector<16x32xf32>
    %11 = arith.addf %6, %10 : vector<16x32xf32>
    %c0_12 = arith.constant 0 : index
    %c0_13 = arith.constant 0 : index
    %c0_14 = arith.constant 0 : index
    %12 = vector.load %arg4[%c0_12, %c0_13, %c0_14] : memref<1x16x16xbf16, #tpu.memory_space<vmem>>, vector<1x16x16xbf16>
    %13 = vector.shape_cast %12 : vector<1x16x16xbf16> to vector<16x16xbf16>
    %c0_15 = arith.constant 0 : index
    %c0_16 = arith.constant 0 : index
    %14 = vector.load %arg7[%c0_15, %c0_16] : memref<16x32xbf16, #tpu.memory_space<vmem>>, vector<16x32xbf16>
    %cst_17 = arith.constant dense<0.000000e+00> : vector<16x32xf32>
    %15 = tpu.matmul %13, %14, %cst_17 {dimension_numbers = #tpu.dot_dimension_numbers<[1], [0], [0], [1], [0, 0, 1, 1], [], []>} : vector<16x16xbf16>, vector<16x32xbf16>, vector<16x32xf32> -> vector<16x32xf32>
    %16 = arith.addf %11, %15 : vector<16x32xf32>
    %cst_18 = arith.constant 0.000000e+00 : f32
    %17 = vector.broadcast %cst_18 : f32 to vector<16x32xf32>
    %18 = arith.maximumf %16, %17 : vector<16x32xf32>
    %19 = arith.truncf %18 : vector<16x32xf32> to vector<16x32xbf16>
    %c0_19 = arith.constant 0 : index
    %c0_20 = arith.constant 0 : index
    %20 = vector.load %arg9[%c0_19, %c0_20] : memref<32x64xbf16, #tpu.memory_space<vmem>>, vector<32x64xbf16>
    %cst_21 = arith.constant dense<0.000000e+00> : vector<16x64xf32>
    %21 = tpu.matmul %19, %20, %cst_21 {dimension_numbers = #tpu.dot_dimension_numbers<[1], [0], [0], [1], [0, 0, 1, 1], [], []>} : vector<16x32xbf16>, vector<32x64xbf16>, vector<16x64xf32> -> vector<16x64xf32>
    %c0_22 = arith.constant 0 : index
    %c0_23 = arith.constant 0 : index
    %22 = vector.load %arg11[%c0_22, %c0_23] : memref<1x64xf32, #tpu.memory_space<vmem>>, vector<1x64xf32>
    %23 = vector.broadcast %22 : vector<1x64xf32> to vector<16x64xf32>
    %24 = arith.addf %21, %23 : vector<16x64xf32>
    %25 = arith.truncf %24 : vector<16x64xf32> to vector<16x64xbf16>
    %c0_24 = arith.constant 0 : index
    %c0_25 = arith.constant 0 : index
    %c0_26 = arith.constant 0 : index
    %26 = vector.load %arg13[%c0_24, %c0_25, %c0_26] : memref<1x16x64xbf16, #tpu.memory_space<vmem>>, vector<1x16x64xbf16>
    %27 = vector.shape_cast %26 : vector<1x16x64xbf16> to vector<16x64xbf16>
    %28 = vector.shape_cast %25 : vector<16x64xbf16> to vector<1x16x64xbf16>
    tpu.vector_store %arg13[%c0_24, %c0_25, %c0_26], %28 {strides = array<i32>} : memref<1x16x64xbf16, #tpu.memory_space<vmem>>, vector<1x16x64xbf16>,
    %c0_27 = arith.constant 0 : index
    %c0_28 = arith.constant 0 : index
    %29 = vector.load %arg10[%c0_27, %c0_28] : memref<32x64xbf16, #tpu.memory_space<vmem>>, vector<32x64xbf16>
    %cst_29 = arith.constant dense<0.000000e+00> : vector<16x64xf32>
    %30 = tpu.matmul %19, %29, %cst_29 {dimension_numbers = #tpu.dot_dimension_numbers<[1], [0], [0], [1], [0, 0, 1, 1], [], []>} : vector<16x32xbf16>, vector<32x64xbf16>, vector<16x64xf32> -> vector<16x64xf32>
    %c0_30 = arith.constant 0 : index
    %c0_31 = arith.constant 0 : index
    %31 = vector.load %arg12[%c0_30, %c0_31] : memref<1x64xf32, #tpu.memory_space<vmem>>, vector<1x64xf32>
    %32 = vector.broadcast %31 : vector<1x64xf32> to vector<16x64xf32>
    %33 = arith.addf %30, %32 : vector<16x64xf32>
    %34 = arith.truncf %33 : vector<16x64xf32> to vector<16x64xbf16>
    %c0_32 = arith.constant 0 : index
    %c0_33 = arith.constant 0 : index
    %c0_34 = arith.constant 0 : index
    %35 = vector.load %arg14[%c0_32, %c0_33, %c0_34] : memref<1x16x64xbf16, #tpu.memory_space<vmem>>, vector<1x16x64xbf16>
    %36 = vector.shape_cast %35 : vector<1x16x64xbf16> to vector<16x64xbf16>
    %37 = vector.shape_cast %34 : vector<16x64xbf16> to vector<1x16x64xbf16>
    tpu.vector_store %arg14[%c0_32, %c0_33, %c0_34], %37 {strides = array<i32>} : memref<1x16x64xbf16, #tpu.memory_space<vmem>>, vector<1x16x64xbf16>,
    return
  }
  func.func @transform_0(%arg0: i32, %arg1: i32) -> (i32, i32, i32) {
    %c0_i32 = arith.constant 0 : i32
    %0 = arith.addi %arg1, %c0_i32 : i32
    %c0_i32_0 = arith.constant 0 : i32
    %c0_i32_1 = arith.constant 0 : i32
    return %0, %arg0, %c0_i32_0 : i32, i32, i32
  }
  func.func @transform_1(%arg0: i32, %arg1: i32) -> (i32, i32, i32) {
    %c1_i32 = arith.constant 1 : i32
    %0 = arith.addi %arg1, %c1_i32 : i32
    %c0_i32 = arith.constant 0 : i32
    %c0_i32_0 = arith.constant 0 : i32
    return %0, %arg0, %c0_i32 : i32, i32, i32
  }
  func.func @transform_2(%arg0: i32, %arg1: i32) -> (i32, i32, i32) {
    %c2_i32 = arith.constant 2 : i32
    %0 = arith.addi %arg1, %c2_i32 : i32
    %c0_i32 = arith.constant 0 : i32
    %c0_i32_0 = arith.constant 0 : i32
    return %0, %arg0, %c0_i32 : i32, i32, i32
  }
  func.func @transform_3(%arg0: i32, %arg1: i32) -> (i32, i32) {
    %c0_i32 = arith.constant 0 : i32
    %c0_i32_0 = arith.constant 0 : i32
    %c0_i32_1 = arith.constant 0 : i32
    return %c0_i32, %c0_i32_0 : i32, i32
  }
  func.func @transform_4(%arg0: i32, %arg1: i32) -> (i32, i32) {
    %c0_i32 = arith.constant 0 : i32
    %c0_i32_0 = arith.constant 0 : i32
    %c0_i32_1 = arith.constant 0 : i32
    return %c0_i32, %c0_i32_0 : i32, i32
  }
  func.func @transform_5(%arg0: i32, %arg1: i32) -> (i32, i32) {
    %c0_i32 = arith.constant 0 : i32
    %c0_i32_0 = arith.constant 0 : i32
    %c0_i32_1 = arith.constant 0 : i32
    return %c0_i32, %c0_i32_0 : i32, i32
  }
  func.func @transform_6(%arg0: i32, %arg1: i32) -> (i32, i32) {
    %c0_i32 = arith.constant 0 : i32
    %c0_i32_0 = arith.constant 0 : i32
    %c0_i32_1 = arith.constant 0 : i32
    return %c0_i32, %c0_i32_0 : i32, i32
  }
  func.func @transform_7(%arg0: i32, %arg1: i32) -> (i32, i32) {
    %c0_i32 = arith.constant 0 : i32
    %c0_i32_0 = arith.constant 0 : i32
    %c0_i32_1 = arith.constant 0 : i32
    return %c0_i32, %c0_i32_0 : i32, i32
  }
  func.func @transform_8(%arg0: i32, %arg1: i32) -> (i32, i32) {
    %c0_i32 = arith.constant 0 : i32
    %c0_i32_0 = arith.constant 0 : i32
    %c0_i32_1 = arith.constant 0 : i32
    return %c0_i32, %c0_i32_0 : i32, i32
  }
  func.func @transform_9(%arg0: i32, %arg1: i32) -> (i32, i32) {
    %c0_i32 = arith.constant 0 : i32
    %c0_i32_0 = arith.constant 0 : i32
    %c0_i32_1 = arith.constant 0 : i32
    return %c0_i32, %c0_i32_0 : i32, i32
  }
  func.func @transform_10(%arg0: i32, %arg1: i32) -> (i32, i32) {
    %c0_i32 = arith.constant 0 : i32
    %c0_i32_0 = arith.constant 0 : i32
    %c0_i32_1 = arith.constant 0 : i32
    return %c0_i32, %c0_i32_0 : i32, i32
  }
  func.func @transform_11(%arg0: i32, %arg1: i32) -> (i32, i32, i32) {
    %c0_i32 = arith.constant 0 : i32
    %c0_i32_0 = arith.constant 0 : i32
    return %arg1, %arg0, %c0_i32 : i32, i32, i32
  }
  func.func @transform_12(%arg0: i32, %arg1: i32) -> (i32, i32, i32) {
    %c0_i32 = arith.constant 0 : i32
    %c0_i32_0 = arith.constant 0 : i32
    return %arg1, %arg0, %c0_i32 : i32, i32, i32
  }
}

module attributes {stable_mosaic.version = 11 : i64} {
  func.func @_bilstm_final_kernel(%arg0: i32, %arg1: i32, %arg2: memref<5x16x64xbf16, #tpu.memory_space<vmem>>, %arg3: memref<5x16x64xbf16, #tpu.memory_space<vmem>>, %arg4: memref<16x1xi32, #tpu.memory_space<vmem>>, %arg5: memref<16x64xbf16, #tpu.memory_space<vmem>>, %arg6: memref<16x64xbf16, #tpu.memory_space<vmem>>, %arg7: memref<16x32xf32, #tpu.memory_space<vmem>>, %arg8: memref<16x16xf32, #tpu.memory_space<vmem>>, %arg9: memref<16x16xf32, #tpu.memory_space<vmem>>, %arg10: memref<16x16xf32, #tpu.memory_space<vmem>>, %arg11: memref<16x16xf32, #tpu.memory_space<vmem>>) attributes {dimension_semantics = [#tpu.dimension_semantics<parallel>, #tpu.dimension_semantics<arbitrary>], iteration_bounds = array<i64: 1, 2>, scalar_prefetch = 0 : i64, scratch_operands = 4 : i64, tpu.core_type = #tpu.core_type<tc>, window_params = [{transform_indices = @transform_0, window_bounds = array<i64: 5, 16, 64>}, {transform_indices = @transform_1, window_bounds = array<i64: 5, 16, 64>}, {transform_indices = @transform_2, window_bounds = array<i64: 16, 1>}, {pipeline_mode = #tpu.pipeline_mode<synchronous>, transform_indices = @transform_3, window_bounds = array<i64: 16, 64>}, {pipeline_mode = #tpu.pipeline_mode<synchronous>, transform_indices = @transform_4, window_bounds = array<i64: 16, 64>}, {transform_indices = @transform_5, window_bounds = array<i64: 16, 32>}]} {
    %c0_i32 = arith.constant 0 : i32
    %0 = arith.cmpi eq, %arg1, %c0_i32 : i32
    %1 = arith.extui %0 : i1 to i32
    %c0_i32_0 = arith.constant 0 : i32
    %2 = arith.cmpi ne, %1, %c0_i32_0 : i32
    scf.if %2 {
      %cst_214 = arith.constant 0.000000e+00 : f32
      %478 = vector.broadcast %cst_214 : f32 to vector<16x16xf32>
      %c0_215 = arith.constant 0 : index
      %c0_216 = arith.constant 0 : index
      %479 = vector.load %arg8[%c0_215, %c0_216] : memref<16x16xf32, #tpu.memory_space<vmem>>, vector<16x16xf32>
      tpu.vector_store %arg8[%c0_215, %c0_216], %478 {strides = array<i32>} : memref<16x16xf32, #tpu.memory_space<vmem>>, vector<16x16xf32>,
      %cst_217 = arith.constant 0.000000e+00 : f32
      %480 = vector.broadcast %cst_217 : f32 to vector<16x16xf32>
      %c0_218 = arith.constant 0 : index
      %c0_219 = arith.constant 0 : index
      %481 = vector.load %arg9[%c0_218, %c0_219] : memref<16x16xf32, #tpu.memory_space<vmem>>, vector<16x16xf32>
      tpu.vector_store %arg9[%c0_218, %c0_219], %480 {strides = array<i32>} : memref<16x16xf32, #tpu.memory_space<vmem>>, vector<16x16xf32>,
      %cst_220 = arith.constant 0.000000e+00 : f32
      %482 = vector.broadcast %cst_220 : f32 to vector<16x16xf32>
      %c0_221 = arith.constant 0 : index
      %c0_222 = arith.constant 0 : index
      %483 = vector.load %arg10[%c0_221, %c0_222] : memref<16x16xf32, #tpu.memory_space<vmem>>, vector<16x16xf32>
      tpu.vector_store %arg10[%c0_221, %c0_222], %482 {strides = array<i32>} : memref<16x16xf32, #tpu.memory_space<vmem>>, vector<16x16xf32>,
      %cst_223 = arith.constant 0.000000e+00 : f32
      %484 = vector.broadcast %cst_223 : f32 to vector<16x16xf32>
      %c0_224 = arith.constant 0 : index
      %c0_225 = arith.constant 0 : index
      %485 = vector.load %arg11[%c0_224, %c0_225] : memref<16x16xf32, #tpu.memory_space<vmem>>, vector<16x16xf32>
      tpu.vector_store %arg11[%c0_224, %c0_225], %484 {strides = array<i32>} : memref<16x16xf32, #tpu.memory_space<vmem>>, vector<16x16xf32>,
    } else {
    }
    %c0 = arith.constant 0 : index
    %c0_1 = arith.constant 0 : index
    %3 = vector.load %arg4[%c0, %c0_1] : memref<16x1xi32, #tpu.memory_space<vmem>>, vector<16x1xi32>
    %c5_i32 = arith.constant 5 : i32
    %4 = arith.muli %arg1, %c5_i32 : i32
    %c0_i32_2 = arith.constant 0 : i32
    %5 = arith.addi %4, %c0_i32_2 : i32
    %c9_i32 = arith.constant 9 : i32
    %6 = arith.subi %c9_i32, %5 : i32
    %c0_3 = arith.constant 0 : index
    %c0_4 = arith.constant 0 : index
    %c0_5 = arith.constant 0 : index
    %7 = vector.load %arg2[%c0_3, %c0_4, %c0_5] : memref<5x16x64xbf16, #tpu.memory_space<vmem>>, vector<1x16x64xbf16>
    %8 = vector.shape_cast %7 : vector<1x16x64xbf16> to vector<16x64xbf16>
    %9 = arith.extf %8 : vector<16x64xbf16> to vector<16x64xf32>
    %c0_6 = arith.constant 0 : index
    %c0_7 = arith.constant 0 : index
    %10 = vector.load %arg8[%c0_6, %c0_7] : memref<16x16xf32, #tpu.memory_space<vmem>>, vector<16x16xf32>
    %11 = arith.truncf %10 : vector<16x16xf32> to vector<16x16xbf16>
    %c0_8 = arith.constant 0 : index
    %c0_9 = arith.constant 0 : index
    %12 = vector.load %arg5[%c0_8, %c0_9] : memref<16x64xbf16, #tpu.memory_space<vmem>>, vector<16x64xbf16>
    %cst = arith.constant dense<0.000000e+00> : vector<16x64xf32>
    %13 = tpu.matmul %11, %12, %cst {dimension_numbers = #tpu.dot_dimension_numbers<[1], [0], [0], [1], [0, 0, 1, 1], [], []>} : vector<16x16xbf16>, vector<16x64xbf16>, vector<16x64xf32> -> vector<16x64xf32>
    %14 = arith.addf %9, %13 : vector<16x64xf32>
    %c4 = arith.constant 4 : index
    %c0_10 = arith.constant 0 : index
    %c0_11 = arith.constant 0 : index
    %15 = vector.load %arg3[%c4, %c0_10, %c0_11] : memref<5x16x64xbf16, #tpu.memory_space<vmem>>, vector<1x16x64xbf16>
    %16 = vector.shape_cast %15 : vector<1x16x64xbf16> to vector<16x64xbf16>
    %17 = arith.extf %16 : vector<16x64xbf16> to vector<16x64xf32>
    %c0_12 = arith.constant 0 : index
    %c0_13 = arith.constant 0 : index
    %18 = vector.load %arg10[%c0_12, %c0_13] : memref<16x16xf32, #tpu.memory_space<vmem>>, vector<16x16xf32>
    %19 = arith.truncf %18 : vector<16x16xf32> to vector<16x16xbf16>
    %c0_14 = arith.constant 0 : index
    %c0_15 = arith.constant 0 : index
    %20 = vector.load %arg6[%c0_14, %c0_15] : memref<16x64xbf16, #tpu.memory_space<vmem>>, vector<16x64xbf16>
    %cst_16 = arith.constant dense<0.000000e+00> : vector<16x64xf32>
    %21 = tpu.matmul %19, %20, %cst_16 {dimension_numbers = #tpu.dot_dimension_numbers<[1], [0], [0], [1], [0, 0, 1, 1], [], []>} : vector<16x16xbf16>, vector<16x64xbf16>, vector<16x64xf32> -> vector<16x64xf32>
    %22 = arith.addf %17, %21 : vector<16x64xf32>
    %23 = vector.broadcast %5 : i32 to vector<16x1xi32>
    %24 = arith.cmpi sgt, %3, %23 : vector<16x1xi32>
    %25 = vector.broadcast %6 : i32 to vector<16x1xi32>
    %26 = arith.cmpi sgt, %3, %25 : vector<16x1xi32>
    %27 = vector.extract_strided_slice %14 {offsets = [0, 0], sizes = [16, 16], strides = [1, 1]} : vector<16x64xf32> to vector<16x16xf32>
    %28 = arith.negf %27 : vector<16x16xf32>
    %29 = math.exp %28 : vector<16x16xf32>
    %cst_17 = arith.constant 1.000000e+00 : f32
    %30 = vector.broadcast %cst_17 : f32 to vector<16x16xf32>
    %31 = arith.addf %30, %29 : vector<16x16xf32>
    %32 = arith.divf %30, %31 : vector<16x16xf32>
    %33 = vector.extract_strided_slice %14 {offsets = [0, 16], sizes = [16, 16], strides = [1, 1]} : vector<16x64xf32> to vector<16x16xf32>
    %34 = arith.negf %33 : vector<16x16xf32>
    %35 = math.exp %34 : vector<16x16xf32>
    %cst_18 = arith.constant 1.000000e+00 : f32
    %36 = vector.broadcast %cst_18 : f32 to vector<16x16xf32>
    %37 = arith.addf %36, %35 : vector<16x16xf32>
    %38 = arith.divf %36, %37 : vector<16x16xf32>
    %39 = vector.extract_strided_slice %14 {offsets = [0, 32], sizes = [16, 16], strides = [1, 1]} : vector<16x64xf32> to vector<16x16xf32>
    %40 = math.tanh %39 : vector<16x16xf32>
    %41 = vector.extract_strided_slice %14 {offsets = [0, 48], sizes = [16, 16], strides = [1, 1]} : vector<16x64xf32> to vector<16x16xf32>
    %42 = arith.negf %41 : vector<16x16xf32>
    %43 = math.exp %42 : vector<16x16xf32>
    %cst_19 = arith.constant 1.000000e+00 : f32
    %44 = vector.broadcast %cst_19 : f32 to vector<16x16xf32>
    %45 = arith.addf %44, %43 : vector<16x16xf32>
    %46 = arith.divf %44, %45 : vector<16x16xf32>
    %c0_20 = arith.constant 0 : index
    %c0_21 = arith.constant 0 : index
    %47 = vector.load %arg9[%c0_20, %c0_21] : memref<16x16xf32, #tpu.memory_space<vmem>>, vector<16x16xf32>
    %48 = arith.mulf %38, %47 : vector<16x16xf32>
    %49 = arith.mulf %32, %40 : vector<16x16xf32>
    %50 = arith.addf %48, %49 : vector<16x16xf32>
    %51 = math.tanh %50 : vector<16x16xf32>
    %52 = arith.mulf %46, %51 : vector<16x16xf32>
    %c0_22 = arith.constant 0 : index
    %c0_23 = arith.constant 0 : index
    %53 = vector.load %arg8[%c0_22, %c0_23] : memref<16x16xf32, #tpu.memory_space<vmem>>, vector<16x16xf32>
    %54 = vector.shape_cast %24 : vector<16x1xi1> to vector<16x1xi1>
    %55 = vector.broadcast %54 : vector<16x1xi1> to vector<16x16xi1>
    %56 = arith.select %55, %52, %53 : vector<16x16xi1>, vector<16x16xf32>
    %c0_24 = arith.constant 0 : index
    %c0_25 = arith.constant 0 : index
    %57 = vector.load %arg8[%c0_24, %c0_25] : memref<16x16xf32, #tpu.memory_space<vmem>>, vector<16x16xf32>
    tpu.vector_store %arg8[%c0_24, %c0_25], %56 {strides = array<i32>} : memref<16x16xf32, #tpu.memory_space<vmem>>, vector<16x16xf32>,
    %c0_26 = arith.constant 0 : index
    %c0_27 = arith.constant 0 : index
    %58 = vector.load %arg9[%c0_26, %c0_27] : memref<16x16xf32, #tpu.memory_space<vmem>>, vector<16x16xf32>
    %59 = vector.shape_cast %24 : vector<16x1xi1> to vector<16x1xi1>
    %60 = vector.broadcast %59 : vector<16x1xi1> to vector<16x16xi1>
    %61 = arith.select %60, %50, %58 : vector<16x16xi1>, vector<16x16xf32>
    %c0_28 = arith.constant 0 : index
    %c0_29 = arith.constant 0 : index
    %62 = vector.load %arg9[%c0_28, %c0_29] : memref<16x16xf32, #tpu.memory_space<vmem>>, vector<16x16xf32>
    tpu.vector_store %arg9[%c0_28, %c0_29], %61 {strides = array<i32>} : memref<16x16xf32, #tpu.memory_space<vmem>>, vector<16x16xf32>,
    %63 = vector.extract_strided_slice %22 {offsets = [0, 0], sizes = [16, 16], strides = [1, 1]} : vector<16x64xf32> to vector<16x16xf32>
    %64 = arith.negf %63 : vector<16x16xf32>
    %65 = math.exp %64 : vector<16x16xf32>
    %cst_30 = arith.constant 1.000000e+00 : f32
    %66 = vector.broadcast %cst_30 : f32 to vector<16x16xf32>
    %67 = arith.addf %66, %65 : vector<16x16xf32>
    %68 = arith.divf %66, %67 : vector<16x16xf32>
    %69 = vector.extract_strided_slice %22 {offsets = [0, 16], sizes = [16, 16], strides = [1, 1]} : vector<16x64xf32> to vector<16x16xf32>
    %70 = arith.negf %69 : vector<16x16xf32>
    %71 = math.exp %70 : vector<16x16xf32>
    %cst_31 = arith.constant 1.000000e+00 : f32
    %72 = vector.broadcast %cst_31 : f32 to vector<16x16xf32>
    %73 = arith.addf %72, %71 : vector<16x16xf32>
    %74 = arith.divf %72, %73 : vector<16x16xf32>
    %75 = vector.extract_strided_slice %22 {offsets = [0, 32], sizes = [16, 16], strides = [1, 1]} : vector<16x64xf32> to vector<16x16xf32>
    %76 = math.tanh %75 : vector<16x16xf32>
    %77 = vector.extract_strided_slice %22 {offsets = [0, 48], sizes = [16, 16], strides = [1, 1]} : vector<16x64xf32> to vector<16x16xf32>
    %78 = arith.negf %77 : vector<16x16xf32>
    %79 = math.exp %78 : vector<16x16xf32>
    %cst_32 = arith.constant 1.000000e+00 : f32
    %80 = vector.broadcast %cst_32 : f32 to vector<16x16xf32>
    %81 = arith.addf %80, %79 : vector<16x16xf32>
    %82 = arith.divf %80, %81 : vector<16x16xf32>
    %c0_33 = arith.constant 0 : index
    %c0_34 = arith.constant 0 : index
    %83 = vector.load %arg11[%c0_33, %c0_34] : memref<16x16xf32, #tpu.memory_space<vmem>>, vector<16x16xf32>
    %84 = arith.mulf %74, %83 : vector<16x16xf32>
    %85 = arith.mulf %68, %76 : vector<16x16xf32>
    %86 = arith.addf %84, %85 : vector<16x16xf32>
    %87 = math.tanh %86 : vector<16x16xf32>
    %88 = arith.mulf %82, %87 : vector<16x16xf32>
    %c0_35 = arith.constant 0 : index
    %c0_36 = arith.constant 0 : index
    %89 = vector.load %arg10[%c0_35, %c0_36] : memref<16x16xf32, #tpu.memory_space<vmem>>, vector<16x16xf32>
    %90 = vector.shape_cast %26 : vector<16x1xi1> to vector<16x1xi1>
    %91 = vector.broadcast %90 : vector<16x1xi1> to vector<16x16xi1>
    %92 = arith.select %91, %88, %89 : vector<16x16xi1>, vector<16x16xf32>
    %c0_37 = arith.constant 0 : index
    %c0_38 = arith.constant 0 : index
    %93 = vector.load %arg10[%c0_37, %c0_38] : memref<16x16xf32, #tpu.memory_space<vmem>>, vector<16x16xf32>
    tpu.vector_store %arg10[%c0_37, %c0_38], %92 {strides = array<i32>} : memref<16x16xf32, #tpu.memory_space<vmem>>, vector<16x16xf32>,
    %c0_39 = arith.constant 0 : index
    %c0_40 = arith.constant 0 : index
    %94 = vector.load %arg11[%c0_39, %c0_40] : memref<16x16xf32, #tpu.memory_space<vmem>>, vector<16x16xf32>
    %95 = vector.shape_cast %26 : vector<16x1xi1> to vector<16x1xi1>
    %96 = vector.broadcast %95 : vector<16x1xi1> to vector<16x16xi1>
    %97 = arith.select %96, %86, %94 : vector<16x16xi1>, vector<16x16xf32>
    %c0_41 = arith.constant 0 : index
    %c0_42 = arith.constant 0 : index
    %98 = vector.load %arg11[%c0_41, %c0_42] : memref<16x16xf32, #tpu.memory_space<vmem>>, vector<16x16xf32>
    tpu.vector_store %arg11[%c0_41, %c0_42], %97 {strides = array<i32>} : memref<16x16xf32, #tpu.memory_space<vmem>>, vector<16x16xf32>,
    %c1_i32 = arith.constant 1 : i32
    %99 = arith.addi %4, %c1_i32 : i32
    %c9_i32_43 = arith.constant 9 : i32
    %100 = arith.subi %c9_i32_43, %99 : i32
    %c1 = arith.constant 1 : index
    %c0_44 = arith.constant 0 : index
    %c0_45 = arith.constant 0 : index
    %101 = vector.load %arg2[%c1, %c0_44, %c0_45] : memref<5x16x64xbf16, #tpu.memory_space<vmem>>, vector<1x16x64xbf16>
    %102 = vector.shape_cast %101 : vector<1x16x64xbf16> to vector<16x64xbf16>
    %103 = arith.extf %102 : vector<16x64xbf16> to vector<16x64xf32>
    %c0_46 = arith.constant 0 : index
    %c0_47 = arith.constant 0 : index
    %104 = vector.load %arg8[%c0_46, %c0_47] : memref<16x16xf32, #tpu.memory_space<vmem>>, vector<16x16xf32>
    %105 = arith.truncf %104 : vector<16x16xf32> to vector<16x16xbf16>
    %c0_48 = arith.constant 0 : index
    %c0_49 = arith.constant 0 : index
    %106 = vector.load %arg5[%c0_48, %c0_49] : memref<16x64xbf16, #tpu.memory_space<vmem>>, vector<16x64xbf16>
    %cst_50 = arith.constant dense<0.000000e+00> : vector<16x64xf32>
    %107 = tpu.matmul %105, %106, %cst_50 {dimension_numbers = #tpu.dot_dimension_numbers<[1], [0], [0], [1], [0, 0, 1, 1], [], []>} : vector<16x16xbf16>, vector<16x64xbf16>, vector<16x64xf32> -> vector<16x64xf32>
    %108 = arith.addf %103, %107 : vector<16x64xf32>
    %c3 = arith.constant 3 : index
    %c0_51 = arith.constant 0 : index
    %c0_52 = arith.constant 0 : index
    %109 = vector.load %arg3[%c3, %c0_51, %c0_52] : memref<5x16x64xbf16, #tpu.memory_space<vmem>>, vector<1x16x64xbf16>
    %110 = vector.shape_cast %109 : vector<1x16x64xbf16> to vector<16x64xbf16>
    %111 = arith.extf %110 : vector<16x64xbf16> to vector<16x64xf32>
    %c0_53 = arith.constant 0 : index
    %c0_54 = arith.constant 0 : index
    %112 = vector.load %arg10[%c0_53, %c0_54] : memref<16x16xf32, #tpu.memory_space<vmem>>, vector<16x16xf32>
    %113 = arith.truncf %112 : vector<16x16xf32> to vector<16x16xbf16>
    %c0_55 = arith.constant 0 : index
    %c0_56 = arith.constant 0 : index
    %114 = vector.load %arg6[%c0_55, %c0_56] : memref<16x64xbf16, #tpu.memory_space<vmem>>, vector<16x64xbf16>
    %cst_57 = arith.constant dense<0.000000e+00> : vector<16x64xf32>
    %115 = tpu.matmul %113, %114, %cst_57 {dimension_numbers = #tpu.dot_dimension_numbers<[1], [0], [0], [1], [0, 0, 1, 1], [], []>} : vector<16x16xbf16>, vector<16x64xbf16>, vector<16x64xf32> -> vector<16x64xf32>
    %116 = arith.addf %111, %115 : vector<16x64xf32>
    %117 = vector.broadcast %99 : i32 to vector<16x1xi32>
    %118 = arith.cmpi sgt, %3, %117 : vector<16x1xi32>
    %119 = vector.broadcast %100 : i32 to vector<16x1xi32>
    %120 = arith.cmpi sgt, %3, %119 : vector<16x1xi32>
    %121 = vector.extract_strided_slice %108 {offsets = [0, 0], sizes = [16, 16], strides = [1, 1]} : vector<16x64xf32> to vector<16x16xf32>
    %122 = arith.negf %121 : vector<16x16xf32>
    %123 = math.exp %122 : vector<16x16xf32>
    %cst_58 = arith.constant 1.000000e+00 : f32
    %124 = vector.broadcast %cst_58 : f32 to vector<16x16xf32>
    %125 = arith.addf %124, %123 : vector<16x16xf32>
    %126 = arith.divf %124, %125 : vector<16x16xf32>
    %127 = vector.extract_strided_slice %108 {offsets = [0, 16], sizes = [16, 16], strides = [1, 1]} : vector<16x64xf32> to vector<16x16xf32>
    %128 = arith.negf %127 : vector<16x16xf32>
    %129 = math.exp %128 : vector<16x16xf32>
    %cst_59 = arith.constant 1.000000e+00 : f32
    %130 = vector.broadcast %cst_59 : f32 to vector<16x16xf32>
    %131 = arith.addf %130, %129 : vector<16x16xf32>
    %132 = arith.divf %130, %131 : vector<16x16xf32>
    %133 = vector.extract_strided_slice %108 {offsets = [0, 32], sizes = [16, 16], strides = [1, 1]} : vector<16x64xf32> to vector<16x16xf32>
    %134 = math.tanh %133 : vector<16x16xf32>
    %135 = vector.extract_strided_slice %108 {offsets = [0, 48], sizes = [16, 16], strides = [1, 1]} : vector<16x64xf32> to vector<16x16xf32>
    %136 = arith.negf %135 : vector<16x16xf32>
    %137 = math.exp %136 : vector<16x16xf32>
    %cst_60 = arith.constant 1.000000e+00 : f32
    %138 = vector.broadcast %cst_60 : f32 to vector<16x16xf32>
    %139 = arith.addf %138, %137 : vector<16x16xf32>
    %140 = arith.divf %138, %139 : vector<16x16xf32>
    %c0_61 = arith.constant 0 : index
    %c0_62 = arith.constant 0 : index
    %141 = vector.load %arg9[%c0_61, %c0_62] : memref<16x16xf32, #tpu.memory_space<vmem>>, vector<16x16xf32>
    %142 = arith.mulf %132, %141 : vector<16x16xf32>
    %143 = arith.mulf %126, %134 : vector<16x16xf32>
    %144 = arith.addf %142, %143 : vector<16x16xf32>
    %145 = math.tanh %144 : vector<16x16xf32>
    %146 = arith.mulf %140, %145 : vector<16x16xf32>
    %c0_63 = arith.constant 0 : index
    %c0_64 = arith.constant 0 : index
    %147 = vector.load %arg8[%c0_63, %c0_64] : memref<16x16xf32, #tpu.memory_space<vmem>>, vector<16x16xf32>
    %148 = vector.shape_cast %118 : vector<16x1xi1> to vector<16x1xi1>
    %149 = vector.broadcast %148 : vector<16x1xi1> to vector<16x16xi1>
    %150 = arith.select %149, %146, %147 : vector<16x16xi1>, vector<16x16xf32>
    %c0_65 = arith.constant 0 : index
    %c0_66 = arith.constant 0 : index
    %151 = vector.load %arg8[%c0_65, %c0_66] : memref<16x16xf32, #tpu.memory_space<vmem>>, vector<16x16xf32>
    tpu.vector_store %arg8[%c0_65, %c0_66], %150 {strides = array<i32>} : memref<16x16xf32, #tpu.memory_space<vmem>>, vector<16x16xf32>,
    %c0_67 = arith.constant 0 : index
    %c0_68 = arith.constant 0 : index
    %152 = vector.load %arg9[%c0_67, %c0_68] : memref<16x16xf32, #tpu.memory_space<vmem>>, vector<16x16xf32>
    %153 = vector.shape_cast %118 : vector<16x1xi1> to vector<16x1xi1>
    %154 = vector.broadcast %153 : vector<16x1xi1> to vector<16x16xi1>
    %155 = arith.select %154, %144, %152 : vector<16x16xi1>, vector<16x16xf32>
    %c0_69 = arith.constant 0 : index
    %c0_70 = arith.constant 0 : index
    %156 = vector.load %arg9[%c0_69, %c0_70] : memref<16x16xf32, #tpu.memory_space<vmem>>, vector<16x16xf32>
    tpu.vector_store %arg9[%c0_69, %c0_70], %155 {strides = array<i32>} : memref<16x16xf32, #tpu.memory_space<vmem>>, vector<16x16xf32>,
    %157 = vector.extract_strided_slice %116 {offsets = [0, 0], sizes = [16, 16], strides = [1, 1]} : vector<16x64xf32> to vector<16x16xf32>
    %158 = arith.negf %157 : vector<16x16xf32>
    %159 = math.exp %158 : vector<16x16xf32>
    %cst_71 = arith.constant 1.000000e+00 : f32
    %160 = vector.broadcast %cst_71 : f32 to vector<16x16xf32>
    %161 = arith.addf %160, %159 : vector<16x16xf32>
    %162 = arith.divf %160, %161 : vector<16x16xf32>
    %163 = vector.extract_strided_slice %116 {offsets = [0, 16], sizes = [16, 16], strides = [1, 1]} : vector<16x64xf32> to vector<16x16xf32>
    %164 = arith.negf %163 : vector<16x16xf32>
    %165 = math.exp %164 : vector<16x16xf32>
    %cst_72 = arith.constant 1.000000e+00 : f32
    %166 = vector.broadcast %cst_72 : f32 to vector<16x16xf32>
    %167 = arith.addf %166, %165 : vector<16x16xf32>
    %168 = arith.divf %166, %167 : vector<16x16xf32>
    %169 = vector.extract_strided_slice %116 {offsets = [0, 32], sizes = [16, 16], strides = [1, 1]} : vector<16x64xf32> to vector<16x16xf32>
    %170 = math.tanh %169 : vector<16x16xf32>
    %171 = vector.extract_strided_slice %116 {offsets = [0, 48], sizes = [16, 16], strides = [1, 1]} : vector<16x64xf32> to vector<16x16xf32>
    %172 = arith.negf %171 : vector<16x16xf32>
    %173 = math.exp %172 : vector<16x16xf32>
    %cst_73 = arith.constant 1.000000e+00 : f32
    %174 = vector.broadcast %cst_73 : f32 to vector<16x16xf32>
    %175 = arith.addf %174, %173 : vector<16x16xf32>
    %176 = arith.divf %174, %175 : vector<16x16xf32>
    %c0_74 = arith.constant 0 : index
    %c0_75 = arith.constant 0 : index
    %177 = vector.load %arg11[%c0_74, %c0_75] : memref<16x16xf32, #tpu.memory_space<vmem>>, vector<16x16xf32>
    %178 = arith.mulf %168, %177 : vector<16x16xf32>
    %179 = arith.mulf %162, %170 : vector<16x16xf32>
    %180 = arith.addf %178, %179 : vector<16x16xf32>
    %181 = math.tanh %180 : vector<16x16xf32>
    %182 = arith.mulf %176, %181 : vector<16x16xf32>
    %c0_76 = arith.constant 0 : index
    %c0_77 = arith.constant 0 : index
    %183 = vector.load %arg10[%c0_76, %c0_77] : memref<16x16xf32, #tpu.memory_space<vmem>>, vector<16x16xf32>
    %184 = vector.shape_cast %120 : vector<16x1xi1> to vector<16x1xi1>
    %185 = vector.broadcast %184 : vector<16x1xi1> to vector<16x16xi1>
    %186 = arith.select %185, %182, %183 : vector<16x16xi1>, vector<16x16xf32>
    %c0_78 = arith.constant 0 : index
    %c0_79 = arith.constant 0 : index
    %187 = vector.load %arg10[%c0_78, %c0_79] : memref<16x16xf32, #tpu.memory_space<vmem>>, vector<16x16xf32>
    tpu.vector_store %arg10[%c0_78, %c0_79], %186 {strides = array<i32>} : memref<16x16xf32, #tpu.memory_space<vmem>>, vector<16x16xf32>,
    %c0_80 = arith.constant 0 : index
    %c0_81 = arith.constant 0 : index
    %188 = vector.load %arg11[%c0_80, %c0_81] : memref<16x16xf32, #tpu.memory_space<vmem>>, vector<16x16xf32>
    %189 = vector.shape_cast %120 : vector<16x1xi1> to vector<16x1xi1>
    %190 = vector.broadcast %189 : vector<16x1xi1> to vector<16x16xi1>
    %191 = arith.select %190, %180, %188 : vector<16x16xi1>, vector<16x16xf32>
    %c0_82 = arith.constant 0 : index
    %c0_83 = arith.constant 0 : index
    %192 = vector.load %arg11[%c0_82, %c0_83] : memref<16x16xf32, #tpu.memory_space<vmem>>, vector<16x16xf32>
    tpu.vector_store %arg11[%c0_82, %c0_83], %191 {strides = array<i32>} : memref<16x16xf32, #tpu.memory_space<vmem>>, vector<16x16xf32>,
    %c2_i32 = arith.constant 2 : i32
    %193 = arith.addi %4, %c2_i32 : i32
    %c9_i32_84 = arith.constant 9 : i32
    %194 = arith.subi %c9_i32_84, %193 : i32
    %c2 = arith.constant 2 : index
    %c0_85 = arith.constant 0 : index
    %c0_86 = arith.constant 0 : index
    %195 = vector.load %arg2[%c2, %c0_85, %c0_86] : memref<5x16x64xbf16, #tpu.memory_space<vmem>>, vector<1x16x64xbf16>
    %196 = vector.shape_cast %195 : vector<1x16x64xbf16> to vector<16x64xbf16>
    %197 = arith.extf %196 : vector<16x64xbf16> to vector<16x64xf32>
    %c0_87 = arith.constant 0 : index
    %c0_88 = arith.constant 0 : index
    %198 = vector.load %arg8[%c0_87, %c0_88] : memref<16x16xf32, #tpu.memory_space<vmem>>, vector<16x16xf32>
    %199 = arith.truncf %198 : vector<16x16xf32> to vector<16x16xbf16>
    %c0_89 = arith.constant 0 : index
    %c0_90 = arith.constant 0 : index
    %200 = vector.load %arg5[%c0_89, %c0_90] : memref<16x64xbf16, #tpu.memory_space<vmem>>, vector<16x64xbf16>
    %cst_91 = arith.constant dense<0.000000e+00> : vector<16x64xf32>
    %201 = tpu.matmul %199, %200, %cst_91 {dimension_numbers = #tpu.dot_dimension_numbers<[1], [0], [0], [1], [0, 0, 1, 1], [], []>} : vector<16x16xbf16>, vector<16x64xbf16>, vector<16x64xf32> -> vector<16x64xf32>
    %202 = arith.addf %197, %201 : vector<16x64xf32>
    %c2_92 = arith.constant 2 : index
    %c0_93 = arith.constant 0 : index
    %c0_94 = arith.constant 0 : index
    %203 = vector.load %arg3[%c2_92, %c0_93, %c0_94] : memref<5x16x64xbf16, #tpu.memory_space<vmem>>, vector<1x16x64xbf16>
    %204 = vector.shape_cast %203 : vector<1x16x64xbf16> to vector<16x64xbf16>
    %205 = arith.extf %204 : vector<16x64xbf16> to vector<16x64xf32>
    %c0_95 = arith.constant 0 : index
    %c0_96 = arith.constant 0 : index
    %206 = vector.load %arg10[%c0_95, %c0_96] : memref<16x16xf32, #tpu.memory_space<vmem>>, vector<16x16xf32>
    %207 = arith.truncf %206 : vector<16x16xf32> to vector<16x16xbf16>
    %c0_97 = arith.constant 0 : index
    %c0_98 = arith.constant 0 : index
    %208 = vector.load %arg6[%c0_97, %c0_98] : memref<16x64xbf16, #tpu.memory_space<vmem>>, vector<16x64xbf16>
    %cst_99 = arith.constant dense<0.000000e+00> : vector<16x64xf32>
    %209 = tpu.matmul %207, %208, %cst_99 {dimension_numbers = #tpu.dot_dimension_numbers<[1], [0], [0], [1], [0, 0, 1, 1], [], []>} : vector<16x16xbf16>, vector<16x64xbf16>, vector<16x64xf32> -> vector<16x64xf32>
    %210 = arith.addf %205, %209 : vector<16x64xf32>
    %211 = vector.broadcast %193 : i32 to vector<16x1xi32>
    %212 = arith.cmpi sgt, %3, %211 : vector<16x1xi32>
    %213 = vector.broadcast %194 : i32 to vector<16x1xi32>
    %214 = arith.cmpi sgt, %3, %213 : vector<16x1xi32>
    %215 = vector.extract_strided_slice %202 {offsets = [0, 0], sizes = [16, 16], strides = [1, 1]} : vector<16x64xf32> to vector<16x16xf32>
    %216 = arith.negf %215 : vector<16x16xf32>
    %217 = math.exp %216 : vector<16x16xf32>
    %cst_100 = arith.constant 1.000000e+00 : f32
    %218 = vector.broadcast %cst_100 : f32 to vector<16x16xf32>
    %219 = arith.addf %218, %217 : vector<16x16xf32>
    %220 = arith.divf %218, %219 : vector<16x16xf32>
    %221 = vector.extract_strided_slice %202 {offsets = [0, 16], sizes = [16, 16], strides = [1, 1]} : vector<16x64xf32> to vector<16x16xf32>
    %222 = arith.negf %221 : vector<16x16xf32>
    %223 = math.exp %222 : vector<16x16xf32>
    %cst_101 = arith.constant 1.000000e+00 : f32
    %224 = vector.broadcast %cst_101 : f32 to vector<16x16xf32>
    %225 = arith.addf %224, %223 : vector<16x16xf32>
    %226 = arith.divf %224, %225 : vector<16x16xf32>
    %227 = vector.extract_strided_slice %202 {offsets = [0, 32], sizes = [16, 16], strides = [1, 1]} : vector<16x64xf32> to vector<16x16xf32>
    %228 = math.tanh %227 : vector<16x16xf32>
    %229 = vector.extract_strided_slice %202 {offsets = [0, 48], sizes = [16, 16], strides = [1, 1]} : vector<16x64xf32> to vector<16x16xf32>
    %230 = arith.negf %229 : vector<16x16xf32>
    %231 = math.exp %230 : vector<16x16xf32>
    %cst_102 = arith.constant 1.000000e+00 : f32
    %232 = vector.broadcast %cst_102 : f32 to vector<16x16xf32>
    %233 = arith.addf %232, %231 : vector<16x16xf32>
    %234 = arith.divf %232, %233 : vector<16x16xf32>
    %c0_103 = arith.constant 0 : index
    %c0_104 = arith.constant 0 : index
    %235 = vector.load %arg9[%c0_103, %c0_104] : memref<16x16xf32, #tpu.memory_space<vmem>>, vector<16x16xf32>
    %236 = arith.mulf %226, %235 : vector<16x16xf32>
    %237 = arith.mulf %220, %228 : vector<16x16xf32>
    %238 = arith.addf %236, %237 : vector<16x16xf32>
    %239 = math.tanh %238 : vector<16x16xf32>
    %240 = arith.mulf %234, %239 : vector<16x16xf32>
    %c0_105 = arith.constant 0 : index
    %c0_106 = arith.constant 0 : index
    %241 = vector.load %arg8[%c0_105, %c0_106] : memref<16x16xf32, #tpu.memory_space<vmem>>, vector<16x16xf32>
    %242 = vector.shape_cast %212 : vector<16x1xi1> to vector<16x1xi1>
    %243 = vector.broadcast %242 : vector<16x1xi1> to vector<16x16xi1>
    %244 = arith.select %243, %240, %241 : vector<16x16xi1>, vector<16x16xf32>
    %c0_107 = arith.constant 0 : index
    %c0_108 = arith.constant 0 : index
    %245 = vector.load %arg8[%c0_107, %c0_108] : memref<16x16xf32, #tpu.memory_space<vmem>>, vector<16x16xf32>
    tpu.vector_store %arg8[%c0_107, %c0_108], %244 {strides = array<i32>} : memref<16x16xf32, #tpu.memory_space<vmem>>, vector<16x16xf32>,
    %c0_109 = arith.constant 0 : index
    %c0_110 = arith.constant 0 : index
    %246 = vector.load %arg9[%c0_109, %c0_110] : memref<16x16xf32, #tpu.memory_space<vmem>>, vector<16x16xf32>
    %247 = vector.shape_cast %212 : vector<16x1xi1> to vector<16x1xi1>
    %248 = vector.broadcast %247 : vector<16x1xi1> to vector<16x16xi1>
    %249 = arith.select %248, %238, %246 : vector<16x16xi1>, vector<16x16xf32>
    %c0_111 = arith.constant 0 : index
    %c0_112 = arith.constant 0 : index
    %250 = vector.load %arg9[%c0_111, %c0_112] : memref<16x16xf32, #tpu.memory_space<vmem>>, vector<16x16xf32>
    tpu.vector_store %arg9[%c0_111, %c0_112], %249 {strides = array<i32>} : memref<16x16xf32, #tpu.memory_space<vmem>>, vector<16x16xf32>,
    %251 = vector.extract_strided_slice %210 {offsets = [0, 0], sizes = [16, 16], strides = [1, 1]} : vector<16x64xf32> to vector<16x16xf32>
    %252 = arith.negf %251 : vector<16x16xf32>
    %253 = math.exp %252 : vector<16x16xf32>
    %cst_113 = arith.constant 1.000000e+00 : f32
    %254 = vector.broadcast %cst_113 : f32 to vector<16x16xf32>
    %255 = arith.addf %254, %253 : vector<16x16xf32>
    %256 = arith.divf %254, %255 : vector<16x16xf32>
    %257 = vector.extract_strided_slice %210 {offsets = [0, 16], sizes = [16, 16], strides = [1, 1]} : vector<16x64xf32> to vector<16x16xf32>
    %258 = arith.negf %257 : vector<16x16xf32>
    %259 = math.exp %258 : vector<16x16xf32>
    %cst_114 = arith.constant 1.000000e+00 : f32
    %260 = vector.broadcast %cst_114 : f32 to vector<16x16xf32>
    %261 = arith.addf %260, %259 : vector<16x16xf32>
    %262 = arith.divf %260, %261 : vector<16x16xf32>
    %263 = vector.extract_strided_slice %210 {offsets = [0, 32], sizes = [16, 16], strides = [1, 1]} : vector<16x64xf32> to vector<16x16xf32>
    %264 = math.tanh %263 : vector<16x16xf32>
    %265 = vector.extract_strided_slice %210 {offsets = [0, 48], sizes = [16, 16], strides = [1, 1]} : vector<16x64xf32> to vector<16x16xf32>
    %266 = arith.negf %265 : vector<16x16xf32>
    %267 = math.exp %266 : vector<16x16xf32>
    %cst_115 = arith.constant 1.000000e+00 : f32
    %268 = vector.broadcast %cst_115 : f32 to vector<16x16xf32>
    %269 = arith.addf %268, %267 : vector<16x16xf32>
    %270 = arith.divf %268, %269 : vector<16x16xf32>
    %c0_116 = arith.constant 0 : index
    %c0_117 = arith.constant 0 : index
    %271 = vector.load %arg11[%c0_116, %c0_117] : memref<16x16xf32, #tpu.memory_space<vmem>>, vector<16x16xf32>
    %272 = arith.mulf %262, %271 : vector<16x16xf32>
    %273 = arith.mulf %256, %264 : vector<16x16xf32>
    %274 = arith.addf %272, %273 : vector<16x16xf32>
    %275 = math.tanh %274 : vector<16x16xf32>
    %276 = arith.mulf %270, %275 : vector<16x16xf32>
    %c0_118 = arith.constant 0 : index
    %c0_119 = arith.constant 0 : index
    %277 = vector.load %arg10[%c0_118, %c0_119] : memref<16x16xf32, #tpu.memory_space<vmem>>, vector<16x16xf32>
    %278 = vector.shape_cast %214 : vector<16x1xi1> to vector<16x1xi1>
    %279 = vector.broadcast %278 : vector<16x1xi1> to vector<16x16xi1>
    %280 = arith.select %279, %276, %277 : vector<16x16xi1>, vector<16x16xf32>
    %c0_120 = arith.constant 0 : index
    %c0_121 = arith.constant 0 : index
    %281 = vector.load %arg10[%c0_120, %c0_121] : memref<16x16xf32, #tpu.memory_space<vmem>>, vector<16x16xf32>
    tpu.vector_store %arg10[%c0_120, %c0_121], %280 {strides = array<i32>} : memref<16x16xf32, #tpu.memory_space<vmem>>, vector<16x16xf32>,
    %c0_122 = arith.constant 0 : index
    %c0_123 = arith.constant 0 : index
    %282 = vector.load %arg11[%c0_122, %c0_123] : memref<16x16xf32, #tpu.memory_space<vmem>>, vector<16x16xf32>
    %283 = vector.shape_cast %214 : vector<16x1xi1> to vector<16x1xi1>
    %284 = vector.broadcast %283 : vector<16x1xi1> to vector<16x16xi1>
    %285 = arith.select %284, %274, %282 : vector<16x16xi1>, vector<16x16xf32>
    %c0_124 = arith.constant 0 : index
    %c0_125 = arith.constant 0 : index
    %286 = vector.load %arg11[%c0_124, %c0_125] : memref<16x16xf32, #tpu.memory_space<vmem>>, vector<16x16xf32>
    tpu.vector_store %arg11[%c0_124, %c0_125], %285 {strides = array<i32>} : memref<16x16xf32, #tpu.memory_space<vmem>>, vector<16x16xf32>,
    %c3_i32 = arith.constant 3 : i32
    %287 = arith.addi %4, %c3_i32 : i32
    %c9_i32_126 = arith.constant 9 : i32
    %288 = arith.subi %c9_i32_126, %287 : i32
    %c3_127 = arith.constant 3 : index
    %c0_128 = arith.constant 0 : index
    %c0_129 = arith.constant 0 : index
    %289 = vector.load %arg2[%c3_127, %c0_128, %c0_129] : memref<5x16x64xbf16, #tpu.memory_space<vmem>>, vector<1x16x64xbf16>
    %290 = vector.shape_cast %289 : vector<1x16x64xbf16> to vector<16x64xbf16>
    %291 = arith.extf %290 : vector<16x64xbf16> to vector<16x64xf32>
    %c0_130 = arith.constant 0 : index
    %c0_131 = arith.constant 0 : index
    %292 = vector.load %arg8[%c0_130, %c0_131] : memref<16x16xf32, #tpu.memory_space<vmem>>, vector<16x16xf32>
    %293 = arith.truncf %292 : vector<16x16xf32> to vector<16x16xbf16>
    %c0_132 = arith.constant 0 : index
    %c0_133 = arith.constant 0 : index
    %294 = vector.load %arg5[%c0_132, %c0_133] : memref<16x64xbf16, #tpu.memory_space<vmem>>, vector<16x64xbf16>
    %cst_134 = arith.constant dense<0.000000e+00> : vector<16x64xf32>
    %295 = tpu.matmul %293, %294, %cst_134 {dimension_numbers = #tpu.dot_dimension_numbers<[1], [0], [0], [1], [0, 0, 1, 1], [], []>} : vector<16x16xbf16>, vector<16x64xbf16>, vector<16x64xf32> -> vector<16x64xf32>
    %296 = arith.addf %291, %295 : vector<16x64xf32>
    %c1_135 = arith.constant 1 : index
    %c0_136 = arith.constant 0 : index
    %c0_137 = arith.constant 0 : index
    %297 = vector.load %arg3[%c1_135, %c0_136, %c0_137] : memref<5x16x64xbf16, #tpu.memory_space<vmem>>, vector<1x16x64xbf16>
    %298 = vector.shape_cast %297 : vector<1x16x64xbf16> to vector<16x64xbf16>
    %299 = arith.extf %298 : vector<16x64xbf16> to vector<16x64xf32>
    %c0_138 = arith.constant 0 : index
    %c0_139 = arith.constant 0 : index
    %300 = vector.load %arg10[%c0_138, %c0_139] : memref<16x16xf32, #tpu.memory_space<vmem>>, vector<16x16xf32>
    %301 = arith.truncf %300 : vector<16x16xf32> to vector<16x16xbf16>
    %c0_140 = arith.constant 0 : index
    %c0_141 = arith.constant 0 : index
    %302 = vector.load %arg6[%c0_140, %c0_141] : memref<16x64xbf16, #tpu.memory_space<vmem>>, vector<16x64xbf16>
    %cst_142 = arith.constant dense<0.000000e+00> : vector<16x64xf32>
    %303 = tpu.matmul %301, %302, %cst_142 {dimension_numbers = #tpu.dot_dimension_numbers<[1], [0], [0], [1], [0, 0, 1, 1], [], []>} : vector<16x16xbf16>, vector<16x64xbf16>, vector<16x64xf32> -> vector<16x64xf32>
    %304 = arith.addf %299, %303 : vector<16x64xf32>
    %305 = vector.broadcast %287 : i32 to vector<16x1xi32>
    %306 = arith.cmpi sgt, %3, %305 : vector<16x1xi32>
    %307 = vector.broadcast %288 : i32 to vector<16x1xi32>
    %308 = arith.cmpi sgt, %3, %307 : vector<16x1xi32>
    %309 = vector.extract_strided_slice %296 {offsets = [0, 0], sizes = [16, 16], strides = [1, 1]} : vector<16x64xf32> to vector<16x16xf32>
    %310 = arith.negf %309 : vector<16x16xf32>
    %311 = math.exp %310 : vector<16x16xf32>
    %cst_143 = arith.constant 1.000000e+00 : f32
    %312 = vector.broadcast %cst_143 : f32 to vector<16x16xf32>
    %313 = arith.addf %312, %311 : vector<16x16xf32>
    %314 = arith.divf %312, %313 : vector<16x16xf32>
    %315 = vector.extract_strided_slice %296 {offsets = [0, 16], sizes = [16, 16], strides = [1, 1]} : vector<16x64xf32> to vector<16x16xf32>
    %316 = arith.negf %315 : vector<16x16xf32>
    %317 = math.exp %316 : vector<16x16xf32>
    %cst_144 = arith.constant 1.000000e+00 : f32
    %318 = vector.broadcast %cst_144 : f32 to vector<16x16xf32>
    %319 = arith.addf %318, %317 : vector<16x16xf32>
    %320 = arith.divf %318, %319 : vector<16x16xf32>
    %321 = vector.extract_strided_slice %296 {offsets = [0, 32], sizes = [16, 16], strides = [1, 1]} : vector<16x64xf32> to vector<16x16xf32>
    %322 = math.tanh %321 : vector<16x16xf32>
    %323 = vector.extract_strided_slice %296 {offsets = [0, 48], sizes = [16, 16], strides = [1, 1]} : vector<16x64xf32> to vector<16x16xf32>
    %324 = arith.negf %323 : vector<16x16xf32>
    %325 = math.exp %324 : vector<16x16xf32>
    %cst_145 = arith.constant 1.000000e+00 : f32
    %326 = vector.broadcast %cst_145 : f32 to vector<16x16xf32>
    %327 = arith.addf %326, %325 : vector<16x16xf32>
    %328 = arith.divf %326, %327 : vector<16x16xf32>
    %c0_146 = arith.constant 0 : index
    %c0_147 = arith.constant 0 : index
    %329 = vector.load %arg9[%c0_146, %c0_147] : memref<16x16xf32, #tpu.memory_space<vmem>>, vector<16x16xf32>
    %330 = arith.mulf %320, %329 : vector<16x16xf32>
    %331 = arith.mulf %314, %322 : vector<16x16xf32>
    %332 = arith.addf %330, %331 : vector<16x16xf32>
    %333 = math.tanh %332 : vector<16x16xf32>
    %334 = arith.mulf %328, %333 : vector<16x16xf32>
    %c0_148 = arith.constant 0 : index
    %c0_149 = arith.constant 0 : index
    %335 = vector.load %arg8[%c0_148, %c0_149] : memref<16x16xf32, #tpu.memory_space<vmem>>, vector<16x16xf32>
    %336 = vector.shape_cast %306 : vector<16x1xi1> to vector<16x1xi1>
    %337 = vector.broadcast %336 : vector<16x1xi1> to vector<16x16xi1>
    %338 = arith.select %337, %334, %335 : vector<16x16xi1>, vector<16x16xf32>
    %c0_150 = arith.constant 0 : index
    %c0_151 = arith.constant 0 : index
    %339 = vector.load %arg8[%c0_150, %c0_151] : memref<16x16xf32, #tpu.memory_space<vmem>>, vector<16x16xf32>
    tpu.vector_store %arg8[%c0_150, %c0_151], %338 {strides = array<i32>} : memref<16x16xf32, #tpu.memory_space<vmem>>, vector<16x16xf32>,
    %c0_152 = arith.constant 0 : index
    %c0_153 = arith.constant 0 : index
    %340 = vector.load %arg9[%c0_152, %c0_153] : memref<16x16xf32, #tpu.memory_space<vmem>>, vector<16x16xf32>
    %341 = vector.shape_cast %306 : vector<16x1xi1> to vector<16x1xi1>
    %342 = vector.broadcast %341 : vector<16x1xi1> to vector<16x16xi1>
    %343 = arith.select %342, %332, %340 : vector<16x16xi1>, vector<16x16xf32>
    %c0_154 = arith.constant 0 : index
    %c0_155 = arith.constant 0 : index
    %344 = vector.load %arg9[%c0_154, %c0_155] : memref<16x16xf32, #tpu.memory_space<vmem>>, vector<16x16xf32>
    tpu.vector_store %arg9[%c0_154, %c0_155], %343 {strides = array<i32>} : memref<16x16xf32, #tpu.memory_space<vmem>>, vector<16x16xf32>,
    %345 = vector.extract_strided_slice %304 {offsets = [0, 0], sizes = [16, 16], strides = [1, 1]} : vector<16x64xf32> to vector<16x16xf32>
    %346 = arith.negf %345 : vector<16x16xf32>
    %347 = math.exp %346 : vector<16x16xf32>
    %cst_156 = arith.constant 1.000000e+00 : f32
    %348 = vector.broadcast %cst_156 : f32 to vector<16x16xf32>
    %349 = arith.addf %348, %347 : vector<16x16xf32>
    %350 = arith.divf %348, %349 : vector<16x16xf32>
    %351 = vector.extract_strided_slice %304 {offsets = [0, 16], sizes = [16, 16], strides = [1, 1]} : vector<16x64xf32> to vector<16x16xf32>
    %352 = arith.negf %351 : vector<16x16xf32>
    %353 = math.exp %352 : vector<16x16xf32>
    %cst_157 = arith.constant 1.000000e+00 : f32
    %354 = vector.broadcast %cst_157 : f32 to vector<16x16xf32>
    %355 = arith.addf %354, %353 : vector<16x16xf32>
    %356 = arith.divf %354, %355 : vector<16x16xf32>
    %357 = vector.extract_strided_slice %304 {offsets = [0, 32], sizes = [16, 16], strides = [1, 1]} : vector<16x64xf32> to vector<16x16xf32>
    %358 = math.tanh %357 : vector<16x16xf32>
    %359 = vector.extract_strided_slice %304 {offsets = [0, 48], sizes = [16, 16], strides = [1, 1]} : vector<16x64xf32> to vector<16x16xf32>
    %360 = arith.negf %359 : vector<16x16xf32>
    %361 = math.exp %360 : vector<16x16xf32>
    %cst_158 = arith.constant 1.000000e+00 : f32
    %362 = vector.broadcast %cst_158 : f32 to vector<16x16xf32>
    %363 = arith.addf %362, %361 : vector<16x16xf32>
    %364 = arith.divf %362, %363 : vector<16x16xf32>
    %c0_159 = arith.constant 0 : index
    %c0_160 = arith.constant 0 : index
    %365 = vector.load %arg11[%c0_159, %c0_160] : memref<16x16xf32, #tpu.memory_space<vmem>>, vector<16x16xf32>
    %366 = arith.mulf %356, %365 : vector<16x16xf32>
    %367 = arith.mulf %350, %358 : vector<16x16xf32>
    %368 = arith.addf %366, %367 : vector<16x16xf32>
    %369 = math.tanh %368 : vector<16x16xf32>
    %370 = arith.mulf %364, %369 : vector<16x16xf32>
    %c0_161 = arith.constant 0 : index
    %c0_162 = arith.constant 0 : index
    %371 = vector.load %arg10[%c0_161, %c0_162] : memref<16x16xf32, #tpu.memory_space<vmem>>, vector<16x16xf32>
    %372 = vector.shape_cast %308 : vector<16x1xi1> to vector<16x1xi1>
    %373 = vector.broadcast %372 : vector<16x1xi1> to vector<16x16xi1>
    %374 = arith.select %373, %370, %371 : vector<16x16xi1>, vector<16x16xf32>
    %c0_163 = arith.constant 0 : index
    %c0_164 = arith.constant 0 : index
    %375 = vector.load %arg10[%c0_163, %c0_164] : memref<16x16xf32, #tpu.memory_space<vmem>>, vector<16x16xf32>
    tpu.vector_store %arg10[%c0_163, %c0_164], %374 {strides = array<i32>} : memref<16x16xf32, #tpu.memory_space<vmem>>, vector<16x16xf32>,
    %c0_165 = arith.constant 0 : index
    %c0_166 = arith.constant 0 : index
    %376 = vector.load %arg11[%c0_165, %c0_166] : memref<16x16xf32, #tpu.memory_space<vmem>>, vector<16x16xf32>
    %377 = vector.shape_cast %308 : vector<16x1xi1> to vector<16x1xi1>
    %378 = vector.broadcast %377 : vector<16x1xi1> to vector<16x16xi1>
    %379 = arith.select %378, %368, %376 : vector<16x16xi1>, vector<16x16xf32>
    %c0_167 = arith.constant 0 : index
    %c0_168 = arith.constant 0 : index
    %380 = vector.load %arg11[%c0_167, %c0_168] : memref<16x16xf32, #tpu.memory_space<vmem>>, vector<16x16xf32>
    tpu.vector_store %arg11[%c0_167, %c0_168], %379 {strides = array<i32>} : memref<16x16xf32, #tpu.memory_space<vmem>>, vector<16x16xf32>,
    %c4_i32 = arith.constant 4 : i32
    %381 = arith.addi %4, %c4_i32 : i32
    %c9_i32_169 = arith.constant 9 : i32
    %382 = arith.subi %c9_i32_169, %381 : i32
    %c4_170 = arith.constant 4 : index
    %c0_171 = arith.constant 0 : index
    %c0_172 = arith.constant 0 : index
    %383 = vector.load %arg2[%c4_170, %c0_171, %c0_172] : memref<5x16x64xbf16, #tpu.memory_space<vmem>>, vector<1x16x64xbf16>
    %384 = vector.shape_cast %383 : vector<1x16x64xbf16> to vector<16x64xbf16>
    %385 = arith.extf %384 : vector<16x64xbf16> to vector<16x64xf32>
    %c0_173 = arith.constant 0 : index
    %c0_174 = arith.constant 0 : index
    %386 = vector.load %arg8[%c0_173, %c0_174] : memref<16x16xf32, #tpu.memory_space<vmem>>, vector<16x16xf32>
    %387 = arith.truncf %386 : vector<16x16xf32> to vector<16x16xbf16>
    %c0_175 = arith.constant 0 : index
    %c0_176 = arith.constant 0 : index
    %388 = vector.load %arg5[%c0_175, %c0_176] : memref<16x64xbf16, #tpu.memory_space<vmem>>, vector<16x64xbf16>
    %cst_177 = arith.constant dense<0.000000e+00> : vector<16x64xf32>
    %389 = tpu.matmul %387, %388, %cst_177 {dimension_numbers = #tpu.dot_dimension_numbers<[1], [0], [0], [1], [0, 0, 1, 1], [], []>} : vector<16x16xbf16>, vector<16x64xbf16>, vector<16x64xf32> -> vector<16x64xf32>
    %390 = arith.addf %385, %389 : vector<16x64xf32>
    %c0_178 = arith.constant 0 : index
    %c0_179 = arith.constant 0 : index
    %c0_180 = arith.constant 0 : index
    %391 = vector.load %arg3[%c0_178, %c0_179, %c0_180] : memref<5x16x64xbf16, #tpu.memory_space<vmem>>, vector<1x16x64xbf16>
    %392 = vector.shape_cast %391 : vector<1x16x64xbf16> to vector<16x64xbf16>
    %393 = arith.extf %392 : vector<16x64xbf16> to vector<16x64xf32>
    %c0_181 = arith.constant 0 : index
    %c0_182 = arith.constant 0 : index
    %394 = vector.load %arg10[%c0_181, %c0_182] : memref<16x16xf32, #tpu.memory_space<vmem>>, vector<16x16xf32>
    %395 = arith.truncf %394 : vector<16x16xf32> to vector<16x16xbf16>
    %c0_183 = arith.constant 0 : index
    %c0_184 = arith.constant 0 : index
    %396 = vector.load %arg6[%c0_183, %c0_184] : memref<16x64xbf16, #tpu.memory_space<vmem>>, vector<16x64xbf16>
    %cst_185 = arith.constant dense<0.000000e+00> : vector<16x64xf32>
    %397 = tpu.matmul %395, %396, %cst_185 {dimension_numbers = #tpu.dot_dimension_numbers<[1], [0], [0], [1], [0, 0, 1, 1], [], []>} : vector<16x16xbf16>, vector<16x64xbf16>, vector<16x64xf32> -> vector<16x64xf32>
    %398 = arith.addf %393, %397 : vector<16x64xf32>
    %399 = vector.broadcast %381 : i32 to vector<16x1xi32>
    %400 = arith.cmpi sgt, %3, %399 : vector<16x1xi32>
    %401 = vector.broadcast %382 : i32 to vector<16x1xi32>
    %402 = arith.cmpi sgt, %3, %401 : vector<16x1xi32>
    %403 = vector.extract_strided_slice %390 {offsets = [0, 0], sizes = [16, 16], strides = [1, 1]} : vector<16x64xf32> to vector<16x16xf32>
    %404 = arith.negf %403 : vector<16x16xf32>
    %405 = math.exp %404 : vector<16x16xf32>
    %cst_186 = arith.constant 1.000000e+00 : f32
    %406 = vector.broadcast %cst_186 : f32 to vector<16x16xf32>
    %407 = arith.addf %406, %405 : vector<16x16xf32>
    %408 = arith.divf %406, %407 : vector<16x16xf32>
    %409 = vector.extract_strided_slice %390 {offsets = [0, 16], sizes = [16, 16], strides = [1, 1]} : vector<16x64xf32> to vector<16x16xf32>
    %410 = arith.negf %409 : vector<16x16xf32>
    %411 = math.exp %410 : vector<16x16xf32>
    %cst_187 = arith.constant 1.000000e+00 : f32
    %412 = vector.broadcast %cst_187 : f32 to vector<16x16xf32>
    %413 = arith.addf %412, %411 : vector<16x16xf32>
    %414 = arith.divf %412, %413 : vector<16x16xf32>
    %415 = vector.extract_strided_slice %390 {offsets = [0, 32], sizes = [16, 16], strides = [1, 1]} : vector<16x64xf32> to vector<16x16xf32>
    %416 = math.tanh %415 : vector<16x16xf32>
    %417 = vector.extract_strided_slice %390 {offsets = [0, 48], sizes = [16, 16], strides = [1, 1]} : vector<16x64xf32> to vector<16x16xf32>
    %418 = arith.negf %417 : vector<16x16xf32>
    %419 = math.exp %418 : vector<16x16xf32>
    %cst_188 = arith.constant 1.000000e+00 : f32
    %420 = vector.broadcast %cst_188 : f32 to vector<16x16xf32>
    %421 = arith.addf %420, %419 : vector<16x16xf32>
    %422 = arith.divf %420, %421 : vector<16x16xf32>
    %c0_189 = arith.constant 0 : index
    %c0_190 = arith.constant 0 : index
    %423 = vector.load %arg9[%c0_189, %c0_190] : memref<16x16xf32, #tpu.memory_space<vmem>>, vector<16x16xf32>
    %424 = arith.mulf %414, %423 : vector<16x16xf32>
    %425 = arith.mulf %408, %416 : vector<16x16xf32>
    %426 = arith.addf %424, %425 : vector<16x16xf32>
    %427 = math.tanh %426 : vector<16x16xf32>
    %428 = arith.mulf %422, %427 : vector<16x16xf32>
    %c0_191 = arith.constant 0 : index
    %c0_192 = arith.constant 0 : index
    %429 = vector.load %arg8[%c0_191, %c0_192] : memref<16x16xf32, #tpu.memory_space<vmem>>, vector<16x16xf32>
    %430 = vector.shape_cast %400 : vector<16x1xi1> to vector<16x1xi1>
    %431 = vector.broadcast %430 : vector<16x1xi1> to vector<16x16xi1>
    %432 = arith.select %431, %428, %429 : vector<16x16xi1>, vector<16x16xf32>
    %c0_193 = arith.constant 0 : index
    %c0_194 = arith.constant 0 : index
    %433 = vector.load %arg8[%c0_193, %c0_194] : memref<16x16xf32, #tpu.memory_space<vmem>>, vector<16x16xf32>
    tpu.vector_store %arg8[%c0_193, %c0_194], %432 {strides = array<i32>} : memref<16x16xf32, #tpu.memory_space<vmem>>, vector<16x16xf32>,
    %c0_195 = arith.constant 0 : index
    %c0_196 = arith.constant 0 : index
    %434 = vector.load %arg9[%c0_195, %c0_196] : memref<16x16xf32, #tpu.memory_space<vmem>>, vector<16x16xf32>
    %435 = vector.shape_cast %400 : vector<16x1xi1> to vector<16x1xi1>
    %436 = vector.broadcast %435 : vector<16x1xi1> to vector<16x16xi1>
    %437 = arith.select %436, %426, %434 : vector<16x16xi1>, vector<16x16xf32>
    %c0_197 = arith.constant 0 : index
    %c0_198 = arith.constant 0 : index
    %438 = vector.load %arg9[%c0_197, %c0_198] : memref<16x16xf32, #tpu.memory_space<vmem>>, vector<16x16xf32>
    tpu.vector_store %arg9[%c0_197, %c0_198], %437 {strides = array<i32>} : memref<16x16xf32, #tpu.memory_space<vmem>>, vector<16x16xf32>,
    %439 = vector.extract_strided_slice %398 {offsets = [0, 0], sizes = [16, 16], strides = [1, 1]} : vector<16x64xf32> to vector<16x16xf32>
    %440 = arith.negf %439 : vector<16x16xf32>
    %441 = math.exp %440 : vector<16x16xf32>
    %cst_199 = arith.constant 1.000000e+00 : f32
    %442 = vector.broadcast %cst_199 : f32 to vector<16x16xf32>
    %443 = arith.addf %442, %441 : vector<16x16xf32>
    %444 = arith.divf %442, %443 : vector<16x16xf32>
    %445 = vector.extract_strided_slice %398 {offsets = [0, 16], sizes = [16, 16], strides = [1, 1]} : vector<16x64xf32> to vector<16x16xf32>
    %446 = arith.negf %445 : vector<16x16xf32>
    %447 = math.exp %446 : vector<16x16xf32>
    %cst_200 = arith.constant 1.000000e+00 : f32
    %448 = vector.broadcast %cst_200 : f32 to vector<16x16xf32>
    %449 = arith.addf %448, %447 : vector<16x16xf32>
    %450 = arith.divf %448, %449 : vector<16x16xf32>
    %451 = vector.extract_strided_slice %398 {offsets = [0, 32], sizes = [16, 16], strides = [1, 1]} : vector<16x64xf32> to vector<16x16xf32>
    %452 = math.tanh %451 : vector<16x16xf32>
    %453 = vector.extract_strided_slice %398 {offsets = [0, 48], sizes = [16, 16], strides = [1, 1]} : vector<16x64xf32> to vector<16x16xf32>
    %454 = arith.negf %453 : vector<16x16xf32>
    %455 = math.exp %454 : vector<16x16xf32>
    %cst_201 = arith.constant 1.000000e+00 : f32
    %456 = vector.broadcast %cst_201 : f32 to vector<16x16xf32>
    %457 = arith.addf %456, %455 : vector<16x16xf32>
    %458 = arith.divf %456, %457 : vector<16x16xf32>
    %c0_202 = arith.constant 0 : index
    %c0_203 = arith.constant 0 : index
    %459 = vector.load %arg11[%c0_202, %c0_203] : memref<16x16xf32, #tpu.memory_space<vmem>>, vector<16x16xf32>
    %460 = arith.mulf %450, %459 : vector<16x16xf32>
    %461 = arith.mulf %444, %452 : vector<16x16xf32>
    %462 = arith.addf %460, %461 : vector<16x16xf32>
    %463 = math.tanh %462 : vector<16x16xf32>
    %464 = arith.mulf %458, %463 : vector<16x16xf32>
    %c0_204 = arith.constant 0 : index
    %c0_205 = arith.constant 0 : index
    %465 = vector.load %arg10[%c0_204, %c0_205] : memref<16x16xf32, #tpu.memory_space<vmem>>, vector<16x16xf32>
    %466 = vector.shape_cast %402 : vector<16x1xi1> to vector<16x1xi1>
    %467 = vector.broadcast %466 : vector<16x1xi1> to vector<16x16xi1>
    %468 = arith.select %467, %464, %465 : vector<16x16xi1>, vector<16x16xf32>
    %c0_206 = arith.constant 0 : index
    %c0_207 = arith.constant 0 : index
    %469 = vector.load %arg10[%c0_206, %c0_207] : memref<16x16xf32, #tpu.memory_space<vmem>>, vector<16x16xf32>
    tpu.vector_store %arg10[%c0_206, %c0_207], %468 {strides = array<i32>} : memref<16x16xf32, #tpu.memory_space<vmem>>, vector<16x16xf32>,
    %c0_208 = arith.constant 0 : index
    %c0_209 = arith.constant 0 : index
    %470 = vector.load %arg11[%c0_208, %c0_209] : memref<16x16xf32, #tpu.memory_space<vmem>>, vector<16x16xf32>
    %471 = vector.shape_cast %402 : vector<16x1xi1> to vector<16x1xi1>
    %472 = vector.broadcast %471 : vector<16x1xi1> to vector<16x16xi1>
    %473 = arith.select %472, %462, %470 : vector<16x16xi1>, vector<16x16xf32>
    %c0_210 = arith.constant 0 : index
    %c0_211 = arith.constant 0 : index
    %474 = vector.load %arg11[%c0_210, %c0_211] : memref<16x16xf32, #tpu.memory_space<vmem>>, vector<16x16xf32>
    tpu.vector_store %arg11[%c0_210, %c0_211], %473 {strides = array<i32>} : memref<16x16xf32, #tpu.memory_space<vmem>>, vector<16x16xf32>,
    %c1_i32_212 = arith.constant 1 : i32
    %475 = arith.cmpi eq, %arg1, %c1_i32_212 : i32
    %476 = arith.extui %475 : i1 to i32
    %c0_i32_213 = arith.constant 0 : i32
    %477 = arith.cmpi ne, %476, %c0_i32_213 : i32
    scf.if %477 {
      %c0_214 = arith.constant 0 : index
      %c0_215 = arith.constant 0 : index
      %478 = vector.load %arg8[%c0_214, %c0_215] : memref<16x16xf32, #tpu.memory_space<vmem>>, vector<16x16xf32>
      %c0_216 = arith.constant 0 : index
      %c0_217 = arith.constant 0 : index
      %479 = vector.load %arg7[%c0_216, %c0_217] : memref<16x32xf32, #tpu.memory_space<vmem>>, vector<16x16xf32>
      tpu.vector_store %arg7[%c0_216, %c0_217], %478 {strides = array<i32>} : memref<16x32xf32, #tpu.memory_space<vmem>>, vector<16x16xf32>,
      %c0_218 = arith.constant 0 : index
      %c0_219 = arith.constant 0 : index
      %480 = vector.load %arg10[%c0_218, %c0_219] : memref<16x16xf32, #tpu.memory_space<vmem>>, vector<16x16xf32>
      %c0_220 = arith.constant 0 : index
      %c16 = arith.constant 16 : index
      %481 = vector.load %arg7[%c0_220, %c16] : memref<16x32xf32, #tpu.memory_space<vmem>>, vector<16x16xf32>
      tpu.vector_store %arg7[%c0_220, %c16], %480 {strides = array<i32>} : memref<16x32xf32, #tpu.memory_space<vmem>>, vector<16x16xf32>,
    } else {
    }
    return
  }
  func.func @transform_0(%arg0: i32, %arg1: i32) -> (i32, i32, i32) {
    %c0_i32 = arith.constant 0 : i32
    %c0_i32_0 = arith.constant 0 : i32
    return %arg1, %arg0, %c0_i32 : i32, i32, i32
  }
  func.func @transform_1(%arg0: i32, %arg1: i32) -> (i32, i32, i32) {
    %c1_i32 = arith.constant 1 : i32
    %0 = arith.subi %c1_i32, %arg1 : i32
    %c0_i32 = arith.constant 0 : i32
    %c0_i32_0 = arith.constant 0 : i32
    return %0, %arg0, %c0_i32 : i32, i32, i32
  }
  func.func @transform_2(%arg0: i32, %arg1: i32) -> (i32, i32) {
    %c0_i32 = arith.constant 0 : i32
    %c0_i32_0 = arith.constant 0 : i32
    return %arg0, %c0_i32 : i32, i32
  }
  func.func @transform_3(%arg0: i32, %arg1: i32) -> (i32, i32) {
    %c0_i32 = arith.constant 0 : i32
    %c0_i32_0 = arith.constant 0 : i32
    %c0_i32_1 = arith.constant 0 : i32
    return %c0_i32, %c0_i32_0 : i32, i32
  }
  func.func @transform_4(%arg0: i32, %arg1: i32) -> (i32, i32) {
    %c0_i32 = arith.constant 0 : i32
    %c0_i32_0 = arith.constant 0 : i32
    %c0_i32_1 = arith.constant 0 : i32
    return %c0_i32, %c0_i32_0 : i32, i32
  }
  func.func @transform_5(%arg0: i32, %arg1: i32) -> (i32, i32) {
    %c0_i32 = arith.constant 0 : i32
    %c0_i32_0 = arith.constant 0 : i32
    return %arg0, %c0_i32 : i32, i32
  }
}

module attributes {stable_mosaic.version = 11 : i64} {
  func.func @_fused_matmul_kernel(%arg0: i32, %arg1: memref<16x32xf32, #tpu.memory_space<vmem>>, %arg2: memref<32x256xbf16, #tpu.memory_space<vmem>>, %arg3: memref<1x256xf32, #tpu.memory_space<vmem>>, %arg4: memref<16x128xbf16, #tpu.memory_space<vmem>>, %arg5: memref<16x128xbf16, #tpu.memory_space<vmem>>) attributes {dimension_semantics = [#tpu.dimension_semantics<parallel>], iteration_bounds = array<i64: 1>, scalar_prefetch = 0 : i64, scratch_operands = 0 : i64, tpu.core_type = #tpu.core_type<tc>, window_params = [{transform_indices = @transform_0, window_bounds = array<i64: 16, 32>}, {pipeline_mode = #tpu.pipeline_mode<synchronous>, transform_indices = @transform_1, window_bounds = array<i64: 32, 256>}, {pipeline_mode = #tpu.pipeline_mode<synchronous>, transform_indices = @transform_2, window_bounds = array<i64: 1, 256>}, {transform_indices = @transform_3, window_bounds = array<i64: 16, 128>}, {transform_indices = @transform_4, window_bounds = array<i64: 16, 128>}]} {
    %c0 = arith.constant 0 : index
    %c0_0 = arith.constant 0 : index
    %0 = vector.load %arg3[%c0, %c0_0] : memref<1x256xf32, #tpu.memory_space<vmem>>, vector<1x256xf32>
    %c0_1 = arith.constant 0 : index
    %c0_2 = arith.constant 0 : index
    %1 = vector.load %arg1[%c0_1, %c0_2] : memref<16x32xf32, #tpu.memory_space<vmem>>, vector<16x32xf32>
    %2 = arith.truncf %1 : vector<16x32xf32> to vector<16x32xbf16>
    %c0_3 = arith.constant 0 : index
    %c0_4 = arith.constant 0 : index
    %3 = vector.load %arg2[%c0_3, %c0_4] : memref<32x256xbf16, #tpu.memory_space<vmem>>, vector<32x256xbf16>
    %cst = arith.constant dense<0.000000e+00> : vector<16x256xf32>
    %4 = tpu.matmul %2, %3, %cst {dimension_numbers = #tpu.dot_dimension_numbers<[1], [0], [0], [1], [0, 0, 1, 1], [], []>} : vector<16x32xbf16>, vector<32x256xbf16>, vector<16x256xf32> -> vector<16x256xf32>
    %5 = vector.broadcast %0 : vector<1x256xf32> to vector<16x256xf32>
    %6 = arith.addf %5, %4 : vector<16x256xf32>
    %7 = vector.extract_strided_slice %6 {offsets = [0, 0], sizes = [16, 128], strides = [1, 1]} : vector<16x256xf32> to vector<16x128xf32>
    %8 = arith.truncf %7 : vector<16x128xf32> to vector<16x128xbf16>
    %c0_5 = arith.constant 0 : index
    %c0_6 = arith.constant 0 : index
    %9 = vector.load %arg4[%c0_5, %c0_6] : memref<16x128xbf16, #tpu.memory_space<vmem>>, vector<16x128xbf16>
    tpu.vector_store %arg4[%c0_5, %c0_6], %8 {strides = array<i32>} : memref<16x128xbf16, #tpu.memory_space<vmem>>, vector<16x128xbf16>,
    %10 = vector.extract_strided_slice %6 {offsets = [0, 128], sizes = [16, 128], strides = [1, 1]} : vector<16x256xf32> to vector<16x128xf32>
    %11 = arith.truncf %10 : vector<16x128xf32> to vector<16x128xbf16>
    %c0_7 = arith.constant 0 : index
    %c0_8 = arith.constant 0 : index
    %12 = vector.load %arg5[%c0_7, %c0_8] : memref<16x128xbf16, #tpu.memory_space<vmem>>, vector<16x128xbf16>
    tpu.vector_store %arg5[%c0_7, %c0_8], %11 {strides = array<i32>} : memref<16x128xbf16, #tpu.memory_space<vmem>>, vector<16x128xbf16>,
    return
  }
  func.func @transform_0(%arg0: i32) -> (i32, i32) {
    %c0_i32 = arith.constant 0 : i32
    %c0_i32_0 = arith.constant 0 : i32
    return %arg0, %c0_i32 : i32, i32
  }
  func.func @transform_1(%arg0: i32) -> (i32, i32) {
    %c0_i32 = arith.constant 0 : i32
    %c0_i32_0 = arith.constant 0 : i32
    %c0_i32_1 = arith.constant 0 : i32
    return %c0_i32, %c0_i32_0 : i32, i32
  }
  func.func @transform_2(%arg0: i32) -> (i32, i32) {
    %c0_i32 = arith.constant 0 : i32
    %c0_i32_0 = arith.constant 0 : i32
    %c0_i32_1 = arith.constant 0 : i32
    return %c0_i32, %c0_i32_0 : i32, i32
  }
  func.func @transform_3(%arg0: i32) -> (i32, i32) {
    %c0_i32 = arith.constant 0 : i32
    %c0_i32_0 = arith.constant 0 : i32
    return %arg0, %c0_i32 : i32, i32
  }
  func.func @transform_4(%arg0: i32) -> (i32, i32) {
    %c0_i32 = arith.constant 0 : i32
    %c0_i32_0 = arith.constant 0 : i32
    return %arg0, %c0_i32 : i32, i32
  }
}

module attributes {stable_mosaic.version = 11 : i64} {
  func.func @_bilstm_seq_kernel(%arg0: i32, %arg1: i32, %arg2: memref<6x2x128xbf16, #tpu.memory_space<vmem>>, %arg3: memref<6x2x128xbf16, #tpu.memory_space<vmem>>, %arg4: memref<2x1xi32, #tpu.memory_space<vmem>>, %arg5: memref<32x128xbf16, #tpu.memory_space<vmem>>, %arg6: memref<32x128xbf16, #tpu.memory_space<vmem>>, %arg7: memref<6x2x32xbf16, #tpu.memory_space<vmem>>, %arg8: memref<6x2x32xbf16, #tpu.memory_space<vmem>>, %arg9: memref<2x32xf32, #tpu.memory_space<vmem>>, %arg10: memref<2x32xf32, #tpu.memory_space<vmem>>, %arg11: memref<2x32xf32, #tpu.memory_space<vmem>>, %arg12: memref<2x32xf32, #tpu.memory_space<vmem>>) attributes {dimension_semantics = [#tpu.dimension_semantics<parallel>, #tpu.dimension_semantics<arbitrary>], iteration_bounds = array<i64: 1, 1>, scalar_prefetch = 0 : i64, scratch_operands = 4 : i64, tpu.core_type = #tpu.core_type<tc>, window_params = [{transform_indices = @transform_0, window_bounds = array<i64: 6, 2, 128>}, {transform_indices = @transform_1, window_bounds = array<i64: 6, 2, 128>}, {transform_indices = @transform_2, window_bounds = array<i64: 2, 1>}, {pipeline_mode = #tpu.pipeline_mode<synchronous>, transform_indices = @transform_3, window_bounds = array<i64: 32, 128>}, {pipeline_mode = #tpu.pipeline_mode<synchronous>, transform_indices = @transform_4, window_bounds = array<i64: 32, 128>}, {transform_indices = @transform_5, window_bounds = array<i64: 6, 2, 32>}, {transform_indices = @transform_6, window_bounds = array<i64: 6, 2, 32>}]} {
    %c0_i32 = arith.constant 0 : i32
    %0 = arith.cmpi eq, %arg1, %c0_i32 : i32
    %1 = arith.extui %0 : i1 to i32
    %c0_i32_0 = arith.constant 0 : i32
    %2 = arith.cmpi ne, %1, %c0_i32_0 : i32
    scf.if %2 {
      %cst_303 = arith.constant 0.000000e+00 : f32
      %665 = vector.broadcast %cst_303 : f32 to vector<2x32xf32>
      %c0_304 = arith.constant 0 : index
      %c0_305 = arith.constant 0 : index
      %666 = vector.load %arg9[%c0_304, %c0_305] : memref<2x32xf32, #tpu.memory_space<vmem>>, vector<2x32xf32>
      tpu.vector_store %arg9[%c0_304, %c0_305], %665 {strides = array<i32>} : memref<2x32xf32, #tpu.memory_space<vmem>>, vector<2x32xf32>,
      %cst_306 = arith.constant 0.000000e+00 : f32
      %667 = vector.broadcast %cst_306 : f32 to vector<2x32xf32>
      %c0_307 = arith.constant 0 : index
      %c0_308 = arith.constant 0 : index
      %668 = vector.load %arg10[%c0_307, %c0_308] : memref<2x32xf32, #tpu.memory_space<vmem>>, vector<2x32xf32>
      tpu.vector_store %arg10[%c0_307, %c0_308], %667 {strides = array<i32>} : memref<2x32xf32, #tpu.memory_space<vmem>>, vector<2x32xf32>,
      %cst_309 = arith.constant 0.000000e+00 : f32
      %669 = vector.broadcast %cst_309 : f32 to vector<2x32xf32>
      %c0_310 = arith.constant 0 : index
      %c0_311 = arith.constant 0 : index
      %670 = vector.load %arg11[%c0_310, %c0_311] : memref<2x32xf32, #tpu.memory_space<vmem>>, vector<2x32xf32>
      tpu.vector_store %arg11[%c0_310, %c0_311], %669 {strides = array<i32>} : memref<2x32xf32, #tpu.memory_space<vmem>>, vector<2x32xf32>,
      %cst_312 = arith.constant 0.000000e+00 : f32
      %671 = vector.broadcast %cst_312 : f32 to vector<2x32xf32>
      %c0_313 = arith.constant 0 : index
      %c0_314 = arith.constant 0 : index
      %672 = vector.load %arg12[%c0_313, %c0_314] : memref<2x32xf32, #tpu.memory_space<vmem>>, vector<2x32xf32>
      tpu.vector_store %arg12[%c0_313, %c0_314], %671 {strides = array<i32>} : memref<2x32xf32, #tpu.memory_space<vmem>>, vector<2x32xf32>,
    } else {
    }
    %c0 = arith.constant 0 : index
    %c0_1 = arith.constant 0 : index
    %3 = vector.load %arg4[%c0, %c0_1] : memref<2x1xi32, #tpu.memory_space<vmem>>, vector<2x1xi32>
    %c6_i32 = arith.constant 6 : i32
    %4 = arith.muli %arg1, %c6_i32 : i32
    %c0_i32_2 = arith.constant 0 : i32
    %5 = arith.addi %4, %c0_i32_2 : i32
    %c5_i32 = arith.constant 5 : i32
    %6 = arith.subi %c5_i32, %5 : i32
    %c0_3 = arith.constant 0 : index
    %c0_4 = arith.constant 0 : index
    %c0_5 = arith.constant 0 : index
    %7 = vector.load %arg2[%c0_3, %c0_4, %c0_5] : memref<6x2x128xbf16, #tpu.memory_space<vmem>>, vector<1x2x128xbf16>
    %8 = vector.shape_cast %7 : vector<1x2x128xbf16> to vector<2x128xbf16>
    %9 = arith.extf %8 : vector<2x128xbf16> to vector<2x128xf32>
    %c0_6 = arith.constant 0 : index
    %c0_7 = arith.constant 0 : index
    %10 = vector.load %arg9[%c0_6, %c0_7] : memref<2x32xf32, #tpu.memory_space<vmem>>, vector<2x32xf32>
    %11 = arith.truncf %10 : vector<2x32xf32> to vector<2x32xbf16>
    %c0_8 = arith.constant 0 : index
    %c0_9 = arith.constant 0 : index
    %12 = vector.load %arg5[%c0_8, %c0_9] : memref<32x128xbf16, #tpu.memory_space<vmem>>, vector<32x128xbf16>
    %cst = arith.constant dense<0.000000e+00> : vector<2x128xf32>
    %13 = tpu.matmul %11, %12, %cst {dimension_numbers = #tpu.dot_dimension_numbers<[1], [0], [0], [1], [0, 0, 1, 1], [], []>} : vector<2x32xbf16>, vector<32x128xbf16>, vector<2x128xf32> -> vector<2x128xf32>
    %14 = arith.addf %9, %13 : vector<2x128xf32>
    %c5 = arith.constant 5 : index
    %c0_10 = arith.constant 0 : index
    %c0_11 = arith.constant 0 : index
    %15 = vector.load %arg3[%c5, %c0_10, %c0_11] : memref<6x2x128xbf16, #tpu.memory_space<vmem>>, vector<1x2x128xbf16>
    %16 = vector.shape_cast %15 : vector<1x2x128xbf16> to vector<2x128xbf16>
    %17 = arith.extf %16 : vector<2x128xbf16> to vector<2x128xf32>
    %c0_12 = arith.constant 0 : index
    %c0_13 = arith.constant 0 : index
    %18 = vector.load %arg11[%c0_12, %c0_13] : memref<2x32xf32, #tpu.memory_space<vmem>>, vector<2x32xf32>
    %19 = arith.truncf %18 : vector<2x32xf32> to vector<2x32xbf16>
    %c0_14 = arith.constant 0 : index
    %c0_15 = arith.constant 0 : index
    %20 = vector.load %arg6[%c0_14, %c0_15] : memref<32x128xbf16, #tpu.memory_space<vmem>>, vector<32x128xbf16>
    %cst_16 = arith.constant dense<0.000000e+00> : vector<2x128xf32>
    %21 = tpu.matmul %19, %20, %cst_16 {dimension_numbers = #tpu.dot_dimension_numbers<[1], [0], [0], [1], [0, 0, 1, 1], [], []>} : vector<2x32xbf16>, vector<32x128xbf16>, vector<2x128xf32> -> vector<2x128xf32>
    %22 = arith.addf %17, %21 : vector<2x128xf32>
    %23 = vector.broadcast %5 : i32 to vector<2x1xi32>
    %24 = arith.cmpi sgt, %3, %23 : vector<2x1xi32>
    %25 = vector.broadcast %6 : i32 to vector<2x1xi32>
    %26 = arith.cmpi sgt, %3, %25 : vector<2x1xi32>
    %27 = vector.extract_strided_slice %14 {offsets = [0, 0], sizes = [2, 32], strides = [1, 1]} : vector<2x128xf32> to vector<2x32xf32>
    %28 = arith.negf %27 : vector<2x32xf32>
    %29 = math.exp %28 : vector<2x32xf32>
    %cst_17 = arith.constant 1.000000e+00 : f32
    %30 = vector.broadcast %cst_17 : f32 to vector<2x32xf32>
    %31 = arith.addf %30, %29 : vector<2x32xf32>
    %32 = arith.divf %30, %31 : vector<2x32xf32>
    %33 = vector.extract_strided_slice %14 {offsets = [0, 32], sizes = [2, 32], strides = [1, 1]} : vector<2x128xf32> to vector<2x32xf32>
    %34 = arith.negf %33 : vector<2x32xf32>
    %35 = math.exp %34 : vector<2x32xf32>
    %cst_18 = arith.constant 1.000000e+00 : f32
    %36 = vector.broadcast %cst_18 : f32 to vector<2x32xf32>
    %37 = arith.addf %36, %35 : vector<2x32xf32>
    %38 = arith.divf %36, %37 : vector<2x32xf32>
    %39 = vector.extract_strided_slice %14 {offsets = [0, 64], sizes = [2, 32], strides = [1, 1]} : vector<2x128xf32> to vector<2x32xf32>
    %40 = math.tanh %39 : vector<2x32xf32>
    %41 = vector.extract_strided_slice %14 {offsets = [0, 96], sizes = [2, 32], strides = [1, 1]} : vector<2x128xf32> to vector<2x32xf32>
    %42 = arith.negf %41 : vector<2x32xf32>
    %43 = math.exp %42 : vector<2x32xf32>
    %cst_19 = arith.constant 1.000000e+00 : f32
    %44 = vector.broadcast %cst_19 : f32 to vector<2x32xf32>
    %45 = arith.addf %44, %43 : vector<2x32xf32>
    %46 = arith.divf %44, %45 : vector<2x32xf32>
    %c0_20 = arith.constant 0 : index
    %c0_21 = arith.constant 0 : index
    %47 = vector.load %arg10[%c0_20, %c0_21] : memref<2x32xf32, #tpu.memory_space<vmem>>, vector<2x32xf32>
    %48 = arith.mulf %38, %47 : vector<2x32xf32>
    %49 = arith.mulf %32, %40 : vector<2x32xf32>
    %50 = arith.addf %48, %49 : vector<2x32xf32>
    %51 = math.tanh %50 : vector<2x32xf32>
    %52 = arith.mulf %46, %51 : vector<2x32xf32>
    %c0_22 = arith.constant 0 : index
    %c0_23 = arith.constant 0 : index
    %53 = vector.load %arg9[%c0_22, %c0_23] : memref<2x32xf32, #tpu.memory_space<vmem>>, vector<2x32xf32>
    %54 = vector.shape_cast %24 : vector<2x1xi1> to vector<2x1xi1>
    %55 = vector.broadcast %54 : vector<2x1xi1> to vector<2x32xi1>
    %56 = arith.select %55, %52, %53 : vector<2x32xi1>, vector<2x32xf32>
    %c0_24 = arith.constant 0 : index
    %c0_25 = arith.constant 0 : index
    %57 = vector.load %arg9[%c0_24, %c0_25] : memref<2x32xf32, #tpu.memory_space<vmem>>, vector<2x32xf32>
    tpu.vector_store %arg9[%c0_24, %c0_25], %56 {strides = array<i32>} : memref<2x32xf32, #tpu.memory_space<vmem>>, vector<2x32xf32>,
    %c0_26 = arith.constant 0 : index
    %c0_27 = arith.constant 0 : index
    %58 = vector.load %arg10[%c0_26, %c0_27] : memref<2x32xf32, #tpu.memory_space<vmem>>, vector<2x32xf32>
    %59 = vector.shape_cast %24 : vector<2x1xi1> to vector<2x1xi1>
    %60 = vector.broadcast %59 : vector<2x1xi1> to vector<2x32xi1>
    %61 = arith.select %60, %50, %58 : vector<2x32xi1>, vector<2x32xf32>
    %c0_28 = arith.constant 0 : index
    %c0_29 = arith.constant 0 : index
    %62 = vector.load %arg10[%c0_28, %c0_29] : memref<2x32xf32, #tpu.memory_space<vmem>>, vector<2x32xf32>
    tpu.vector_store %arg10[%c0_28, %c0_29], %61 {strides = array<i32>} : memref<2x32xf32, #tpu.memory_space<vmem>>, vector<2x32xf32>,
    %63 = vector.extract_strided_slice %22 {offsets = [0, 0], sizes = [2, 32], strides = [1, 1]} : vector<2x128xf32> to vector<2x32xf32>
    %64 = arith.negf %63 : vector<2x32xf32>
    %65 = math.exp %64 : vector<2x32xf32>
    %cst_30 = arith.constant 1.000000e+00 : f32
    %66 = vector.broadcast %cst_30 : f32 to vector<2x32xf32>
    %67 = arith.addf %66, %65 : vector<2x32xf32>
    %68 = arith.divf %66, %67 : vector<2x32xf32>
    %69 = vector.extract_strided_slice %22 {offsets = [0, 32], sizes = [2, 32], strides = [1, 1]} : vector<2x128xf32> to vector<2x32xf32>
    %70 = arith.negf %69 : vector<2x32xf32>
    %71 = math.exp %70 : vector<2x32xf32>
    %cst_31 = arith.constant 1.000000e+00 : f32
    %72 = vector.broadcast %cst_31 : f32 to vector<2x32xf32>
    %73 = arith.addf %72, %71 : vector<2x32xf32>
    %74 = arith.divf %72, %73 : vector<2x32xf32>
    %75 = vector.extract_strided_slice %22 {offsets = [0, 64], sizes = [2, 32], strides = [1, 1]} : vector<2x128xf32> to vector<2x32xf32>
    %76 = math.tanh %75 : vector<2x32xf32>
    %77 = vector.extract_strided_slice %22 {offsets = [0, 96], sizes = [2, 32], strides = [1, 1]} : vector<2x128xf32> to vector<2x32xf32>
    %78 = arith.negf %77 : vector<2x32xf32>
    %79 = math.exp %78 : vector<2x32xf32>
    %cst_32 = arith.constant 1.000000e+00 : f32
    %80 = vector.broadcast %cst_32 : f32 to vector<2x32xf32>
    %81 = arith.addf %80, %79 : vector<2x32xf32>
    %82 = arith.divf %80, %81 : vector<2x32xf32>
    %c0_33 = arith.constant 0 : index
    %c0_34 = arith.constant 0 : index
    %83 = vector.load %arg12[%c0_33, %c0_34] : memref<2x32xf32, #tpu.memory_space<vmem>>, vector<2x32xf32>
    %84 = arith.mulf %74, %83 : vector<2x32xf32>
    %85 = arith.mulf %68, %76 : vector<2x32xf32>
    %86 = arith.addf %84, %85 : vector<2x32xf32>
    %87 = math.tanh %86 : vector<2x32xf32>
    %88 = arith.mulf %82, %87 : vector<2x32xf32>
    %c0_35 = arith.constant 0 : index
    %c0_36 = arith.constant 0 : index
    %89 = vector.load %arg11[%c0_35, %c0_36] : memref<2x32xf32, #tpu.memory_space<vmem>>, vector<2x32xf32>
    %90 = vector.shape_cast %26 : vector<2x1xi1> to vector<2x1xi1>
    %91 = vector.broadcast %90 : vector<2x1xi1> to vector<2x32xi1>
    %92 = arith.select %91, %88, %89 : vector<2x32xi1>, vector<2x32xf32>
    %c0_37 = arith.constant 0 : index
    %c0_38 = arith.constant 0 : index
    %93 = vector.load %arg11[%c0_37, %c0_38] : memref<2x32xf32, #tpu.memory_space<vmem>>, vector<2x32xf32>
    tpu.vector_store %arg11[%c0_37, %c0_38], %92 {strides = array<i32>} : memref<2x32xf32, #tpu.memory_space<vmem>>, vector<2x32xf32>,
    %c0_39 = arith.constant 0 : index
    %c0_40 = arith.constant 0 : index
    %94 = vector.load %arg12[%c0_39, %c0_40] : memref<2x32xf32, #tpu.memory_space<vmem>>, vector<2x32xf32>
    %95 = vector.shape_cast %26 : vector<2x1xi1> to vector<2x1xi1>
    %96 = vector.broadcast %95 : vector<2x1xi1> to vector<2x32xi1>
    %97 = arith.select %96, %86, %94 : vector<2x32xi1>, vector<2x32xf32>
    %c0_41 = arith.constant 0 : index
    %c0_42 = arith.constant 0 : index
    %98 = vector.load %arg12[%c0_41, %c0_42] : memref<2x32xf32, #tpu.memory_space<vmem>>, vector<2x32xf32>
    tpu.vector_store %arg12[%c0_41, %c0_42], %97 {strides = array<i32>} : memref<2x32xf32, #tpu.memory_space<vmem>>, vector<2x32xf32>,
    %cst_43 = arith.constant 0.000000e+00 : f32
    %99 = vector.shape_cast %24 : vector<2x1xi1> to vector<2x1xi1>
    %100 = vector.broadcast %99 : vector<2x1xi1> to vector<2x32xi1>
    %101 = vector.broadcast %cst_43 : f32 to vector<2x32xf32>
    %102 = arith.select %100, %52, %101 : vector<2x32xi1>, vector<2x32xf32>
    %103 = arith.truncf %102 : vector<2x32xf32> to vector<2x32xbf16>
    %c0_44 = arith.constant 0 : index
    %c0_45 = arith.constant 0 : index
    %c0_46 = arith.constant 0 : index
    %104 = vector.load %arg7[%c0_44, %c0_45, %c0_46] : memref<6x2x32xbf16, #tpu.memory_space<vmem>>, vector<1x2x32xbf16>
    %105 = vector.shape_cast %104 : vector<1x2x32xbf16> to vector<2x32xbf16>
    %106 = vector.shape_cast %103 : vector<2x32xbf16> to vector<1x2x32xbf16>
    tpu.vector_store %arg7[%c0_44, %c0_45, %c0_46], %106 {strides = array<i32>} : memref<6x2x32xbf16, #tpu.memory_space<vmem>>, vector<1x2x32xbf16>,
    %cst_47 = arith.constant 0.000000e+00 : f32
    %107 = vector.shape_cast %26 : vector<2x1xi1> to vector<2x1xi1>
    %108 = vector.broadcast %107 : vector<2x1xi1> to vector<2x32xi1>
    %109 = vector.broadcast %cst_47 : f32 to vector<2x32xf32>
    %110 = arith.select %108, %88, %109 : vector<2x32xi1>, vector<2x32xf32>
    %111 = arith.truncf %110 : vector<2x32xf32> to vector<2x32xbf16>
    %c5_48 = arith.constant 5 : index
    %c0_49 = arith.constant 0 : index
    %c0_50 = arith.constant 0 : index
    %112 = vector.load %arg8[%c5_48, %c0_49, %c0_50] : memref<6x2x32xbf16, #tpu.memory_space<vmem>>, vector<1x2x32xbf16>
    %113 = vector.shape_cast %112 : vector<1x2x32xbf16> to vector<2x32xbf16>
    %114 = vector.shape_cast %111 : vector<2x32xbf16> to vector<1x2x32xbf16>
    tpu.vector_store %arg8[%c5_48, %c0_49, %c0_50], %114 {strides = array<i32>} : memref<6x2x32xbf16, #tpu.memory_space<vmem>>, vector<1x2x32xbf16>,
    %c1_i32 = arith.constant 1 : i32
    %115 = arith.addi %4, %c1_i32 : i32
    %c5_i32_51 = arith.constant 5 : i32
    %116 = arith.subi %c5_i32_51, %115 : i32
    %c1 = arith.constant 1 : index
    %c0_52 = arith.constant 0 : index
    %c0_53 = arith.constant 0 : index
    %117 = vector.load %arg2[%c1, %c0_52, %c0_53] : memref<6x2x128xbf16, #tpu.memory_space<vmem>>, vector<1x2x128xbf16>
    %118 = vector.shape_cast %117 : vector<1x2x128xbf16> to vector<2x128xbf16>
    %119 = arith.extf %118 : vector<2x128xbf16> to vector<2x128xf32>
    %c0_54 = arith.constant 0 : index
    %c0_55 = arith.constant 0 : index
    %120 = vector.load %arg9[%c0_54, %c0_55] : memref<2x32xf32, #tpu.memory_space<vmem>>, vector<2x32xf32>
    %121 = arith.truncf %120 : vector<2x32xf32> to vector<2x32xbf16>
    %c0_56 = arith.constant 0 : index
    %c0_57 = arith.constant 0 : index
    %122 = vector.load %arg5[%c0_56, %c0_57] : memref<32x128xbf16, #tpu.memory_space<vmem>>, vector<32x128xbf16>
    %cst_58 = arith.constant dense<0.000000e+00> : vector<2x128xf32>
    %123 = tpu.matmul %121, %122, %cst_58 {dimension_numbers = #tpu.dot_dimension_numbers<[1], [0], [0], [1], [0, 0, 1, 1], [], []>} : vector<2x32xbf16>, vector<32x128xbf16>, vector<2x128xf32> -> vector<2x128xf32>
    %124 = arith.addf %119, %123 : vector<2x128xf32>
    %c4 = arith.constant 4 : index
    %c0_59 = arith.constant 0 : index
    %c0_60 = arith.constant 0 : index
    %125 = vector.load %arg3[%c4, %c0_59, %c0_60] : memref<6x2x128xbf16, #tpu.memory_space<vmem>>, vector<1x2x128xbf16>
    %126 = vector.shape_cast %125 : vector<1x2x128xbf16> to vector<2x128xbf16>
    %127 = arith.extf %126 : vector<2x128xbf16> to vector<2x128xf32>
    %c0_61 = arith.constant 0 : index
    %c0_62 = arith.constant 0 : index
    %128 = vector.load %arg11[%c0_61, %c0_62] : memref<2x32xf32, #tpu.memory_space<vmem>>, vector<2x32xf32>
    %129 = arith.truncf %128 : vector<2x32xf32> to vector<2x32xbf16>
    %c0_63 = arith.constant 0 : index
    %c0_64 = arith.constant 0 : index
    %130 = vector.load %arg6[%c0_63, %c0_64] : memref<32x128xbf16, #tpu.memory_space<vmem>>, vector<32x128xbf16>
    %cst_65 = arith.constant dense<0.000000e+00> : vector<2x128xf32>
    %131 = tpu.matmul %129, %130, %cst_65 {dimension_numbers = #tpu.dot_dimension_numbers<[1], [0], [0], [1], [0, 0, 1, 1], [], []>} : vector<2x32xbf16>, vector<32x128xbf16>, vector<2x128xf32> -> vector<2x128xf32>
    %132 = arith.addf %127, %131 : vector<2x128xf32>
    %133 = vector.broadcast %115 : i32 to vector<2x1xi32>
    %134 = arith.cmpi sgt, %3, %133 : vector<2x1xi32>
    %135 = vector.broadcast %116 : i32 to vector<2x1xi32>
    %136 = arith.cmpi sgt, %3, %135 : vector<2x1xi32>
    %137 = vector.extract_strided_slice %124 {offsets = [0, 0], sizes = [2, 32], strides = [1, 1]} : vector<2x128xf32> to vector<2x32xf32>
    %138 = arith.negf %137 : vector<2x32xf32>
    %139 = math.exp %138 : vector<2x32xf32>
    %cst_66 = arith.constant 1.000000e+00 : f32
    %140 = vector.broadcast %cst_66 : f32 to vector<2x32xf32>
    %141 = arith.addf %140, %139 : vector<2x32xf32>
    %142 = arith.divf %140, %141 : vector<2x32xf32>
    %143 = vector.extract_strided_slice %124 {offsets = [0, 32], sizes = [2, 32], strides = [1, 1]} : vector<2x128xf32> to vector<2x32xf32>
    %144 = arith.negf %143 : vector<2x32xf32>
    %145 = math.exp %144 : vector<2x32xf32>
    %cst_67 = arith.constant 1.000000e+00 : f32
    %146 = vector.broadcast %cst_67 : f32 to vector<2x32xf32>
    %147 = arith.addf %146, %145 : vector<2x32xf32>
    %148 = arith.divf %146, %147 : vector<2x32xf32>
    %149 = vector.extract_strided_slice %124 {offsets = [0, 64], sizes = [2, 32], strides = [1, 1]} : vector<2x128xf32> to vector<2x32xf32>
    %150 = math.tanh %149 : vector<2x32xf32>
    %151 = vector.extract_strided_slice %124 {offsets = [0, 96], sizes = [2, 32], strides = [1, 1]} : vector<2x128xf32> to vector<2x32xf32>
    %152 = arith.negf %151 : vector<2x32xf32>
    %153 = math.exp %152 : vector<2x32xf32>
    %cst_68 = arith.constant 1.000000e+00 : f32
    %154 = vector.broadcast %cst_68 : f32 to vector<2x32xf32>
    %155 = arith.addf %154, %153 : vector<2x32xf32>
    %156 = arith.divf %154, %155 : vector<2x32xf32>
    %c0_69 = arith.constant 0 : index
    %c0_70 = arith.constant 0 : index
    %157 = vector.load %arg10[%c0_69, %c0_70] : memref<2x32xf32, #tpu.memory_space<vmem>>, vector<2x32xf32>
    %158 = arith.mulf %148, %157 : vector<2x32xf32>
    %159 = arith.mulf %142, %150 : vector<2x32xf32>
    %160 = arith.addf %158, %159 : vector<2x32xf32>
    %161 = math.tanh %160 : vector<2x32xf32>
    %162 = arith.mulf %156, %161 : vector<2x32xf32>
    %c0_71 = arith.constant 0 : index
    %c0_72 = arith.constant 0 : index
    %163 = vector.load %arg9[%c0_71, %c0_72] : memref<2x32xf32, #tpu.memory_space<vmem>>, vector<2x32xf32>
    %164 = vector.shape_cast %134 : vector<2x1xi1> to vector<2x1xi1>
    %165 = vector.broadcast %164 : vector<2x1xi1> to vector<2x32xi1>
    %166 = arith.select %165, %162, %163 : vector<2x32xi1>, vector<2x32xf32>
    %c0_73 = arith.constant 0 : index
    %c0_74 = arith.constant 0 : index
    %167 = vector.load %arg9[%c0_73, %c0_74] : memref<2x32xf32, #tpu.memory_space<vmem>>, vector<2x32xf32>
    tpu.vector_store %arg9[%c0_73, %c0_74], %166 {strides = array<i32>} : memref<2x32xf32, #tpu.memory_space<vmem>>, vector<2x32xf32>,
    %c0_75 = arith.constant 0 : index
    %c0_76 = arith.constant 0 : index
    %168 = vector.load %arg10[%c0_75, %c0_76] : memref<2x32xf32, #tpu.memory_space<vmem>>, vector<2x32xf32>
    %169 = vector.shape_cast %134 : vector<2x1xi1> to vector<2x1xi1>
    %170 = vector.broadcast %169 : vector<2x1xi1> to vector<2x32xi1>
    %171 = arith.select %170, %160, %168 : vector<2x32xi1>, vector<2x32xf32>
    %c0_77 = arith.constant 0 : index
    %c0_78 = arith.constant 0 : index
    %172 = vector.load %arg10[%c0_77, %c0_78] : memref<2x32xf32, #tpu.memory_space<vmem>>, vector<2x32xf32>
    tpu.vector_store %arg10[%c0_77, %c0_78], %171 {strides = array<i32>} : memref<2x32xf32, #tpu.memory_space<vmem>>, vector<2x32xf32>,
    %173 = vector.extract_strided_slice %132 {offsets = [0, 0], sizes = [2, 32], strides = [1, 1]} : vector<2x128xf32> to vector<2x32xf32>
    %174 = arith.negf %173 : vector<2x32xf32>
    %175 = math.exp %174 : vector<2x32xf32>
    %cst_79 = arith.constant 1.000000e+00 : f32
    %176 = vector.broadcast %cst_79 : f32 to vector<2x32xf32>
    %177 = arith.addf %176, %175 : vector<2x32xf32>
    %178 = arith.divf %176, %177 : vector<2x32xf32>
    %179 = vector.extract_strided_slice %132 {offsets = [0, 32], sizes = [2, 32], strides = [1, 1]} : vector<2x128xf32> to vector<2x32xf32>
    %180 = arith.negf %179 : vector<2x32xf32>
    %181 = math.exp %180 : vector<2x32xf32>
    %cst_80 = arith.constant 1.000000e+00 : f32
    %182 = vector.broadcast %cst_80 : f32 to vector<2x32xf32>
    %183 = arith.addf %182, %181 : vector<2x32xf32>
    %184 = arith.divf %182, %183 : vector<2x32xf32>
    %185 = vector.extract_strided_slice %132 {offsets = [0, 64], sizes = [2, 32], strides = [1, 1]} : vector<2x128xf32> to vector<2x32xf32>
    %186 = math.tanh %185 : vector<2x32xf32>
    %187 = vector.extract_strided_slice %132 {offsets = [0, 96], sizes = [2, 32], strides = [1, 1]} : vector<2x128xf32> to vector<2x32xf32>
    %188 = arith.negf %187 : vector<2x32xf32>
    %189 = math.exp %188 : vector<2x32xf32>
    %cst_81 = arith.constant 1.000000e+00 : f32
    %190 = vector.broadcast %cst_81 : f32 to vector<2x32xf32>
    %191 = arith.addf %190, %189 : vector<2x32xf32>
    %192 = arith.divf %190, %191 : vector<2x32xf32>
    %c0_82 = arith.constant 0 : index
    %c0_83 = arith.constant 0 : index
    %193 = vector.load %arg12[%c0_82, %c0_83] : memref<2x32xf32, #tpu.memory_space<vmem>>, vector<2x32xf32>
    %194 = arith.mulf %184, %193 : vector<2x32xf32>
    %195 = arith.mulf %178, %186 : vector<2x32xf32>
    %196 = arith.addf %194, %195 : vector<2x32xf32>
    %197 = math.tanh %196 : vector<2x32xf32>
    %198 = arith.mulf %192, %197 : vector<2x32xf32>
    %c0_84 = arith.constant 0 : index
    %c0_85 = arith.constant 0 : index
    %199 = vector.load %arg11[%c0_84, %c0_85] : memref<2x32xf32, #tpu.memory_space<vmem>>, vector<2x32xf32>
    %200 = vector.shape_cast %136 : vector<2x1xi1> to vector<2x1xi1>
    %201 = vector.broadcast %200 : vector<2x1xi1> to vector<2x32xi1>
    %202 = arith.select %201, %198, %199 : vector<2x32xi1>, vector<2x32xf32>
    %c0_86 = arith.constant 0 : index
    %c0_87 = arith.constant 0 : index
    %203 = vector.load %arg11[%c0_86, %c0_87] : memref<2x32xf32, #tpu.memory_space<vmem>>, vector<2x32xf32>
    tpu.vector_store %arg11[%c0_86, %c0_87], %202 {strides = array<i32>} : memref<2x32xf32, #tpu.memory_space<vmem>>, vector<2x32xf32>,
    %c0_88 = arith.constant 0 : index
    %c0_89 = arith.constant 0 : index
    %204 = vector.load %arg12[%c0_88, %c0_89] : memref<2x32xf32, #tpu.memory_space<vmem>>, vector<2x32xf32>
    %205 = vector.shape_cast %136 : vector<2x1xi1> to vector<2x1xi1>
    %206 = vector.broadcast %205 : vector<2x1xi1> to vector<2x32xi1>
    %207 = arith.select %206, %196, %204 : vector<2x32xi1>, vector<2x32xf32>
    %c0_90 = arith.constant 0 : index
    %c0_91 = arith.constant 0 : index
    %208 = vector.load %arg12[%c0_90, %c0_91] : memref<2x32xf32, #tpu.memory_space<vmem>>, vector<2x32xf32>
    tpu.vector_store %arg12[%c0_90, %c0_91], %207 {strides = array<i32>} : memref<2x32xf32, #tpu.memory_space<vmem>>, vector<2x32xf32>,
    %cst_92 = arith.constant 0.000000e+00 : f32
    %209 = vector.shape_cast %134 : vector<2x1xi1> to vector<2x1xi1>
    %210 = vector.broadcast %209 : vector<2x1xi1> to vector<2x32xi1>
    %211 = vector.broadcast %cst_92 : f32 to vector<2x32xf32>
    %212 = arith.select %210, %162, %211 : vector<2x32xi1>, vector<2x32xf32>
    %213 = arith.truncf %212 : vector<2x32xf32> to vector<2x32xbf16>
    %c1_93 = arith.constant 1 : index
    %c0_94 = arith.constant 0 : index
    %c0_95 = arith.constant 0 : index
    %214 = vector.load %arg7[%c1_93, %c0_94, %c0_95] : memref<6x2x32xbf16, #tpu.memory_space<vmem>>, vector<1x2x32xbf16>
    %215 = vector.shape_cast %214 : vector<1x2x32xbf16> to vector<2x32xbf16>
    %216 = vector.shape_cast %213 : vector<2x32xbf16> to vector<1x2x32xbf16>
    tpu.vector_store %arg7[%c1_93, %c0_94, %c0_95], %216 {strides = array<i32>} : memref<6x2x32xbf16, #tpu.memory_space<vmem>>, vector<1x2x32xbf16>,
    %cst_96 = arith.constant 0.000000e+00 : f32
    %217 = vector.shape_cast %136 : vector<2x1xi1> to vector<2x1xi1>
    %218 = vector.broadcast %217 : vector<2x1xi1> to vector<2x32xi1>
    %219 = vector.broadcast %cst_96 : f32 to vector<2x32xf32>
    %220 = arith.select %218, %198, %219 : vector<2x32xi1>, vector<2x32xf32>
    %221 = arith.truncf %220 : vector<2x32xf32> to vector<2x32xbf16>
    %c4_97 = arith.constant 4 : index
    %c0_98 = arith.constant 0 : index
    %c0_99 = arith.constant 0 : index
    %222 = vector.load %arg8[%c4_97, %c0_98, %c0_99] : memref<6x2x32xbf16, #tpu.memory_space<vmem>>, vector<1x2x32xbf16>
    %223 = vector.shape_cast %222 : vector<1x2x32xbf16> to vector<2x32xbf16>
    %224 = vector.shape_cast %221 : vector<2x32xbf16> to vector<1x2x32xbf16>
    tpu.vector_store %arg8[%c4_97, %c0_98, %c0_99], %224 {strides = array<i32>} : memref<6x2x32xbf16, #tpu.memory_space<vmem>>, vector<1x2x32xbf16>,
    %c2_i32 = arith.constant 2 : i32
    %225 = arith.addi %4, %c2_i32 : i32
    %c5_i32_100 = arith.constant 5 : i32
    %226 = arith.subi %c5_i32_100, %225 : i32
    %c2 = arith.constant 2 : index
    %c0_101 = arith.constant 0 : index
    %c0_102 = arith.constant 0 : index
    %227 = vector.load %arg2[%c2, %c0_101, %c0_102] : memref<6x2x128xbf16, #tpu.memory_space<vmem>>, vector<1x2x128xbf16>
    %228 = vector.shape_cast %227 : vector<1x2x128xbf16> to vector<2x128xbf16>
    %229 = arith.extf %228 : vector<2x128xbf16> to vector<2x128xf32>
    %c0_103 = arith.constant 0 : index
    %c0_104 = arith.constant 0 : index
    %230 = vector.load %arg9[%c0_103, %c0_104] : memref<2x32xf32, #tpu.memory_space<vmem>>, vector<2x32xf32>
    %231 = arith.truncf %230 : vector<2x32xf32> to vector<2x32xbf16>
    %c0_105 = arith.constant 0 : index
    %c0_106 = arith.constant 0 : index
    %232 = vector.load %arg5[%c0_105, %c0_106] : memref<32x128xbf16, #tpu.memory_space<vmem>>, vector<32x128xbf16>
    %cst_107 = arith.constant dense<0.000000e+00> : vector<2x128xf32>
    %233 = tpu.matmul %231, %232, %cst_107 {dimension_numbers = #tpu.dot_dimension_numbers<[1], [0], [0], [1], [0, 0, 1, 1], [], []>} : vector<2x32xbf16>, vector<32x128xbf16>, vector<2x128xf32> -> vector<2x128xf32>
    %234 = arith.addf %229, %233 : vector<2x128xf32>
    %c3 = arith.constant 3 : index
    %c0_108 = arith.constant 0 : index
    %c0_109 = arith.constant 0 : index
    %235 = vector.load %arg3[%c3, %c0_108, %c0_109] : memref<6x2x128xbf16, #tpu.memory_space<vmem>>, vector<1x2x128xbf16>
    %236 = vector.shape_cast %235 : vector<1x2x128xbf16> to vector<2x128xbf16>
    %237 = arith.extf %236 : vector<2x128xbf16> to vector<2x128xf32>
    %c0_110 = arith.constant 0 : index
    %c0_111 = arith.constant 0 : index
    %238 = vector.load %arg11[%c0_110, %c0_111] : memref<2x32xf32, #tpu.memory_space<vmem>>, vector<2x32xf32>
    %239 = arith.truncf %238 : vector<2x32xf32> to vector<2x32xbf16>
    %c0_112 = arith.constant 0 : index
    %c0_113 = arith.constant 0 : index
    %240 = vector.load %arg6[%c0_112, %c0_113] : memref<32x128xbf16, #tpu.memory_space<vmem>>, vector<32x128xbf16>
    %cst_114 = arith.constant dense<0.000000e+00> : vector<2x128xf32>
    %241 = tpu.matmul %239, %240, %cst_114 {dimension_numbers = #tpu.dot_dimension_numbers<[1], [0], [0], [1], [0, 0, 1, 1], [], []>} : vector<2x32xbf16>, vector<32x128xbf16>, vector<2x128xf32> -> vector<2x128xf32>
    %242 = arith.addf %237, %241 : vector<2x128xf32>
    %243 = vector.broadcast %225 : i32 to vector<2x1xi32>
    %244 = arith.cmpi sgt, %3, %243 : vector<2x1xi32>
    %245 = vector.broadcast %226 : i32 to vector<2x1xi32>
    %246 = arith.cmpi sgt, %3, %245 : vector<2x1xi32>
    %247 = vector.extract_strided_slice %234 {offsets = [0, 0], sizes = [2, 32], strides = [1, 1]} : vector<2x128xf32> to vector<2x32xf32>
    %248 = arith.negf %247 : vector<2x32xf32>
    %249 = math.exp %248 : vector<2x32xf32>
    %cst_115 = arith.constant 1.000000e+00 : f32
    %250 = vector.broadcast %cst_115 : f32 to vector<2x32xf32>
    %251 = arith.addf %250, %249 : vector<2x32xf32>
    %252 = arith.divf %250, %251 : vector<2x32xf32>
    %253 = vector.extract_strided_slice %234 {offsets = [0, 32], sizes = [2, 32], strides = [1, 1]} : vector<2x128xf32> to vector<2x32xf32>
    %254 = arith.negf %253 : vector<2x32xf32>
    %255 = math.exp %254 : vector<2x32xf32>
    %cst_116 = arith.constant 1.000000e+00 : f32
    %256 = vector.broadcast %cst_116 : f32 to vector<2x32xf32>
    %257 = arith.addf %256, %255 : vector<2x32xf32>
    %258 = arith.divf %256, %257 : vector<2x32xf32>
    %259 = vector.extract_strided_slice %234 {offsets = [0, 64], sizes = [2, 32], strides = [1, 1]} : vector<2x128xf32> to vector<2x32xf32>
    %260 = math.tanh %259 : vector<2x32xf32>
    %261 = vector.extract_strided_slice %234 {offsets = [0, 96], sizes = [2, 32], strides = [1, 1]} : vector<2x128xf32> to vector<2x32xf32>
    %262 = arith.negf %261 : vector<2x32xf32>
    %263 = math.exp %262 : vector<2x32xf32>
    %cst_117 = arith.constant 1.000000e+00 : f32
    %264 = vector.broadcast %cst_117 : f32 to vector<2x32xf32>
    %265 = arith.addf %264, %263 : vector<2x32xf32>
    %266 = arith.divf %264, %265 : vector<2x32xf32>
    %c0_118 = arith.constant 0 : index
    %c0_119 = arith.constant 0 : index
    %267 = vector.load %arg10[%c0_118, %c0_119] : memref<2x32xf32, #tpu.memory_space<vmem>>, vector<2x32xf32>
    %268 = arith.mulf %258, %267 : vector<2x32xf32>
    %269 = arith.mulf %252, %260 : vector<2x32xf32>
    %270 = arith.addf %268, %269 : vector<2x32xf32>
    %271 = math.tanh %270 : vector<2x32xf32>
    %272 = arith.mulf %266, %271 : vector<2x32xf32>
    %c0_120 = arith.constant 0 : index
    %c0_121 = arith.constant 0 : index
    %273 = vector.load %arg9[%c0_120, %c0_121] : memref<2x32xf32, #tpu.memory_space<vmem>>, vector<2x32xf32>
    %274 = vector.shape_cast %244 : vector<2x1xi1> to vector<2x1xi1>
    %275 = vector.broadcast %274 : vector<2x1xi1> to vector<2x32xi1>
    %276 = arith.select %275, %272, %273 : vector<2x32xi1>, vector<2x32xf32>
    %c0_122 = arith.constant 0 : index
    %c0_123 = arith.constant 0 : index
    %277 = vector.load %arg9[%c0_122, %c0_123] : memref<2x32xf32, #tpu.memory_space<vmem>>, vector<2x32xf32>
    tpu.vector_store %arg9[%c0_122, %c0_123], %276 {strides = array<i32>} : memref<2x32xf32, #tpu.memory_space<vmem>>, vector<2x32xf32>,
    %c0_124 = arith.constant 0 : index
    %c0_125 = arith.constant 0 : index
    %278 = vector.load %arg10[%c0_124, %c0_125] : memref<2x32xf32, #tpu.memory_space<vmem>>, vector<2x32xf32>
    %279 = vector.shape_cast %244 : vector<2x1xi1> to vector<2x1xi1>
    %280 = vector.broadcast %279 : vector<2x1xi1> to vector<2x32xi1>
    %281 = arith.select %280, %270, %278 : vector<2x32xi1>, vector<2x32xf32>
    %c0_126 = arith.constant 0 : index
    %c0_127 = arith.constant 0 : index
    %282 = vector.load %arg10[%c0_126, %c0_127] : memref<2x32xf32, #tpu.memory_space<vmem>>, vector<2x32xf32>
    tpu.vector_store %arg10[%c0_126, %c0_127], %281 {strides = array<i32>} : memref<2x32xf32, #tpu.memory_space<vmem>>, vector<2x32xf32>,
    %283 = vector.extract_strided_slice %242 {offsets = [0, 0], sizes = [2, 32], strides = [1, 1]} : vector<2x128xf32> to vector<2x32xf32>
    %284 = arith.negf %283 : vector<2x32xf32>
    %285 = math.exp %284 : vector<2x32xf32>
    %cst_128 = arith.constant 1.000000e+00 : f32
    %286 = vector.broadcast %cst_128 : f32 to vector<2x32xf32>
    %287 = arith.addf %286, %285 : vector<2x32xf32>
    %288 = arith.divf %286, %287 : vector<2x32xf32>
    %289 = vector.extract_strided_slice %242 {offsets = [0, 32], sizes = [2, 32], strides = [1, 1]} : vector<2x128xf32> to vector<2x32xf32>
    %290 = arith.negf %289 : vector<2x32xf32>
    %291 = math.exp %290 : vector<2x32xf32>
    %cst_129 = arith.constant 1.000000e+00 : f32
    %292 = vector.broadcast %cst_129 : f32 to vector<2x32xf32>
    %293 = arith.addf %292, %291 : vector<2x32xf32>
    %294 = arith.divf %292, %293 : vector<2x32xf32>
    %295 = vector.extract_strided_slice %242 {offsets = [0, 64], sizes = [2, 32], strides = [1, 1]} : vector<2x128xf32> to vector<2x32xf32>
    %296 = math.tanh %295 : vector<2x32xf32>
    %297 = vector.extract_strided_slice %242 {offsets = [0, 96], sizes = [2, 32], strides = [1, 1]} : vector<2x128xf32> to vector<2x32xf32>
    %298 = arith.negf %297 : vector<2x32xf32>
    %299 = math.exp %298 : vector<2x32xf32>
    %cst_130 = arith.constant 1.000000e+00 : f32
    %300 = vector.broadcast %cst_130 : f32 to vector<2x32xf32>
    %301 = arith.addf %300, %299 : vector<2x32xf32>
    %302 = arith.divf %300, %301 : vector<2x32xf32>
    %c0_131 = arith.constant 0 : index
    %c0_132 = arith.constant 0 : index
    %303 = vector.load %arg12[%c0_131, %c0_132] : memref<2x32xf32, #tpu.memory_space<vmem>>, vector<2x32xf32>
    %304 = arith.mulf %294, %303 : vector<2x32xf32>
    %305 = arith.mulf %288, %296 : vector<2x32xf32>
    %306 = arith.addf %304, %305 : vector<2x32xf32>
    %307 = math.tanh %306 : vector<2x32xf32>
    %308 = arith.mulf %302, %307 : vector<2x32xf32>
    %c0_133 = arith.constant 0 : index
    %c0_134 = arith.constant 0 : index
    %309 = vector.load %arg11[%c0_133, %c0_134] : memref<2x32xf32, #tpu.memory_space<vmem>>, vector<2x32xf32>
    %310 = vector.shape_cast %246 : vector<2x1xi1> to vector<2x1xi1>
    %311 = vector.broadcast %310 : vector<2x1xi1> to vector<2x32xi1>
    %312 = arith.select %311, %308, %309 : vector<2x32xi1>, vector<2x32xf32>
    %c0_135 = arith.constant 0 : index
    %c0_136 = arith.constant 0 : index
    %313 = vector.load %arg11[%c0_135, %c0_136] : memref<2x32xf32, #tpu.memory_space<vmem>>, vector<2x32xf32>
    tpu.vector_store %arg11[%c0_135, %c0_136], %312 {strides = array<i32>} : memref<2x32xf32, #tpu.memory_space<vmem>>, vector<2x32xf32>,
    %c0_137 = arith.constant 0 : index
    %c0_138 = arith.constant 0 : index
    %314 = vector.load %arg12[%c0_137, %c0_138] : memref<2x32xf32, #tpu.memory_space<vmem>>, vector<2x32xf32>
    %315 = vector.shape_cast %246 : vector<2x1xi1> to vector<2x1xi1>
    %316 = vector.broadcast %315 : vector<2x1xi1> to vector<2x32xi1>
    %317 = arith.select %316, %306, %314 : vector<2x32xi1>, vector<2x32xf32>
    %c0_139 = arith.constant 0 : index
    %c0_140 = arith.constant 0 : index
    %318 = vector.load %arg12[%c0_139, %c0_140] : memref<2x32xf32, #tpu.memory_space<vmem>>, vector<2x32xf32>
    tpu.vector_store %arg12[%c0_139, %c0_140], %317 {strides = array<i32>} : memref<2x32xf32, #tpu.memory_space<vmem>>, vector<2x32xf32>,
    %cst_141 = arith.constant 0.000000e+00 : f32
    %319 = vector.shape_cast %244 : vector<2x1xi1> to vector<2x1xi1>
    %320 = vector.broadcast %319 : vector<2x1xi1> to vector<2x32xi1>
    %321 = vector.broadcast %cst_141 : f32 to vector<2x32xf32>
    %322 = arith.select %320, %272, %321 : vector<2x32xi1>, vector<2x32xf32>
    %323 = arith.truncf %322 : vector<2x32xf32> to vector<2x32xbf16>
    %c2_142 = arith.constant 2 : index
    %c0_143 = arith.constant 0 : index
    %c0_144 = arith.constant 0 : index
    %324 = vector.load %arg7[%c2_142, %c0_143, %c0_144] : memref<6x2x32xbf16, #tpu.memory_space<vmem>>, vector<1x2x32xbf16>
    %325 = vector.shape_cast %324 : vector<1x2x32xbf16> to vector<2x32xbf16>
    %326 = vector.shape_cast %323 : vector<2x32xbf16> to vector<1x2x32xbf16>
    tpu.vector_store %arg7[%c2_142, %c0_143, %c0_144], %326 {strides = array<i32>} : memref<6x2x32xbf16, #tpu.memory_space<vmem>>, vector<1x2x32xbf16>,
    %cst_145 = arith.constant 0.000000e+00 : f32
    %327 = vector.shape_cast %246 : vector<2x1xi1> to vector<2x1xi1>
    %328 = vector.broadcast %327 : vector<2x1xi1> to vector<2x32xi1>
    %329 = vector.broadcast %cst_145 : f32 to vector<2x32xf32>
    %330 = arith.select %328, %308, %329 : vector<2x32xi1>, vector<2x32xf32>
    %331 = arith.truncf %330 : vector<2x32xf32> to vector<2x32xbf16>
    %c3_146 = arith.constant 3 : index
    %c0_147 = arith.constant 0 : index
    %c0_148 = arith.constant 0 : index
    %332 = vector.load %arg8[%c3_146, %c0_147, %c0_148] : memref<6x2x32xbf16, #tpu.memory_space<vmem>>, vector<1x2x32xbf16>
    %333 = vector.shape_cast %332 : vector<1x2x32xbf16> to vector<2x32xbf16>
    %334 = vector.shape_cast %331 : vector<2x32xbf16> to vector<1x2x32xbf16>
    tpu.vector_store %arg8[%c3_146, %c0_147, %c0_148], %334 {strides = array<i32>} : memref<6x2x32xbf16, #tpu.memory_space<vmem>>, vector<1x2x32xbf16>,
    %c3_i32 = arith.constant 3 : i32
    %335 = arith.addi %4, %c3_i32 : i32
    %c5_i32_149 = arith.constant 5 : i32
    %336 = arith.subi %c5_i32_149, %335 : i32
    %c3_150 = arith.constant 3 : index
    %c0_151 = arith.constant 0 : index
    %c0_152 = arith.constant 0 : index
    %337 = vector.load %arg2[%c3_150, %c0_151, %c0_152] : memref<6x2x128xbf16, #tpu.memory_space<vmem>>, vector<1x2x128xbf16>
    %338 = vector.shape_cast %337 : vector<1x2x128xbf16> to vector<2x128xbf16>
    %339 = arith.extf %338 : vector<2x128xbf16> to vector<2x128xf32>
    %c0_153 = arith.constant 0 : index
    %c0_154 = arith.constant 0 : index
    %340 = vector.load %arg9[%c0_153, %c0_154] : memref<2x32xf32, #tpu.memory_space<vmem>>, vector<2x32xf32>
    %341 = arith.truncf %340 : vector<2x32xf32> to vector<2x32xbf16>
    %c0_155 = arith.constant 0 : index
    %c0_156 = arith.constant 0 : index
    %342 = vector.load %arg5[%c0_155, %c0_156] : memref<32x128xbf16, #tpu.memory_space<vmem>>, vector<32x128xbf16>
    %cst_157 = arith.constant dense<0.000000e+00> : vector<2x128xf32>
    %343 = tpu.matmul %341, %342, %cst_157 {dimension_numbers = #tpu.dot_dimension_numbers<[1], [0], [0], [1], [0, 0, 1, 1], [], []>} : vector<2x32xbf16>, vector<32x128xbf16>, vector<2x128xf32> -> vector<2x128xf32>
    %344 = arith.addf %339, %343 : vector<2x128xf32>
    %c2_158 = arith.constant 2 : index
    %c0_159 = arith.constant 0 : index
    %c0_160 = arith.constant 0 : index
    %345 = vector.load %arg3[%c2_158, %c0_159, %c0_160] : memref<6x2x128xbf16, #tpu.memory_space<vmem>>, vector<1x2x128xbf16>
    %346 = vector.shape_cast %345 : vector<1x2x128xbf16> to vector<2x128xbf16>
    %347 = arith.extf %346 : vector<2x128xbf16> to vector<2x128xf32>
    %c0_161 = arith.constant 0 : index
    %c0_162 = arith.constant 0 : index
    %348 = vector.load %arg11[%c0_161, %c0_162] : memref<2x32xf32, #tpu.memory_space<vmem>>, vector<2x32xf32>
    %349 = arith.truncf %348 : vector<2x32xf32> to vector<2x32xbf16>
    %c0_163 = arith.constant 0 : index
    %c0_164 = arith.constant 0 : index
    %350 = vector.load %arg6[%c0_163, %c0_164] : memref<32x128xbf16, #tpu.memory_space<vmem>>, vector<32x128xbf16>
    %cst_165 = arith.constant dense<0.000000e+00> : vector<2x128xf32>
    %351 = tpu.matmul %349, %350, %cst_165 {dimension_numbers = #tpu.dot_dimension_numbers<[1], [0], [0], [1], [0, 0, 1, 1], [], []>} : vector<2x32xbf16>, vector<32x128xbf16>, vector<2x128xf32> -> vector<2x128xf32>
    %352 = arith.addf %347, %351 : vector<2x128xf32>
    %353 = vector.broadcast %335 : i32 to vector<2x1xi32>
    %354 = arith.cmpi sgt, %3, %353 : vector<2x1xi32>
    %355 = vector.broadcast %336 : i32 to vector<2x1xi32>
    %356 = arith.cmpi sgt, %3, %355 : vector<2x1xi32>
    %357 = vector.extract_strided_slice %344 {offsets = [0, 0], sizes = [2, 32], strides = [1, 1]} : vector<2x128xf32> to vector<2x32xf32>
    %358 = arith.negf %357 : vector<2x32xf32>
    %359 = math.exp %358 : vector<2x32xf32>
    %cst_166 = arith.constant 1.000000e+00 : f32
    %360 = vector.broadcast %cst_166 : f32 to vector<2x32xf32>
    %361 = arith.addf %360, %359 : vector<2x32xf32>
    %362 = arith.divf %360, %361 : vector<2x32xf32>
    %363 = vector.extract_strided_slice %344 {offsets = [0, 32], sizes = [2, 32], strides = [1, 1]} : vector<2x128xf32> to vector<2x32xf32>
    %364 = arith.negf %363 : vector<2x32xf32>
    %365 = math.exp %364 : vector<2x32xf32>
    %cst_167 = arith.constant 1.000000e+00 : f32
    %366 = vector.broadcast %cst_167 : f32 to vector<2x32xf32>
    %367 = arith.addf %366, %365 : vector<2x32xf32>
    %368 = arith.divf %366, %367 : vector<2x32xf32>
    %369 = vector.extract_strided_slice %344 {offsets = [0, 64], sizes = [2, 32], strides = [1, 1]} : vector<2x128xf32> to vector<2x32xf32>
    %370 = math.tanh %369 : vector<2x32xf32>
    %371 = vector.extract_strided_slice %344 {offsets = [0, 96], sizes = [2, 32], strides = [1, 1]} : vector<2x128xf32> to vector<2x32xf32>
    %372 = arith.negf %371 : vector<2x32xf32>
    %373 = math.exp %372 : vector<2x32xf32>
    %cst_168 = arith.constant 1.000000e+00 : f32
    %374 = vector.broadcast %cst_168 : f32 to vector<2x32xf32>
    %375 = arith.addf %374, %373 : vector<2x32xf32>
    %376 = arith.divf %374, %375 : vector<2x32xf32>
    %c0_169 = arith.constant 0 : index
    %c0_170 = arith.constant 0 : index
    %377 = vector.load %arg10[%c0_169, %c0_170] : memref<2x32xf32, #tpu.memory_space<vmem>>, vector<2x32xf32>
    %378 = arith.mulf %368, %377 : vector<2x32xf32>
    %379 = arith.mulf %362, %370 : vector<2x32xf32>
    %380 = arith.addf %378, %379 : vector<2x32xf32>
    %381 = math.tanh %380 : vector<2x32xf32>
    %382 = arith.mulf %376, %381 : vector<2x32xf32>
    %c0_171 = arith.constant 0 : index
    %c0_172 = arith.constant 0 : index
    %383 = vector.load %arg9[%c0_171, %c0_172] : memref<2x32xf32, #tpu.memory_space<vmem>>, vector<2x32xf32>
    %384 = vector.shape_cast %354 : vector<2x1xi1> to vector<2x1xi1>
    %385 = vector.broadcast %384 : vector<2x1xi1> to vector<2x32xi1>
    %386 = arith.select %385, %382, %383 : vector<2x32xi1>, vector<2x32xf32>
    %c0_173 = arith.constant 0 : index
    %c0_174 = arith.constant 0 : index
    %387 = vector.load %arg9[%c0_173, %c0_174] : memref<2x32xf32, #tpu.memory_space<vmem>>, vector<2x32xf32>
    tpu.vector_store %arg9[%c0_173, %c0_174], %386 {strides = array<i32>} : memref<2x32xf32, #tpu.memory_space<vmem>>, vector<2x32xf32>,
    %c0_175 = arith.constant 0 : index
    %c0_176 = arith.constant 0 : index
    %388 = vector.load %arg10[%c0_175, %c0_176] : memref<2x32xf32, #tpu.memory_space<vmem>>, vector<2x32xf32>
    %389 = vector.shape_cast %354 : vector<2x1xi1> to vector<2x1xi1>
    %390 = vector.broadcast %389 : vector<2x1xi1> to vector<2x32xi1>
    %391 = arith.select %390, %380, %388 : vector<2x32xi1>, vector<2x32xf32>
    %c0_177 = arith.constant 0 : index
    %c0_178 = arith.constant 0 : index
    %392 = vector.load %arg10[%c0_177, %c0_178] : memref<2x32xf32, #tpu.memory_space<vmem>>, vector<2x32xf32>
    tpu.vector_store %arg10[%c0_177, %c0_178], %391 {strides = array<i32>} : memref<2x32xf32, #tpu.memory_space<vmem>>, vector<2x32xf32>,
    %393 = vector.extract_strided_slice %352 {offsets = [0, 0], sizes = [2, 32], strides = [1, 1]} : vector<2x128xf32> to vector<2x32xf32>
    %394 = arith.negf %393 : vector<2x32xf32>
    %395 = math.exp %394 : vector<2x32xf32>
    %cst_179 = arith.constant 1.000000e+00 : f32
    %396 = vector.broadcast %cst_179 : f32 to vector<2x32xf32>
    %397 = arith.addf %396, %395 : vector<2x32xf32>
    %398 = arith.divf %396, %397 : vector<2x32xf32>
    %399 = vector.extract_strided_slice %352 {offsets = [0, 32], sizes = [2, 32], strides = [1, 1]} : vector<2x128xf32> to vector<2x32xf32>
    %400 = arith.negf %399 : vector<2x32xf32>
    %401 = math.exp %400 : vector<2x32xf32>
    %cst_180 = arith.constant 1.000000e+00 : f32
    %402 = vector.broadcast %cst_180 : f32 to vector<2x32xf32>
    %403 = arith.addf %402, %401 : vector<2x32xf32>
    %404 = arith.divf %402, %403 : vector<2x32xf32>
    %405 = vector.extract_strided_slice %352 {offsets = [0, 64], sizes = [2, 32], strides = [1, 1]} : vector<2x128xf32> to vector<2x32xf32>
    %406 = math.tanh %405 : vector<2x32xf32>
    %407 = vector.extract_strided_slice %352 {offsets = [0, 96], sizes = [2, 32], strides = [1, 1]} : vector<2x128xf32> to vector<2x32xf32>
    %408 = arith.negf %407 : vector<2x32xf32>
    %409 = math.exp %408 : vector<2x32xf32>
    %cst_181 = arith.constant 1.000000e+00 : f32
    %410 = vector.broadcast %cst_181 : f32 to vector<2x32xf32>
    %411 = arith.addf %410, %409 : vector<2x32xf32>
    %412 = arith.divf %410, %411 : vector<2x32xf32>
    %c0_182 = arith.constant 0 : index
    %c0_183 = arith.constant 0 : index
    %413 = vector.load %arg12[%c0_182, %c0_183] : memref<2x32xf32, #tpu.memory_space<vmem>>, vector<2x32xf32>
    %414 = arith.mulf %404, %413 : vector<2x32xf32>
    %415 = arith.mulf %398, %406 : vector<2x32xf32>
    %416 = arith.addf %414, %415 : vector<2x32xf32>
    %417 = math.tanh %416 : vector<2x32xf32>
    %418 = arith.mulf %412, %417 : vector<2x32xf32>
    %c0_184 = arith.constant 0 : index
    %c0_185 = arith.constant 0 : index
    %419 = vector.load %arg11[%c0_184, %c0_185] : memref<2x32xf32, #tpu.memory_space<vmem>>, vector<2x32xf32>
    %420 = vector.shape_cast %356 : vector<2x1xi1> to vector<2x1xi1>
    %421 = vector.broadcast %420 : vector<2x1xi1> to vector<2x32xi1>
    %422 = arith.select %421, %418, %419 : vector<2x32xi1>, vector<2x32xf32>
    %c0_186 = arith.constant 0 : index
    %c0_187 = arith.constant 0 : index
    %423 = vector.load %arg11[%c0_186, %c0_187] : memref<2x32xf32, #tpu.memory_space<vmem>>, vector<2x32xf32>
    tpu.vector_store %arg11[%c0_186, %c0_187], %422 {strides = array<i32>} : memref<2x32xf32, #tpu.memory_space<vmem>>, vector<2x32xf32>,
    %c0_188 = arith.constant 0 : index
    %c0_189 = arith.constant 0 : index
    %424 = vector.load %arg12[%c0_188, %c0_189] : memref<2x32xf32, #tpu.memory_space<vmem>>, vector<2x32xf32>
    %425 = vector.shape_cast %356 : vector<2x1xi1> to vector<2x1xi1>
    %426 = vector.broadcast %425 : vector<2x1xi1> to vector<2x32xi1>
    %427 = arith.select %426, %416, %424 : vector<2x32xi1>, vector<2x32xf32>
    %c0_190 = arith.constant 0 : index
    %c0_191 = arith.constant 0 : index
    %428 = vector.load %arg12[%c0_190, %c0_191] : memref<2x32xf32, #tpu.memory_space<vmem>>, vector<2x32xf32>
    tpu.vector_store %arg12[%c0_190, %c0_191], %427 {strides = array<i32>} : memref<2x32xf32, #tpu.memory_space<vmem>>, vector<2x32xf32>,
    %cst_192 = arith.constant 0.000000e+00 : f32
    %429 = vector.shape_cast %354 : vector<2x1xi1> to vector<2x1xi1>
    %430 = vector.broadcast %429 : vector<2x1xi1> to vector<2x32xi1>
    %431 = vector.broadcast %cst_192 : f32 to vector<2x32xf32>
    %432 = arith.select %430, %382, %431 : vector<2x32xi1>, vector<2x32xf32>
    %433 = arith.truncf %432 : vector<2x32xf32> to vector<2x32xbf16>
    %c3_193 = arith.constant 3 : index
    %c0_194 = arith.constant 0 : index
    %c0_195 = arith.constant 0 : index
    %434 = vector.load %arg7[%c3_193, %c0_194, %c0_195] : memref<6x2x32xbf16, #tpu.memory_space<vmem>>, vector<1x2x32xbf16>
    %435 = vector.shape_cast %434 : vector<1x2x32xbf16> to vector<2x32xbf16>
    %436 = vector.shape_cast %433 : vector<2x32xbf16> to vector<1x2x32xbf16>
    tpu.vector_store %arg7[%c3_193, %c0_194, %c0_195], %436 {strides = array<i32>} : memref<6x2x32xbf16, #tpu.memory_space<vmem>>, vector<1x2x32xbf16>,
    %cst_196 = arith.constant 0.000000e+00 : f32
    %437 = vector.shape_cast %356 : vector<2x1xi1> to vector<2x1xi1>
    %438 = vector.broadcast %437 : vector<2x1xi1> to vector<2x32xi1>
    %439 = vector.broadcast %cst_196 : f32 to vector<2x32xf32>
    %440 = arith.select %438, %418, %439 : vector<2x32xi1>, vector<2x32xf32>
    %441 = arith.truncf %440 : vector<2x32xf32> to vector<2x32xbf16>
    %c2_197 = arith.constant 2 : index
    %c0_198 = arith.constant 0 : index
    %c0_199 = arith.constant 0 : index
    %442 = vector.load %arg8[%c2_197, %c0_198, %c0_199] : memref<6x2x32xbf16, #tpu.memory_space<vmem>>, vector<1x2x32xbf16>
    %443 = vector.shape_cast %442 : vector<1x2x32xbf16> to vector<2x32xbf16>
    %444 = vector.shape_cast %441 : vector<2x32xbf16> to vector<1x2x32xbf16>
    tpu.vector_store %arg8[%c2_197, %c0_198, %c0_199], %444 {strides = array<i32>} : memref<6x2x32xbf16, #tpu.memory_space<vmem>>, vector<1x2x32xbf16>,
    %c4_i32 = arith.constant 4 : i32
    %445 = arith.addi %4, %c4_i32 : i32
    %c5_i32_200 = arith.constant 5 : i32
    %446 = arith.subi %c5_i32_200, %445 : i32
    %c4_201 = arith.constant 4 : index
    %c0_202 = arith.constant 0 : index
    %c0_203 = arith.constant 0 : index
    %447 = vector.load %arg2[%c4_201, %c0_202, %c0_203] : memref<6x2x128xbf16, #tpu.memory_space<vmem>>, vector<1x2x128xbf16>
    %448 = vector.shape_cast %447 : vector<1x2x128xbf16> to vector<2x128xbf16>
    %449 = arith.extf %448 : vector<2x128xbf16> to vector<2x128xf32>
    %c0_204 = arith.constant 0 : index
    %c0_205 = arith.constant 0 : index
    %450 = vector.load %arg9[%c0_204, %c0_205] : memref<2x32xf32, #tpu.memory_space<vmem>>, vector<2x32xf32>
    %451 = arith.truncf %450 : vector<2x32xf32> to vector<2x32xbf16>
    %c0_206 = arith.constant 0 : index
    %c0_207 = arith.constant 0 : index
    %452 = vector.load %arg5[%c0_206, %c0_207] : memref<32x128xbf16, #tpu.memory_space<vmem>>, vector<32x128xbf16>
    %cst_208 = arith.constant dense<0.000000e+00> : vector<2x128xf32>
    %453 = tpu.matmul %451, %452, %cst_208 {dimension_numbers = #tpu.dot_dimension_numbers<[1], [0], [0], [1], [0, 0, 1, 1], [], []>} : vector<2x32xbf16>, vector<32x128xbf16>, vector<2x128xf32> -> vector<2x128xf32>
    %454 = arith.addf %449, %453 : vector<2x128xf32>
    %c1_209 = arith.constant 1 : index
    %c0_210 = arith.constant 0 : index
    %c0_211 = arith.constant 0 : index
    %455 = vector.load %arg3[%c1_209, %c0_210, %c0_211] : memref<6x2x128xbf16, #tpu.memory_space<vmem>>, vector<1x2x128xbf16>
    %456 = vector.shape_cast %455 : vector<1x2x128xbf16> to vector<2x128xbf16>
    %457 = arith.extf %456 : vector<2x128xbf16> to vector<2x128xf32>
    %c0_212 = arith.constant 0 : index
    %c0_213 = arith.constant 0 : index
    %458 = vector.load %arg11[%c0_212, %c0_213] : memref<2x32xf32, #tpu.memory_space<vmem>>, vector<2x32xf32>
    %459 = arith.truncf %458 : vector<2x32xf32> to vector<2x32xbf16>
    %c0_214 = arith.constant 0 : index
    %c0_215 = arith.constant 0 : index
    %460 = vector.load %arg6[%c0_214, %c0_215] : memref<32x128xbf16, #tpu.memory_space<vmem>>, vector<32x128xbf16>
    %cst_216 = arith.constant dense<0.000000e+00> : vector<2x128xf32>
    %461 = tpu.matmul %459, %460, %cst_216 {dimension_numbers = #tpu.dot_dimension_numbers<[1], [0], [0], [1], [0, 0, 1, 1], [], []>} : vector<2x32xbf16>, vector<32x128xbf16>, vector<2x128xf32> -> vector<2x128xf32>
    %462 = arith.addf %457, %461 : vector<2x128xf32>
    %463 = vector.broadcast %445 : i32 to vector<2x1xi32>
    %464 = arith.cmpi sgt, %3, %463 : vector<2x1xi32>
    %465 = vector.broadcast %446 : i32 to vector<2x1xi32>
    %466 = arith.cmpi sgt, %3, %465 : vector<2x1xi32>
    %467 = vector.extract_strided_slice %454 {offsets = [0, 0], sizes = [2, 32], strides = [1, 1]} : vector<2x128xf32> to vector<2x32xf32>
    %468 = arith.negf %467 : vector<2x32xf32>
    %469 = math.exp %468 : vector<2x32xf32>
    %cst_217 = arith.constant 1.000000e+00 : f32
    %470 = vector.broadcast %cst_217 : f32 to vector<2x32xf32>
    %471 = arith.addf %470, %469 : vector<2x32xf32>
    %472 = arith.divf %470, %471 : vector<2x32xf32>
    %473 = vector.extract_strided_slice %454 {offsets = [0, 32], sizes = [2, 32], strides = [1, 1]} : vector<2x128xf32> to vector<2x32xf32>
    %474 = arith.negf %473 : vector<2x32xf32>
    %475 = math.exp %474 : vector<2x32xf32>
    %cst_218 = arith.constant 1.000000e+00 : f32
    %476 = vector.broadcast %cst_218 : f32 to vector<2x32xf32>
    %477 = arith.addf %476, %475 : vector<2x32xf32>
    %478 = arith.divf %476, %477 : vector<2x32xf32>
    %479 = vector.extract_strided_slice %454 {offsets = [0, 64], sizes = [2, 32], strides = [1, 1]} : vector<2x128xf32> to vector<2x32xf32>
    %480 = math.tanh %479 : vector<2x32xf32>
    %481 = vector.extract_strided_slice %454 {offsets = [0, 96], sizes = [2, 32], strides = [1, 1]} : vector<2x128xf32> to vector<2x32xf32>
    %482 = arith.negf %481 : vector<2x32xf32>
    %483 = math.exp %482 : vector<2x32xf32>
    %cst_219 = arith.constant 1.000000e+00 : f32
    %484 = vector.broadcast %cst_219 : f32 to vector<2x32xf32>
    %485 = arith.addf %484, %483 : vector<2x32xf32>
    %486 = arith.divf %484, %485 : vector<2x32xf32>
    %c0_220 = arith.constant 0 : index
    %c0_221 = arith.constant 0 : index
    %487 = vector.load %arg10[%c0_220, %c0_221] : memref<2x32xf32, #tpu.memory_space<vmem>>, vector<2x32xf32>
    %488 = arith.mulf %478, %487 : vector<2x32xf32>
    %489 = arith.mulf %472, %480 : vector<2x32xf32>
    %490 = arith.addf %488, %489 : vector<2x32xf32>
    %491 = math.tanh %490 : vector<2x32xf32>
    %492 = arith.mulf %486, %491 : vector<2x32xf32>
    %c0_222 = arith.constant 0 : index
    %c0_223 = arith.constant 0 : index
    %493 = vector.load %arg9[%c0_222, %c0_223] : memref<2x32xf32, #tpu.memory_space<vmem>>, vector<2x32xf32>
    %494 = vector.shape_cast %464 : vector<2x1xi1> to vector<2x1xi1>
    %495 = vector.broadcast %494 : vector<2x1xi1> to vector<2x32xi1>
    %496 = arith.select %495, %492, %493 : vector<2x32xi1>, vector<2x32xf32>
    %c0_224 = arith.constant 0 : index
    %c0_225 = arith.constant 0 : index
    %497 = vector.load %arg9[%c0_224, %c0_225] : memref<2x32xf32, #tpu.memory_space<vmem>>, vector<2x32xf32>
    tpu.vector_store %arg9[%c0_224, %c0_225], %496 {strides = array<i32>} : memref<2x32xf32, #tpu.memory_space<vmem>>, vector<2x32xf32>,
    %c0_226 = arith.constant 0 : index
    %c0_227 = arith.constant 0 : index
    %498 = vector.load %arg10[%c0_226, %c0_227] : memref<2x32xf32, #tpu.memory_space<vmem>>, vector<2x32xf32>
    %499 = vector.shape_cast %464 : vector<2x1xi1> to vector<2x1xi1>
    %500 = vector.broadcast %499 : vector<2x1xi1> to vector<2x32xi1>
    %501 = arith.select %500, %490, %498 : vector<2x32xi1>, vector<2x32xf32>
    %c0_228 = arith.constant 0 : index
    %c0_229 = arith.constant 0 : index
    %502 = vector.load %arg10[%c0_228, %c0_229] : memref<2x32xf32, #tpu.memory_space<vmem>>, vector<2x32xf32>
    tpu.vector_store %arg10[%c0_228, %c0_229], %501 {strides = array<i32>} : memref<2x32xf32, #tpu.memory_space<vmem>>, vector<2x32xf32>,
    %503 = vector.extract_strided_slice %462 {offsets = [0, 0], sizes = [2, 32], strides = [1, 1]} : vector<2x128xf32> to vector<2x32xf32>
    %504 = arith.negf %503 : vector<2x32xf32>
    %505 = math.exp %504 : vector<2x32xf32>
    %cst_230 = arith.constant 1.000000e+00 : f32
    %506 = vector.broadcast %cst_230 : f32 to vector<2x32xf32>
    %507 = arith.addf %506, %505 : vector<2x32xf32>
    %508 = arith.divf %506, %507 : vector<2x32xf32>
    %509 = vector.extract_strided_slice %462 {offsets = [0, 32], sizes = [2, 32], strides = [1, 1]} : vector<2x128xf32> to vector<2x32xf32>
    %510 = arith.negf %509 : vector<2x32xf32>
    %511 = math.exp %510 : vector<2x32xf32>
    %cst_231 = arith.constant 1.000000e+00 : f32
    %512 = vector.broadcast %cst_231 : f32 to vector<2x32xf32>
    %513 = arith.addf %512, %511 : vector<2x32xf32>
    %514 = arith.divf %512, %513 : vector<2x32xf32>
    %515 = vector.extract_strided_slice %462 {offsets = [0, 64], sizes = [2, 32], strides = [1, 1]} : vector<2x128xf32> to vector<2x32xf32>
    %516 = math.tanh %515 : vector<2x32xf32>
    %517 = vector.extract_strided_slice %462 {offsets = [0, 96], sizes = [2, 32], strides = [1, 1]} : vector<2x128xf32> to vector<2x32xf32>
    %518 = arith.negf %517 : vector<2x32xf32>
    %519 = math.exp %518 : vector<2x32xf32>
    %cst_232 = arith.constant 1.000000e+00 : f32
    %520 = vector.broadcast %cst_232 : f32 to vector<2x32xf32>
    %521 = arith.addf %520, %519 : vector<2x32xf32>
    %522 = arith.divf %520, %521 : vector<2x32xf32>
    %c0_233 = arith.constant 0 : index
    %c0_234 = arith.constant 0 : index
    %523 = vector.load %arg12[%c0_233, %c0_234] : memref<2x32xf32, #tpu.memory_space<vmem>>, vector<2x32xf32>
    %524 = arith.mulf %514, %523 : vector<2x32xf32>
    %525 = arith.mulf %508, %516 : vector<2x32xf32>
    %526 = arith.addf %524, %525 : vector<2x32xf32>
    %527 = math.tanh %526 : vector<2x32xf32>
    %528 = arith.mulf %522, %527 : vector<2x32xf32>
    %c0_235 = arith.constant 0 : index
    %c0_236 = arith.constant 0 : index
    %529 = vector.load %arg11[%c0_235, %c0_236] : memref<2x32xf32, #tpu.memory_space<vmem>>, vector<2x32xf32>
    %530 = vector.shape_cast %466 : vector<2x1xi1> to vector<2x1xi1>
    %531 = vector.broadcast %530 : vector<2x1xi1> to vector<2x32xi1>
    %532 = arith.select %531, %528, %529 : vector<2x32xi1>, vector<2x32xf32>
    %c0_237 = arith.constant 0 : index
    %c0_238 = arith.constant 0 : index
    %533 = vector.load %arg11[%c0_237, %c0_238] : memref<2x32xf32, #tpu.memory_space<vmem>>, vector<2x32xf32>
    tpu.vector_store %arg11[%c0_237, %c0_238], %532 {strides = array<i32>} : memref<2x32xf32, #tpu.memory_space<vmem>>, vector<2x32xf32>,
    %c0_239 = arith.constant 0 : index
    %c0_240 = arith.constant 0 : index
    %534 = vector.load %arg12[%c0_239, %c0_240] : memref<2x32xf32, #tpu.memory_space<vmem>>, vector<2x32xf32>
    %535 = vector.shape_cast %466 : vector<2x1xi1> to vector<2x1xi1>
    %536 = vector.broadcast %535 : vector<2x1xi1> to vector<2x32xi1>
    %537 = arith.select %536, %526, %534 : vector<2x32xi1>, vector<2x32xf32>
    %c0_241 = arith.constant 0 : index
    %c0_242 = arith.constant 0 : index
    %538 = vector.load %arg12[%c0_241, %c0_242] : memref<2x32xf32, #tpu.memory_space<vmem>>, vector<2x32xf32>
    tpu.vector_store %arg12[%c0_241, %c0_242], %537 {strides = array<i32>} : memref<2x32xf32, #tpu.memory_space<vmem>>, vector<2x32xf32>,
    %cst_243 = arith.constant 0.000000e+00 : f32
    %539 = vector.shape_cast %464 : vector<2x1xi1> to vector<2x1xi1>
    %540 = vector.broadcast %539 : vector<2x1xi1> to vector<2x32xi1>
    %541 = vector.broadcast %cst_243 : f32 to vector<2x32xf32>
    %542 = arith.select %540, %492, %541 : vector<2x32xi1>, vector<2x32xf32>
    %543 = arith.truncf %542 : vector<2x32xf32> to vector<2x32xbf16>
    %c4_244 = arith.constant 4 : index
    %c0_245 = arith.constant 0 : index
    %c0_246 = arith.constant 0 : index
    %544 = vector.load %arg7[%c4_244, %c0_245, %c0_246] : memref<6x2x32xbf16, #tpu.memory_space<vmem>>, vector<1x2x32xbf16>
    %545 = vector.shape_cast %544 : vector<1x2x32xbf16> to vector<2x32xbf16>
    %546 = vector.shape_cast %543 : vector<2x32xbf16> to vector<1x2x32xbf16>
    tpu.vector_store %arg7[%c4_244, %c0_245, %c0_246], %546 {strides = array<i32>} : memref<6x2x32xbf16, #tpu.memory_space<vmem>>, vector<1x2x32xbf16>,
    %cst_247 = arith.constant 0.000000e+00 : f32
    %547 = vector.shape_cast %466 : vector<2x1xi1> to vector<2x1xi1>
    %548 = vector.broadcast %547 : vector<2x1xi1> to vector<2x32xi1>
    %549 = vector.broadcast %cst_247 : f32 to vector<2x32xf32>
    %550 = arith.select %548, %528, %549 : vector<2x32xi1>, vector<2x32xf32>
    %551 = arith.truncf %550 : vector<2x32xf32> to vector<2x32xbf16>
    %c1_248 = arith.constant 1 : index
    %c0_249 = arith.constant 0 : index
    %c0_250 = arith.constant 0 : index
    %552 = vector.load %arg8[%c1_248, %c0_249, %c0_250] : memref<6x2x32xbf16, #tpu.memory_space<vmem>>, vector<1x2x32xbf16>
    %553 = vector.shape_cast %552 : vector<1x2x32xbf16> to vector<2x32xbf16>
    %554 = vector.shape_cast %551 : vector<2x32xbf16> to vector<1x2x32xbf16>
    tpu.vector_store %arg8[%c1_248, %c0_249, %c0_250], %554 {strides = array<i32>} : memref<6x2x32xbf16, #tpu.memory_space<vmem>>, vector<1x2x32xbf16>,
    %c5_i32_251 = arith.constant 5 : i32
    %555 = arith.addi %4, %c5_i32_251 : i32
    %c5_i32_252 = arith.constant 5 : i32
    %556 = arith.subi %c5_i32_252, %555 : i32
    %c5_253 = arith.constant 5 : index
    %c0_254 = arith.constant 0 : index
    %c0_255 = arith.constant 0 : index
    %557 = vector.load %arg2[%c5_253, %c0_254, %c0_255] : memref<6x2x128xbf16, #tpu.memory_space<vmem>>, vector<1x2x128xbf16>
    %558 = vector.shape_cast %557 : vector<1x2x128xbf16> to vector<2x128xbf16>
    %559 = arith.extf %558 : vector<2x128xbf16> to vector<2x128xf32>
    %c0_256 = arith.constant 0 : index
    %c0_257 = arith.constant 0 : index
    %560 = vector.load %arg9[%c0_256, %c0_257] : memref<2x32xf32, #tpu.memory_space<vmem>>, vector<2x32xf32>
    %561 = arith.truncf %560 : vector<2x32xf32> to vector<2x32xbf16>
    %c0_258 = arith.constant 0 : index
    %c0_259 = arith.constant 0 : index
    %562 = vector.load %arg5[%c0_258, %c0_259] : memref<32x128xbf16, #tpu.memory_space<vmem>>, vector<32x128xbf16>
    %cst_260 = arith.constant dense<0.000000e+00> : vector<2x128xf32>
    %563 = tpu.matmul %561, %562, %cst_260 {dimension_numbers = #tpu.dot_dimension_numbers<[1], [0], [0], [1], [0, 0, 1, 1], [], []>} : vector<2x32xbf16>, vector<32x128xbf16>, vector<2x128xf32> -> vector<2x128xf32>
    %564 = arith.addf %559, %563 : vector<2x128xf32>
    %c0_261 = arith.constant 0 : index
    %c0_262 = arith.constant 0 : index
    %c0_263 = arith.constant 0 : index
    %565 = vector.load %arg3[%c0_261, %c0_262, %c0_263] : memref<6x2x128xbf16, #tpu.memory_space<vmem>>, vector<1x2x128xbf16>
    %566 = vector.shape_cast %565 : vector<1x2x128xbf16> to vector<2x128xbf16>
    %567 = arith.extf %566 : vector<2x128xbf16> to vector<2x128xf32>
    %c0_264 = arith.constant 0 : index
    %c0_265 = arith.constant 0 : index
    %568 = vector.load %arg11[%c0_264, %c0_265] : memref<2x32xf32, #tpu.memory_space<vmem>>, vector<2x32xf32>
    %569 = arith.truncf %568 : vector<2x32xf32> to vector<2x32xbf16>
    %c0_266 = arith.constant 0 : index
    %c0_267 = arith.constant 0 : index
    %570 = vector.load %arg6[%c0_266, %c0_267] : memref<32x128xbf16, #tpu.memory_space<vmem>>, vector<32x128xbf16>
    %cst_268 = arith.constant dense<0.000000e+00> : vector<2x128xf32>
    %571 = tpu.matmul %569, %570, %cst_268 {dimension_numbers = #tpu.dot_dimension_numbers<[1], [0], [0], [1], [0, 0, 1, 1], [], []>} : vector<2x32xbf16>, vector<32x128xbf16>, vector<2x128xf32> -> vector<2x128xf32>
    %572 = arith.addf %567, %571 : vector<2x128xf32>
    %573 = vector.broadcast %555 : i32 to vector<2x1xi32>
    %574 = arith.cmpi sgt, %3, %573 : vector<2x1xi32>
    %575 = vector.broadcast %556 : i32 to vector<2x1xi32>
    %576 = arith.cmpi sgt, %3, %575 : vector<2x1xi32>
    %577 = vector.extract_strided_slice %564 {offsets = [0, 0], sizes = [2, 32], strides = [1, 1]} : vector<2x128xf32> to vector<2x32xf32>
    %578 = arith.negf %577 : vector<2x32xf32>
    %579 = math.exp %578 : vector<2x32xf32>
    %cst_269 = arith.constant 1.000000e+00 : f32
    %580 = vector.broadcast %cst_269 : f32 to vector<2x32xf32>
    %581 = arith.addf %580, %579 : vector<2x32xf32>
    %582 = arith.divf %580, %581 : vector<2x32xf32>
    %583 = vector.extract_strided_slice %564 {offsets = [0, 32], sizes = [2, 32], strides = [1, 1]} : vector<2x128xf32> to vector<2x32xf32>
    %584 = arith.negf %583 : vector<2x32xf32>
    %585 = math.exp %584 : vector<2x32xf32>
    %cst_270 = arith.constant 1.000000e+00 : f32
    %586 = vector.broadcast %cst_270 : f32 to vector<2x32xf32>
    %587 = arith.addf %586, %585 : vector<2x32xf32>
    %588 = arith.divf %586, %587 : vector<2x32xf32>
    %589 = vector.extract_strided_slice %564 {offsets = [0, 64], sizes = [2, 32], strides = [1, 1]} : vector<2x128xf32> to vector<2x32xf32>
    %590 = math.tanh %589 : vector<2x32xf32>
    %591 = vector.extract_strided_slice %564 {offsets = [0, 96], sizes = [2, 32], strides = [1, 1]} : vector<2x128xf32> to vector<2x32xf32>
    %592 = arith.negf %591 : vector<2x32xf32>
    %593 = math.exp %592 : vector<2x32xf32>
    %cst_271 = arith.constant 1.000000e+00 : f32
    %594 = vector.broadcast %cst_271 : f32 to vector<2x32xf32>
    %595 = arith.addf %594, %593 : vector<2x32xf32>
    %596 = arith.divf %594, %595 : vector<2x32xf32>
    %c0_272 = arith.constant 0 : index
    %c0_273 = arith.constant 0 : index
    %597 = vector.load %arg10[%c0_272, %c0_273] : memref<2x32xf32, #tpu.memory_space<vmem>>, vector<2x32xf32>
    %598 = arith.mulf %588, %597 : vector<2x32xf32>
    %599 = arith.mulf %582, %590 : vector<2x32xf32>
    %600 = arith.addf %598, %599 : vector<2x32xf32>
    %601 = math.tanh %600 : vector<2x32xf32>
    %602 = arith.mulf %596, %601 : vector<2x32xf32>
    %c0_274 = arith.constant 0 : index
    %c0_275 = arith.constant 0 : index
    %603 = vector.load %arg9[%c0_274, %c0_275] : memref<2x32xf32, #tpu.memory_space<vmem>>, vector<2x32xf32>
    %604 = vector.shape_cast %574 : vector<2x1xi1> to vector<2x1xi1>
    %605 = vector.broadcast %604 : vector<2x1xi1> to vector<2x32xi1>
    %606 = arith.select %605, %602, %603 : vector<2x32xi1>, vector<2x32xf32>
    %c0_276 = arith.constant 0 : index
    %c0_277 = arith.constant 0 : index
    %607 = vector.load %arg9[%c0_276, %c0_277] : memref<2x32xf32, #tpu.memory_space<vmem>>, vector<2x32xf32>
    tpu.vector_store %arg9[%c0_276, %c0_277], %606 {strides = array<i32>} : memref<2x32xf32, #tpu.memory_space<vmem>>, vector<2x32xf32>,
    %c0_278 = arith.constant 0 : index
    %c0_279 = arith.constant 0 : index
    %608 = vector.load %arg10[%c0_278, %c0_279] : memref<2x32xf32, #tpu.memory_space<vmem>>, vector<2x32xf32>
    %609 = vector.shape_cast %574 : vector<2x1xi1> to vector<2x1xi1>
    %610 = vector.broadcast %609 : vector<2x1xi1> to vector<2x32xi1>
    %611 = arith.select %610, %600, %608 : vector<2x32xi1>, vector<2x32xf32>
    %c0_280 = arith.constant 0 : index
    %c0_281 = arith.constant 0 : index
    %612 = vector.load %arg10[%c0_280, %c0_281] : memref<2x32xf32, #tpu.memory_space<vmem>>, vector<2x32xf32>
    tpu.vector_store %arg10[%c0_280, %c0_281], %611 {strides = array<i32>} : memref<2x32xf32, #tpu.memory_space<vmem>>, vector<2x32xf32>,
    %613 = vector.extract_strided_slice %572 {offsets = [0, 0], sizes = [2, 32], strides = [1, 1]} : vector<2x128xf32> to vector<2x32xf32>
    %614 = arith.negf %613 : vector<2x32xf32>
    %615 = math.exp %614 : vector<2x32xf32>
    %cst_282 = arith.constant 1.000000e+00 : f32
    %616 = vector.broadcast %cst_282 : f32 to vector<2x32xf32>
    %617 = arith.addf %616, %615 : vector<2x32xf32>
    %618 = arith.divf %616, %617 : vector<2x32xf32>
    %619 = vector.extract_strided_slice %572 {offsets = [0, 32], sizes = [2, 32], strides = [1, 1]} : vector<2x128xf32> to vector<2x32xf32>
    %620 = arith.negf %619 : vector<2x32xf32>
    %621 = math.exp %620 : vector<2x32xf32>
    %cst_283 = arith.constant 1.000000e+00 : f32
    %622 = vector.broadcast %cst_283 : f32 to vector<2x32xf32>
    %623 = arith.addf %622, %621 : vector<2x32xf32>
    %624 = arith.divf %622, %623 : vector<2x32xf32>
    %625 = vector.extract_strided_slice %572 {offsets = [0, 64], sizes = [2, 32], strides = [1, 1]} : vector<2x128xf32> to vector<2x32xf32>
    %626 = math.tanh %625 : vector<2x32xf32>
    %627 = vector.extract_strided_slice %572 {offsets = [0, 96], sizes = [2, 32], strides = [1, 1]} : vector<2x128xf32> to vector<2x32xf32>
    %628 = arith.negf %627 : vector<2x32xf32>
    %629 = math.exp %628 : vector<2x32xf32>
    %cst_284 = arith.constant 1.000000e+00 : f32
    %630 = vector.broadcast %cst_284 : f32 to vector<2x32xf32>
    %631 = arith.addf %630, %629 : vector<2x32xf32>
    %632 = arith.divf %630, %631 : vector<2x32xf32>
    %c0_285 = arith.constant 0 : index
    %c0_286 = arith.constant 0 : index
    %633 = vector.load %arg12[%c0_285, %c0_286] : memref<2x32xf32, #tpu.memory_space<vmem>>, vector<2x32xf32>
    %634 = arith.mulf %624, %633 : vector<2x32xf32>
    %635 = arith.mulf %618, %626 : vector<2x32xf32>
    %636 = arith.addf %634, %635 : vector<2x32xf32>
    %637 = math.tanh %636 : vector<2x32xf32>
    %638 = arith.mulf %632, %637 : vector<2x32xf32>
    %c0_287 = arith.constant 0 : index
    %c0_288 = arith.constant 0 : index
    %639 = vector.load %arg11[%c0_287, %c0_288] : memref<2x32xf32, #tpu.memory_space<vmem>>, vector<2x32xf32>
    %640 = vector.shape_cast %576 : vector<2x1xi1> to vector<2x1xi1>
    %641 = vector.broadcast %640 : vector<2x1xi1> to vector<2x32xi1>
    %642 = arith.select %641, %638, %639 : vector<2x32xi1>, vector<2x32xf32>
    %c0_289 = arith.constant 0 : index
    %c0_290 = arith.constant 0 : index
    %643 = vector.load %arg11[%c0_289, %c0_290] : memref<2x32xf32, #tpu.memory_space<vmem>>, vector<2x32xf32>
    tpu.vector_store %arg11[%c0_289, %c0_290], %642 {strides = array<i32>} : memref<2x32xf32, #tpu.memory_space<vmem>>, vector<2x32xf32>,
    %c0_291 = arith.constant 0 : index
    %c0_292 = arith.constant 0 : index
    %644 = vector.load %arg12[%c0_291, %c0_292] : memref<2x32xf32, #tpu.memory_space<vmem>>, vector<2x32xf32>
    %645 = vector.shape_cast %576 : vector<2x1xi1> to vector<2x1xi1>
    %646 = vector.broadcast %645 : vector<2x1xi1> to vector<2x32xi1>
    %647 = arith.select %646, %636, %644 : vector<2x32xi1>, vector<2x32xf32>
    %c0_293 = arith.constant 0 : index
    %c0_294 = arith.constant 0 : index
    %648 = vector.load %arg12[%c0_293, %c0_294] : memref<2x32xf32, #tpu.memory_space<vmem>>, vector<2x32xf32>
    tpu.vector_store %arg12[%c0_293, %c0_294], %647 {strides = array<i32>} : memref<2x32xf32, #tpu.memory_space<vmem>>, vector<2x32xf32>,
    %cst_295 = arith.constant 0.000000e+00 : f32
    %649 = vector.shape_cast %574 : vector<2x1xi1> to vector<2x1xi1>
    %650 = vector.broadcast %649 : vector<2x1xi1> to vector<2x32xi1>
    %651 = vector.broadcast %cst_295 : f32 to vector<2x32xf32>
    %652 = arith.select %650, %602, %651 : vector<2x32xi1>, vector<2x32xf32>
    %653 = arith.truncf %652 : vector<2x32xf32> to vector<2x32xbf16>
    %c5_296 = arith.constant 5 : index
    %c0_297 = arith.constant 0 : index
    %c0_298 = arith.constant 0 : index
    %654 = vector.load %arg7[%c5_296, %c0_297, %c0_298] : memref<6x2x32xbf16, #tpu.memory_space<vmem>>, vector<1x2x32xbf16>
    %655 = vector.shape_cast %654 : vector<1x2x32xbf16> to vector<2x32xbf16>
    %656 = vector.shape_cast %653 : vector<2x32xbf16> to vector<1x2x32xbf16>
    tpu.vector_store %arg7[%c5_296, %c0_297, %c0_298], %656 {strides = array<i32>} : memref<6x2x32xbf16, #tpu.memory_space<vmem>>, vector<1x2x32xbf16>,
    %cst_299 = arith.constant 0.000000e+00 : f32
    %657 = vector.shape_cast %576 : vector<2x1xi1> to vector<2x1xi1>
    %658 = vector.broadcast %657 : vector<2x1xi1> to vector<2x32xi1>
    %659 = vector.broadcast %cst_299 : f32 to vector<2x32xf32>
    %660 = arith.select %658, %638, %659 : vector<2x32xi1>, vector<2x32xf32>
    %661 = arith.truncf %660 : vector<2x32xf32> to vector<2x32xbf16>
    %c0_300 = arith.constant 0 : index
    %c0_301 = arith.constant 0 : index
    %c0_302 = arith.constant 0 : index
    %662 = vector.load %arg8[%c0_300, %c0_301, %c0_302] : memref<6x2x32xbf16, #tpu.memory_space<vmem>>, vector<1x2x32xbf16>
    %663 = vector.shape_cast %662 : vector<1x2x32xbf16> to vector<2x32xbf16>
    %664 = vector.shape_cast %661 : vector<2x32xbf16> to vector<1x2x32xbf16>
    tpu.vector_store %arg8[%c0_300, %c0_301, %c0_302], %664 {strides = array<i32>} : memref<6x2x32xbf16, #tpu.memory_space<vmem>>, vector<1x2x32xbf16>,
    return
  }
  func.func @transform_0(%arg0: i32, %arg1: i32) -> (i32, i32, i32) {
    %c0_i32 = arith.constant 0 : i32
    %c0_i32_0 = arith.constant 0 : i32
    return %arg1, %arg0, %c0_i32 : i32, i32, i32
  }
  func.func @transform_1(%arg0: i32, %arg1: i32) -> (i32, i32, i32) {
    %c0_i32 = arith.constant 0 : i32
    %0 = arith.subi %c0_i32, %arg1 : i32
    %c0_i32_0 = arith.constant 0 : i32
    %c0_i32_1 = arith.constant 0 : i32
    return %0, %arg0, %c0_i32_0 : i32, i32, i32
  }
  func.func @transform_2(%arg0: i32, %arg1: i32) -> (i32, i32) {
    %c0_i32 = arith.constant 0 : i32
    %c0_i32_0 = arith.constant 0 : i32
    return %arg0, %c0_i32 : i32, i32
  }
  func.func @transform_3(%arg0: i32, %arg1: i32) -> (i32, i32) {
    %c0_i32 = arith.constant 0 : i32
    %c0_i32_0 = arith.constant 0 : i32
    %c0_i32_1 = arith.constant 0 : i32
    return %c0_i32, %c0_i32_0 : i32, i32
  }
  func.func @transform_4(%arg0: i32, %arg1: i32) -> (i32, i32) {
    %c0_i32 = arith.constant 0 : i32
    %c0_i32_0 = arith.constant 0 : i32
    %c0_i32_1 = arith.constant 0 : i32
    return %c0_i32, %c0_i32_0 : i32, i32
  }
  func.func @transform_5(%arg0: i32, %arg1: i32) -> (i32, i32, i32) {
    %c0_i32 = arith.constant 0 : i32
    %c0_i32_0 = arith.constant 0 : i32
    return %arg1, %arg0, %c0_i32 : i32, i32, i32
  }
  func.func @transform_6(%arg0: i32, %arg1: i32) -> (i32, i32, i32) {
    %c0_i32 = arith.constant 0 : i32
    %0 = arith.subi %c0_i32, %arg1 : i32
    %c0_i32_0 = arith.constant 0 : i32
    %c0_i32_1 = arith.constant 0 : i32
    return %0, %arg0, %c0_i32_0 : i32, i32, i32
  }
}

module attributes {stable_mosaic.version = 11 : i64} {
  func.func @_head_kernel(%arg0: i32, %arg1: memref<16x32xf32, #tpu.memory_space<vmem>>, %arg2: memref<16x32xbf16, #tpu.memory_space<vmem>>, %arg3: memref<16x32xbf16, #tpu.memory_space<vmem>>, %arg4: memref<32x32xbf16, #tpu.memory_space<vmem>>, %arg5: memref<32x32xbf16, #tpu.memory_space<vmem>>, %arg6: memref<32x32xbf16, #tpu.memory_space<vmem>>, %arg7: memref<1x32xf32, #tpu.memory_space<vmem>>, %arg8: memref<32x32xbf16, #tpu.memory_space<vmem>>, %arg9: memref<1x32xf32, #tpu.memory_space<vmem>>, %arg10: memref<32x32xbf16, #tpu.memory_space<vmem>>, %arg11: memref<1x32xf32, #tpu.memory_space<vmem>>, %arg12: memref<32x32xbf16, #tpu.memory_space<vmem>>, %arg13: memref<1x32xf32, #tpu.memory_space<vmem>>, %arg14: memref<16x32xf32, #tpu.memory_space<vmem>>) attributes {dimension_semantics = [#tpu.dimension_semantics<parallel>], iteration_bounds = array<i64: 1>, scalar_prefetch = 0 : i64, scratch_operands = 0 : i64, tpu.core_type = #tpu.core_type<tc>, window_params = [{transform_indices = @transform_0, window_bounds = array<i64: 16, 32>}, {transform_indices = @transform_1, window_bounds = array<i64: 16, 32>}, {transform_indices = @transform_2, window_bounds = array<i64: 16, 32>}, {pipeline_mode = #tpu.pipeline_mode<synchronous>, transform_indices = @transform_3, window_bounds = array<i64: 32, 32>}, {pipeline_mode = #tpu.pipeline_mode<synchronous>, transform_indices = @transform_4, window_bounds = array<i64: 32, 32>}, {pipeline_mode = #tpu.pipeline_mode<synchronous>, transform_indices = @transform_5, window_bounds = array<i64: 32, 32>}, {pipeline_mode = #tpu.pipeline_mode<synchronous>, transform_indices = @transform_6, window_bounds = array<i64: 1, 32>}, {pipeline_mode = #tpu.pipeline_mode<synchronous>, transform_indices = @transform_7, window_bounds = array<i64: 32, 32>}, {pipeline_mode = #tpu.pipeline_mode<synchronous>, transform_indices = @transform_8, window_bounds = array<i64: 1, 32>}, {pipeline_mode = #tpu.pipeline_mode<synchronous>, transform_indices = @transform_9, window_bounds = array<i64: 32, 32>}, {pipeline_mode = #tpu.pipeline_mode<synchronous>, transform_indices = @transform_10, window_bounds = array<i64: 1, 32>}, {pipeline_mode = #tpu.pipeline_mode<synchronous>, transform_indices = @transform_11, window_bounds = array<i64: 32, 32>}, {pipeline_mode = #tpu.pipeline_mode<synchronous>, transform_indices = @transform_12, window_bounds = array<i64: 1, 32>}, {transform_indices = @transform_13, window_bounds = array<i64: 16, 32>}]} {
    %c0 = arith.constant 0 : index
    %c0_0 = arith.constant 0 : index
    %0 = vector.load %arg1[%c0, %c0_0] : memref<16x32xf32, #tpu.memory_space<vmem>>, vector<16x32xf32>
    %1 = arith.truncf %0 : vector<16x32xf32> to vector<16x32xbf16>
    %c0_1 = arith.constant 0 : index
    %c0_2 = arith.constant 0 : index
    %2 = vector.load %arg4[%c0_1, %c0_2] : memref<32x32xbf16, #tpu.memory_space<vmem>>, vector<32x32xbf16>
    %cst = arith.constant dense<0.000000e+00> : vector<16x32xf32>
    %3 = tpu.matmul %1, %2, %cst {dimension_numbers = #tpu.dot_dimension_numbers<[1], [0], [0], [1], [0, 0, 1, 1], [], []>} : vector<16x32xbf16>, vector<32x32xbf16>, vector<16x32xf32> -> vector<16x32xf32>
    %c0_3 = arith.constant 0 : index
    %c0_4 = arith.constant 0 : index
    %4 = vector.load %arg2[%c0_3, %c0_4] : memref<16x32xbf16, #tpu.memory_space<vmem>>, vector<16x32xbf16>
    %c0_5 = arith.constant 0 : index
    %c0_6 = arith.constant 0 : index
    %5 = vector.load %arg5[%c0_5, %c0_6] : memref<32x32xbf16, #tpu.memory_space<vmem>>, vector<32x32xbf16>
    %cst_7 = arith.constant dense<0.000000e+00> : vector<16x32xf32>
    %6 = tpu.matmul %4, %5, %cst_7 {dimension_numbers = #tpu.dot_dimension_numbers<[1], [0], [0], [1], [0, 0, 1, 1], [], []>} : vector<16x32xbf16>, vector<32x32xbf16>, vector<16x32xf32> -> vector<16x32xf32>
    %7 = arith.addf %3, %6 : vector<16x32xf32>
    %c0_8 = arith.constant 0 : index
    %c0_9 = arith.constant 0 : index
    %8 = vector.load %arg3[%c0_8, %c0_9] : memref<16x32xbf16, #tpu.memory_space<vmem>>, vector<16x32xbf16>
    %c0_10 = arith.constant 0 : index
    %c0_11 = arith.constant 0 : index
    %9 = vector.load %arg6[%c0_10, %c0_11] : memref<32x32xbf16, #tpu.memory_space<vmem>>, vector<32x32xbf16>
    %cst_12 = arith.constant dense<0.000000e+00> : vector<16x32xf32>
    %10 = tpu.matmul %8, %9, %cst_12 {dimension_numbers = #tpu.dot_dimension_numbers<[1], [0], [0], [1], [0, 0, 1, 1], [], []>} : vector<16x32xbf16>, vector<32x32xbf16>, vector<16x32xf32> -> vector<16x32xf32>
    %11 = arith.addf %7, %10 : vector<16x32xf32>
    %c0_13 = arith.constant 0 : index
    %c0_14 = arith.constant 0 : index
    %12 = vector.load %arg7[%c0_13, %c0_14] : memref<1x32xf32, #tpu.memory_space<vmem>>, vector<1x32xf32>
    %13 = vector.broadcast %12 : vector<1x32xf32> to vector<16x32xf32>
    %14 = arith.addf %11, %13 : vector<16x32xf32>
    %cst_15 = arith.constant 0.000000e+00 : f32
    %15 = vector.broadcast %cst_15 : f32 to vector<16x32xf32>
    %16 = arith.maximumf %14, %15 : vector<16x32xf32>
    %17 = arith.truncf %16 : vector<16x32xf32> to vector<16x32xbf16>
    %c0_16 = arith.constant 0 : index
    %c0_17 = arith.constant 0 : index
    %18 = vector.load %arg8[%c0_16, %c0_17] : memref<32x32xbf16, #tpu.memory_space<vmem>>, vector<32x32xbf16>
    %cst_18 = arith.constant dense<0.000000e+00> : vector<16x32xf32>
    %19 = tpu.matmul %17, %18, %cst_18 {dimension_numbers = #tpu.dot_dimension_numbers<[1], [0], [0], [1], [0, 0, 1, 1], [], []>} : vector<16x32xbf16>, vector<32x32xbf16>, vector<16x32xf32> -> vector<16x32xf32>
    %c0_19 = arith.constant 0 : index
    %c0_20 = arith.constant 0 : index
    %20 = vector.load %arg9[%c0_19, %c0_20] : memref<1x32xf32, #tpu.memory_space<vmem>>, vector<1x32xf32>
    %21 = vector.broadcast %20 : vector<1x32xf32> to vector<16x32xf32>
    %22 = arith.addf %19, %21 : vector<16x32xf32>
    %23 = arith.addf %22, %0 : vector<16x32xf32>
    %24 = arith.truncf %23 : vector<16x32xf32> to vector<16x32xbf16>
    %c0_21 = arith.constant 0 : index
    %c0_22 = arith.constant 0 : index
    %25 = vector.load %arg10[%c0_21, %c0_22] : memref<32x32xbf16, #tpu.memory_space<vmem>>, vector<32x32xbf16>
    %cst_23 = arith.constant dense<0.000000e+00> : vector<16x32xf32>
    %26 = tpu.matmul %24, %25, %cst_23 {dimension_numbers = #tpu.dot_dimension_numbers<[1], [0], [0], [1], [0, 0, 1, 1], [], []>} : vector<16x32xbf16>, vector<32x32xbf16>, vector<16x32xf32> -> vector<16x32xf32>
    %c0_24 = arith.constant 0 : index
    %c0_25 = arith.constant 0 : index
    %27 = vector.load %arg11[%c0_24, %c0_25] : memref<1x32xf32, #tpu.memory_space<vmem>>, vector<1x32xf32>
    %28 = vector.broadcast %27 : vector<1x32xf32> to vector<16x32xf32>
    %29 = arith.addf %26, %28 : vector<16x32xf32>
    %cst_26 = arith.constant 0.000000e+00 : f32
    %30 = vector.broadcast %cst_26 : f32 to vector<16x32xf32>
    %31 = arith.maximumf %29, %30 : vector<16x32xf32>
    %32 = arith.addf %23, %31 : vector<16x32xf32>
    %33 = arith.truncf %32 : vector<16x32xf32> to vector<16x32xbf16>
    %c0_27 = arith.constant 0 : index
    %c0_28 = arith.constant 0 : index
    %34 = vector.load %arg12[%c0_27, %c0_28] : memref<32x32xbf16, #tpu.memory_space<vmem>>, vector<32x32xbf16>
    %cst_29 = arith.constant dense<0.000000e+00> : vector<16x32xf32>
    %35 = tpu.matmul %33, %34, %cst_29 {dimension_numbers = #tpu.dot_dimension_numbers<[1], [0], [0], [1], [0, 0, 1, 1], [], []>} : vector<16x32xbf16>, vector<32x32xbf16>, vector<16x32xf32> -> vector<16x32xf32>
    %c0_30 = arith.constant 0 : index
    %c0_31 = arith.constant 0 : index
    %36 = vector.load %arg13[%c0_30, %c0_31] : memref<1x32xf32, #tpu.memory_space<vmem>>, vector<1x32xf32>
    %37 = vector.broadcast %36 : vector<1x32xf32> to vector<16x32xf32>
    %38 = arith.addf %35, %37 : vector<16x32xf32>
    %cst_32 = arith.constant 0.000000e+00 : f32
    %39 = vector.broadcast %cst_32 : f32 to vector<16x32xf32>
    %40 = arith.maximumf %38, %39 : vector<16x32xf32>
    %41 = arith.addf %32, %40 : vector<16x32xf32>
    %c0_33 = arith.constant 0 : index
    %c0_34 = arith.constant 0 : index
    %42 = vector.load %arg14[%c0_33, %c0_34] : memref<16x32xf32, #tpu.memory_space<vmem>>, vector<16x32xf32>
    tpu.vector_store %arg14[%c0_33, %c0_34], %41 {strides = array<i32>} : memref<16x32xf32, #tpu.memory_space<vmem>>, vector<16x32xf32>,
    return
  }
  func.func @transform_0(%arg0: i32) -> (i32, i32) {
    %c0_i32 = arith.constant 0 : i32
    %c0_i32_0 = arith.constant 0 : i32
    return %arg0, %c0_i32 : i32, i32
  }
  func.func @transform_1(%arg0: i32) -> (i32, i32) {
    %c0_i32 = arith.constant 0 : i32
    %c0_i32_0 = arith.constant 0 : i32
    return %arg0, %c0_i32 : i32, i32
  }
  func.func @transform_2(%arg0: i32) -> (i32, i32) {
    %c0_i32 = arith.constant 0 : i32
    %c0_i32_0 = arith.constant 0 : i32
    return %arg0, %c0_i32 : i32, i32
  }
  func.func @transform_3(%arg0: i32) -> (i32, i32) {
    %c0_i32 = arith.constant 0 : i32
    %c0_i32_0 = arith.constant 0 : i32
    %c0_i32_1 = arith.constant 0 : i32
    return %c0_i32, %c0_i32_0 : i32, i32
  }
  func.func @transform_4(%arg0: i32) -> (i32, i32) {
    %c0_i32 = arith.constant 0 : i32
    %c0_i32_0 = arith.constant 0 : i32
    %c0_i32_1 = arith.constant 0 : i32
    return %c0_i32, %c0_i32_0 : i32, i32
  }
  func.func @transform_5(%arg0: i32) -> (i32, i32) {
    %c0_i32 = arith.constant 0 : i32
    %c0_i32_0 = arith.constant 0 : i32
    %c0_i32_1 = arith.constant 0 : i32
    return %c0_i32, %c0_i32_0 : i32, i32
  }
  func.func @transform_6(%arg0: i32) -> (i32, i32) {
    %c0_i32 = arith.constant 0 : i32
    %c0_i32_0 = arith.constant 0 : i32
    %c0_i32_1 = arith.constant 0 : i32
    return %c0_i32, %c0_i32_0 : i32, i32
  }
  func.func @transform_7(%arg0: i32) -> (i32, i32) {
    %c0_i32 = arith.constant 0 : i32
    %c0_i32_0 = arith.constant 0 : i32
    %c0_i32_1 = arith.constant 0 : i32
    return %c0_i32, %c0_i32_0 : i32, i32
  }
  func.func @transform_8(%arg0: i32) -> (i32, i32) {
    %c0_i32 = arith.constant 0 : i32
    %c0_i32_0 = arith.constant 0 : i32
    %c0_i32_1 = arith.constant 0 : i32
    return %c0_i32, %c0_i32_0 : i32, i32
  }
  func.func @transform_9(%arg0: i32) -> (i32, i32) {
    %c0_i32 = arith.constant 0 : i32
    %c0_i32_0 = arith.constant 0 : i32
    %c0_i32_1 = arith.constant 0 : i32
    return %c0_i32, %c0_i32_0 : i32, i32
  }
  func.func @transform_10(%arg0: i32) -> (i32, i32) {
    %c0_i32 = arith.constant 0 : i32
    %c0_i32_0 = arith.constant 0 : i32
    %c0_i32_1 = arith.constant 0 : i32
    return %c0_i32, %c0_i32_0 : i32, i32
  }
  func.func @transform_11(%arg0: i32) -> (i32, i32) {
    %c0_i32 = arith.constant 0 : i32
    %c0_i32_0 = arith.constant 0 : i32
    %c0_i32_1 = arith.constant 0 : i32
    return %c0_i32, %c0_i32_0 : i32, i32
  }
  func.func @transform_12(%arg0: i32) -> (i32, i32) {
    %c0_i32 = arith.constant 0 : i32
    %c0_i32_0 = arith.constant 0 : i32
    %c0_i32_1 = arith.constant 0 : i32
    return %c0_i32, %c0_i32_0 : i32, i32
  }
  func.func @transform_13(%arg0: i32) -> (i32, i32) {
    %c0_i32 = arith.constant 0 : i32
    %c0_i32_0 = arith.constant 0 : i32
    return %arg0, %c0_i32 : i32, i32
  }
}

module attributes {stable_mosaic.version = 11 : i64} {
  func.func @_fused_matmul_kernel(%arg0: i32, %arg1: memref<16x32xbf16, #tpu.memory_space<vmem>>, %arg2: memref<16x32xbf16, #tpu.memory_space<vmem>>, %arg3: memref<32x256xbf16, #tpu.memory_space<vmem>>, %arg4: memref<32x256xbf16, #tpu.memory_space<vmem>>, %arg5: memref<1x256xf32, #tpu.memory_space<vmem>>, %arg6: memref<16x128xbf16, #tpu.memory_space<vmem>>, %arg7: memref<16x128xbf16, #tpu.memory_space<vmem>>) attributes {dimension_semantics = [#tpu.dimension_semantics<parallel>], iteration_bounds = array<i64: 1>, scalar_prefetch = 0 : i64, scratch_operands = 0 : i64, tpu.core_type = #tpu.core_type<tc>, window_params = [{transform_indices = @transform_0, window_bounds = array<i64: 16, 32>}, {transform_indices = @transform_1, window_bounds = array<i64: 16, 32>}, {pipeline_mode = #tpu.pipeline_mode<synchronous>, transform_indices = @transform_2, window_bounds = array<i64: 32, 256>}, {pipeline_mode = #tpu.pipeline_mode<synchronous>, transform_indices = @transform_3, window_bounds = array<i64: 32, 256>}, {pipeline_mode = #tpu.pipeline_mode<synchronous>, transform_indices = @transform_4, window_bounds = array<i64: 1, 256>}, {transform_indices = @transform_5, window_bounds = array<i64: 16, 128>}, {transform_indices = @transform_6, window_bounds = array<i64: 16, 128>}]} {
    %c0 = arith.constant 0 : index
    %c0_0 = arith.constant 0 : index
    %0 = vector.load %arg5[%c0, %c0_0] : memref<1x256xf32, #tpu.memory_space<vmem>>, vector<1x256xf32>
    %c0_1 = arith.constant 0 : index
    %c0_2 = arith.constant 0 : index
    %1 = vector.load %arg1[%c0_1, %c0_2] : memref<16x32xbf16, #tpu.memory_space<vmem>>, vector<16x32xbf16>
    %c0_3 = arith.constant 0 : index
    %c0_4 = arith.constant 0 : index
    %2 = vector.load %arg3[%c0_3, %c0_4] : memref<32x256xbf16, #tpu.memory_space<vmem>>, vector<32x256xbf16>
    %cst = arith.constant dense<0.000000e+00> : vector<16x256xf32>
    %3 = tpu.matmul %1, %2, %cst {dimension_numbers = #tpu.dot_dimension_numbers<[1], [0], [0], [1], [0, 0, 1, 1], [], []>} : vector<16x32xbf16>, vector<32x256xbf16>, vector<16x256xf32> -> vector<16x256xf32>
    %4 = vector.broadcast %0 : vector<1x256xf32> to vector<16x256xf32>
    %5 = arith.addf %4, %3 : vector<16x256xf32>
    %c0_5 = arith.constant 0 : index
    %c0_6 = arith.constant 0 : index
    %6 = vector.load %arg2[%c0_5, %c0_6] : memref<16x32xbf16, #tpu.memory_space<vmem>>, vector<16x32xbf16>
    %c0_7 = arith.constant 0 : index
    %c0_8 = arith.constant 0 : index
    %7 = vector.load %arg4[%c0_7, %c0_8] : memref<32x256xbf16, #tpu.memory_space<vmem>>, vector<32x256xbf16>
    %cst_9 = arith.constant dense<0.000000e+00> : vector<16x256xf32>
    %8 = tpu.matmul %6, %7, %cst_9 {dimension_numbers = #tpu.dot_dimension_numbers<[1], [0], [0], [1], [0, 0, 1, 1], [], []>} : vector<16x32xbf16>, vector<32x256xbf16>, vector<16x256xf32> -> vector<16x256xf32>
    %9 = arith.addf %5, %8 : vector<16x256xf32>
    %10 = vector.extract_strided_slice %9 {offsets = [0, 0], sizes = [16, 128], strides = [1, 1]} : vector<16x256xf32> to vector<16x128xf32>
    %11 = arith.truncf %10 : vector<16x128xf32> to vector<16x128xbf16>
    %c0_10 = arith.constant 0 : index
    %c0_11 = arith.constant 0 : index
    %12 = vector.load %arg6[%c0_10, %c0_11] : memref<16x128xbf16, #tpu.memory_space<vmem>>, vector<16x128xbf16>
    tpu.vector_store %arg6[%c0_10, %c0_11], %11 {strides = array<i32>} : memref<16x128xbf16, #tpu.memory_space<vmem>>, vector<16x128xbf16>,
    %13 = vector.extract_strided_slice %9 {offsets = [0, 128], sizes = [16, 128], strides = [1, 1]} : vector<16x256xf32> to vector<16x128xf32>
    %14 = arith.truncf %13 : vector<16x128xf32> to vector<16x128xbf16>
    %c0_12 = arith.constant 0 : index
    %c0_13 = arith.constant 0 : index
    %15 = vector.load %arg7[%c0_12, %c0_13] : memref<16x128xbf16, #tpu.memory_space<vmem>>, vector<16x128xbf16>
    tpu.vector_store %arg7[%c0_12, %c0_13], %14 {strides = array<i32>} : memref<16x128xbf16, #tpu.memory_space<vmem>>, vector<16x128xbf16>,
    return
  }
  func.func @transform_0(%arg0: i32) -> (i32, i32) {
    %c0_i32 = arith.constant 0 : i32
    %c0_i32_0 = arith.constant 0 : i32
    return %arg0, %c0_i32 : i32, i32
  }
  func.func @transform_1(%arg0: i32) -> (i32, i32) {
    %c0_i32 = arith.constant 0 : i32
    %c0_i32_0 = arith.constant 0 : i32
    return %arg0, %c0_i32 : i32, i32
  }
  func.func @transform_2(%arg0: i32) -> (i32, i32) {
    %c0_i32 = arith.constant 0 : i32
    %c0_i32_0 = arith.constant 0 : i32
    %c0_i32_1 = arith.constant 0 : i32
    return %c0_i32, %c0_i32_0 : i32, i32
  }
  func.func @transform_3(%arg0: i32) -> (i32, i32) {
    %c0_i32 = arith.constant 0 : i32
    %c0_i32_0 = arith.constant 0 : i32
    %c0_i32_1 = arith.constant 0 : i32
    return %c0_i32, %c0_i32_0 : i32, i32
  }
  func.func @transform_4(%arg0: i32) -> (i32, i32) {
    %c0_i32 = arith.constant 0 : i32
    %c0_i32_0 = arith.constant 0 : i32
    %c0_i32_1 = arith.constant 0 : i32
    return %c0_i32, %c0_i32_0 : i32, i32
  }
  func.func @transform_5(%arg0: i32) -> (i32, i32) {
    %c0_i32 = arith.constant 0 : i32
    %c0_i32_0 = arith.constant 0 : i32
    return %arg0, %c0_i32 : i32, i32
  }
  func.func @transform_6(%arg0: i32) -> (i32, i32) {
    %c0_i32 = arith.constant 0 : i32
    %c0_i32_0 = arith.constant 0 : i32
    return %arg0, %c0_i32 : i32, i32
  }
}

</mosaic_0001>

<bundles_post_ra>
// kernel: encoder_forward.9
= control target key start
LH: loop header
LB: loop body
LE: loop exit
PB: predicated region body
PF: predicated region fallthrough
CT: control target
= control target key end

     0   :  { %v165_v1 = vmov 0   ;;  %vm45_vm0 = vcmask 261120   ;;  %v93_v8 = vlaneseq  ;;  %s218_s1 = inlined_call_operand.vmem [shape: bf16[32,256], index: 1, kind: input, shape index: {}]   ;;  %s219_s0 = inlined_call_operand.vmem [shape: f32[16,32], index: 0, kind: input, shape index: {}]   ;;  %s220_s2 = inlined_call_operand.vmem [shape: f32[1,256], index: 2, kind: input, shape index: {}]   ;;  %s221_s3 = inlined_call_operand.vmem [shape: bf16[16,128], index: 3, kind: output, shape index: {0}]   ;;  %s222_s4 = inlined_call_operand.vmem [shape: bf16[16,128], index: 4, kind: output, shape index: {1}]  }
   0x1   :  { %v159_v0 = vld [vmem:[%s218_s1 + $0x4] ss:$8 sps:$4 sm:$0xff]   ;;  %81 = vmatprep.mubr.bf16.mxu0 %v165_v1  ;;  %v161_v2 = vld [vmem:[%s218_s1] ss:$8 sps:$4 sm:$0xff]   ;;  %v162_v3 = vld [vmem:[%s218_s1 + $0x14] ss:$8 sps:$4 sm:$0xff]  }
   0x2   :  { %49 = vmatprep.subr.bf16.mxu0 %v159_v0  ;;  %v164_v4 = vld [vmem:[%s218_s1 + $0x10] ss:$8 sps:$4 sm:$0xff]   ;;  %v18_v5 = vld [vmem:[%s219_s0] sm:$0xff]  ;;  %v19_v6 = vld [vmem:[%s219_s0 + $0x8] sm:$0xff]  ;;  %v94_v9 = vshrl.u32 %v93_v8, 7 }
   0x3   :  { %50 = vmatpush1.bf16.msra.mxu0 %v161_v2  ;;  %v20_v7 = vpack.c.bf16 %v19_v6, %v18_v5  ;;  %v17_v11 = vld [vmem:[%s220_s2] sm:$0x3] }
   0x4   :  { %51 = vmatprep.subr.bf16.mxu0 %v162_v3  ;;  %v95_v10 = vsub.s32 0, %v94_v9  ;;  %v99_v12 = vsub.s32 1, %v94_v9 }
   0x6   :  { %v96_v13 = vrot.slane %v17_v11, %v95_v10  ;;  %v100_v15 = vrot.slane %v17_v11, %v99_v12 }
   0x7   :  { %52 = vmatpush1.bf16.msra.mxu0 %v164_v4 }
   0xa   :  { %139 = vmatmul.mubr.msk.bf16.vlgmr.msra.gmra.mrb[0].mxu0 %vm45_vm0, %v20_v7 }
  0xdd   :  { %v83_v14 = vpop.f32.mrb[0].mxu0 }
  0xde   :  { %v85_v16 = vpop.f32.mrb[1].mxu0  ;;  %v103_v18 = vadd.f32 %v96_v13, %v83_v14 }
  0xdf   :  { %v87_v17 = vpop.f32.mrb[2].mxu0  ;;  %v104_v21 = vadd.f32 %v100_v15, %v85_v16 }
  0xe0   :  { %v105_v19 = vadd.f32 %v96_v13, %v87_v17  ;;  %v89_v20 = vpop.f32.mrb[3].mxu0 }
  0xe1   :  { %v106_v22 = vadd.f32 %v100_v15, %v89_v20 }
  0xe2   :  { %v151_v23 = vpack.c.bf16 %v105_v19, %v103_v18 }
  0xe3   :  { %v156_v24 = vpack.c.bf16 %v106_v22, %v104_v21 }
  0xe4   :  { %152 = vst [vmem:[%s221_s3] sm:$0xff] %v151_v23  }
  0xe5   :  { %157 = vst [vmem:[%s222_s4] sm:$0xff] %v156_v24  }

// kernel: encoder_forward.7
= control target key start
LH: loop header
LB: loop body
LE: loop exit
PB: predicated region body
PF: predicated region fallthrough
CT: control target
= control target key end

     0   :  { %s1315_s21 = smov 0   ;;  %s1317_s22 = smov 0   ;;  %s1407_s0 = inlined_call_operand.vmem [shape: bf16[12,16,16], index: 0, kind: input, shape index: {}, may-alias: {0,1,2}]   ;;  %s1408_s1 = inlined_call_operand.vmem [shape: bf16[12,16,16], index: 1, kind: input, shape index: {}, may-alias: {0,1,2}]   ;;  %s1409_s2 = inlined_call_operand.vmem [shape: bf16[12,16,16], index: 2, kind: input, shape index: {}, may-alias: {0,1,2}]   ;;  %s1410_s3 = inlined_call_operand.vmem [shape: bf16[16,32], index: 3, kind: input, shape index: {}]   ;;  %s1411_s4 = inlined_call_operand.vmem [shape: bf16[16,32], index: 4, kind: input, shape index: {}]   ;;  %s1412_s5 = inlined_call_operand.vmem [shape: bf16[16,32], index: 5, kind: input, shape index: {}]   ;;  %s1413_s6 = inlined_call_operand.vmem [shape: f32[1,32], index: 6, kind: input, shape index: {}]   ;;  %s1414_s7 = inlined_call_operand.vmem [shape: bf16[32,64], index: 7, kind: input, shape index: {}]   ;;  %s1415_s8 = inlined_call_operand.vmem [shape: bf16[32,64], index: 8, kind: input, shape index: {}]   ;;  %s1416_s9 = inlined_call_operand.vmem [shape: f32[1,64], index: 9, kind: input, shape index: {}]   ;;  %s1417_s10 = inlined_call_operand.vmem [shape: f32[1,64], index: 10, kind: input, shape index: {}]   ;;  %s1418_s11 = inlined_call_operand.vmem [shape: bf16[10,16,64], index: 11, kind: output, shape index: {0}]   ;;  %s1419_s12 = inlined_call_operand.vmem [shape: bf16[10,16,64], index: 12, kind: output, shape index: {1}]  }
   0x1   :  { %s1319_s23 = smov 0  }
   0x2 LB: > { %s32_s24 = sadd.s32 1, %s1242_s22  ;;  %p1088_p0 = scmp.ge.s32.totalorder %s1246_s23, 1  ;;  %s1246_s23 = sphi %s1319_s23, %s23_s23   ;;  %s1242_s22 = sphi %s1317_s22, %s1421_s22   ;;  %s1238_s21 = sphi %s1315_s21, %s1420_s21  }
   0x3   : > { %p33_p1 = scmp.ge.s32.totalorder %s32_s24, 10  ;;  %p430_p2 = scmp.lt.s32.totalorder %s1246_s23, 11 }
   0x5   : > { %s1423_s24 = smov (%p33_p1, %s32_s24), 0  ;;  %p431_p3 = pnand %p1088_p0, %p430_p2 }
   0x6   : > { %v1214_v0 = vld [vmem:[%s1410_s3] sm:$0xff] (!%p431_p3)   ;;  %v1248_v1 = vmov (!%p431_p3), 0.0   ;;  %p510_p4 = scmp.lt.s32.totalorder (!%p431_p3), %s1238_s21, 11  ;;  %vm1249_vm0 = vmmov (!%p431_p3), 0   ;;  %s519_s27 = sadd.s32 (!%p431_p3), 1, %s1238_s21  ;;  %vm580_vm1 = vcmask (!%p431_p3), 130048  }
   0x7   : > { %434 = sbr.rel (%p431_p3) target bundleno = 490 (0x1ea), region = 64  ;;  %1144 = vmatprep.subr.bf16.mxu0 (!%p431_p3), %v1248_v1  ;;  %1162 = vmatprep.subr.bf16.mxu1 (!%p431_p3), %v1248_v1  ;;  %v1216_v2 = vld [vmem:[%s1411_s4] sm:$0xff] (!%p431_p3)   ;;  %p521_p5 = scmp.lt.s32.totalorder (!%p431_p3), %s519_s27, 11  ;;  %v1221_v8 = vld [vmem:[%s1414_s7 + $0x8] sm:$0xff] (!%p431_p3)   ;;  %vm781_vm2 = vcmask (!%p431_p3), 261120   ;;  %vm834_vm3 = vcmask (!%p431_p3), 519168  }
   0x8   : > { %1145 = vmatpush3.bf16.msra.mxu0 (!%p431_p3), %v1214_v0  ;;  %1146 = vmatprep.mubr.msk.bf16.mxu0 (!%p431_p3), %vm1249_vm0, %v1248_v1  ;;  %s531_s13 = sadd.s32 (!%p431_p3), 2, %s1238_s21  ;;  %v1218_v5 = vld [vmem:[%s1412_s5] sm:$0xff] (!%p431_p3)   ;;  %v1223_v20 = vld [vmem:[%s1415_s8 + $0x8] sm:$0xff] (!%p431_p3)   ;;  %p544_p7 = scmp.lt.s32.totalorder (!%p431_p3), %s1238_s21, 9 }
   0x9   : > { %1150 = vmatprep.subr.bf16.mxu0 (!%p431_p3), %v1248_v1  ;;  %1166 = vmatprep.mubr.msk.bf16.mxu1 (!%p431_p3), %vm1249_vm0, %v1248_v1  ;;  %p533_p6 = scmp.lt.s32.totalorder (!%p431_p3), %s531_s13, 11  ;;  %v1220_v7 = vld [vmem:[%s1414_s7] sm:$0xff] (!%p431_p3)  }
   0xa   : > { %1163 = vmatpush3.bf16.msra.mxu1 (!%p431_p3), %v1220_v7  ;;  %v1102_v9 = vld [vmem:[%s1413_s6] ss:$0 sm:$0xff] (!%p431_p3) }
   0xb   : > { %1164 = vmatprep.subr.bf16.mxu1 (!%p431_p3), %v1248_v1  ;;  %v1222_v18 = vld [vmem:[%s1415_s8] sm:$0xff] (!%p431_p3)  }
   0xc   : > { %v1109_v21 = vld [vmem:[%s1416_s9] ss:$0 sm:$0xff] (!%p431_p3) }
   0xd   : > { %v1115_v30 = vld [vmem:[%s1417_s10] ss:$0 sm:$0xff] (!%p431_p3) }
   0xe   : > { %s511_s28 = scalar_select %p510_p4, %s1238_s21, 11  ;;  %1165 = vmatpush3.bf16.msra.mxu1 %v1221_v8 }
   0xf   : > { %s1425_s27 = smov (!%p521_p5, %s519_s27), 11  ;;  %s1427_s13 = smov (!%p533_p6, %s531_s13), 11  ;;  %1170 = vmatprep.subr.bf16.mxu1 %v1248_v1 }
  0x10   : > { %s1123_s14 = sshll.u32 %s511_s28, 3  ;;  %s1124_s18 = sshll.u32 %s1425_s27, 3 }
  0x11   : > { %s517_s17 = scalar_lea.vmem %s1407_s0, %s1123_s14  ;;  %s528_s25 = scalar_lea.vmem %s1408_s1, %s1124_s18 }
  0x12   : > { %v1215_v3 = vld [vmem:[%s517_s17] sm:$0xff]   ;;  %s1125_s26 = sshll.u32 %s1427_s13, 3  ;;  %s1429_s21 = smov (!%p544_p7, %s1238_s21), 9 }
  0x13   : > { %1147 = vmatmul.mubr.msk.bf16.vlgmr.msra.gmra.mrb[0].mxu0 %vm580_vm1, %v1215_v3  ;;  %s540_s30 = scalar_lea.vmem %s1409_s2, %s1125_s26  ;;  %v1217_v4 = vld [vmem:[%s528_s25] sm:$0xff]   ;;  %s1126_s14 = sshll.u32 %s1429_s21, 3 }
  0x14   : > { %1151 = vmatpush3.bf16.msra.mxu0 %v1216_v2  ;;  %1152 = vmatprep.mubr.msk.bf16.mxu0 %vm1249_vm0, %v1248_v1  ;;  %v1219_v6 = vld [vmem:[%s540_s30] sm:$0xff]   ;;  %s551_s13 = scalar_lea.vmem %s1418_s11, %s1126_s14  ;;  %s561_s19 = scalar_lea.vmem %s1419_s12, %s1126_s14 }
  0x15   : > { %1156 = vmatprep.subr.bf16.mxu0 %v1248_v1 }
  0x1f   : > { %1153 = vmatmul.mubr.msk.bf16.vlgmr.msra.gmra.mrb[0].mxu0 %vm580_vm1, %v1217_v4 }
  0x20   : > { %1157 = vmatpush3.bf16.msra.mxu0 %v1218_v5  ;;  %1158 = vmatprep.mubr.msk.bf16.mxu0 %vm1249_vm0, %v1248_v1 }
  0x2b   : > { %1159 = vmatmul.mubr.msk.bf16.vlgmr.msra.gmra.mrb[0].mxu0 %vm580_vm1, %v1219_v6 }
  0xfe   : > { %v746_v10 = vpop.f32.mrb[0].mxu0 }
  0xff   : > { %v1178_v11 = vadd.f32 %v1102_v9, %v746_v10  ;;  %v1160_v12 = vpop.f32.mrb[1].mxu0 }
 0x100   : > { %v749_v13 = vpop.f32.mrb[2].mxu0 }
 0x101   : > { %v1179_v14 = vadd.f32 %v1102_v9, %v749_v13  ;;  %v1161_v15 = vpop.f32.mrb[3].mxu0  ;;  %v755_v16 = vmax.f32 %v1178_v11, 0.0 }
 0x103   : > { %v756_v17 = vmax.f32 %v1179_v14, 0.0 }
 0x105   : > { %v757_v19 = vpack.c.bf16 %v756_v17, %v755_v16 }
 0x107   : > { %1167 = vmatmul.mubr.msk.bf16.vlgmr.msra.gmra.mrb[0].mxu1 %vm781_vm2, %v757_v19 }
 0x108   : > { %1171 = vmatpush3.bf16.msra.mxu1 %v1222_v18  ;;  %1174 = vmatprep.mubr.msk.bf16.mxu1 %vm1249_vm0, %v1248_v1 }
 0x109   : > { %1172 = vmatprep.subr.bf16.mxu1 %v1248_v1 }
 0x10c   : > { %1173 = vmatpush3.bf16.msra.mxu1 %v1223_v20 }
 0x10f   : > { %1175 = vmatmul.mubr.msk.bf16.vlgmr.msra.gmra.mrb[4].mxu1 %vm781_vm2, %v757_v19 }
 0x1da   : > { %v819_v22 = vpop.f32.mrb[0].mxu1 }
 0x1db   : > { %v820_v23 = vadd.f32 %v1109_v21, %v819_v22  ;;  %v1168_v24 = vpop.f32.mrb[1].mxu1 }
 0x1dc   : > { %v822_v25 = vpop.f32.mrb[2].mxu1 }
 0x1dd   : > { %v1128_v26 = vpack.c.bf16 %v820_v23, %v820_v23  ;;  %v823_v27 = vadd.f32 %v1109_v21, %v822_v25  ;;  %v1169_v28 = vpop.f32.mrb[3].mxu1 }
 0x1df   : > { %835 = vst.msk [vmem:[%s551_s13] sm:$0xf] %vm834_vm3, %v1128_v26  ;;  %v1129_v29 = vpack.c.bf16 %v823_v27, %v823_v27 }
 0x1e1   : > { %836 = vst.msk [vmem:[%s551_s13 + $0x4] sm:$0xf] %vm834_vm3, %v1129_v29 }
 0x1e2   : > { %v894_v31 = vpop.f32.mrb[4].mxu1 }
 0x1e3   : > { %v895_v32 = vadd.f32 %v1115_v30, %v894_v31  ;;  %v1176_v33 = vpop.f32.mrb[5].mxu1 }
 0x1e4   : > { %v897_v34 = vpop.f32.mrb[6].mxu1 }
 0x1e5   : > { %v1130_v35 = vpack.c.bf16 %v895_v32, %v895_v32  ;;  %v898_v36 = vadd.f32 %v1115_v30, %v897_v34  ;;  %v1177_v37 = vpop.f32.mrb[7].mxu1 }
 0x1e7   : > { %909 = vst.msk [vmem:[%s561_s19] sm:$0xf] %vm834_vm3, %v1130_v35  ;;  %v1131_v38 = vpack.c.bf16 %v898_v36, %v898_v36 }
 0x1e9   : > { %910 = vst.msk [vmem:[%s561_s19 + $0x4] sm:$0xf] %vm834_vm3, %v1131_v38 }
 0x1ea PF: > { %s23_s23 = sadd.s32 1, %s1246_s23   ;;  %s1420_s21 = smov %s1242_s22 }
 0x1eb   : > { %p20_p8 = scmp.ge.s32.totalorder %s23_s23, 12   ;;  %s1421_s22 = smov %s1423_s24 }
 0x1ed   :  { %22 = sbr.rel (!%p20_p8) target bundleno = 2 (0x2), region = 112 }

// kernel: encoder_forward.8
= control target key start
LH: loop header
LB: loop body
LE: loop exit
PB: predicated region body
PF: predicated region fallthrough
CT: control target
= control target key end

     0   :  { %s2711_s18 = smov 0   ;;  %s2713_s19 = smov 0   ;;  %s3477_s0 = inlined_call_operand.vmem [shape: bf16[10,16,64], index: 0, kind: input, shape index: {}]   ;;  %s3478_s1 = inlined_call_operand.vmem [shape: bf16[10,16,64], index: 1, kind: input, shape index: {}]   ;;  %s3479_s2 = inlined_call_operand.vmem [shape: s32[16,1], index: 2, kind: input, shape index: {}]   ;;  %s3480_s3 = inlined_call_operand.vmem [shape: bf16[16,64], index: 3, kind: input, shape index: {}]   ;;  %s3481_s4 = inlined_call_operand.vmem [shape: bf16[16,64], index: 4, kind: input, shape index: {}]   ;;  %s3482_s5 = inlined_call_operand.vmem [shape: f32[16,32], index: 5, kind: output, shape index: {}]  }
   0x1   :  { %s2715_s20 = smov 0  }
   0x2 LB: > { %s24_s21 = sadd.s32 1, %s2664_s19  ;;  %p2240_p0 = scmp.ge.s32.totalorder %s2668_s20, 1  ;;  %s2668_s20 = sphi %s2715_s20, %s15_s20   ;;  %s2664_s19 = sphi %s2713_s19, %s3484_s19   ;;  %s2660_s18 = sphi %s2711_s18, %s3483_s18  }
   0x3   : > { %p25_p1 = scmp.ge.s32.totalorder %s24_s21, 2  ;;  %p242_p2 = scmp.lt.s32.totalorder %s2668_s20, 3 }
   0x5   : > { %s3486_s21 = smov (%p25_p1, %s24_s21), 0  ;;  %p243_p3 = pnand %p2240_p0, %p242_p2 }
   0x6   : > { %s2732_s22 = smul.u32 (!%p243_p3), 5, %s2660_s18  ;;  %s303_s23 = ssub.s32 (!%p243_p3), 1, %s2660_s18 }
   0x7   : > { %246 = sbr.rel (%p243_p3) target bundleno = 3733 (0xe95), region = 40  ;;  %p2245_p6 = scmp.ne.s32.totalorder (!%p243_p3), %s2660_s18, 0 }
   0x8   : > { %s304_s24 = smul.u32 (!%p243_p3), 5, %s303_s23  ;;  %p293_p4 = scmp.lt.s32.totalorder (!%p243_p3), %s2732_s22, 9 }
   0xa   : > { %p306_p5 = scmp.lt.s32.totalorder (!%p243_p3), %s304_s24, 9 }
   0xe   : > { %s294_s25 = scalar_select %p293_p4, %s2732_s22, 9 }
   0xf   : > { %s3488_s24 = smov (!%p306_p5, %s304_s24), 9  ;;  %333 = sbr.rel (%p2245_p6) target bundleno = 22 (0x16), region = 44 }
  0x10   : > { %s2307_s26 = sshll.u32 %s294_s25, 3  ;;  %s2308_s30 = sshll.u32 %s3488_s24, 3  ;;  %vm334_vm0 = vcmask (!%p2245_p6), 130048   ;;  %v2670_v0 = vmov (!%p2245_p6), 0.0  }
  0x11   : > { %s2740_s29 = scalar_lea.vmem %s3477_s0, %s2307_s26  ;;  %s2745_s8 = scalar_lea.vmem %s3478_s1, %s2308_s30  ;;  %335 = vst.msk [vmem:[#allocation2] sm:$0xff] (!%p2245_p6), %vm334_vm0, %v2670_v0  ;;  %336 = vst.msk [vmem:[#allocation2 + $0x8] sm:$0xff] (!%p2245_p6), %vm334_vm0, %v2670_v0 }
  0x12   : > { %337 = vst.msk [vmem:[#allocation3] sm:$0xff] (!%p2245_p6), %vm334_vm0, %v2670_v0  ;;  %338 = vst.msk [vmem:[#allocation3 + $0x8] sm:$0xff] (!%p2245_p6), %vm334_vm0, %v2670_v0 }
  0x13   : > { %339 = vst.msk [vmem:[#allocation4] sm:$0xff] (!%p2245_p6), %vm334_vm0, %v2670_v0  ;;  %340 = vst.msk [vmem:[#allocation4 + $0x8] sm:$0xff] (!%p2245_p6), %vm334_vm0, %v2670_v0 }
  0x14   : > { %341 = vst.msk [vmem:[#allocation5] sm:$0xff] (!%p2245_p6), %vm334_vm0, %v2670_v0  ;;  %342 = vst.msk [vmem:[#allocation5 + $0x8] sm:$0xff] (!%p2245_p6), %vm334_vm0, %v2670_v0 }
  0x16 PF: > { %v2474_v1 = vld [vmem:[%s3480_s3] sm:$0xff]   ;;  %v2671_v2 = vmov 0.0   ;;  %vm2672_vm1 = vmmov 0   ;;  %vm362_vm2 = vcmask 130048   ;;  %s2673_s13 = smov 96   ;;  %v2674_v30 = vmov 0  }
  0x17   : > { %2377 = vmatprep.subr.bf16.mxu0 %v2671_v2  ;;  %2383 = vmatprep.subr.bf16.mxu1 %v2671_v2  ;;  %v2475_v3 = vld [vmem:[%s3481_s4] sm:$0xff]   ;;  %s2675_s14 = smov 16   ;;  %v471_v53 = vstv %s2732_s22  ;;  %s346_s17 = ssub.s32 9, %s2732_s22  ;;  %v2826_v62 = vld [vmem:[%s3479_s2 + $0x8] sm:$0xff] }
  0x18   : > { %2378 = vmatpush3.bf16.msra.mxu0 %v2474_v1  ;;  %2379 = vmatprep.mubr.msk.bf16.mxu0 %vm2672_vm1, %v2671_v2  ;;  %v2758_v4 = vld [vmem:[#allocation2] sm:$0xff]  ;;  %v2760_v5 = vld [vmem:[#allocation2 + $0x8] sm:$0xff]  ;;  %v474_v60 = vstv %s346_s17  ;;  %vm473_vm5 = vcmp.gt.s32.totalorder %v2826_v62, %v471_v53  ;;  %s2676_s25 = smov 48   ;;  %s2677_s26 = smov 32  }
  0x19   : > { %2384 = vmatpush3.bf16.msra.mxu1 %v2475_v3  ;;  %2385 = vmatprep.mubr.msk.bf16.mxu1 %vm2672_vm1, %v2671_v2  ;;  %v353_v7 = vpack.c.bf16 %v2760_v5, %v2758_v4  ;;  %v2310_v10 = vld [vmem:[%s2740_s29] sm:$0xff]   ;;  %v2787_v33 = vld [vmem:[#allocation3] sm:$0xff]  ;;  %v2790_v34 = vld [vmem:[#allocation3 + $0x8] sm:$0xff]  ;;  %vm476_vm4 = vcmp.gt.s32.totalorder %v2826_v62, %v474_v60  ;;  %s2678_s7 = smov 80   ;;  %s2679_s9 = smov 112  }
  0x1a   : > { %v2762_v6 = vld [vmem:[#allocation4] sm:$0xff]  ;;  %v2768_v8 = vld [vmem:[#allocation4 + $0x8] sm:$0xff]  ;;  %2389 = vmatprep.subr.bf16.mxu0 %v2671_v2  ;;  %2395 = vmatprep.subr.bf16.mxu1 %v2671_v2  ;;  %v2311_v12 = vunpack.c.l.bf16 %v2310_v10  ;;  %v2312_v15 = vunpack.c.h.bf16 %v2310_v10  ;;  %v648_v3 = vsel %vm476_vm4, 1, %v2674_v30  ;;  %s699_s10 = sadd.s32 1, %s2732_s22  ;;  %s700_s11 = ssub.s32 8, %s2732_s22 }
  0x1b   : > { %v416_v9 = vpack.c.bf16 %v2768_v8, %v2762_v6  ;;  %2380 = vmatmul.mubr.msk.bf16.vlgmr.msra.gmra.mrb[0].mxu0 %vm362_vm2, %v353_v7  ;;  %v2349_v11 = vld [vmem:[%s2745_s8 + $0x20] sm:$0xff]   ;;  %2473 = vset.pattern.permute.xlu1 %v2674_v30  ;;  %v2794_v35 = vld [vmem:[#allocation5] sm:$0xff]  ;;  %v2798_v36 = vld [vmem:[#allocation5 + $0x8] sm:$0xff]  ;;  %v536_v7 = vsel %vm473_vm5, 1, %v2674_v30  ;;  %s1053_s23 = sadd.s32 2, %s2732_s22  ;;  %s1054_s24 = ssub.s32 7, %s2732_s22 }
  0x1c   : > { %2391 = vmatprep.mubr.msk.bf16.mxu0 %vm2672_vm1, %v2671_v2  ;;  %v2315_v13 = vunpack.c.l.bf16 %v2349_v11  ;;  %v2316_v22 = vunpack.c.h.bf16 %v2349_v11  ;;  %2472 = vset.pattern.permute.xlu0 %v2674_v30  ;;  %v2811_v54 = vld [vmem:[%s3479_s2] sm:$0xff]  ;;  %p2302_p7 = scmp.ne.s32.totalorder %s2660_s18, 1 }
  0x1d   : > { %2386 = vmatmul.mubr.msk.bf16.vlgmr.msra.gmra.mrb[0].mxu1 %vm362_vm2, %v416_v9  ;;  %vm472_vm3 = vcmp.gt.s32.totalorder %v2811_v54, %v471_v53  ;;  %vm475_vm6 = vcmp.gt.s32.totalorder %v2811_v54, %v474_v60 }
  0x1e   : > { %2397 = vmatprep.mubr.msk.bf16.mxu1 %vm2672_vm1, %v2671_v2  ;;  %v535_v63 = vsel %vm472_vm3, 1, %v2674_v30  ;;  %v647_v9 = vsel %vm475_vm6, 1, %v2674_v30 }
  0xee   : > { %v400_v14 = vpop.f32.mrb[0].mxu0 }
  0xef   : > { %v407_v16 = vadd.f32 %v2311_v12, %v400_v14  ;;  %v2381_v18 = vpop.f32.mrb[1].mxu0 }
  0xf0   : > { %v462_v17 = vpop.f32.mrb[0].mxu1  ;;  %v403_v20 = vpop.f32.mrb[2].mxu0 }
  0xf1   : > { %v469_v19 = vadd.f32 %v2315_v13, %v462_v17  ;;  %v2387_v21 = vpop.f32.mrb[1].mxu1  ;;  %2484 = vtanh.f32 %v407_v16  ;;  %v2382_v23 = vpop.f32.mrb[3].mxu0  ;;  %v408_v25 = vadd.f32 %v2312_v15, %v403_v20  ;;  %v2252_v37 = vmul.f32 -1.442695, %v407_v16 }
  0xf2   : > { %v465_v24 = vpop.f32.mrb[2].mxu1 }
  0xf3   : > { %2486 = vtanh.f32 %v469_v19  ;;  %v2388_v26 = vpop.f32.mrb[3].mxu1  ;;  %v470_v27 = vadd.f32 %v2316_v22, %v465_v24  ;;  %v2254_v38 = vmul.f32 -1.442695, %v469_v19  ;;  %v2253_v39 = vmul.f32 -1.442695, %v408_v25 }
  0xf4   : > { %2488 = vtanh.f32 %v408_v25 }
  0xf5   : > { %2490 = vtanh.f32 %v470_v27  ;;  %v2255_v40 = vmul.f32 -1.442695, %v470_v27 }
  0xf6   : > { %2492 = vpow2.f32 %v2252_v37 }
  0xf7   : > { %2494 = vpow2.f32 %v2254_v38  ;;  %v2476_v38 = vld [vmem:[%s3480_s3] sm:$0xff]  }
  0xf8   : > { %2496 = vpow2.f32 %v2253_v39  ;;  %2390 = vmatpush3.bf16.msra.mxu0 %v2476_v38 }
  0xf9   : > { %2498 = vpow2.f32 %v2255_v40  ;;  %2401 = vmatprep.subr.bf16.mxu0 %v2671_v2 }
  0xfb   : > { %v2485_v28 = vpop.eup %2484 }
  0xfc   : > { %505 = vrot.lane.b32.xlu0 %v2485_v28, %s2673_s13 }
  0xfd   : > { %v2487_v29 = vpop.eup %2486 }
  0xfe   : > { %615 = vrot.lane.b32.xlu1 %v2487_v29, %s2673_s13  ;;  %v2489_v31 = vpop.eup %2488 }
  0xff   : > { %v2491_v32 = vpop.eup %2490 }
 0x100   : > { %507 = vrot.lane.b32.xlu0 %v2489_v31, %s2673_s13  ;;  %v2493_v41 = vpop.eup %2492 }
 0x101   : > { %v483_v42 = vadd.f32 1.0, %v2493_v41  ;;  %v2495_v43 = vpop.eup %2494 }
 0x102   : > { %617 = vrot.lane.b32.xlu1 %v2491_v32, %s2673_s13  ;;  %v2497_v44 = vpop.eup %2496  ;;  %v593_v45 = vadd.f32 1.0, %v2495_v43 }
 0x103   : > { %2500 = vrcp.f32 %v483_v42  ;;  %v484_v46 = vadd.f32 1.0, %v2497_v44  ;;  %v2499_v47 = vpop.eup %2498 }
 0x104   : > { %495 = vrot.lane.b32.xlu0 %v2787_v33, %s2675_s14  ;;  %2502 = vrcp.f32 %v593_v45  ;;  %v594_v48 = vadd.f32 1.0, %v2499_v47 }
 0x105   : > { %2504 = vrcp.f32 %v484_v46 }
 0x106   : > { %497 = vrot.lane.b32.xlu1 %v2790_v34, %s2675_s14  ;;  %2506 = vrcp.f32 %v594_v48 }
 0x108   : > { %605 = vrot.lane.b32.xlu0 %v2794_v35, %s2675_s14 }
 0x10a   : > { %607 = vrot.lane.b32.xlu1 %v2798_v36, %s2675_s14 }
 0x10d   : > { %v2804_v49 = vpop.eup %2500 }
 0x10e   : > { %v2815_v55 = vpop.eup %2502 }
 0x10f   : > { %v2817_v56 = vpop.eup %2504 }
 0x110   : > { %v2830_v0 = vpop.eup %2506 }
 0x16e   : > { %v506_v50 = vpop.permute.xlu0 %505 }
 0x16f   : > { %v511_v52 = vmul.f32 %v2804_v49, %v506_v50 }
 0x170   : > { %v616_v51 = vpop.permute.xlu1 %615 }
 0x171   : > { %515 = vrot.lane.b32.xlu0 %v511_v52, %s2675_s14  ;;  %v621_v57 = vmul.f32 %v2815_v55, %v616_v51 }
 0x172   : > { %v508_v58 = vpop.permute.xlu0 %507 }
 0x173   : > { %v512_v59 = vmul.f32 %v2817_v56, %v508_v58 }
 0x174   : > { %v618_v61 = vpop.permute.xlu1 %617 }
 0x175   : > { %625 = vrot.lane.b32.xlu0 %v621_v57, %s2675_s14  ;;  %517 = vrot.lane.b32.xlu1 %v512_v59, %s2675_s14  ;;  %v622_v1 = vmul.f32 %v2830_v0, %v618_v61 }
 0x176   : > { %v496_v10 = vpop.permute.xlu0 %495 }
 0x177   : > { %v501_v13 = vmul.f32 %v2804_v49, %v496_v10 }
 0x178   : > { %v498_v11 = vpop.permute.xlu1 %497 }
 0x179   : > { %538 = vperm.xlu0 %2472, %v535_v63   ;;  %627 = vrot.lane.b32.xlu1 %v622_v1, %s2675_s14  ;;  %v502_v18 = vmul.f32 %v2817_v56, %v498_v11 }
 0x17a   : > { %v606_v12 = vpop.permute.xlu0 %605 }
 0x17b   : > { %v611_v17 = vmul.f32 %v2815_v55, %v606_v12 }
 0x17c   : > { %v608_v15 = vpop.permute.xlu1 %607 }
 0x17d   : > { %653 = vperm.xlu0 %2472, %v648_v3   ;;  %541 = vperm.xlu1 %2473, %v536_v7   ;;  %v612_v21 = vmul.f32 %v2830_v0, %v608_v15 }
 0x181   : > { %549 = vrot.lane.b32.xlu0 %v2760_v5, %s2676_s25  ;;  %650 = vperm.xlu1 %2473, %v647_v9  }
 0x185   : > { %547 = vrot.lane.b32.xlu1 %v2758_v4, %s2676_s25 }
 0x1e3   : > { %v516_v14 = vpop.permute.xlu0 %515 }
 0x1e4   : > { %v2845_v16 = vadd.f32 %v516_v14, %v501_v13  ;;  %v2350_v14 = vld [vmem:[%s2740_s29 + $0x8] sm:$0xff]  }
 0x1e5   : > { %v2319_v15 = vunpack.c.l.bf16 %v2350_v14 }
 0x1e6   : > { %2508 = vtanh.f32 %v2845_v16 }
 0x1e7   : > { %v626_v5 = vpop.permute.xlu0 %625  ;;  %v518_v19 = vpop.permute.xlu1 %517 }
 0x1e8   : > { %v2850_v20 = vadd.f32 %v626_v5, %v611_v17  ;;  %v2852_v4 = vadd.f32 %v518_v19, %v502_v18  ;;  %v2351_v18 = vld [vmem:[%s2745_s8 + $0x18] sm:$0xff]  }
 0x1ea   : > { %2510 = vtanh.f32 %v2850_v20 }
 0x1eb   : > { %2512 = vtanh.f32 %v2852_v4  ;;  %v628_v22 = vpop.permute.xlu1 %627 }
 0x1ec   : > { %v2857_v23 = vadd.f32 %v628_v22, %v612_v21  ;;  %v2323_v22 = vunpack.c.l.bf16 %v2351_v18 }
 0x1ee   : > { %2514 = vtanh.f32 %v2857_v23 }
 0x1f0   : > { %v2509_v24 = vpop.eup %2508 }
 0x1f1   : > { %527 = vrot.lane.b32.xlu1 %v2509_v24, %s2677_s26 }
 0x1f4   : > { %v2511_v25 = vpop.eup %2510 }
 0x1f5   : > { %v2513_v26 = vpop.eup %2512  ;;  %637 = vrot.lane.b32.xlu1 %v2511_v25, %s2677_s26 }
 0x1f6   : > { %529 = vrot.lane.b32.xlu0 %v2513_v26, %s2677_s26 }
 0x1f8   : > { %v2515_v27 = vpop.eup %2514  ;;  %v539_v31 = vpop.permute.xlu0 %538 }
 0x1f9   : > { %659 = vrot.lane.b32.xlu1 %v2762_v6, %s2676_s25  ;;  %vm543_vm7 = vcmp.eq.s32.totalorder %v539_v31, 1 }
 0x1fa   : > { %639 = vrot.lane.b32.xlu0 %v2515_v27, %s2677_s26 }
 0x1fc   : > { %v542_v28 = vpop.permute.xlu1 %541  ;;  %v2868_v37 = vpop.permute.xlu0 %653 }
 0x1fd   : > { %vm544_vm8 = vcmp.eq.s32.totalorder %v542_v28, 1  ;;  %vm656_vm10 = vcmp.eq.s32.totalorder %v2868_v37, 1 }
 0x1fe   : > { %661 = vrot.lane.b32.xlu0 %v2768_v8, %s2676_s25  ;;  %v2477_v8 = vld [vmem:[%s3481_s4] sm:$0xff]  }
 0x1ff   : > { %2396 = vmatpush3.bf16.msra.mxu1 %v2477_v8 }
 0x200   : > { %v651_v29 = vpop.permute.xlu1 %650  ;;  %v550_v39 = vpop.permute.xlu0 %549  ;;  %2407 = vmatprep.subr.bf16.mxu1 %v2671_v2 }
 0x201   : > { %vm655_vm9 = vcmp.eq.s32.totalorder %v651_v29, 1 }
 0x204   : > { %v548_v32 = vpop.permute.xlu1 %547 }
 0x263   : > { %v528_v40 = vpop.permute.xlu1 %527 }
 0x264   : > { %v533_v6 = vmul.f32 %v2804_v49, %v528_v40 }
 0x266   : > { %v553_v41 = vsel %vm543_vm7, %v533_v6, %v548_v32 }
 0x267   : > { %v638_v42 = vpop.permute.xlu1 %637  ;;  %557 = vrot.lane.b32.xlu1 %v553_v41, %s2678_s7 }
 0x268   : > { %v530_v43 = vpop.permute.xlu0 %529  ;;  %v643_v45 = vmul.f32 %v2815_v55, %v638_v42 }
 0x269   : > { %v534_v44 = vmul.f32 %v2817_v56, %v530_v43 }
 0x26b   : > { %v660_v46 = vpop.permute.xlu1 %659  ;;  %v554_v47 = vsel %vm544_vm8, %v534_v44, %v550_v39 }
 0x26c   : > { %559 = vrot.lane.b32.xlu0 %v554_v47, %s2678_s7  ;;  %v640_v48 = vpop.permute.xlu0 %639  ;;  %v665_v49 = vsel %vm655_vm9, %v643_v45, %v660_v46 }
 0x26d   : > { %669 = vrot.lane.b32.xlu1 %v665_v49, %s2678_s7  ;;  %v644_v50 = vmul.f32 %v2830_v0, %v640_v48 }
 0x270   : > { %v662_v51 = vpop.permute.xlu0 %661 }
 0x271   : > { %569 = vrot.lane.b32.xlu1 %v2787_v33, %s2675_s14  ;;  %v666_v52 = vsel %vm656_vm10, %v644_v50, %v662_v51 }
 0x272   : > { %671 = vrot.lane.b32.xlu0 %v666_v52, %s2678_s7 }
 0x275   : > { %681 = vrot.lane.b32.xlu1 %v2794_v35, %s2675_s14 }
 0x276   : > { %571 = vrot.lane.b32.xlu0 %v2790_v34, %s2675_s14 }
 0x27a   : > { %683 = vrot.lane.b32.xlu0 %v2798_v36, %s2675_s14 }
 0x2d9   : > { %v558_v53 = vpop.permute.xlu1 %557 }
 0x2da   : > { %563 = vst.msk [vmem:[#allocation2] sm:$0xff] %vm362_vm2, %v558_v53 }
 0x2de   : > { %v560_v55 = vpop.permute.xlu0 %559 }
 0x2df   : > { %564 = vst.msk [vmem:[#allocation2 + $0x8] sm:$0xff] %vm362_vm2, %v560_v55  ;;  %v670_v33 = vpop.permute.xlu1 %669 }
 0x2e0   : > { %675 = vst.msk [vmem:[#allocation4] sm:$0xff] %vm362_vm2, %v670_v33 }
 0x2e1   : > { %v2907_v34 = vld [vmem:[#allocation2] sm:$0xff] }
 0x2e3   : > { %v570_v56 = vpop.permute.xlu1 %569 }
 0x2e4   : > { %v672_v57 = vpop.permute.xlu0 %671  ;;  %v575_v35 = vsel %vm543_vm7, %v2845_v16, %v570_v56  ;;  %v2320_v16 = vunpack.c.h.bf16 %v2350_v14 }
 0x2e5   : > { %676 = vst.msk [vmem:[#allocation4 + $0x8] sm:$0xff] %vm362_vm2, %v672_v57  ;;  %579 = vrot.lane.b32.xlu1 %v575_v35, %s2679_s9 }
 0x2e6   : > { %v2909_v36 = vld [vmem:[#allocation2 + $0x8] sm:$0xff] }
 0x2e7   : > { %v682_v58 = vpop.permute.xlu1 %681  ;;  %v708_v59 = vpack.c.bf16 %v2909_v36, %v2907_v34  ;;  %v2922_v1 = vld [vmem:[#allocation4] sm:$0xff] }
 0x2e8   : > { %v572_v60 = vpop.permute.xlu0 %571  ;;  %v687_v61 = vsel %vm655_vm9, %v2850_v20, %v682_v58  ;;  %v825_v58 = vstv %s699_s10  ;;  %s1407_s10 = sadd.s32 3, %s2732_s22 }
 0x2e9   : > { %2392 = vmatmul.mubr.msk.bf16.vlgmr.msra.gmra.mrb[4].mxu0 %vm362_vm2, %v708_v59  ;;  %691 = vrot.lane.b32.xlu1 %v687_v61, %s2679_s9  ;;  %v576_v63 = vsel %vm544_vm8, %v2852_v4, %v572_v60  ;;  %vm826_vm11 = vcmp.gt.s32.totalorder %v2811_v54, %v825_v58  ;;  %vm827_vm12 = vcmp.gt.s32.totalorder %v2826_v62, %v825_v58 }
 0x2ea   : > { %581 = vrot.lane.b32.xlu0 %v576_v63, %s2679_s9  ;;  %2403 = vmatprep.mubr.msk.bf16.mxu0 %vm2672_vm1, %v2671_v2  ;;  %v828_v63 = vstv %s700_s11  ;;  %s1408_s11 = ssub.s32 6, %s2732_s22 }
 0x2eb   : > { %vm829_vm13 = vcmp.gt.s32.totalorder %v2811_v54, %v828_v63  ;;  %vm830_vm14 = vcmp.gt.s32.totalorder %v2826_v62, %v828_v63 }
 0x2ec   : > { %v684_v0 = vpop.permute.xlu0 %683  ;;  %v2924_v3 = vld [vmem:[#allocation4 + $0x8] sm:$0xff] }
 0x2ed   : > { %v688_v7 = vsel %vm656_vm10, %v2857_v23, %v684_v0  ;;  %v770_v9 = vpack.c.bf16 %v2924_v3, %v2922_v1  ;;  %v2324_v23 = vunpack.c.h.bf16 %v2351_v18 }
 0x2ee   : > { %693 = vrot.lane.b32.xlu0 %v688_v7, %s2679_s9 }
 0x2ef   : > { %2398 = vmatmul.mubr.msk.bf16.vlgmr.msra.gmra.mrb[4].mxu1 %vm362_vm2, %v770_v9 }
 0x2f0   : > { %2409 = vmatprep.mubr.msk.bf16.mxu1 %vm2672_vm1, %v2671_v2 }
 0x357   : > { %v580_v10 = vpop.permute.xlu1 %579 }
 0x358   : > { %585 = vst.msk [vmem:[#allocation3] sm:$0xff] %vm362_vm2, %v580_v10  ;;  %v889_v10 = vsel %vm826_vm11, 1, %v2674_v30 }
 0x35b   : > { %v692_v11 = vpop.permute.xlu1 %691 }
 0x35c   : > { %697 = vst.msk [vmem:[#allocation5] sm:$0xff] %vm362_vm2, %v692_v11  ;;  %v582_v12 = vpop.permute.xlu0 %581  ;;  %v890_v11 = vsel %vm827_vm12, 1, %v2674_v30 }
 0x35d   : > { %586 = vst.msk [vmem:[#allocation3 + $0x8] sm:$0xff] %vm362_vm2, %v582_v12  ;;  %v1001_v12 = vsel %vm829_vm13, 1, %v2674_v30 }
 0x35f   : > { %v2945_v39 = vld [vmem:[#allocation3] sm:$0xff] }
 0x360   : > { %v694_v13 = vpop.permute.xlu0 %693 }
 0x361   : > { %698 = vst.msk [vmem:[#allocation5 + $0x8] sm:$0xff] %vm362_vm2, %v694_v13  ;;  %v1002_v13 = vsel %vm830_vm14, 1, %v2674_v30 }
 0x363   : > { %v2953_v6 = vld [vmem:[#allocation5] sm:$0xff] }
 0x364   : > { %v2949_v40 = vld [vmem:[#allocation3 + $0x8] sm:$0xff] }
 0x368   : > { %v2957_v8 = vld [vmem:[#allocation5 + $0x8] sm:$0xff] }
 0x3bc   : > { %v754_v17 = vpop.f32.mrb[4].mxu0 }
 0x3bd   : > { %v761_v5 = vadd.f32 %v2319_v15, %v754_v17  ;;  %v2393_v19 = vpop.f32.mrb[5].mxu0 }
 0x3be   : > { %v757_v20 = vpop.f32.mrb[6].mxu0 }
 0x3bf   : > { %2516 = vtanh.f32 %v761_v5  ;;  %v762_v4 = vadd.f32 %v2320_v16, %v757_v20  ;;  %v2394_v21 = vpop.f32.mrb[7].mxu0  ;;  %v2264_v41 = vmul.f32 -1.442695, %v761_v5 }
 0x3c1   : > { %2518 = vtanh.f32 %v762_v4  ;;  %v2265_v42 = vmul.f32 -1.442695, %v762_v4 }
 0x3c2   : > { %v816_v24 = vpop.f32.mrb[4].mxu1 }
 0x3c3   : > { %v823_v25 = vadd.f32 %v2323_v22, %v816_v24  ;;  %v2399_v26 = vpop.f32.mrb[5].mxu1 }
 0x3c4   : > { %v819_v27 = vpop.f32.mrb[6].mxu1 }
 0x3c5   : > { %2520 = vtanh.f32 %v823_v25  ;;  %v824_v28 = vadd.f32 %v2324_v23, %v819_v27  ;;  %v2400_v29 = vpop.f32.mrb[7].mxu1  ;;  %v2266_v43 = vmul.f32 -1.442695, %v823_v25 }
 0x3c7   : > { %2522 = vtanh.f32 %v824_v28  ;;  %v2267_v44 = vmul.f32 -1.442695, %v824_v28 }
 0x3c8   : > { %2524 = vpow2.f32 %v2264_v41 }
 0x3c9   : > { %v2517_v31 = vpop.eup %2516  ;;  %2526 = vpow2.f32 %v2265_v42 }
 0x3ca   : > { %859 = vrot.lane.b32.xlu1 %v2517_v31, %s2673_s13  ;;  %2528 = vpow2.f32 %v2266_v43  ;;  %v2478_v43 = vld [vmem:[%s3480_s3] sm:$0xff]  }
 0x3cb   : > { %v2519_v32 = vpop.eup %2518  ;;  %2530 = vpow2.f32 %v2267_v44  ;;  %2402 = vmatpush3.bf16.msra.mxu0 %v2478_v43 }
 0x3cc   : > { %861 = vrot.lane.b32.xlu0 %v2519_v32, %s2673_s13  ;;  %2413 = vmatprep.subr.bf16.mxu0 %v2671_v2 }
 0x3cf   : > { %v2521_v37 = vpop.eup %2520 }
 0x3d0   : > { %969 = vrot.lane.b32.xlu1 %v2521_v37, %s2673_s13 }
 0x3d1   : > { %v2523_v38 = vpop.eup %2522 }
 0x3d2   : > { %971 = vrot.lane.b32.xlu0 %v2523_v38, %s2673_s13  ;;  %v2525_v45 = vpop.eup %2524 }
 0x3d3   : > { %v2527_v46 = vpop.eup %2526  ;;  %v837_v47 = vadd.f32 1.0, %v2525_v45 }
 0x3d4   : > { %849 = vrot.lane.b32.xlu1 %v2945_v39, %s2675_s14  ;;  %v2529_v48 = vpop.eup %2528  ;;  %v838_v49 = vadd.f32 1.0, %v2527_v46 }
 0x3d5   : > { %2532 = vrcp.f32 %v837_v47  ;;  %v2531_v50 = vpop.eup %2530  ;;  %v947_v51 = vadd.f32 1.0, %v2529_v48  ;;  %v2479_v47 = vld [vmem:[%s3481_s4] sm:$0xff]  }
 0x3d6   : > { %851 = vrot.lane.b32.xlu0 %v2949_v40, %s2675_s14  ;;  %2534 = vrcp.f32 %v838_v49  ;;  %v948_v52 = vadd.f32 1.0, %v2531_v50  ;;  %2408 = vmatpush3.bf16.msra.mxu1 %v2479_v47 }
 0x3d7   : > { %2536 = vrcp.f32 %v947_v51  ;;  %2419 = vmatprep.subr.bf16.mxu1 %v2671_v2 }
 0x3d8   : > { %959 = vrot.lane.b32.xlu1 %v2953_v6, %s2675_s14  ;;  %2538 = vrcp.f32 %v948_v52 }
 0x3da   : > { %961 = vrot.lane.b32.xlu0 %v2957_v8, %s2675_s14 }
 0x3df   : > { %v2961_v53 = vpop.eup %2532 }
 0x3e0   : > { %v2965_v56 = vpop.eup %2534 }
 0x3e1   : > { %v2970_v59 = vpop.eup %2536 }
 0x3e2   : > { %v2975_v0 = vpop.eup %2538 }
 0x43c   : > { %v860_v55 = vpop.permute.xlu1 %859 }
 0x43d   : > { %v865_v33 = vmul.f32 %v2961_v53, %v860_v55 }
 0x43e   : > { %v862_v57 = vpop.permute.xlu0 %861 }
 0x43f   : > { %869 = vrot.lane.b32.xlu1 %v865_v33, %s2675_s14  ;;  %v866_v35 = vmul.f32 %v2965_v56, %v862_v57 }
 0x441   : > { %871 = vrot.lane.b32.xlu0 %v866_v35, %s2675_s14 }
 0x442   : > { %v970_v60 = vpop.permute.xlu1 %969 }
 0x443   : > { %v975_v61 = vmul.f32 %v2970_v59, %v970_v60 }
 0x444   : > { %v972_v7 = vpop.permute.xlu0 %971 }
 0x445   : > { %979 = vrot.lane.b32.xlu1 %v975_v61, %s2675_s14  ;;  %v976_v9 = vmul.f32 %v2975_v0, %v972_v7 }
 0x446   : > { %v850_v14 = vpop.permute.xlu1 %849 }
 0x447   : > { %981 = vrot.lane.b32.xlu0 %v976_v9, %s2675_s14  ;;  %v855_v17 = vmul.f32 %v2961_v53, %v850_v14 }
 0x448   : > { %v852_v15 = vpop.permute.xlu0 %851 }
 0x449   : > { %892 = vperm.xlu1 %2473, %v889_v10   ;;  %v856_v20 = vmul.f32 %v2965_v56, %v852_v15 }
 0x44a   : > { %v960_v16 = vpop.permute.xlu1 %959 }
 0x44b   : > { %895 = vperm.xlu0 %2472, %v890_v11  }
 0x44c   : > { %v962_v18 = vpop.permute.xlu0 %961 }
 0x44d   : > { %1004 = vperm.xlu1 %2473, %v1001_v12   ;;  %v966_v23 = vmul.f32 %v2975_v0, %v962_v18  ;;  %v2352_v18 = vld [vmem:[%s2740_s29 + $0x10] sm:$0xff]  }
 0x44f   : > { %1007 = vperm.xlu0 %2472, %v1002_v13  }
 0x451   : > { %901 = vrot.lane.b32.xlu1 %v2907_v34, %s2676_s25  ;;  %v965_v34 = vmul.f32 %v2970_v59, %v960_v16 }
 0x453   : > { %903 = vrot.lane.b32.xlu0 %v2909_v36, %s2676_s25 }
 0x4b1   : > { %v870_v5 = vpop.permute.xlu1 %869 }
 0x4b2   : > { %v2992_v19 = vadd.f32 %v870_v5, %v855_v17  ;;  %v2327_v5 = vunpack.c.l.bf16 %v2352_v18 }
 0x4b3   : > { %v872_v4 = vpop.permute.xlu0 %871 }
 0x4b4   : > { %2540 = vtanh.f32 %v2992_v19  ;;  %v2996_v21 = vadd.f32 %v872_v4, %v856_v20 }
 0x4b6   : > { %2542 = vtanh.f32 %v2996_v21 }
 0x4b7   : > { %v980_v36 = vpop.permute.xlu1 %979 }
 0x4b8   : > { %v3000_v22 = vadd.f32 %v980_v36, %v965_v34  ;;  %v2353_v36 = vld [vmem:[%s2745_s8 + $0x10] sm:$0xff]  }
 0x4b9   : > { %v982_v24 = vpop.permute.xlu0 %981 }
 0x4ba   : > { %2544 = vtanh.f32 %v3000_v22  ;;  %v3004_v25 = vadd.f32 %v982_v24, %v966_v23  ;;  %v2331_v24 = vunpack.c.l.bf16 %v2353_v36 }
 0x4bc   : > { %2546 = vtanh.f32 %v3004_v25 }
 0x4be   : > { %v2541_v26 = vpop.eup %2540 }
 0x4bf   : > { %881 = vrot.lane.b32.xlu1 %v2541_v26, %s2677_s26 }
 0x4c0   : > { %v2543_v27 = vpop.eup %2542 }
 0x4c1   : > { %883 = vrot.lane.b32.xlu0 %v2543_v27, %s2677_s26 }
 0x4c4   : > { %v2545_v28 = vpop.eup %2544 }
 0x4c5   : > { %991 = vrot.lane.b32.xlu1 %v2545_v28, %s2677_s26 }
 0x4c6   : > { %v2547_v29 = vpop.eup %2546 }
 0x4c7   : > { %993 = vrot.lane.b32.xlu0 %v2547_v29, %s2677_s26 }
 0x4c8   : > { %v893_v31 = vpop.permute.xlu1 %892 }
 0x4c9   : > { %1013 = vrot.lane.b32.xlu1 %v2922_v1, %s2676_s25  ;;  %vm897_vm15 = vcmp.eq.s32.totalorder %v893_v31, 1 }
 0x4ca   : > { %v896_v32 = vpop.permute.xlu0 %895 }
 0x4cb   : > { %1015 = vrot.lane.b32.xlu0 %v2924_v3, %s2676_s25  ;;  %vm898_vm0 = vcmp.eq.s32.totalorder %v896_v32, 1 }
 0x4cc   : > { %v1005_v37 = vpop.permute.xlu1 %1004 }
 0x4cd   : > { %vm1009_vm3 = vcmp.eq.s32.totalorder %v1005_v37, 1 }
 0x4ce   : > { %v1008_v38 = vpop.permute.xlu0 %1007 }
 0x4cf   : > { %vm1010_vm4 = vcmp.eq.s32.totalorder %v1008_v38, 1 }
 0x4d0   : > { %v902_v41 = vpop.permute.xlu1 %901 }
 0x4d2   : > { %v904_v42 = vpop.permute.xlu0 %903 }
 0x531   : > { %v882_v44 = vpop.permute.xlu1 %881 }
 0x532   : > { %v887_v45 = vmul.f32 %v2961_v53, %v882_v44 }
 0x533   : > { %v884_v1 = vpop.permute.xlu0 %883 }
 0x534   : > { %v907_v3 = vsel %vm897_vm15, %v887_v45, %v902_v41  ;;  %v888_v46 = vmul.f32 %v2965_v56, %v884_v1 }
 0x535   : > { %911 = vrot.lane.b32.xlu1 %v907_v3, %s2678_s7 }
 0x536   : > { %v908_v49 = vsel %vm898_vm0, %v888_v46, %v904_v42 }
 0x537   : > { %v992_v48 = vpop.permute.xlu1 %991  ;;  %913 = vrot.lane.b32.xlu0 %v908_v49, %s2678_s7 }
 0x538   : > { %v997_v50 = vmul.f32 %v2970_v59, %v992_v48 }
 0x539   : > { %v994_v51 = vpop.permute.xlu0 %993 }
 0x53a   : > { %v998_v55 = vmul.f32 %v2975_v0, %v994_v51 }
 0x53b   : > { %v1014_v52 = vpop.permute.xlu1 %1013 }
 0x53c   : > { %v1019_v53 = vsel %vm1009_vm3, %v997_v50, %v1014_v52 }
 0x53d   : > { %1023 = vrot.lane.b32.xlu1 %v1019_v53, %s2678_s7  ;;  %v1016_v33 = vpop.permute.xlu0 %1015 }
 0x53e   : > { %v1020_v56 = vsel %vm1010_vm4, %v998_v55, %v1016_v33 }
 0x53f   : > { %1025 = vrot.lane.b32.xlu0 %v1020_v56, %s2678_s7 }
 0x541   : > { %923 = vrot.lane.b32.xlu1 %v2945_v39, %s2675_s14 }
 0x543   : > { %925 = vrot.lane.b32.xlu0 %v2949_v40, %s2675_s14 }
 0x545   : > { %1035 = vrot.lane.b32.xlu1 %v2953_v6, %s2675_s14 }
 0x547   : > { %1037 = vrot.lane.b32.xlu0 %v2957_v8, %s2675_s14 }
 0x5a7   : > { %v912_v57 = vpop.permute.xlu1 %911 }
 0x5a8   : > { %917 = vst.msk [vmem:[#allocation2] sm:$0xff] %vm362_vm2, %v912_v57 }
 0x5a9   : > { %v914_v35 = vpop.permute.xlu0 %913 }
 0x5aa   : > { %918 = vst.msk [vmem:[#allocation2 + $0x8] sm:$0xff] %vm362_vm2, %v914_v35 }
 0x5af   : > { %v1024_v58 = vpop.permute.xlu1 %1023  ;;  %v3046_v39 = vld [vmem:[#allocation2] sm:$0xff] }
 0x5b0   : > { %1029 = vst.msk [vmem:[#allocation4] sm:$0xff] %vm362_vm2, %v1024_v58 }
 0x5b1   : > { %v1026_v59 = vpop.permute.xlu0 %1025  ;;  %v3048_v60 = vld [vmem:[#allocation2 + $0x8] sm:$0xff] }
 0x5b2   : > { %1030 = vst.msk [vmem:[#allocation4 + $0x8] sm:$0xff] %vm362_vm2, %v1026_v59  ;;  %v1062_v6 = vpack.c.bf16 %v3048_v60, %v3046_v39 }
 0x5b3   : > { %v924_v40 = vpop.permute.xlu1 %923 }
 0x5b4   : > { %v929_v8 = vsel %vm897_vm15, %v2992_v19, %v924_v40  ;;  %2404 = vmatmul.mubr.msk.bf16.vlgmr.msra.gmra.mrb[8].mxu0 %vm362_vm2, %v1062_v6  ;;  %v2328_v19 = vunpack.c.h.bf16 %v2352_v18 }
 0x5b5   : > { %933 = vrot.lane.b32.xlu1 %v929_v8, %s2679_s9  ;;  %v926_v61 = vpop.permute.xlu0 %925  ;;  %2415 = vmatprep.mubr.msk.bf16.mxu0 %vm2672_vm1, %v2671_v2  ;;  %v1179_v8 = vstv %s1053_s23 }
 0x5b6   : > { %v930_v0 = vsel %vm898_vm0, %v2996_v21, %v926_v61  ;;  %vm1180_vm5 = vcmp.gt.s32.totalorder %v2811_v54, %v1179_v8  ;;  %vm1181_vm6 = vcmp.gt.s32.totalorder %v2826_v62, %v1179_v8 }
 0x5b7   : > { %v1036_v63 = vpop.permute.xlu1 %1035  ;;  %935 = vrot.lane.b32.xlu0 %v930_v0, %s2679_s9  ;;  %v3065_v10 = vld [vmem:[#allocation4] sm:$0xff] }
 0x5b8   : > { %v1041_v7 = vsel %vm1009_vm3, %v3000_v22, %v1036_v63 }
 0x5b9   : > { %1045 = vrot.lane.b32.xlu1 %v1041_v7, %s2679_s9  ;;  %v1038_v9 = vpop.permute.xlu0 %1037  ;;  %v3067_v11 = vld [vmem:[#allocation4 + $0x8] sm:$0xff]  ;;  %v1182_v7 = vstv %s1054_s24 }
 0x5ba   : > { %v1042_v12 = vsel %vm1010_vm4, %v3004_v25, %v1038_v9  ;;  %v1124_v13 = vpack.c.bf16 %v3067_v11, %v3065_v10  ;;  %v2332_v25 = vunpack.c.h.bf16 %v2353_v36  ;;  %vm1183_vm7 = vcmp.gt.s32.totalorder %v2811_v54, %v1182_v7 }
 0x5bb   : > { %1047 = vrot.lane.b32.xlu0 %v1042_v12, %s2679_s9  ;;  %vm1184_vm8 = vcmp.gt.s32.totalorder %v2826_v62, %v1182_v7 }
 0x5bc   : > { %2410 = vmatmul.mubr.msk.bf16.vlgmr.msra.gmra.mrb[8].mxu1 %vm362_vm2, %v1124_v13 }
 0x5bd   : > { %2421 = vmatprep.mubr.msk.bf16.mxu1 %vm2672_vm1, %v2671_v2 }
 0x627   : > { %v934_v14 = vpop.permute.xlu1 %933 }
 0x628   : > { %939 = vst.msk [vmem:[#allocation3] sm:$0xff] %vm362_vm2, %v934_v14  ;;  %v1243_v14 = vsel %vm1180_vm5, 1, %v2674_v30 }
 0x629   : > { %v936_v15 = vpop.permute.xlu0 %935 }
 0x62a   : > { %940 = vst.msk [vmem:[#allocation3 + $0x8] sm:$0xff] %vm362_vm2, %v936_v15  ;;  %v1244_v15 = vsel %vm1181_vm6, 1, %v2674_v30 }
 0x62b   : > { %v1046_v16 = vpop.permute.xlu1 %1045 }
 0x62c   : > { %1051 = vst.msk [vmem:[#allocation5] sm:$0xff] %vm362_vm2, %v1046_v16  ;;  %v1355_v16 = vsel %vm1183_vm7, 1, %v2674_v30 }
 0x62d   : > { %v1048_v17 = vpop.permute.xlu0 %1047 }
 0x62e   : > { %1052 = vst.msk [vmem:[#allocation5 + $0x8] sm:$0xff] %vm362_vm2, %v1048_v17  ;;  %v1356_v17 = vsel %vm1184_vm8, 1, %v2674_v30 }
 0x62f   : > { %v3087_v43 = vld [vmem:[#allocation3] sm:$0xff] }
 0x631   : > { %v3091_v44 = vld [vmem:[#allocation3 + $0x8] sm:$0xff] }
 0x633   : > { %v3095_v45 = vld [vmem:[#allocation5] sm:$0xff] }
 0x635   : > { %v3099_v1 = vld [vmem:[#allocation5 + $0x8] sm:$0xff] }
 0x687   : > { %v1108_v20 = vpop.f32.mrb[8].mxu0 }
 0x688   : > { %v1115_v4 = vadd.f32 %v2327_v5, %v1108_v20  ;;  %v2405_v21 = vpop.f32.mrb[9].mxu0 }
 0x689   : > { %v1111_v34 = vpop.f32.mrb[10].mxu0 }
 0x68a   : > { %2548 = vtanh.f32 %v1115_v4  ;;  %v1116_v22 = vadd.f32 %v2328_v19, %v1111_v34  ;;  %v2406_v23 = vpop.f32.mrb[11].mxu0  ;;  %v2276_v3 = vmul.f32 -1.442695, %v1115_v4 }
 0x68c   : > { %2550 = vtanh.f32 %v1116_v22  ;;  %v2277_v46 = vmul.f32 -1.442695, %v1116_v22 }
 0x68f   : > { %v1170_v26 = vpop.f32.mrb[8].mxu1 }
 0x690   : > { %v1177_v27 = vadd.f32 %v2331_v24, %v1170_v26  ;;  %v2411_v28 = vpop.f32.mrb[9].mxu1 }
 0x691   : > { %v1173_v29 = vpop.f32.mrb[10].mxu1 }
 0x692   : > { %2552 = vtanh.f32 %v1177_v27  ;;  %v1178_v31 = vadd.f32 %v2332_v25, %v1173_v29  ;;  %v2412_v32 = vpop.f32.mrb[11].mxu1  ;;  %v2278_v47 = vmul.f32 -1.442695, %v1177_v27 }
 0x694   : > { %v2549_v37 = vpop.eup %2548  ;;  %2554 = vtanh.f32 %v1178_v31  ;;  %v2279_v48 = vmul.f32 -1.442695, %v1178_v31 }
 0x695   : > { %1213 = vrot.lane.b32.xlu1 %v2549_v37, %s2673_s13  ;;  %2556 = vpow2.f32 %v2276_v3 }
 0x696   : > { %v2551_v38 = vpop.eup %2550  ;;  %2558 = vpow2.f32 %v2277_v46 }
 0x697   : > { %1215 = vrot.lane.b32.xlu0 %v2551_v38, %s2673_s13  ;;  %2560 = vpow2.f32 %v2278_v47 }
 0x698   : > { %2562 = vpow2.f32 %v2279_v48 }
 0x69c   : > { %v2553_v41 = vpop.eup %2552 }
 0x69d   : > { %1323 = vrot.lane.b32.xlu1 %v2553_v41, %s2673_s13  ;;  %v2480_v41 = vld [vmem:[%s3480_s3] sm:$0xff]  }
 0x69e   : > { %v2555_v42 = vpop.eup %2554  ;;  %2414 = vmatpush3.bf16.msra.mxu0 %v2480_v41 }
 0x69f   : > { %1325 = vrot.lane.b32.xlu0 %v2555_v42, %s2673_s13  ;;  %v2557_v49 = vpop.eup %2556  ;;  %2425 = vmatprep.subr.bf16.mxu0 %v2671_v2 }
 0x6a0   : > { %v2559_v50 = vpop.eup %2558  ;;  %v1191_v51 = vadd.f32 1.0, %v2557_v49  ;;  %v2481_v49 = vld [vmem:[%s3481_s4] sm:$0xff]  }
 0x6a1   : > { %1203 = vrot.lane.b32.xlu1 %v3087_v43, %s2675_s14  ;;  %v1192_v52 = vadd.f32 1.0, %v2559_v50  ;;  %v2561_v53 = vpop.eup %2560  ;;  %2420 = vmatpush3.bf16.msra.mxu1 %v2481_v49 }
 0x6a2   : > { %2564 = vrcp.f32 %v1191_v51  ;;  %v2563_v55 = vpop.eup %2562  ;;  %v1301_v33 = vadd.f32 1.0, %v2561_v53  ;;  %2431 = vmatprep.subr.bf16.mxu1 %v2671_v2 }
 0x6a3   : > { %1205 = vrot.lane.b32.xlu0 %v3091_v44, %s2675_s14  ;;  %2566 = vrcp.f32 %v1192_v52  ;;  %v1302_v56 = vadd.f32 1.0, %v2563_v55 }
 0x6a4   : > { %2568 = vrcp.f32 %v1301_v33 }
 0x6a5   : > { %1313 = vrot.lane.b32.xlu1 %v3095_v45, %s2675_s14  ;;  %2570 = vrcp.f32 %v1302_v56 }
 0x6a7   : > { %1315 = vrot.lane.b32.xlu0 %v3099_v1, %s2675_s14 }
 0x6ac   : > { %v3103_v57 = vpop.eup %2564 }
 0x6ad   : > { %v3106_v59 = vpop.eup %2566 }
 0x6ae   : > { %v3113_v61 = vpop.eup %2568 }
 0x6af   : > { %v3117_v9 = vpop.eup %2570 }
 0x707   : > { %v1214_v35 = vpop.permute.xlu1 %1213 }
 0x708   : > { %v1219_v58 = vmul.f32 %v3103_v57, %v1214_v35 }
 0x709   : > { %v1216_v40 = vpop.permute.xlu0 %1215 }
 0x70a   : > { %1223 = vrot.lane.b32.xlu1 %v1219_v58, %s2675_s14  ;;  %v1220_v6 = vmul.f32 %v3106_v59, %v1216_v40 }
 0x70c   : > { %1225 = vrot.lane.b32.xlu0 %v1220_v6, %s2675_s14 }
 0x70f   : > { %v1324_v63 = vpop.permute.xlu1 %1323 }
 0x710   : > { %v1329_v0 = vmul.f32 %v3113_v61, %v1324_v63 }
 0x711   : > { %v1326_v12 = vpop.permute.xlu0 %1325 }
 0x712   : > { %1333 = vrot.lane.b32.xlu1 %v1329_v0, %s2675_s14  ;;  %v1330_v13 = vmul.f32 %v3117_v9, %v1326_v12 }
 0x713   : > { %v1204_v54 = vpop.permute.xlu1 %1203 }
 0x714   : > { %1335 = vrot.lane.b32.xlu0 %v1330_v13, %s2675_s14  ;;  %v1209_v19 = vmul.f32 %v3103_v57, %v1204_v54 }
 0x715   : > { %v1206_v18 = vpop.permute.xlu0 %1205 }
 0x716   : > { %1246 = vperm.xlu1 %2473, %v1243_v14   ;;  %v1210_v62 = vmul.f32 %v3106_v59, %v1206_v18 }
 0x717   : > { %v1314_v5 = vpop.permute.xlu1 %1313 }
 0x718   : > { %1249 = vperm.xlu0 %2472, %v1244_v15  }
 0x719   : > { %v1316_v20 = vpop.permute.xlu0 %1315 }
 0x71a   : > { %1358 = vperm.xlu1 %2473, %v1355_v16   ;;  %v1320_v23 = vmul.f32 %v3117_v9, %v1316_v20 }
 0x71c   : > { %1361 = vperm.xlu0 %2472, %v1356_v17  }
 0x71e   : > { %1255 = vrot.lane.b32.xlu1 %v3046_v39, %s2676_s25  ;;  %v1319_v39 = vmul.f32 %v3113_v61, %v1314_v5  ;;  %v2354_v5 = vld [vmem:[%s2740_s29 + $0x18] sm:$0xff]  }
 0x71f   : > { %v2336_v20 = vunpack.c.h.bf16 %v2354_v5 }
 0x720   : > { %1257 = vrot.lane.b32.xlu0 %v3048_v60, %s2676_s25 }
 0x77c   : > { %v1224_v4 = vpop.permute.xlu1 %1223 }
 0x77d   : > { %v3134_v21 = vadd.f32 %v1224_v4, %v1209_v19  ;;  %v2335_v19 = vunpack.c.l.bf16 %v2354_v5 }
 0x77e   : > { %v1226_v34 = vpop.permute.xlu0 %1225 }
 0x77f   : > { %2572 = vtanh.f32 %v3134_v21  ;;  %v3138_v36 = vadd.f32 %v1226_v34, %v1210_v62 }
 0x781   : > { %2574 = vtanh.f32 %v3138_v36 }
 0x784   : > { %v1334_v60 = vpop.permute.xlu1 %1333 }
 0x785   : > { %v3142_v22 = vadd.f32 %v1334_v60, %v1319_v39  ;;  %v2355_v39 = vld [vmem:[%s2745_s8 + $0x8] sm:$0xff]  }
 0x786   : > { %v1336_v24 = vpop.permute.xlu0 %1335  ;;  %v2339_v60 = vunpack.c.l.bf16 %v2355_v39 }
 0x787   : > { %2576 = vtanh.f32 %v3142_v22  ;;  %v3146_v25 = vadd.f32 %v1336_v24, %v1320_v23 }
 0x789   : > { %v2573_v26 = vpop.eup %2572  ;;  %2578 = vtanh.f32 %v3146_v25 }
 0x78a   : > { %1235 = vrot.lane.b32.xlu1 %v2573_v26, %s2677_s26 }
 0x78b   : > { %v2575_v27 = vpop.eup %2574 }
 0x78c   : > { %1237 = vrot.lane.b32.xlu0 %v2575_v27, %s2677_s26 }
 0x791   : > { %v2577_v28 = vpop.eup %2576 }
 0x792   : > { %1345 = vrot.lane.b32.xlu1 %v2577_v28, %s2677_s26 }
 0x793   : > { %v2579_v29 = vpop.eup %2578 }
 0x794   : > { %1347 = vrot.lane.b32.xlu0 %v2579_v29, %s2677_s26 }
 0x795   : > { %v1247_v31 = vpop.permute.xlu1 %1246 }
 0x796   : > { %1367 = vrot.lane.b32.xlu1 %v3065_v10, %s2676_s25  ;;  %vm1251_vm9 = vcmp.eq.s32.totalorder %v1247_v31, 1 }
 0x797   : > { %v1250_v32 = vpop.permute.xlu0 %1249 }
 0x798   : > { %1369 = vrot.lane.b32.xlu0 %v3067_v11, %s2676_s25  ;;  %vm1252_vm10 = vcmp.eq.s32.totalorder %v1250_v32, 1 }
 0x799   : > { %v1359_v37 = vpop.permute.xlu1 %1358 }
 0x79a   : > { %vm1363_vm11 = vcmp.eq.s32.totalorder %v1359_v37, 1 }
 0x79b   : > { %v1362_v38 = vpop.permute.xlu0 %1361 }
 0x79c   : > { %vm1364_vm12 = vcmp.eq.s32.totalorder %v1362_v38, 1 }
 0x79d   : > { %v1256_v42 = vpop.permute.xlu1 %1255 }
 0x79f   : > { %v1258_v3 = vpop.permute.xlu0 %1257 }
 0x7fc   : > { %v1236_v46 = vpop.permute.xlu1 %1235 }
 0x7fd   : > { %v1241_v47 = vmul.f32 %v3103_v57, %v1236_v46 }
 0x7fe   : > { %v1238_v10 = vpop.permute.xlu0 %1237 }
 0x7ff   : > { %v1261_v11 = vsel %vm1251_vm9, %v1241_v47, %v1256_v42  ;;  %v1242_v48 = vmul.f32 %v3106_v59, %v1238_v10 }
 0x800   : > { %1265 = vrot.lane.b32.xlu1 %v1261_v11, %s2678_s7 }
 0x801   : > { %v1262_v50 = vsel %vm1252_vm10, %v1242_v48, %v1258_v3 }
 0x802   : > { %1267 = vrot.lane.b32.xlu0 %v1262_v50, %s2678_s7 }
 0x804   : > { %v1346_v51 = vpop.permute.xlu1 %1345 }
 0x805   : > { %v1351_v52 = vmul.f32 %v3113_v61, %v1346_v51 }
 0x806   : > { %v1348_v53 = vpop.permute.xlu0 %1347 }
 0x807   : > { %v1352_v56 = vmul.f32 %v3117_v9, %v1348_v53 }
 0x808   : > { %v1368_v55 = vpop.permute.xlu1 %1367 }
 0x809   : > { %v1373_v33 = vsel %vm1363_vm11, %v1351_v52, %v1368_v55 }
 0x80a   : > { %1377 = vrot.lane.b32.xlu1 %v1373_v33, %s2678_s7  ;;  %v1370_v57 = vpop.permute.xlu0 %1369 }
 0x80b   : > { %v1374_v35 = vsel %vm1364_vm12, %v1352_v56, %v1370_v57 }
 0x80c   : > { %1379 = vrot.lane.b32.xlu0 %v1374_v35, %s2678_s7 }
 0x80e   : > { %1277 = vrot.lane.b32.xlu1 %v3087_v43, %s2675_s14 }
 0x810   : > { %1279 = vrot.lane.b32.xlu0 %v3091_v44, %s2675_s14 }
 0x812   : > { %1389 = vrot.lane.b32.xlu1 %v3095_v45, %s2675_s14 }
 0x814   : > { %1391 = vrot.lane.b32.xlu0 %v3099_v1, %s2675_s14 }
 0x872   : > { %v1266_v58 = vpop.permute.xlu1 %1265 }
 0x873   : > { %1271 = vst.msk [vmem:[#allocation2] sm:$0xff] %vm362_vm2, %v1266_v58 }
 0x874   : > { %v1268_v59 = vpop.permute.xlu0 %1267 }
 0x875   : > { %1272 = vst.msk [vmem:[#allocation2 + $0x8] sm:$0xff] %vm362_vm2, %v1268_v59 }
 0x87a   : > { %v3188_v6 = vld [vmem:[#allocation2] sm:$0xff] }
 0x87c   : > { %v1378_v40 = vpop.permute.xlu1 %1377  ;;  %v3190_v43 = vld [vmem:[#allocation2 + $0x8] sm:$0xff] }
 0x87d   : > { %1383 = vst.msk [vmem:[#allocation4] sm:$0xff] %vm362_vm2, %v1378_v40  ;;  %v1416_v44 = vpack.c.bf16 %v3190_v43, %v3188_v6 }
 0x87e   : > { %v1380_v45 = vpop.permute.xlu0 %1379 }
 0x87f   : > { %1384 = vst.msk [vmem:[#allocation4 + $0x8] sm:$0xff] %vm362_vm2, %v1380_v45  ;;  %2416 = vmatmul.mubr.msk.bf16.vlgmr.msra.gmra.mrb[12].mxu0 %vm362_vm2, %v1416_v44  ;;  %v1533_v44 = vstv %s1407_s10 }
 0x880   : > { %v1278_v1 = vpop.permute.xlu1 %1277  ;;  %2427 = vmatprep.mubr.msk.bf16.mxu0 %vm2672_vm1, %v2671_v2 }
 0x881   : > { %v1283_v8 = vsel %vm1251_vm9, %v3134_v21, %v1278_v1 }
 0x882   : > { %1287 = vrot.lane.b32.xlu1 %v1283_v8, %s2679_s9  ;;  %v1280_v61 = vpop.permute.xlu0 %1279 }
 0x883   : > { %v1284_v63 = vsel %vm1252_vm10, %v3138_v36, %v1280_v61  ;;  %v3261_v61 = vld [vmem:[%s3479_s2] sm:$0xff] }
 0x884   : > { %v1390_v0 = vpop.permute.xlu1 %1389  ;;  %1289 = vrot.lane.b32.xlu0 %v1284_v63, %s2679_s9  ;;  %v3207_v12 = vld [vmem:[#allocation4] sm:$0xff]  ;;  %v1536_v63 = vstv %s1408_s11 }
 0x885   : > { %v1395_v7 = vsel %vm1363_vm11, %v3142_v22, %v1390_v0  ;;  %v2340_v22 = vunpack.c.h.bf16 %v2355_v39  ;;  %vm1537_vm14 = vcmp.gt.s32.totalorder %v3261_v61, %v1536_v63 }
 0x886   : > { %1399 = vrot.lane.b32.xlu1 %v1395_v7, %s2679_s9  ;;  %v1392_v9 = vpop.permute.xlu0 %1391  ;;  %v3209_v13 = vld [vmem:[#allocation4 + $0x8] sm:$0xff] }
 0x887   : > { %v1396_v14 = vsel %vm1364_vm12, %v3146_v25, %v1392_v9  ;;  %v1478_v15 = vpack.c.bf16 %v3209_v13, %v3207_v12 }
 0x888   : > { %1401 = vrot.lane.b32.xlu0 %v1396_v14, %s2679_s9 }
 0x889   : > { %2422 = vmatmul.mubr.msk.bf16.vlgmr.msra.gmra.mrb[12].mxu1 %vm362_vm2, %v1478_v15  ;;  %v3272_v15 = vld [vmem:[%s3479_s2 + $0x8] sm:$0xff] }
 0x88a   : > { %2433 = vmatprep.mubr.msk.bf16.mxu1 %vm2672_vm1, %v2671_v2  ;;  %vm1534_vm1 = vcmp.gt.s32.totalorder %v3261_v61, %v1533_v44  ;;  %vm1535_vm13 = vcmp.gt.s32.totalorder %v3272_v15, %v1533_v44  ;;  %vm1538_vm15 = vcmp.gt.s32.totalorder %v3272_v15, %v1536_v63 }
 0x88b   : > { %v1597_v14 = vsel %vm1534_vm1, 1, %v2674_v30 }
 0x8f4   : > { %v1288_v16 = vpop.permute.xlu1 %1287 }
 0x8f5   : > { %1293 = vst.msk [vmem:[#allocation3] sm:$0xff] %vm362_vm2, %v1288_v16  ;;  %v1598_v16 = vsel %vm1535_vm13, 1, %v2674_v30  ;;  %vm2132_vm13 = vcmask (!%p2302_p7), 261248  }
 0x8f6   : > { %v1290_v17 = vpop.permute.xlu0 %1289 }
 0x8f7   : > { %1294 = vst.msk [vmem:[#allocation3 + $0x8] sm:$0xff] %vm362_vm2, %v1290_v17  ;;  %v1709_v17 = vsel %vm1537_vm14, 1, %v2674_v30 }
 0x8f8   : > { %v1400_v54 = vpop.permute.xlu1 %1399 }
 0x8f9   : > { %1405 = vst.msk [vmem:[#allocation5] sm:$0xff] %vm362_vm2, %v1400_v54  ;;  %v1710_v54 = vsel %vm1538_vm15, 1, %v2674_v30 }
 0x8fa   : > { %v1402_v18 = vpop.permute.xlu0 %1401 }
 0x8fb   : > { %1406 = vst.msk [vmem:[#allocation5 + $0x8] sm:$0xff] %vm362_vm2, %v1402_v18 }
 0x8fc   : > { %v3229_v38 = vld [vmem:[#allocation3] sm:$0xff] }
 0x8fe   : > { %v3233_v41 = vld [vmem:[#allocation3 + $0x8] sm:$0xff] }
 0x900   : > { %v3237_v42 = vld [vmem:[#allocation5] sm:$0xff] }
 0x902   : > { %v3241_v3 = vld [vmem:[#allocation5 + $0x8] sm:$0xff] }
 0x952   : > { %v1462_v4 = vpop.f32.mrb[12].mxu0 }
 0x953   : > { %v1469_v21 = vadd.f32 %v2335_v19, %v1462_v4  ;;  %v2417_v62 = vpop.f32.mrb[13].mxu0 }
 0x954   : > { %v1465_v2 = vpop.f32.mrb[14].mxu0 }
 0x955   : > { %2580 = vtanh.f32 %v1469_v21  ;;  %v1470_v34 = vadd.f32 %v2336_v20, %v1465_v2  ;;  %v2418_v36 = vpop.f32.mrb[15].mxu0  ;;  %v2288_v46 = vmul.f32 -1.442695, %v1469_v21 }
 0x957   : > { %2582 = vtanh.f32 %v1470_v34  ;;  %v2289_v47 = vmul.f32 -1.442695, %v1470_v34 }
 0x95c   : > { %v1524_v23 = vpop.f32.mrb[12].mxu1 }
 0x95d   : > { %v1531_v24 = vadd.f32 %v2339_v60, %v1524_v23  ;;  %v2423_v25 = vpop.f32.mrb[13].mxu1 }
 0x95e   : > { %v1527_v26 = vpop.f32.mrb[14].mxu1 }
 0x95f   : > { %v2581_v27 = vpop.eup %2580  ;;  %2584 = vtanh.f32 %v1531_v24  ;;  %v1532_v28 = vadd.f32 %v2340_v22, %v1527_v26  ;;  %v2424_v29 = vpop.f32.mrb[15].mxu1  ;;  %v2290_v10 = vmul.f32 -1.442695, %v1531_v24 }
 0x960   : > { %1567 = vrot.lane.b32.xlu1 %v2581_v27, %s2673_s13 }
 0x961   : > { %v2583_v31 = vpop.eup %2582  ;;  %2586 = vtanh.f32 %v1532_v28  ;;  %v2291_v11 = vmul.f32 -1.442695, %v1532_v28 }
 0x962   : > { %1569 = vrot.lane.b32.xlu0 %v2583_v31, %s2673_s13  ;;  %2588 = vpow2.f32 %v2288_v46 }
 0x963   : > { %2590 = vpow2.f32 %v2289_v47 }
 0x964   : > { %2592 = vpow2.f32 %v2290_v10 }
 0x965   : > { %2594 = vpow2.f32 %v2291_v11 }
 0x969   : > { %v2585_v32 = vpop.eup %2584 }
 0x96a   : > { %1677 = vrot.lane.b32.xlu1 %v2585_v32, %s2673_s13 }
 0x96b   : > { %v2587_v37 = vpop.eup %2586 }
 0x96c   : > { %1679 = vrot.lane.b32.xlu0 %v2587_v37, %s2673_s13  ;;  %v2589_v48 = vpop.eup %2588  ;;  %v2482_v37 = vld [vmem:[%s3480_s3] sm:$0xff]  }
 0x96d   : > { %v2591_v49 = vpop.eup %2590  ;;  %v1545_v50 = vadd.f32 1.0, %v2589_v48  ;;  %2426 = vmatpush3.bf16.msra.mxu0 %v2482_v37 }
 0x96e   : > { %1557 = vrot.lane.b32.xlu1 %v3229_v38, %s2675_s14  ;;  %v1546_v51 = vadd.f32 1.0, %v2591_v49  ;;  %v2593_v52 = vpop.eup %2592 }
 0x96f   : > { %2596 = vrcp.f32 %v1545_v50  ;;  %v2595_v53 = vpop.eup %2594  ;;  %v1655_v55 = vadd.f32 1.0, %v2593_v52  ;;  %v2483_v50 = vld [vmem:[%s3481_s4] sm:$0xff]  }
 0x970   : > { %1559 = vrot.lane.b32.xlu0 %v3233_v41, %s2675_s14  ;;  %2598 = vrcp.f32 %v1546_v51  ;;  %v1656_v33 = vadd.f32 1.0, %v2595_v53  ;;  %2432 = vmatpush3.bf16.msra.mxu1 %v2483_v50 }
 0x971   : > { %2600 = vrcp.f32 %v1655_v55 }
 0x972   : > { %1667 = vrot.lane.b32.xlu1 %v3237_v42, %s2675_s14  ;;  %2602 = vrcp.f32 %v1656_v33 }
 0x974   : > { %1669 = vrot.lane.b32.xlu0 %v3241_v3, %s2675_s14 }
 0x979   : > { %v3245_v56 = vpop.eup %2596 }
 0x97a   : > { %v3248_v58 = vpop.eup %2598 }
 0x97b   : > { %v3255_v45 = vpop.eup %2600 }
 0x97c   : > { %v3264_v0 = vpop.eup %2602 }
 0x9d2   : > { %v1568_v57 = vpop.permute.xlu1 %1567 }
 0x9d3   : > { %v1573_v35 = vmul.f32 %v3245_v56, %v1568_v57 }
 0x9d4   : > { %v1570_v59 = vpop.permute.xlu0 %1569 }
 0x9d5   : > { %1577 = vrot.lane.b32.xlu1 %v1573_v35, %s2675_s14  ;;  %v1574_v40 = vmul.f32 %v3248_v58, %v1570_v59 }
 0x9d7   : > { %1579 = vrot.lane.b32.xlu0 %v1574_v40, %s2675_s14 }
 0x9dc   : > { %v1678_v1 = vpop.permute.xlu1 %1677 }
 0x9dd   : > { %v1683_v8 = vmul.f32 %v3255_v45, %v1678_v1 }
 0x9de   : > { %v1680_v7 = vpop.permute.xlu0 %1679 }
 0x9df   : > { %1687 = vrot.lane.b32.xlu1 %v1683_v8, %s2675_s14  ;;  %v1684_v9 = vmul.f32 %v3264_v0, %v1680_v7 }
 0x9e0   : > { %v1558_v18 = vpop.permute.xlu1 %1557 }
 0x9e1   : > { %1689 = vrot.lane.b32.xlu0 %v1684_v9, %s2675_s14  ;;  %v1563_v20 = vmul.f32 %v3245_v56, %v1558_v18 }
 0x9e2   : > { %v1560_v5 = vpop.permute.xlu0 %1559 }
 0x9e3   : > { %1600 = vperm.xlu1 %2473, %v1597_v14   ;;  %v1564_v2 = vmul.f32 %v3248_v58, %v1560_v5 }
 0x9e4   : > { %v1668_v19 = vpop.permute.xlu1 %1667 }
 0x9e5   : > { %1603 = vperm.xlu0 %2472, %v1598_v16  }
 0x9e6   : > { %v1670_v4 = vpop.permute.xlu0 %1669 }
 0x9e7   : > { %1712 = vperm.xlu1 %2473, %v1709_v17   ;;  %v1674_v60 = vmul.f32 %v3264_v0, %v1670_v4 }
 0x9e9   : > { %1715 = vperm.xlu0 %2472, %v1710_v54  }
 0x9eb   : > { %1609 = vrot.lane.b32.xlu1 %v3188_v6, %s2676_s25  ;;  %v1673_v6 = vmul.f32 %v3255_v45, %v1668_v19 }
 0x9ed   : > { %1611 = vrot.lane.b32.xlu0 %v3190_v43, %s2676_s25 }
 0xa47   : > { %v1578_v21 = vpop.permute.xlu1 %1577 }
 0xa48   : > { %v3286_v62 = vadd.f32 %v1578_v21, %v1563_v20  ;;  %v2356_v20 = vld [vmem:[%s2740_s29 + $0x20] sm:$0xff]   ;;  %s1761_s29 = sadd.s32 4, %s2732_s22 }
 0xa49   : > { %v1580_v34 = vpop.permute.xlu0 %1579  ;;  %v2343_v4 = vunpack.c.l.bf16 %v2356_v20  ;;  %v2344_v21 = vunpack.c.h.bf16 %v2356_v20 }
 0xa4a   : > { %2604 = vtanh.f32 %v3286_v62  ;;  %v3290_v36 = vadd.f32 %v1580_v34, %v1564_v2 }
 0xa4c   : > { %2606 = vtanh.f32 %v3290_v36 }
 0xa51   : > { %v1688_v43 = vpop.permute.xlu1 %1687 }
 0xa52   : > { %v3294_v39 = vadd.f32 %v1688_v43, %v1673_v6 }
 0xa53   : > { %v1690_v23 = vpop.permute.xlu0 %1689 }
 0xa54   : > { %v2605_v22 = vpop.eup %2604  ;;  %2608 = vtanh.f32 %v3294_v39  ;;  %v3298_v24 = vadd.f32 %v1690_v23, %v1674_v60 }
 0xa55   : > { %1589 = vrot.lane.b32.xlu1 %v2605_v22, %s2677_s26 }
 0xa56   : > { %v2607_v25 = vpop.eup %2606  ;;  %2610 = vtanh.f32 %v3298_v24 }
 0xa57   : > { %1591 = vrot.lane.b32.xlu0 %v2607_v25, %s2677_s26 }
 0xa5e   : > { %v2609_v26 = vpop.eup %2608 }
 0xa5f   : > { %1699 = vrot.lane.b32.xlu1 %v2609_v26, %s2677_s26 }
 0xa60   : > { %v2611_v27 = vpop.eup %2610 }
 0xa61   : > { %1701 = vrot.lane.b32.xlu0 %v2611_v27, %s2677_s26 }
 0xa62   : > { %v1601_v28 = vpop.permute.xlu1 %1600 }
 0xa63   : > { %1721 = vrot.lane.b32.xlu1 %v3207_v12, %s2676_s25  ;;  %vm1605_vm0 = vcmp.eq.s32.totalorder %v1601_v28, 1 }
 0xa64   : > { %v1604_v29 = vpop.permute.xlu0 %1603 }
 0xa65   : > { %1723 = vrot.lane.b32.xlu0 %v3209_v13, %s2676_s25  ;;  %vm1606_vm3 = vcmp.eq.s32.totalorder %v1604_v29, 1 }
 0xa66   : > { %v1713_v31 = vpop.permute.xlu1 %1712 }
 0xa67   : > { %vm1717_vm4 = vcmp.eq.s32.totalorder %v1713_v31, 1 }
 0xa68   : > { %v1716_v32 = vpop.permute.xlu0 %1715 }
 0xa69   : > { %vm1718_vm5 = vcmp.eq.s32.totalorder %v1716_v32, 1 }
 0xa6a   : > { %v1610_v46 = vpop.permute.xlu1 %1609 }
 0xa6c   : > { %v1612_v47 = vpop.permute.xlu0 %1611 }
 0xac7   : > { %v1590_v10 = vpop.permute.xlu1 %1589 }
 0xac8   : > { %v1595_v11 = vmul.f32 %v3245_v56, %v1590_v10 }
 0xac9   : > { %v1592_v48 = vpop.permute.xlu0 %1591 }
 0xaca   : > { %v1615_v12 = vsel %vm1605_vm0, %v1595_v11, %v1610_v46  ;;  %v1596_v13 = vmul.f32 %v3248_v58, %v1592_v48 }
 0xacb   : > { %1619 = vrot.lane.b32.xlu1 %v1615_v12, %s2678_s7 }
 0xacc   : > { %v1616_v49 = vsel %vm1606_vm3, %v1596_v13, %v1612_v47 }
 0xacd   : > { %1621 = vrot.lane.b32.xlu0 %v1616_v49, %s2678_s7 }
 0xad1   : > { %v1700_v51 = vpop.permute.xlu1 %1699 }
 0xad2   : > { %v1705_v52 = vmul.f32 %v3255_v45, %v1700_v51 }
 0xad3   : > { %v1702_v53 = vpop.permute.xlu0 %1701 }
 0xad4   : > { %v1706_v56 = vmul.f32 %v3264_v0, %v1702_v53 }
 0xad5   : > { %v1722_v55 = vpop.permute.xlu1 %1721 }
 0xad6   : > { %v1727_v33 = vsel %vm1717_vm4, %v1705_v52, %v1722_v55 }
 0xad7   : > { %1731 = vrot.lane.b32.xlu1 %v1727_v33, %s2678_s7  ;;  %v1724_v57 = vpop.permute.xlu0 %1723 }
 0xad8   : > { %v1728_v35 = vsel %vm1718_vm5, %v1706_v56, %v1724_v57 }
 0xad9   : > { %1733 = vrot.lane.b32.xlu0 %v1728_v35, %s2678_s7 }
 0xadb   : > { %1631 = vrot.lane.b32.xlu1 %v3229_v38, %s2675_s14 }
 0xadd   : > { %1633 = vrot.lane.b32.xlu0 %v3233_v41, %s2675_s14 }
 0xadf   : > { %1743 = vrot.lane.b32.xlu1 %v3237_v42, %s2675_s14 }
 0xae1   : > { %1745 = vrot.lane.b32.xlu0 %v3241_v3, %s2675_s14 }
 0xb3d   : > { %v1620_v58 = vpop.permute.xlu1 %1619 }
 0xb3e   : > { %1625 = vst.msk [vmem:[#allocation2] sm:$0xff] %vm362_vm2, %v1620_v58 }
 0xb3f   : > { %v1622_v59 = vpop.permute.xlu0 %1621 }
 0xb40   : > { %1626 = vst.msk [vmem:[#allocation2 + $0x8] sm:$0xff] %vm362_vm2, %v1622_v59 }
 0xb45   : > { %v3337_v40 = vld [vmem:[#allocation2] sm:$0xff] }
 0xb47   : > { %v3339_v44 = vld [vmem:[#allocation2 + $0x8] sm:$0xff] }
 0xb48   : > { %v1770_v41 = vpack.c.bf16 %v3339_v44, %v3337_v40 }
 0xb49   : > { %v1732_v38 = vpop.permute.xlu1 %1731 }
 0xb4a   : > { %1737 = vst.msk [vmem:[#allocation4] sm:$0xff] %vm362_vm2, %v1732_v38  ;;  %2428 = vmatmul.mubr.msk.bf16.vlgmr.msra.gmra.mrb[16].mxu0 %vm362_vm2, %v1770_v41 }
 0xb4b   : > { %v1734_v42 = vpop.permute.xlu0 %1733 }
 0xb4c   : > { %1738 = vst.msk [vmem:[#allocation4 + $0x8] sm:$0xff] %vm362_vm2, %v1734_v42 }
 0xb4d   : > { %v1632_v3 = vpop.permute.xlu1 %1631 }
 0xb4e   : > { %v1637_v45 = vsel %vm1605_vm0, %v3286_v62, %v1632_v3  ;;  %v1886_v3 = vstv %s1761_s29 }
 0xb4f   : > { %1641 = vrot.lane.b32.xlu1 %v1637_v45, %s2679_s9  ;;  %v1634_v1 = vpop.permute.xlu0 %1633  ;;  %vm1887_vm6 = vcmp.gt.s32.totalorder %v3261_v61, %v1886_v3  ;;  %vm1888_vm8 = vcmp.gt.s32.totalorder %v3272_v15, %v1886_v3 }
 0xb50   : > { %v1638_v8 = vsel %vm1606_vm3, %v3290_v36, %v1634_v1 }
 0xb51   : > { %v1744_v63 = vpop.permute.xlu1 %1743  ;;  %1643 = vrot.lane.b32.xlu0 %v1638_v8, %s2679_s9  ;;  %v3355_v9 = vld [vmem:[#allocation4] sm:$0xff] }
 0xb52   : > { %v1749_v0 = vsel %vm1717_vm4, %v3294_v39, %v1744_v63  ;;  %v2346_v39 = vld [vmem:[%s2745_s8] sm:$0xff]   ;;  %s1762_s8 = ssub.s32 5, %s2732_s22  ;;  %s2680_s22 = smov (!%p2302_p7), 16  }
 0xb53   : > { %1753 = vrot.lane.b32.xlu1 %v1749_v0, %s2679_s9  ;;  %v1746_v7 = vpop.permute.xlu0 %1745  ;;  %v3357_v14 = vld [vmem:[#allocation4 + $0x8] sm:$0xff]  ;;  %v2347_v60 = vunpack.c.l.bf16 %v2346_v39  ;;  %v2348_v26 = vunpack.c.h.bf16 %v2346_v39  ;;  %v1889_v63 = vstv %s1762_s8  ;;  %v1950_v0 = vsel %vm1887_vm6, 1, %v2674_v30 }
 0xb54   : > { %v1750_v16 = vsel %vm1718_vm5, %v3298_v24, %v1746_v7  ;;  %v1831_v17 = vpack.c.bf16 %v3357_v14, %v3355_v9  ;;  %vm1890_vm7 = vcmp.gt.s32.totalorder %v3261_v61, %v1889_v63  ;;  %vm1891_vm9 = vcmp.gt.s32.totalorder %v3272_v15, %v1889_v63 }
 0xb55   : > { %1755 = vrot.lane.b32.xlu0 %v1750_v16, %s2679_s9  ;;  %v2063_v61 = vsel %vm1891_vm9, 1, %v2674_v30 }
 0xb56   : > { %2434 = vmatmul.mubr.msk.bf16.vlgmr.msra.gmra.mrb[16].mxu1 %vm362_vm2, %v1831_v17 }
 0xbc1   : > { %v1642_v54 = vpop.permute.xlu1 %1641 }
 0xbc2   : > { %1647 = vst.msk [vmem:[#allocation3] sm:$0xff] %vm362_vm2, %v1642_v54  ;;  %v2062_v54 = vsel %vm1890_vm7, 1, %v2674_v30 }
 0xbc3   : > { %v1644_v18 = vpop.permute.xlu0 %1643 }
 0xbc4   : > { %1648 = vst.msk [vmem:[#allocation3 + $0x8] sm:$0xff] %vm362_vm2, %v1644_v18  ;;  %v1951_v18 = vsel %vm1888_vm8, 1, %v2674_v30 }
 0xbc5   : > { %v1754_v5 = vpop.permute.xlu1 %1753 }
 0xbc6   : > { %1759 = vst.msk [vmem:[#allocation5] sm:$0xff] %vm362_vm2, %v1754_v5 }
 0xbc7   : > { %v1756_v19 = vpop.permute.xlu0 %1755 }
 0xbc8   : > { %1760 = vst.msk [vmem:[#allocation5 + $0x8] sm:$0xff] %vm362_vm2, %v1756_v19 }
 0xbc9   : > { %v1906_v37 = vld [vmem:[#allocation3] sm:$0xff] }
 0xbcb   : > { %v1907_v10 = vld [vmem:[#allocation3 + $0x8] sm:$0xff] }
 0xbcd   : > { %v3376_v47 = vld [vmem:[#allocation5] sm:$0xff] }
 0xbcf   : > { %v3381_v11 = vld [vmem:[#allocation5 + $0x8] sm:$0xff] }
 0xc1d   : > { %v1816_v62 = vpop.f32.mrb[16].mxu0 }
 0xc1e   : > { %v1823_v2 = vadd.f32 %v2343_v4, %v1816_v62  ;;  %v2429_v34 = vpop.f32.mrb[17].mxu0 }
 0xc1f   : > { %v1819_v36 = vpop.f32.mrb[18].mxu0 }
 0xc20   : > { %2612 = vtanh.f32 %v1823_v2  ;;  %v1824_v6 = vadd.f32 %v2344_v21, %v1819_v36  ;;  %v2430_v43 = vpop.f32.mrb[19].mxu0  ;;  %v2298_v48 = vmul.f32 -1.442695, %v1823_v2 }
 0xc22   : > { %2614 = vtanh.f32 %v1824_v6  ;;  %v2299_v12 = vmul.f32 -1.442695, %v1824_v6 }
 0xc29   : > { %v1877_v22 = vpop.f32.mrb[16].mxu1 }
 0xc2a   : > { %v2613_v23 = vpop.eup %2612  ;;  %v1884_v24 = vadd.f32 %v2347_v60, %v1877_v22  ;;  %v2435_v25 = vpop.f32.mrb[17].mxu1 }
 0xc2b   : > { %1920 = vrot.lane.b32.xlu1 %v2613_v23, %s2673_s13  ;;  %v1880_v27 = vpop.f32.mrb[18].mxu1 }
 0xc2c   : > { %2616 = vtanh.f32 %v1884_v24  ;;  %v2436_v28 = vpop.f32.mrb[19].mxu1  ;;  %v2615_v29 = vpop.eup %2614  ;;  %v1885_v31 = vadd.f32 %v2348_v26, %v1880_v27  ;;  %v2300_v13 = vmul.f32 -1.442695, %v1884_v24 }
 0xc2d   : > { %1922 = vrot.lane.b32.xlu0 %v2615_v29, %s2673_s13 }
 0xc2e   : > { %2618 = vtanh.f32 %v1885_v31  ;;  %v2301_v52 = vmul.f32 -1.442695, %v1885_v31 }
 0xc2f   : > { %2620 = vpow2.f32 %v2298_v48 }
 0xc30   : > { %2622 = vpow2.f32 %v2299_v12 }
 0xc31   : > { %2624 = vpow2.f32 %v2300_v13 }
 0xc36   : > { %v2617_v32 = vpop.eup %2616 }
 0xc37   : > { %2030 = vrot.lane.b32.xlu1 %v2617_v32, %s2673_s13 }
 0xc38   : > { %v2619_v46 = vpop.eup %2618 }
 0xc39   : > { %2032 = vrot.lane.b32.xlu0 %v2619_v46, %s2673_s13  ;;  %v2621_v49 = vpop.eup %2620 }
 0xc3a   : > { %v2623_v50 = vpop.eup %2622  ;;  %v1898_v51 = vadd.f32 1.0, %v2621_v49 }
 0xc3b   : > { %1910 = vrot.lane.b32.xlu1 %v1906_v37, %s2675_s14  ;;  %v1899_v53 = vadd.f32 1.0, %v2623_v50  ;;  %v2625_v55 = vpop.eup %2624 }
 0xc3c   : > { %2626 = vrcp.f32 %v1898_v51  ;;  %v2008_v33 = vadd.f32 1.0, %v2625_v55 }
 0xc3d   : > { %1912 = vrot.lane.b32.xlu0 %v1907_v10, %s2675_s14  ;;  %2628 = vpow2.f32 %v2301_v52 }
 0xc3e   : > { %2630 = vrcp.f32 %v1899_v53 }
 0xc3f   : > { %2020 = vrot.lane.b32.xlu1 %v3376_v47, %s2675_s14  ;;  %2632 = vrcp.f32 %v2008_v33 }
 0xc41   : > { %2022 = vrot.lane.b32.xlu0 %v3381_v11, %s2675_s14 }
 0xc46   : > { %v3385_v56 = vpop.eup %2626 }
 0xc47   : > { %v2629_v35 = vpop.eup %2628 }
 0xc48   : > { %v3388_v59 = vpop.eup %2630  ;;  %v2009_v41 = vadd.f32 1.0, %v2629_v35 }
 0xc49   : > { %v3395_v45 = vpop.eup %2632 }
 0xc4a   : > { %2634 = vrcp.f32 %v2009_v41 }
 0xc54   : > { %v3402_v7 = vpop.eup %2634 }
 0xc9d   : > { %v1921_v57 = vpop.permute.xlu1 %1920 }
 0xc9e   : > { %v1926_v58 = vmul.f32 %v3385_v56, %v1921_v57 }
 0xc9f   : > { %v1923_v38 = vpop.permute.xlu0 %1922 }
 0xca0   : > { %1930 = vrot.lane.b32.xlu1 %v1926_v58, %s2675_s14  ;;  %v1927_v42 = vmul.f32 %v3388_v59, %v1923_v38 }
 0xca2   : > { %1932 = vrot.lane.b32.xlu0 %v1927_v42, %s2675_s14 }
 0xca9   : > { %v2031_v1 = vpop.permute.xlu1 %2030 }
 0xcaa   : > { %v2036_v8 = vmul.f32 %v3395_v45, %v2031_v1 }
 0xcab   : > { %v2033_v16 = vpop.permute.xlu0 %2032 }
 0xcac   : > { %2040 = vrot.lane.b32.xlu1 %v2036_v8, %s2675_s14  ;;  %v2037_v17 = vmul.f32 %v3402_v7, %v2033_v16 }
 0xcad   : > { %v1911_v15 = vpop.permute.xlu1 %1910 }
 0xcae   : > { %2042 = vrot.lane.b32.xlu0 %v2037_v17, %s2675_s14  ;;  %v1916_v19 = vmul.f32 %v3385_v56, %v1911_v15 }
 0xcaf   : > { %v1913_v5 = vpop.permute.xlu0 %1912 }
 0xcb0   : > { %1953 = vperm.xlu1 %2473, %v1950_v0   ;;  %v1917_v21 = vmul.f32 %v3388_v59, %v1913_v5 }
 0xcb1   : > { %v2021_v30 = vpop.permute.xlu1 %2020 }
 0xcb2   : > { %1956 = vperm.xlu0 %2472, %v1951_v18  }
 0xcb4   : > { %2065 = vperm.xlu1 %2473, %v2062_v54  }
 0xcb6   : > { %2068 = vperm.xlu0 %2472, %v2063_v61  }
 0xcb8   : > { %1962 = vrot.lane.b32.xlu1 %v3337_v40, %s2676_s25  ;;  %v2023_v40 = vpop.permute.xlu0 %2022 }
 0xcb9   : > { %v2027_v6 = vmul.f32 %v3402_v7, %v2023_v40 }
 0xcba   : > { %1964 = vrot.lane.b32.xlu0 %v3339_v44, %s2676_s25 }
 0xcbc   : > { %1984 = vrot.lane.b32.xlu1 %v1906_v37, %s2675_s14 }
 0xcbe   : > { %1986 = vrot.lane.b32.xlu0 %v1907_v10, %s2675_s14 }
 0xcc0   : > { %2074 = vrot.lane.b32.xlu1 %v3355_v9, %s2676_s25  ;;  %v2026_v9 = vmul.f32 %v3395_v45, %v2021_v30 }
 0xcc2   : > { %2076 = vrot.lane.b32.xlu0 %v3357_v14, %s2676_s25 }
 0xd12   : > { %v1931_v20 = vpop.permute.xlu1 %1930 }
 0xd13   : > { %v1936_v4 = vadd.f32 %v1931_v20, %v1916_v19 }
 0xd14   : > { %v1933_v44 = vpop.permute.xlu0 %1932 }
 0xd15   : > { %2636 = vtanh.f32 %v1936_v4  ;;  %v1937_v62 = vadd.f32 %v1933_v44, %v1917_v21 }
 0xd17   : > { %2638 = vtanh.f32 %v1937_v62 }
 0xd1e   : > { %v2041_v2 = vpop.permute.xlu1 %2040 }
 0xd1f   : > { %v2637_v34 = vpop.eup %2636  ;;  %v2046_v36 = vadd.f32 %v2041_v2, %v2026_v9 }
 0xd20   : > { %1942 = vrot.lane.b32.xlu1 %v2637_v34, %s2677_s26  ;;  %v2043_v43 = vpop.permute.xlu0 %2042 }
 0xd21   : > { %2640 = vtanh.f32 %v2046_v36  ;;  %v2639_v14 = vpop.eup %2638  ;;  %v2047_v39 = vadd.f32 %v2043_v43, %v2027_v6 }
 0xd22   : > { %1944 = vrot.lane.b32.xlu0 %v2639_v14, %s2677_s26 }
 0xd23   : > { %2642 = vtanh.f32 %v2047_v39 }
 0xd2b   : > { %v2641_v60 = vpop.eup %2640 }
 0xd2c   : > { %2052 = vrot.lane.b32.xlu1 %v2641_v60, %s2677_s26 }
 0xd2d   : > { %v2643_v23 = vpop.eup %2642 }
 0xd2e   : > { %2054 = vrot.lane.b32.xlu0 %v2643_v23, %s2677_s26 }
 0xd2f   : > { %v1954_v22 = vpop.permute.xlu1 %1953 }
 0xd30   : > { %2096 = vrot.lane.b32.xlu1 %v3376_v47, %s2675_s14  ;;  %vm1958_vm10 = vcmp.eq.s32.totalorder %v1954_v22, 1 }
 0xd31   : > { %v1957_v25 = vpop.permute.xlu0 %1956 }
 0xd32   : > { %2098 = vrot.lane.b32.xlu0 %v3381_v11, %s2675_s14  ;;  %vm1959_vm11 = vcmp.eq.s32.totalorder %v1957_v25, 1 }
 0xd33   : > { %v2066_v24 = vpop.permute.xlu1 %2065 }
 0xd34   : > { %vm2070_vm12 = vcmp.eq.s32.totalorder %v2066_v24, 1 }
 0xd35   : > { %v2069_v27 = vpop.permute.xlu0 %2068 }
 0xd36   : > { %vm2071_vm1 = vcmp.eq.s32.totalorder %v2069_v27, 1 }
 0xd37   : > { %v1963_v26 = vpop.permute.xlu1 %1962 }
 0xd39   : > { %v1965_v31 = vpop.permute.xlu0 %1964 }
 0xd3b   : > { %v1985_v28 = vpop.permute.xlu1 %1984 }
 0xd3c   : > { %v1990_v29 = vsel %vm1958_vm10, %v1936_v4, %v1985_v28 }
 0xd3d   : > { %1994 = vrot.lane.b32.xlu1 %v1990_v29, %s2679_s9  ;;  %v1987_v32 = vpop.permute.xlu0 %1986 }
 0xd3e   : > { %v1991_v37 = vsel %vm1959_vm11, %v1937_v62, %v1987_v32 }
 0xd3f   : > { %1996 = vrot.lane.b32.xlu0 %v1991_v37, %s2679_s9  ;;  %v2075_v46 = vpop.permute.xlu1 %2074 }
 0xd41   : > { %v2077_v47 = vpop.permute.xlu0 %2076 }
 0xd92   : > { %v1943_v10 = vpop.permute.xlu1 %1942 }
 0xd93   : > { %v1948_v48 = vmul.f32 %v3385_v56, %v1943_v10 }
 0xd94   : > { %v1945_v12 = vpop.permute.xlu0 %1944 }
 0xd95   : > { %v1968_v11 = vsel %vm1958_vm10, %v1948_v48, %v1963_v26  ;;  %v1949_v13 = vmul.f32 %v3388_v59, %v1945_v12 }
 0xd96   : > { %1972 = vrot.lane.b32.xlu1 %v1968_v11, %s2678_s7 }
 0xd97   : > { %v1969_v49 = vsel %vm1959_vm11, %v1949_v13, %v1965_v31 }
 0xd98   : > { %1974 = vrot.lane.b32.xlu0 %v1969_v49, %s2678_s7 }
 0xd9e   : > { %v2053_v50 = vpop.permute.xlu1 %2052 }
 0xd9f   : > { %v2058_v51 = vmul.f32 %v3395_v45, %v2053_v50 }
 0xda0   : > { %v2055_v55 = vpop.permute.xlu0 %2054 }
 0xda1   : > { %v2080_v52 = vsel %vm2070_vm12, %v2058_v51, %v2075_v46  ;;  %v2059_v33 = vmul.f32 %v3402_v7, %v2055_v55 }
 0xda2   : > { %2084 = vrot.lane.b32.xlu1 %v2080_v52, %s2678_s7  ;;  %v2097_v53 = vpop.permute.xlu1 %2096 }
 0xda3   : > { %v2102_v56 = vsel %vm2070_vm12, %v2046_v36, %v2097_v53  ;;  %v2081_v57 = vsel %vm2071_vm1, %v2059_v33, %v2077_v47 }
 0xda4   : > { %2086 = vrot.lane.b32.xlu0 %v2081_v57, %s2678_s7  ;;  %v2099_v35 = vpop.permute.xlu0 %2098 }
 0xda5   : > { %v2103_v58 = vsel %vm2071_vm1, %v2047_v39, %v2099_v35 }
 0xda6   : > { %2106 = vrot.lane.b32.xlu1 %v2102_v56, %s2679_s9 }
 0xda8   : > { %2108 = vrot.lane.b32.xlu0 %v2103_v58, %s2679_s9 }
 0xdaf   : > { %v1995_v59 = vpop.permute.xlu1 %1994 }
 0xdb0   : > { %2000 = vst.msk [vmem:[#allocation3] sm:$0xff] %vm362_vm2, %v1995_v59 }
 0xdb1   : > { %v1997_v38 = vpop.permute.xlu0 %1996 }
 0xdb2   : > { %2001 = vst.msk [vmem:[#allocation3 + $0x8] sm:$0xff] %vm362_vm2, %v1997_v38 }
 0xe08   : > { %v1973_v41 = vpop.permute.xlu1 %1972 }
 0xe09   : > { %1978 = vst.msk [vmem:[#allocation2] sm:$0xff] %vm362_vm2, %v1973_v41 }
 0xe0a   : > { %v1975_v42 = vpop.permute.xlu0 %1974 }
 0xe0b   : > { %1979 = vst.msk [vmem:[#allocation2 + $0x8] sm:$0xff] %vm362_vm2, %v1975_v42 }
 0xe10   : > { %v2118_v0 = vld [vmem:[#allocation2] sm:$0xff] (!%p2302_p7) }
 0xe11   : > { %2120 = vst.msk [vmem:[%s3482_s5] sm:$0xff] (!%p2302_p7), %vm362_vm2, %v2118_v0 }
 0xe12   : > { %v2119_v7 = vld [vmem:[#allocation2 + $0x8] sm:$0xff] (!%p2302_p7) }
 0xe13   : > { %2121 = vst.msk [vmem:[%s3482_s5 + $0x8] sm:$0xff] (!%p2302_p7), %vm362_vm2, %v2119_v7 }
 0xe14   : > { %v2085_v3 = vpop.permute.xlu1 %2084 }
 0xe15   : > { %2090 = vst.msk [vmem:[#allocation4] sm:$0xff] %vm362_vm2, %v2085_v3  ;;  %2117 = sbr.rel (%p2302_p7) target bundleno = 3733 (0xe95), region = 48 }
 0xe16   : > { %v2087_v1 = vpop.permute.xlu0 %2086 }
 0xe17   : > { %2091 = vst.msk [vmem:[#allocation4 + $0x8] sm:$0xff] %vm362_vm2, %v2087_v1 }
 0xe18   : > { %v2107_v45 = vpop.permute.xlu1 %2106 }
 0xe19   : > { %2112 = vst.msk [vmem:[#allocation5] sm:$0xff] %vm362_vm2, %v2107_v45 }
 0xe1a   : > { %v2109_v8 = vpop.permute.xlu0 %2108 }
 0xe1b   : > { %2113 = vst.msk [vmem:[#allocation5 + $0x8] sm:$0xff] %vm362_vm2, %v2109_v8 }
 0xe1c   : > { %v2122_v63 = vld [vmem:[#allocation4] sm:$0xff] }
 0xe1d   : > { %2126 = vrot.lane.b32.xlu0 %v2122_v63, %s2680_s22 }
 0xe1e   : > { %v2123_v16 = vld [vmem:[#allocation4 + $0x8] sm:$0xff] }
 0xe21   : > { %2128 = vrot.lane.b32.xlu0 %v2123_v16, %s2680_s22 }
 0xe8f   : > { %v2127_v17 = vpop.permute.xlu0 %2126 }
 0xe90   : > { %2133 = vst.msk [vmem:[%s3482_s5] sm:$0xff] %vm2132_vm13, %v2127_v17 }
 0xe93   : > { %v2129_v54 = vpop.permute.xlu0 %2128 }
 0xe94   : > { %2134 = vst.msk [vmem:[%s3482_s5 + $0x8] sm:$0xff] %vm2132_vm13, %v2129_v54 }
 0xe95 PF: > { %s15_s20 = sadd.s32 1, %s2668_s20   ;;  %s3483_s18 = smov %s2664_s19 }
 0xe96   : > { %p12_p8 = scmp.ge.s32.totalorder %s15_s20, 4   ;;  %s3484_s19 = smov %s3486_s21 }
 0xe98   :  { %14 = sbr.rel (!%p12_p8) target bundleno = 2 (0x2), region = 92 }

// kernel: encoder_forward.11
= control target key start
LH: loop header
LB: loop body
LE: loop exit
PB: predicated region body
PF: predicated region fallthrough
CT: control target
= control target key end

     0   :  { %v279_v1 = vmov 0   ;;  %vm55_vm0 = vcmask 261120   ;;  %v103_v11 = vlaneseq  ;;  %s354_s2 = inlined_call_operand.vmem [shape: bf16[32,256], index: 2, kind: input, shape index: {}]   ;;  %s355_s3 = inlined_call_operand.vmem [shape: bf16[32,256], index: 3, kind: input, shape index: {}]   ;;  %s356_s0 = inlined_call_operand.vmem [shape: bf16[16,32], index: 0, kind: input, shape index: {}]   ;;  %s357_s1 = inlined_call_operand.vmem [shape: bf16[16,32], index: 1, kind: input, shape index: {}]   ;;  %s358_s4 = inlined_call_operand.vmem [shape: f32[1,256], index: 4, kind: input, shape index: {}]   ;;  %s359_s5 = inlined_call_operand.vmem [shape: bf16[16,128], index: 5, kind: output, shape index: {0}]   ;;  %s360_s6 = inlined_call_operand.vmem [shape: bf16[16,128], index: 6, kind: output, shape index: {1}]  }
   0x1   :  { %v265_v0 = vld [vmem:[%s354_s2 + $0x4] ss:$8 sps:$4 sm:$0xff]   ;;  %91 = vmatprep.mubr.bf16.mxu1 %v279_v1  ;;  %183 = vmatprep.mubr.bf16.mxu0 %v279_v1  ;;  %v269_v3 = vld [vmem:[%s354_s2] ss:$8 sps:$4 sm:$0xff]   ;;  %v271_v5 = vld [vmem:[%s354_s2 + $0x14] ss:$8 sps:$4 sm:$0xff]  }
   0x2   :  { %v267_v2 = vld [vmem:[%s355_s3 + $0x4] ss:$8 sps:$4 sm:$0xff]   ;;  %59 = vmatprep.subr.bf16.mxu1 %v265_v0  ;;  %v270_v4 = vld [vmem:[%s355_s3] ss:$8 sps:$4 sm:$0xff]   ;;  %v273_v6 = vld [vmem:[%s355_s3 + $0x14] ss:$8 sps:$4 sm:$0xff]  }
   0x3   :  { %151 = vmatprep.subr.bf16.mxu0 %v267_v2  ;;  %60 = vmatpush1.bf16.msra.mxu1 %v269_v3  ;;  %v275_v7 = vld [vmem:[%s354_s2 + $0x10] ss:$8 sps:$4 sm:$0xff]   ;;  %v277_v9 = vld [vmem:[%s356_s0] sm:$0xff]   ;;  %v104_v12 = vshrl.u32 %v103_v11, 7 }
   0x4   :  { %152 = vmatpush1.bf16.msra.mxu0 %v270_v4  ;;  %61 = vmatprep.subr.bf16.mxu1 %v271_v5  ;;  %v276_v8 = vld [vmem:[%s355_s3 + $0x10] ss:$8 sps:$4 sm:$0xff]   ;;  %v278_v10 = vld [vmem:[%s357_s1] sm:$0xff]  }
   0x5   :  { %153 = vmatprep.subr.bf16.mxu0 %v273_v6  ;;  %v105_v13 = vsub.s32 0, %v104_v12  ;;  %v23_v14 = vld [vmem:[%s358_s4] sm:$0x3]  ;;  %v109_v15 = vsub.s32 1, %v104_v12 }
   0x7   :  { %62 = vmatpush1.bf16.msra.mxu1 %v275_v7  ;;  %v106_v16 = vrot.slane %v23_v14, %v105_v13  ;;  %v110_v17 = vrot.slane %v23_v14, %v109_v15 }
   0x8   :  { %154 = vmatpush1.bf16.msra.mxu0 %v276_v8 }
   0xa   :  { %231 = vmatmul.mubr.msk.bf16.vlgmr.msra.gmra.mrb[0].mxu1 %vm55_vm0, %v277_v9 }
   0xb   :  { %237 = vmatmul.mubr.msk.bf16.vlgmr.msra.gmra.mrb[0].mxu0 %vm55_vm0, %v278_v10 }
  0xdd   :  { %v93_v18 = vpop.f32.mrb[0].mxu1 }
  0xde   :  { %v185_v19 = vpop.f32.mrb[0].mxu0  ;;  %v113_v20 = vadd.f32 %v106_v16, %v93_v18  ;;  %v95_v21 = vpop.f32.mrb[1].mxu1 }
  0xdf   :  { %v187_v22 = vpop.f32.mrb[1].mxu0  ;;  %v114_v23 = vadd.f32 %v110_v17, %v95_v21  ;;  %v97_v24 = vpop.f32.mrb[2].mxu1 }
  0xe0   :  { %v189_v25 = vpop.f32.mrb[2].mxu0  ;;  %v194_v26 = vadd.f32 %v185_v19, %v113_v20  ;;  %v115_v27 = vadd.f32 %v106_v16, %v97_v24  ;;  %v99_v28 = vpop.f32.mrb[3].mxu1 }
  0xe1   :  { %v191_v29 = vpop.f32.mrb[3].mxu0  ;;  %v195_v30 = vadd.f32 %v187_v22, %v114_v23  ;;  %v116_v31 = vadd.f32 %v110_v17, %v99_v28 }
  0xe2   :  { %v196_v32 = vadd.f32 %v189_v25, %v115_v27 }
  0xe3   :  { %v197_v33 = vadd.f32 %v191_v29, %v116_v31 }
  0xe4   :  { %v249_v34 = vpack.c.bf16 %v196_v32, %v194_v26 }
  0xe5   :  { %v254_v35 = vpack.c.bf16 %v197_v33, %v195_v30 }
  0xe6   :  { %250 = vst [vmem:[%s359_s5] sm:$0xff] %v249_v34  }
  0xe7   :  { %255 = vst [vmem:[%s360_s6] sm:$0xff] %v254_v35  }

// kernel: encoder_forward.13
= control target key start
LH: loop header
LB: loop body
LE: loop exit
PB: predicated region body
PF: predicated region fallthrough
CT: control target
= control target key end

     0   :  { %v582_v0 = vmov 0.0   ;;  %vm583_vm0 = vmmov 0   ;;  %vm75_vm1 = vcmask 261120   ;;  %s760_s4 = inlined_call_operand.vmem [shape: bf16[32,32], index: 4, kind: input, shape index: {}]   ;;  %s761_s3 = inlined_call_operand.vmem [shape: bf16[32,32], index: 3, kind: input, shape index: {}]   ;;  %s762_s1 = inlined_call_operand.vmem [shape: bf16[16,32], index: 1, kind: input, shape index: {}]   ;;  %s763_s0 = inlined_call_operand.vmem [shape: f32[16,32], index: 0, kind: input, shape index: {}]   ;;  %s764_s5 = inlined_call_operand.vmem [shape: bf16[32,32], index: 5, kind: input, shape index: {}]   ;;  %s765_s2 = inlined_call_operand.vmem [shape: bf16[16,32], index: 2, kind: input, shape index: {}]   ;;  %s766_s7 = inlined_call_operand.vmem [shape: bf16[32,32], index: 7, kind: input, shape index: {}]   ;;  %s767_s6 = inlined_call_operand.vmem [shape: f32[1,32], index: 6, kind: input, shape index: {}]   ;;  %s768_s9 = inlined_call_operand.vmem [shape: bf16[32,32], index: 9, kind: input, shape index: {}]   ;;  %s769_s8 = inlined_call_operand.vmem [shape: f32[1,32], index: 8, kind: input, shape index: {}]   ;;  %s770_s11 = inlined_call_operand.vmem [shape: bf16[32,32], index: 11, kind: input, shape index: {}]   ;;  %s771_s10 = inlined_call_operand.vmem [shape: f32[1,32], index: 10, kind: input, shape index: {}]   ;;  %s772_s12 = inlined_call_operand.vmem [shape: f32[1,32], index: 12, kind: input, shape index: {}]   ;;  %s773_s13 = inlined_call_operand.vmem [shape: f32[16,32], index: 13, kind: output, shape index: {}]  }
   0x1   :  { %518 = vmatprep.subr.bf16.mxu0 %v582_v0  ;;  %526 = vmatprep.subr.bf16.mxu1 %v582_v0  ;;  %v568_v1 = vld [vmem:[%s760_s4] sm:$0xff]   ;;  %v570_v3 = vld [vmem:[%s760_s4 + $0x8] sm:$0xff]  }
   0x2   :  { %v569_v2 = vld [vmem:[%s761_s3] sm:$0xff]   ;;  %522 = vmatprep.mubr.msk.bf16.mxu0 %vm583_vm0, %v582_v0  ;;  %530 = vmatprep.mubr.msk.bf16.mxu1 %vm583_vm0, %v582_v0  ;;  %v571_v4 = vld [vmem:[%s761_s3 + $0x8] sm:$0xff]  }
   0x3   :  { %519 = vmatpush3.bf16.msra.mxu0 %v568_v1  ;;  %527 = vmatpush3.bf16.msra.mxu1 %v569_v2  ;;  %v572_v5 = vld [vmem:[%s762_s1] sm:$0xff]   ;;  %v685_v7 = vld [vmem:[%s763_s0 + $0x8] sm:$0xff] }
   0x4   :  { %520 = vmatprep.subr.bf16.mxu0 %v582_v0  ;;  %528 = vmatprep.subr.bf16.mxu1 %v582_v0  ;;  %v680_v6 = vld [vmem:[%s763_s0] sm:$0xff]  ;;  %v574_v10 = vld [vmem:[%s764_s5 + $0x8] sm:$0xff]  }
   0x5   :  { %v47_v8 = vpack.c.bf16 %v685_v7, %v680_v6  ;;  %v573_v9 = vld [vmem:[%s764_s5] sm:$0xff]   ;;  %v577_v13 = vld [vmem:[%s766_s7 + $0x8] sm:$0xff]  }
   0x6   :  { %v575_v11 = vld [vmem:[%s765_s2] sm:$0xff]   ;;  %v579_v37 = vld [vmem:[%s768_s9 + $0x8] sm:$0xff]  }
   0x7   :  { %521 = vmatpush3.bf16.msra.mxu0 %v570_v3  ;;  %529 = vmatpush3.bf16.msra.mxu1 %v571_v4  ;;  %v576_v12 = vld [vmem:[%s766_s7] sm:$0xff]   ;;  %v581_v49 = vld [vmem:[%s770_s11 + $0x8] sm:$0xff]  }
   0x8   :  { %534 = vmatprep.subr.bf16.mxu0 %v582_v0  ;;  %542 = vmatprep.subr.bf16.mxu1 %v582_v0  ;;  %v487_v25 = vld [vmem:[%s767_s6] ss:$0 sm:$0xff] }
   0x9   :  { %v578_v36 = vld [vmem:[%s768_s9] sm:$0xff]  }
   0xa   :  { %523 = vmatmul.mubr.msk.bf16.vlgmr.msra.gmra.mrb[0].mxu0 %vm75_vm1, %v572_v5  ;;  %531 = vmatmul.mubr.msk.bf16.vlgmr.msra.gmra.mrb[0].mxu1 %vm75_vm1, %v47_v8  ;;  %v488_v38 = vld [vmem:[%s769_s8] ss:$0 sm:$0xff] }
   0xb   :  { %535 = vmatpush3.bf16.msra.mxu0 %v573_v9  ;;  %538 = vmatprep.mubr.msk.bf16.mxu0 %vm583_vm0, %v582_v0  ;;  %v580_v48 = vld [vmem:[%s770_s11] sm:$0xff]  }
   0xc   :  { %536 = vmatprep.subr.bf16.mxu0 %v582_v0  ;;  %546 = vmatprep.mubr.msk.bf16.mxu1 %vm583_vm0, %v582_v0  ;;  %v492_v50 = vld [vmem:[%s771_s10] ss:$0 sm:$0xff] }
   0xd   :  { %543 = vmatpush3.bf16.msra.mxu1 %v576_v12  ;;  %v496_v62 = vld [vmem:[%s772_s12] ss:$0 sm:$0xff] }
   0xe   :  { %544 = vmatprep.subr.bf16.mxu1 %v582_v0 }
   0xf   :  { %537 = vmatpush3.bf16.msra.mxu0 %v574_v10 }
  0x10   :  { %550 = vmatprep.subr.bf16.mxu0 %v582_v0 }
  0x11   :  { %545 = vmatpush3.bf16.msra.mxu1 %v577_v13 }
  0x12   :  { %539 = vmatmul.mubr.msk.bf16.vlgmr.msra.gmra.mrb[4].mxu0 %vm75_vm1, %v575_v11  ;;  %558 = vmatprep.subr.bf16.mxu1 %v582_v0 }
  0x13   :  { %554 = vmatprep.mubr.msk.bf16.mxu0 %vm583_vm0, %v582_v0  ;;  %551 = vmatpush3.bf16.msra.mxu0 %v578_v36 }
  0x14   :  { %552 = vmatprep.subr.bf16.mxu0 %v582_v0 }
  0x17   :  { %553 = vmatpush3.bf16.msra.mxu0 %v579_v37 }
  0xdd   :  { %v113_v14 = vpop.f32.mrb[0].mxu0  ;;  %v169_v15 = vpop.f32.mrb[0].mxu1 }
  0xde   :  { %v524_v16 = vpop.f32.mrb[1].mxu0  ;;  %v170_v17 = vadd.f32 %v169_v15, %v113_v14  ;;  %v532_v18 = vpop.f32.mrb[1].mxu1 }
  0xdf   :  { %v116_v19 = vpop.f32.mrb[2].mxu0  ;;  %v172_v20 = vpop.f32.mrb[2].mxu1 }
  0xe0   :  { %v525_v21 = vpop.f32.mrb[3].mxu0  ;;  %v173_v22 = vadd.f32 %v172_v20, %v116_v19  ;;  %v533_v23 = vpop.f32.mrb[3].mxu1 }
  0xe5   :  { %v236_v24 = vpop.f32.mrb[4].mxu0 }
  0xe6   :  { %v243_v26 = vadd.f32 %v236_v24, %v170_v17  ;;  %v540_v27 = vpop.f32.mrb[5].mxu0 }
  0xe7   :  { %v239_v28 = vpop.f32.mrb[6].mxu0 }
  0xe8   :  { %v252_v29 = vadd.f32 %v487_v25, %v243_v26  ;;  %v244_v30 = vadd.f32 %v239_v28, %v173_v22  ;;  %v541_v31 = vpop.f32.mrb[7].mxu0 }
  0xea   :  { %v253_v32 = vadd.f32 %v487_v25, %v244_v30  ;;  %v254_v33 = vmax.f32 %v252_v29, 0.0 }
  0xec   :  { %v255_v34 = vmax.f32 %v253_v32, 0.0 }
  0xee   :  { %v256_v35 = vpack.c.bf16 %v255_v34, %v254_v33 }
  0xf0   :  { %547 = vmatmul.mubr.msk.bf16.vlgmr.msra.gmra.mrb[4].mxu1 %vm75_vm1, %v256_v35 }
  0xf1   :  { %562 = vmatprep.mubr.msk.bf16.mxu1 %vm583_vm0, %v582_v0  ;;  %559 = vmatpush3.bf16.msra.mxu1 %v580_v48 }
  0xf2   :  { %560 = vmatprep.subr.bf16.mxu1 %v582_v0 }
  0xf5   :  { %561 = vmatpush3.bf16.msra.mxu1 %v581_v49 }
 0x1c3   :  { %v317_v39 = vpop.f32.mrb[4].mxu1 }
 0x1c4   :  { %v318_v40 = vadd.f32 %v488_v38, %v317_v39  ;;  %v548_v41 = vpop.f32.mrb[5].mxu1 }
 0x1c5   :  { %v320_v42 = vpop.f32.mrb[6].mxu1 }
 0x1c6   :  { %v321_v43 = vadd.f32 %v488_v38, %v320_v42  ;;  %v549_v44 = vpop.f32.mrb[7].mxu1  ;;  %v324_v45 = vadd.f32 %v318_v40, %v680_v6 }
 0x1c8   :  { %v325_v46 = vadd.f32 %v321_v43, %v685_v7 }
 0x1ca   :  { %v326_v47 = vpack.c.bf16 %v325_v46, %v324_v45 }
 0x1cc   :  { %555 = vmatmul.mubr.msk.bf16.vlgmr.msra.gmra.mrb[8].mxu0 %vm75_vm1, %v326_v47 }
 0x29f   :  { %v387_v51 = vpop.f32.mrb[8].mxu0 }
 0x2a0   :  { %v388_v52 = vadd.f32 %v492_v50, %v387_v51  ;;  %v556_v53 = vpop.f32.mrb[9].mxu0 }
 0x2a1   :  { %v390_v54 = vpop.f32.mrb[10].mxu0 }
 0x2a2   :  { %v394_v55 = vmax.f32 %v388_v52, 0.0  ;;  %v391_v56 = vadd.f32 %v492_v50, %v390_v54  ;;  %v557_v57 = vpop.f32.mrb[11].mxu0 }
 0x2a4   :  { %v395_v58 = vmax.f32 %v391_v56, 0.0  ;;  %v396_v59 = vadd.f32 %v394_v55, %v324_v45 }
 0x2a6   :  { %v397_v60 = vadd.f32 %v395_v58, %v325_v46 }
 0x2a8   :  { %v398_v61 = vpack.c.bf16 %v397_v60, %v396_v59 }
 0x2aa   :  { %563 = vmatmul.mubr.msk.bf16.vlgmr.msra.gmra.mrb[8].mxu1 %vm75_vm1, %v398_v61 }
 0x37d   :  { %v459_v63 = vpop.f32.mrb[8].mxu1 }
 0x37e   :  { %v460_v0 = vadd.f32 %v496_v62, %v459_v63  ;;  %v564_v1 = vpop.f32.mrb[9].mxu1 }
 0x37f   :  { %v462_v2 = vpop.f32.mrb[10].mxu1 }
 0x380   :  { %v466_v3 = vmax.f32 %v460_v0, 0.0  ;;  %v463_v4 = vadd.f32 %v496_v62, %v462_v2  ;;  %v565_v5 = vpop.f32.mrb[11].mxu1 }
 0x382   :  { %v468_v6 = vadd.f32 %v466_v3, %v396_v59  ;;  %v467_v7 = vmax.f32 %v463_v4, 0.0 }
 0x384   :  { %470 = vst.msk [vmem:[%s773_s13] sm:$0xff] %vm75_vm1, %v468_v6  ;;  %v469_v8 = vadd.f32 %v467_v7, %v397_v60 }
 0x386   :  { %471 = vst.msk [vmem:[%s773_s13 + $0x8] sm:$0xff] %vm75_vm1, %v469_v8 }

// kernel: encoder_forward.10
= control target key start
LH: loop header
LB: loop body
LE: loop exit
PB: predicated region body
PF: predicated region fallthrough
CT: control target
= control target key end

     0   :  { %vm58_vm0 = vcmask 254976   ;;  %v2117_v0 = vmov 0.0   ;;  %vm2118_vm1 = vmmov 0   ;;  %vm86_vm2 = vcmask 261120   ;;  %s2119_s29 = smov 32   ;;  %s2120_s10 = smov 64   ;;  %s2578_s3 = inlined_call_operand.vmem [shape: bf16[32,128], index: 3, kind: input, shape index: {}]   ;;  %s2579_s4 = inlined_call_operand.vmem [shape: bf16[32,128], index: 4, kind: input, shape index: {}]   ;;  %s2580_s0 = inlined_call_operand.vmem [shape: bf16[6,2,128], index: 0, kind: input, shape index: {}]   ;;  %s2581_s1 = inlined_call_operand.vmem [shape: bf16[6,2,128], index: 1, kind: input, shape index: {}]   ;;  %s2582_s2 = inlined_call_operand.vmem [shape: s32[2,1], index: 2, kind: input, shape index: {}]   ;;  %s2583_s5 = inlined_call_operand.vmem [shape: bf16[6,2,32], index: 5, kind: output, shape index: {0}]   ;;  %s2584_s6 = inlined_call_operand.vmem [shape: bf16[6,2,32], index: 6, kind: output, shape index: {1}]  }
   0x1   :  { %1892 = vmatprep.subr.bf16.mxu0 %v2117_v0  ;;  %v1997_v1 = vld [vmem:[%s2578_s3] sm:$0xff]   ;;  %1900 = vmatprep.subr.bf16.mxu1 %v2117_v0  ;;  %59 = vst.msk [vmem:[#allocation2] sm:$0x3] %vm58_vm0, %v2117_v0  ;;  %60 = vst.msk [vmem:[#allocation3] sm:$0x3] %vm58_vm0, %v2117_v0  ;;  %v1999_v3 = vld [vmem:[%s2578_s3 + $0x8] sm:$0xff]   ;;  %v245_v55 = vlaneseq }
   0x2   :  { %61 = vst.msk [vmem:[#allocation4] sm:$0x3] %vm58_vm0, %v2117_v0  ;;  %62 = vst.msk [vmem:[#allocation5] sm:$0x3] %vm58_vm0, %v2117_v0  ;;  %v1998_v2 = vld [vmem:[%s2579_s4] sm:$0xff]   ;;  %1896 = vmatprep.mubr.msk.bf16.mxu0 %vm2118_vm1, %v2117_v0  ;;  %1904 = vmatprep.mubr.msk.bf16.mxu1 %vm2118_vm1, %v2117_v0  ;;  %v2000_v4 = vld [vmem:[%s2579_s4 + $0x8] sm:$0xff]  }
   0x3   :  { %1893 = vmatpush3.bf16.msra.mxu0 %v1997_v1  ;;  %1901 = vmatpush3.bf16.msra.mxu1 %v1998_v2  ;;  %v66_v11 = vld [vmem:[%s2580_s0] sm:$0x1]  ;;  %v1779_v12 = vld [vmem:[%s2581_s1 + $0x5] sm:$0x1]  ;;  %v2121_v39 = vmov 0   ;;  %v246_v58 = vshrl.u32 %v245_v55, 7 }
   0x4   :  { %1894 = vmatprep.subr.bf16.mxu0 %v2117_v0  ;;  %1902 = vmatprep.subr.bf16.mxu1 %v2117_v0  ;;  %v67_v13 = vunpack.c.l.bf16 %v66_v11  ;;  %v133_v14 = vunpack.c.l.bf16 %v1779_v12  ;;  %v2216_v48 = vld [vmem:[%s2582_s2] sm:$0x3]  ;;  %v2122_v53 = vmov 1983009808   ;;  %v2003_v60 = vld [vmem:[%s2578_s3 + $0x8] sm:$0xff]   ;;  %s2123_s20 = smov 96  }
   0x5   :  { %1996 = vset.pattern.permute.xlu1 %v2121_v39  ;;  %1995 = vset.pattern.permute.xlu0 %v2121_v39  ;;  %vm197_vm3 = vcmp.gt.s32.totalorder %v2216_v48, 0  ;;  %vm199_vm4 = vcmp.gt.s32.totalorder %v2216_v48, 5  ;;  %v243_v54 = vunpack.c.l.s4 %v2122_v53  ;;  %v2001_v56 = vld [vmem:[%s2578_s3] sm:$0xff]   ;;  %v2004_v1 = vld [vmem:[%s2579_s4 + $0x8] sm:$0xff]   ;;  %vm340_vm6 = vcmask 253952  }
   0x6   :  { %v2221_v50 = vsel %vm197_vm3, 1, %v2121_v39  ;;  %v2227_v52 = vsel %vm199_vm4, 1, %v2121_v39  ;;  %v2002_v59 = vld [vmem:[%s2579_s4] sm:$0xff]   ;;  %vm479_vm8 = vcmp.gt.s32.totalorder %v2216_v48, 1  ;;  %vm481_vm9 = vcmp.gt.s32.totalorder %v2216_v48, 4 }
   0x7   :  { %1895 = vmatpush3.bf16.msra.mxu0 %v1999_v3  ;;  %1903 = vmatpush3.bf16.msra.mxu1 %v2000_v4  ;;  %v244_v57 = vunpack.c.0.s8 %v243_v54  ;;  %vm760_vm12 = vcmp.gt.s32.totalorder %v2216_v48, 2  ;;  %vm762_vm13 = vcmp.gt.s32.totalorder %v2216_v48, 3  ;;  %v2010_v48 = vld [vmem:[%s2579_s4] sm:$0xff]  }
   0x8   :  { %v2187_v5 = vld [vmem:[#allocation2] sm:$0x3]  ;;  %1908 = vmatprep.subr.bf16.mxu0 %v2117_v0  ;;  %v1784_v9 = vld.sshfl [vmem:[#allocation3] sm:$0x3 pattern:$0x76325410]  ;;  %1916 = vmatprep.subr.bf16.mxu1 %v2117_v0 }
   0x9   :  { %v134_v6 = vld [vmem:[#allocation4] sm:$0x3]  ;;  %v69_v7 = vpack.c.bf16 %v2187_v5, %v2187_v5  ;;  %216 = vrot.lane.b32.xlu1 %v1784_v9, %s2119_s29  ;;  %v1786_v10 = vld.sshfl [vmem:[#allocation5] sm:$0x3 pattern:$0x76325410]  ;;  %v2240_v62 = vsub.s32 %v244_v57, %v246_v58 }
   0xa   :  { %v135_v8 = vpack.c.bf16 %v134_v6, %v134_v6 }
   0xb   :  { %1897 = vmatmul.mubr.msk.bf16.vlgmr.msra.gmra.mrb[0].mxu0 %vm86_vm2, %v69_v7 }
   0xc   :  { %1905 = vmatmul.mubr.msk.bf16.vlgmr.msra.gmra.mrb[0].mxu1 %vm86_vm2, %v135_v8  ;;  %1912 = vmatprep.mubr.msk.bf16.mxu0 %vm2118_vm1, %v2117_v0 }
   0xd   :  { %1920 = vmatprep.mubr.msk.bf16.mxu1 %vm2118_vm1, %v2117_v0  ;;  %285 = vrot.lane.b32.xlu1 %v1786_v10, %s2119_s29 }
   0xe   :  { %1909 = vmatpush3.bf16.msra.mxu0 %v2001_v56  ;;  %1917 = vmatpush3.bf16.msra.mxu1 %v2002_v59 }
   0xf   :  { %1910 = vmatprep.subr.bf16.mxu0 %v2117_v0  ;;  %1918 = vmatprep.subr.bf16.mxu1 %v2117_v0 }
  0x12   :  { %1911 = vmatpush3.bf16.msra.mxu0 %v2003_v60  ;;  %1919 = vmatpush3.bf16.msra.mxu1 %v2004_v1 }
  0x13   :  { %1924 = vmatprep.subr.bf16.mxu0 %v2117_v0  ;;  %1932 = vmatprep.subr.bf16.mxu1 %v2117_v0 }
  0x7b   :  { %v217_v40 = vpop.permute.xlu1 %216 }
  0x7f   :  { %v286_v42 = vpop.permute.xlu1 %285 }
  0xde   :  { %v124_v15 = vpop.f32.mrb[0].mxu0 }
  0xdf   :  { %v189_v16 = vpop.f32.mrb[0].mxu1  ;;  %v130_v17 = vadd.f32 %v124_v15, %v67_v13  ;;  %v1898_v18 = vpop.f32.mrb[1].mxu0  ;;  %v255_v15 = vld [vmem:[#allocation3] sm:$0x3] }
  0xe0   :  { %v195_v19 = vadd.f32 %v189_v16, %v133_v14  ;;  %v1906_v20 = vpop.f32.mrb[1].mxu1  ;;  %v127_v21 = vpop.f32.mrb[2].mxu0  ;;  %v305_v16 = vld [vmem:[#allocation4] sm:$0x3] }
  0xe1   :  { %v192_v22 = vpop.f32.mrb[2].mxu1  ;;  %2021 = vtanh.f32 %v130_v17  ;;  %v1899_v23 = vpop.f32.mrb[3].mxu0  ;;  %v1783_v27 = vmul.f32 -1.442695, %v130_v17 }
  0xe2   :  { %v1907_v24 = vpop.f32.mrb[3].mxu1  ;;  %2023 = vtanh.f32 %v195_v19  ;;  %v1785_v28 = vmul.f32 -1.442695, %v195_v19  ;;  %v324_v22 = vld [vmem:[#allocation5] sm:$0x3] }
  0xe3   :  { %2025 = vpow2.f32 %v1783_v27 }
  0xe4   :  { %2027 = vpow2.f32 %v1785_v28 }
  0xeb   :  { %v2022_v25 = vpop.eup %2021 }
  0xec   :  { %221 = vrot.lane.b32.xlu0 %v2022_v25, %s2120_s10  ;;  %v2024_v26 = vpop.eup %2023 }
  0xed   :  { %v2026_v29 = vpop.eup %2025 }
  0xee   :  { %v203_v30 = vadd.f32 1.0, %v2026_v29  ;;  %v2028_v31 = vpop.eup %2027  ;;  %v1788_v29 = vld [vmem:[%s2580_s0 + $0x1] sm:$0x1] }
  0xef   :  { %v272_v32 = vadd.f32 1.0, %v2028_v31  ;;  %v1792_v31 = vld [vmem:[%s2581_s1 + $0x4] sm:$0x1] }
  0xf0   :  { %290 = vrot.lane.b32.xlu0 %v2024_v26, %s2120_s10  ;;  %2029 = vrcp.f32 %v203_v30  ;;  %v350_v30 = vunpack.c.l.bf16 %v1788_v29 }
  0xf1   :  { %2031 = vrcp.f32 %v272_v32 }
  0xfa   :  { %v2030_v33 = vpop.eup %2029 }
  0xfb   :  { %v2032_v36 = vpop.eup %2031  ;;  %v219_v41 = vmul.f32 %v2030_v33, %v217_v40 }
  0xfc   :  { %v288_v45 = vmul.f32 %v2032_v36, %v286_v42 }
 0x15e   :  { %v222_v34 = vpop.permute.xlu0 %221 }
 0x15f   :  { %v224_v35 = vmul.f32 %v2030_v33, %v222_v34 }
 0x161   :  { %226 = vrot.lane.b32.xlu0 %v224_v35, %s2119_s29  ;;  %v415_v35 = vunpack.c.l.bf16 %v1792_v31 }
 0x162   :  { %v291_v37 = vpop.permute.xlu0 %290 }
 0x163   :  { %v293_v38 = vmul.f32 %v2032_v36, %v291_v37 }
 0x165   :  { %295 = vrot.lane.b32.xlu1 %v293_v38, %s2119_s29 }
 0x1d3   :  { %v227_v43 = vpop.permute.xlu0 %226 }
 0x1d4   :  { %v229_v44 = vadd.f32 %v227_v43, %v219_v41 }
 0x1d6   :  { %2033 = vtanh.f32 %v229_v44  ;;  %v263_v6 = vrot.slane %v229_v44, %v2240_v62 }
 0x1d7   :  { %v296_v46 = vpop.permute.xlu1 %295 }
 0x1d8   :  { %v298_v47 = vadd.f32 %v296_v46, %v288_v45 }
 0x1da   :  { %2035 = vtanh.f32 %v298_v47  ;;  %v332_v8 = vrot.slane %v298_v47, %v2240_v62 }
 0x1e0   :  { %v2034_v49 = vpop.eup %2033 }
 0x1e1   :  { %232 = vrot.lane.b32.xlu0 %v2034_v49, %s2120_s10 }
 0x1e4   :  { %v2036_v51 = vpop.eup %2035 }
 0x1e5   :  { %301 = vrot.lane.b32.xlu1 %v2036_v51, %s2120_s10  ;;  %238 = vperm.xlu0 %1995, %v2221_v50  }
 0x1e9   :  { %308 = vperm.xlu1 %1996, %v2227_v52  }
 0x253   :  { %v233_v61 = vpop.permute.xlu0 %232 }
 0x254   :  { %v235_v63 = vmul.f32 %v2030_v33, %v233_v61 }
 0x256   :  { %v248_v2 = vrot.slane %v235_v63, %v2240_v62 }
 0x257   :  { %v302_v3 = vpop.permute.xlu1 %301 }
 0x258   :  { %v304_v4 = vmul.f32 %v2032_v36, %v302_v3  ;;  %249 = vrot.lane.b32.xlu1 %v248_v2, %s2119_s29 }
 0x25a   :  { %v318_v7 = vrot.slane %v304_v4, %v2240_v62 }
 0x25c   :  { %319 = vrot.lane.b32.xlu0 %v318_v7, %s2119_s29  ;;  %264 = vrot.lane.b32.xlu1 %v263_v6, %s2123_s20 }
 0x260   :  { %333 = vrot.lane.b32.xlu0 %v332_v8, %s2123_s20 }
 0x264   :  { %v239_v10 = vpop.permute.xlu0 %238 }
 0x265   :  { %vm240_vm5 = vcmp.eq.s32.totalorder %v239_v10, 1 }
 0x268   :  { %v309_v9 = vpop.permute.xlu1 %308 }
 0x269   :  { %vm310_vm7 = vcmp.eq.s32.totalorder %v309_v9, 1 }
 0x2ca   :  { %v250_v11 = vpop.permute.xlu1 %249 }
 0x2cb   :  { %v252_v12 = vsel %vm240_vm5, %v250_v11, %v2187_v5  ;;  %v338_v13 = vsel %vm240_vm5, %v250_v11, 0.0  ;;  %v2294_v11 = vsel %vm479_vm8, 1, %v2121_v39 }
 0x2cc   :  { %254 = vst.msk [vmem:[#allocation2] sm:$0x3] %vm58_vm0, %v252_v12  ;;  %v339_v14 = vpack.c.bf16 %v338_v13, %v338_v13  ;;  %v2300_v13 = vsel %vm481_vm9, 1, %v2121_v39 }
 0x2ce   :  { %341 = vst.msk [vmem:[%s2583_s5] sm:$0x1] %vm340_vm6, %v339_v14  ;;  %v265_v17 = vpop.permute.xlu1 %264  ;;  %v320_v18 = vpop.permute.xlu0 %319  ;;  %v2005_v14 = vld [vmem:[%s2578_s3] sm:$0xff]  }
 0x2cf   :  { %v267_v19 = vsel %vm240_vm5, %v265_v17, %v255_v15  ;;  %v322_v20 = vsel %vm310_vm7, %v320_v18, %v305_v16  ;;  %v342_v21 = vsel %vm310_vm7, %v320_v18, 0.0  ;;  %v2006_v15 = vld [vmem:[%s2579_s4] sm:$0xff]   ;;  %v2007_v16 = vld [vmem:[%s2578_s3 + $0x8] sm:$0xff]  }
 0x2d0   :  { %268 = vst.msk [vmem:[#allocation3] sm:$0x3] %vm58_vm0, %v267_v19  ;;  %323 = vst.msk [vmem:[#allocation4] sm:$0x3] %vm58_vm0, %v322_v20  ;;  %v343_v5 = vpack.c.bf16 %v342_v21, %v342_v21  ;;  %v2008_v20 = vld [vmem:[%s2579_s4 + $0x8] sm:$0xff]  }
 0x2d2   :  { %1787 = vst.msk [vmem:[%s2584_s6 + $0x5] sm:$0x1] %vm340_vm6, %v343_v5  ;;  %v334_v23 = vpop.permute.xlu0 %333 }
 0x2d3   :  { %v336_v24 = vsel %vm310_vm7, %v334_v23, %v324_v22  ;;  %v2268_v25 = vld [vmem:[#allocation2] sm:$0x3] }
 0x2d4   :  { %337 = vst.msk [vmem:[#allocation5] sm:$0x3] %vm58_vm0, %v336_v24  ;;  %v352_v26 = vpack.c.bf16 %v2268_v25, %v2268_v25 }
 0x2d6   :  { %1913 = vmatmul.mubr.msk.bf16.vlgmr.msra.gmra.mrb[4].mxu0 %vm86_vm2, %v352_v26 }
 0x2d7   :  { %v416_v27 = vld [vmem:[#allocation4] sm:$0x3]  ;;  %1928 = vmatprep.mubr.msk.bf16.mxu0 %vm2118_vm1, %v2117_v0  ;;  %v1797_v46 = vld.sshfl [vmem:[#allocation3] sm:$0x3 pattern:$0x76325410]  ;;  %1925 = vmatpush3.bf16.msra.mxu0 %v2005_v14 }
 0x2d8   :  { %v417_v28 = vpack.c.bf16 %v416_v27, %v416_v27  ;;  %1926 = vmatprep.subr.bf16.mxu0 %v2117_v0 }
 0x2da   :  { %1921 = vmatmul.mubr.msk.bf16.vlgmr.msra.gmra.mrb[4].mxu1 %vm86_vm2, %v417_v28 }
 0x2db   :  { %1936 = vmatprep.mubr.msk.bf16.mxu1 %vm2118_vm1, %v2117_v0  ;;  %v1799_v47 = vld.sshfl [vmem:[#allocation5] sm:$0x3 pattern:$0x76325410]  ;;  %1933 = vmatpush3.bf16.msra.mxu1 %v2006_v15 }
 0x2dc   :  { %1927 = vmatpush3.bf16.msra.mxu0 %v2007_v16  ;;  %1934 = vmatprep.subr.bf16.mxu1 %v2117_v0 }
 0x2dd   :  { %1940 = vmatprep.subr.bf16.mxu0 %v2117_v0 }
 0x2df   :  { %1935 = vmatpush3.bf16.msra.mxu1 %v2008_v20 }
 0x2e0   :  { %1948 = vmatprep.subr.bf16.mxu1 %v2117_v0 }
 0x3a9   :  { %v406_v32 = vpop.f32.mrb[4].mxu0 }
 0x3aa   :  { %v412_v33 = vadd.f32 %v406_v32, %v350_v30  ;;  %v1914_v34 = vpop.f32.mrb[5].mxu0  ;;  %v536_v32 = vld [vmem:[#allocation3] sm:$0x3] }
 0x3ab   :  { %v409_v36 = vpop.f32.mrb[6].mxu0  ;;  %v586_v34 = vld [vmem:[#allocation4] sm:$0x3] }
 0x3ac   :  { %2037 = vtanh.f32 %v412_v33  ;;  %v1915_v37 = vpop.f32.mrb[7].mxu0  ;;  %v1796_v49 = vmul.f32 -1.442695, %v412_v33 }
 0x3ad   :  { %v471_v38 = vpop.f32.mrb[4].mxu1 }
 0x3ae   :  { %v477_v40 = vadd.f32 %v471_v38, %v415_v35  ;;  %v1922_v41 = vpop.f32.mrb[5].mxu1 }
 0x3af   :  { %v474_v42 = vpop.f32.mrb[6].mxu1 }
 0x3b0   :  { %2039 = vtanh.f32 %v477_v40  ;;  %v1923_v43 = vpop.f32.mrb[7].mxu1  ;;  %v1798_v51 = vmul.f32 -1.442695, %v477_v40  ;;  %v605_v40 = vld [vmem:[#allocation5] sm:$0x3] }
 0x3b1   :  { %2041 = vpow2.f32 %v1796_v49 }
 0x3b2   :  { %2043 = vpow2.f32 %v1798_v51  ;;  %v1806_v51 = vld [vmem:[%s2581_s1 + $0x3] sm:$0x1] }
 0x3b6   :  { %v2038_v44 = vpop.eup %2037 }
 0x3b7   :  { %503 = vrot.lane.b32.xlu1 %v2038_v44, %s2120_s10 }
 0x3ba   :  { %v2040_v45 = vpop.eup %2039 }
 0x3bb   :  { %498 = vrot.lane.b32.xlu1 %v1797_v46, %s2119_s29  ;;  %571 = vrot.lane.b32.xlu0 %v2040_v45, %s2120_s10  ;;  %v2042_v53 = vpop.eup %2041 }
 0x3bc   :  { %v485_v54 = vadd.f32 1.0, %v2042_v53  ;;  %v2044_v55 = vpop.eup %2043 }
 0x3bd   :  { %v553_v56 = vadd.f32 1.0, %v2044_v55 }
 0x3be   :  { %2045 = vrcp.f32 %v485_v54 }
 0x3bf   :  { %566 = vrot.lane.b32.xlu0 %v1799_v47, %s2119_s29  ;;  %2047 = vrcp.f32 %v553_v56  ;;  %v1802_v47 = vld [vmem:[%s2580_s0 + $0x2] sm:$0x1]  ;;  %v696_v56 = vunpack.c.l.bf16 %v1806_v51 }
 0x3c0   :  { %v631_v49 = vunpack.c.l.bf16 %v1802_v47 }
 0x3c8   :  { %v2046_v57 = vpop.eup %2045 }
 0x3c9   :  { %v2048_v60 = vpop.eup %2047 }
 0x429   :  { %v504_v58 = vpop.permute.xlu1 %503 }
 0x42a   :  { %v506_v59 = vmul.f32 %v2046_v57, %v504_v58 }
 0x42c   :  { %508 = vrot.lane.b32.xlu1 %v506_v59, %s2119_s29 }
 0x42d   :  { %v572_v61 = vpop.permute.xlu0 %571  ;;  %v499_v1 = vpop.permute.xlu1 %498 }
 0x42e   :  { %v574_v63 = vmul.f32 %v2048_v60, %v572_v61  ;;  %v501_v2 = vmul.f32 %v2046_v57, %v499_v1 }
 0x430   :  { %576 = vrot.lane.b32.xlu0 %v574_v63, %s2119_s29 }
 0x431   :  { %v567_v3 = vpop.permute.xlu0 %566 }
 0x432   :  { %v569_v7 = vmul.f32 %v2048_v60, %v567_v3 }
 0x49e   :  { %v509_v4 = vpop.permute.xlu1 %508 }
 0x49f   :  { %v511_v6 = vadd.f32 %v509_v4, %v501_v2 }
 0x4a1   :  { %2049 = vtanh.f32 %v511_v6  ;;  %v544_v22 = vrot.slane %v511_v6, %v2240_v62 }
 0x4a2   :  { %v577_v8 = vpop.permute.xlu0 %576 }
 0x4a3   :  { %v579_v9 = vadd.f32 %v577_v8, %v569_v7 }
 0x4a5   :  { %2051 = vtanh.f32 %v579_v9  ;;  %v613_v24 = vrot.slane %v579_v9, %v2240_v62 }
 0x4ab   :  { %v2050_v10 = vpop.eup %2049 }
 0x4ac   :  { %514 = vrot.lane.b32.xlu1 %v2050_v10, %s2120_s10 }
 0x4af   :  { %v2052_v12 = vpop.eup %2051 }
 0x4b0   :  { %520 = vperm.xlu1 %1996, %v2294_v11   ;;  %582 = vrot.lane.b32.xlu0 %v2052_v12, %s2120_s10 }
 0x4b4   :  { %589 = vperm.xlu0 %1995, %v2300_v13  }
 0x51e   :  { %v515_v17 = vpop.permute.xlu1 %514 }
 0x51f   :  { %v517_v18 = vmul.f32 %v2046_v57, %v515_v17 }
 0x521   :  { %v530_v19 = vrot.slane %v517_v18, %v2240_v62 }
 0x522   :  { %v583_v21 = vpop.permute.xlu0 %582 }
 0x523   :  { %v585_v5 = vmul.f32 %v2048_v60, %v583_v21  ;;  %531 = vrot.lane.b32.xlu1 %v530_v19, %s2119_s29 }
 0x525   :  { %v599_v23 = vrot.slane %v585_v5, %v2240_v62 }
 0x527   :  { %545 = vrot.lane.b32.xlu1 %v544_v22, %s2123_s20  ;;  %600 = vrot.lane.b32.xlu0 %v599_v23, %s2119_s29 }
 0x52b   :  { %614 = vrot.lane.b32.xlu0 %v613_v24, %s2123_s20 }
 0x52f   :  { %v521_v26 = vpop.permute.xlu1 %520 }
 0x530   :  { %vm522_vm10 = vcmp.eq.s32.totalorder %v521_v26, 1 }
 0x533   :  { %v590_v27 = vpop.permute.xlu0 %589 }
 0x534   :  { %vm591_vm11 = vcmp.eq.s32.totalorder %v590_v27, 1 }
 0x595   :  { %v532_v28 = vpop.permute.xlu1 %531 }
 0x596   :  { %v534_v29 = vsel %vm522_vm10, %v532_v28, %v2268_v25  ;;  %v619_v30 = vsel %vm522_vm10, %v532_v28, 0.0 }
 0x597   :  { %535 = vst.msk [vmem:[#allocation2] sm:$0x3] %vm58_vm0, %v534_v29  ;;  %v620_v31 = vpack.c.bf16 %v619_v30, %v619_v30  ;;  %v2365_v30 = vsel %vm760_vm12, 1, %v2121_v39 }
 0x599   :  { %1800 = vst.msk [vmem:[%s2583_s5 + $0x1] sm:$0x1] %vm340_vm6, %v620_v31  ;;  %v546_v33 = vpop.permute.xlu1 %545  ;;  %v601_v35 = vpop.permute.xlu0 %600 }
 0x59a   :  { %v548_v36 = vsel %vm522_vm10, %v546_v33, %v536_v32  ;;  %v603_v37 = vsel %vm591_vm11, %v601_v35, %v586_v34  ;;  %v623_v38 = vsel %vm591_vm11, %v601_v35, 0.0  ;;  %v2371_v32 = vsel %vm762_vm13, 1, %v2121_v39  ;;  %v2009_v33 = vld [vmem:[%s2578_s3] sm:$0xff]   ;;  %v2011_v34 = vld [vmem:[%s2578_s3 + $0x8] sm:$0xff]  }
 0x59b   :  { %549 = vst.msk [vmem:[#allocation3] sm:$0x3] %vm58_vm0, %v548_v36  ;;  %604 = vst.msk [vmem:[#allocation4] sm:$0x3] %vm58_vm0, %v603_v37  ;;  %v624_v25 = vpack.c.bf16 %v623_v38, %v623_v38  ;;  %v2012_v37 = vld [vmem:[%s2579_s4 + $0x8] sm:$0xff]  }
 0x59d   :  { %1801 = vst.msk [vmem:[%s2584_s6 + $0x4] sm:$0x1] %vm340_vm6, %v624_v25  ;;  %v615_v41 = vpop.permute.xlu0 %614 }
 0x59e   :  { %v617_v42 = vsel %vm591_vm11, %v615_v41, %v605_v40  ;;  %v2339_v43 = vld [vmem:[#allocation2] sm:$0x3] }
 0x59f   :  { %618 = vst.msk [vmem:[#allocation5] sm:$0x3] %vm58_vm0, %v617_v42  ;;  %v633_v44 = vpack.c.bf16 %v2339_v43, %v2339_v43 }
 0x5a1   :  { %1929 = vmatmul.mubr.msk.bf16.vlgmr.msra.gmra.mrb[8].mxu0 %vm86_vm2, %v633_v44 }
 0x5a2   :  { %v697_v45 = vld [vmem:[#allocation4] sm:$0x3]  ;;  %1944 = vmatprep.mubr.msk.bf16.mxu0 %vm2118_vm1, %v2117_v0  ;;  %v1811_v4 = vld.sshfl [vmem:[#allocation3] sm:$0x3 pattern:$0x76325410]  ;;  %1941 = vmatpush3.bf16.msra.mxu0 %v2009_v33 }
 0x5a3   :  { %v698_v46 = vpack.c.bf16 %v697_v45, %v697_v45  ;;  %1942 = vmatprep.subr.bf16.mxu0 %v2117_v0 }
 0x5a5   :  { %1937 = vmatmul.mubr.msk.bf16.vlgmr.msra.gmra.mrb[8].mxu1 %vm86_vm2, %v698_v46 }
 0x5a6   :  { %1952 = vmatprep.mubr.msk.bf16.mxu1 %vm2118_vm1, %v2117_v0  ;;  %v1813_v6 = vld.sshfl [vmem:[#allocation5] sm:$0x3 pattern:$0x76325410]  ;;  %1949 = vmatpush3.bf16.msra.mxu1 %v2010_v48 }
 0x5a7   :  { %1943 = vmatpush3.bf16.msra.mxu0 %v2011_v34  ;;  %1950 = vmatprep.subr.bf16.mxu1 %v2117_v0 }
 0x5a8   :  { %1956 = vmatprep.subr.bf16.mxu0 %v2117_v0 }
 0x5aa   :  { %1951 = vmatpush3.bf16.msra.mxu1 %v2012_v37 }
 0x5ab   :  { %1964 = vmatprep.subr.bf16.mxu1 %v2117_v0 }
 0x674   :  { %v687_v53 = vpop.f32.mrb[8].mxu0 }
 0x675   :  { %v693_v54 = vadd.f32 %v687_v53, %v631_v49  ;;  %v1930_v55 = vpop.f32.mrb[9].mxu0  ;;  %v817_v53 = vld [vmem:[#allocation3] sm:$0x3] }
 0x676   :  { %v690_v57 = vpop.f32.mrb[10].mxu0  ;;  %v867_v55 = vld [vmem:[#allocation4] sm:$0x3] }
 0x677   :  { %2053 = vtanh.f32 %v693_v54  ;;  %v1931_v58 = vpop.f32.mrb[11].mxu0  ;;  %v1810_v7 = vmul.f32 -1.442695, %v693_v54 }
 0x678   :  { %v752_v59 = vpop.f32.mrb[8].mxu1 }
 0x679   :  { %v758_v60 = vadd.f32 %v752_v59, %v696_v56  ;;  %v1938_v61 = vpop.f32.mrb[9].mxu1 }
 0x67a   :  { %v755_v63 = vpop.f32.mrb[10].mxu1 }
 0x67b   :  { %2055 = vtanh.f32 %v758_v60  ;;  %v1939_v1 = vpop.f32.mrb[11].mxu1  ;;  %v1812_v8 = vmul.f32 -1.442695, %v758_v60  ;;  %v886_v60 = vld [vmem:[#allocation5] sm:$0x3] }
 0x67c   :  { %2057 = vpow2.f32 %v1810_v7 }
 0x67d   :  { %2059 = vpow2.f32 %v1812_v8  ;;  %v1820_v8 = vld [vmem:[%s2581_s1 + $0x2] sm:$0x1] }
 0x681   :  { %v2054_v2 = vpop.eup %2053 }
 0x682   :  { %784 = vrot.lane.b32.xlu1 %v2054_v2, %s2120_s10 }
 0x685   :  { %v2056_v3 = vpop.eup %2055 }
 0x686   :  { %779 = vrot.lane.b32.xlu1 %v1811_v4, %s2119_s29  ;;  %852 = vrot.lane.b32.xlu0 %v2056_v3, %s2120_s10  ;;  %v2058_v9 = vpop.eup %2057 }
 0x687   :  { %v766_v10 = vadd.f32 1.0, %v2058_v9  ;;  %v2060_v12 = vpop.eup %2059 }
 0x688   :  { %v834_v14 = vadd.f32 1.0, %v2060_v12 }
 0x689   :  { %2061 = vrcp.f32 %v766_v10 }
 0x68a   :  { %847 = vrot.lane.b32.xlu0 %v1813_v6, %s2119_s29  ;;  %2063 = vrcp.f32 %v834_v14  ;;  %v1816_v6 = vld [vmem:[%s2580_s0 + $0x3] sm:$0x1]  ;;  %v977_v14 = vunpack.c.l.bf16 %v1820_v8 }
 0x68b   :  { %v912_v7 = vunpack.c.l.bf16 %v1816_v6 }
 0x693   :  { %v2062_v15 = vpop.eup %2061 }
 0x694   :  { %v2064_v18 = vpop.eup %2063 }
 0x6f4   :  { %v785_v16 = vpop.permute.xlu1 %784 }
 0x6f5   :  { %v787_v17 = vmul.f32 %v2062_v15, %v785_v16 }
 0x6f7   :  { %789 = vrot.lane.b32.xlu1 %v787_v17, %s2119_s29 }
 0x6f8   :  { %v853_v19 = vpop.permute.xlu0 %852  ;;  %v780_v21 = vpop.permute.xlu1 %779 }
 0x6f9   :  { %v855_v20 = vmul.f32 %v2064_v18, %v853_v19  ;;  %v782_v5 = vmul.f32 %v2062_v15, %v780_v21 }
 0x6fb   :  { %857 = vrot.lane.b32.xlu0 %v855_v20, %s2119_s29 }
 0x6fc   :  { %v848_v22 = vpop.permute.xlu0 %847 }
 0x6fd   :  { %v850_v26 = vmul.f32 %v2064_v18, %v848_v22 }
 0x769   :  { %v790_v23 = vpop.permute.xlu1 %789 }
 0x76a   :  { %v792_v24 = vadd.f32 %v790_v23, %v782_v5 }
 0x76c   :  { %2065 = vtanh.f32 %v792_v24  ;;  %v825_v40 = vrot.slane %v792_v24, %v2240_v62 }
 0x76d   :  { %v858_v27 = vpop.permute.xlu0 %857 }
 0x76e   :  { %v860_v28 = vadd.f32 %v858_v27, %v850_v26 }
 0x770   :  { %2067 = vtanh.f32 %v860_v28  ;;  %v894_v42 = vrot.slane %v860_v28, %v2240_v62 }
 0x776   :  { %v2066_v29 = vpop.eup %2065 }
 0x777   :  { %795 = vrot.lane.b32.xlu1 %v2066_v29, %s2120_s10 }
 0x77a   :  { %v2068_v31 = vpop.eup %2067 }
 0x77b   :  { %801 = vperm.xlu1 %1996, %v2365_v30   ;;  %863 = vrot.lane.b32.xlu0 %v2068_v31, %s2120_s10 }
 0x77f   :  { %870 = vperm.xlu0 %1995, %v2371_v32  }
 0x7e9   :  { %v796_v35 = vpop.permute.xlu1 %795 }
 0x7ea   :  { %v798_v39 = vmul.f32 %v2062_v15, %v796_v35 }
 0x7ec   :  { %v811_v36 = vrot.slane %v798_v39, %v2240_v62 }
 0x7ed   :  { %v864_v38 = vpop.permute.xlu0 %863 }
 0x7ee   :  { %v866_v25 = vmul.f32 %v2064_v18, %v864_v38  ;;  %812 = vrot.lane.b32.xlu1 %v811_v36, %s2119_s29 }
 0x7f0   :  { %v880_v41 = vrot.slane %v866_v25, %v2240_v62 }
 0x7f2   :  { %826 = vrot.lane.b32.xlu1 %v825_v40, %s2123_s20  ;;  %881 = vrot.lane.b32.xlu0 %v880_v41, %s2119_s29 }
 0x7f6   :  { %895 = vrot.lane.b32.xlu0 %v894_v42, %s2123_s20 }
 0x7fa   :  { %v802_v44 = vpop.permute.xlu1 %801 }
 0x7fb   :  { %vm803_vm14 = vcmp.eq.s32.totalorder %v802_v44, 1 }
 0x7fe   :  { %v871_v45 = vpop.permute.xlu0 %870 }
 0x7ff   :  { %vm872_vm15 = vcmp.eq.s32.totalorder %v871_v45, 1 }
 0x860   :  { %v813_v46 = vpop.permute.xlu1 %812 }
 0x861   :  { %v815_v47 = vsel %vm803_vm14, %v813_v46, %v2339_v43  ;;  %v900_v49 = vsel %vm803_vm14, %v813_v46, 0.0 }
 0x862   :  { %816 = vst.msk [vmem:[#allocation2] sm:$0x3] %vm58_vm0, %v815_v47  ;;  %v901_v51 = vpack.c.bf16 %v900_v49, %v900_v49 }
 0x864   :  { %1814 = vst.msk [vmem:[%s2583_s5 + $0x2] sm:$0x1] %vm340_vm6, %v901_v51  ;;  %v827_v54 = vpop.permute.xlu1 %826  ;;  %v882_v56 = vpop.permute.xlu0 %881  ;;  %v2013_v51 = vld [vmem:[%s2578_s3] sm:$0xff]  }
 0x865   :  { %v829_v57 = vsel %vm803_vm14, %v827_v54, %v817_v53  ;;  %v884_v58 = vsel %vm872_vm15, %v882_v56, %v867_v55  ;;  %v904_v59 = vsel %vm872_vm15, %v882_v56, 0.0  ;;  %v2014_v53 = vld [vmem:[%s2579_s4] sm:$0xff]   ;;  %v2015_v54 = vld [vmem:[%s2578_s3 + $0x8] sm:$0xff]  }
 0x866   :  { %830 = vst.msk [vmem:[#allocation3] sm:$0x3] %vm58_vm0, %v829_v57  ;;  %885 = vst.msk [vmem:[#allocation4] sm:$0x3] %vm58_vm0, %v884_v58  ;;  %v905_v43 = vpack.c.bf16 %v904_v59, %v904_v59  ;;  %v2016_v56 = vld [vmem:[%s2579_s4 + $0x8] sm:$0xff]  }
 0x868   :  { %1815 = vst.msk [vmem:[%s2584_s6 + $0x3] sm:$0x1] %vm340_vm6, %v905_v43  ;;  %v896_v61 = vpop.permute.xlu0 %895 }
 0x869   :  { %v898_v63 = vsel %vm872_vm15, %v896_v61, %v886_v60  ;;  %v2410_v1 = vld [vmem:[#allocation2] sm:$0x3] }
 0x86a   :  { %899 = vst.msk [vmem:[#allocation5] sm:$0x3] %vm58_vm0, %v898_v63  ;;  %v914_v2 = vpack.c.bf16 %v2410_v1, %v2410_v1 }
 0x86c   :  { %1945 = vmatmul.mubr.msk.bf16.vlgmr.msra.gmra.mrb[12].mxu0 %vm86_vm2, %v914_v2 }
 0x86d   :  { %v978_v3 = vld [vmem:[#allocation4] sm:$0x3]  ;;  %1960 = vmatprep.mubr.msk.bf16.mxu0 %vm2118_vm1, %v2117_v0  ;;  %v1825_v23 = vld.sshfl [vmem:[#allocation3] sm:$0x3 pattern:$0x76325410]  ;;  %1957 = vmatpush3.bf16.msra.mxu0 %v2013_v51 }
 0x86e   :  { %v979_v4 = vpack.c.bf16 %v978_v3, %v978_v3  ;;  %1958 = vmatprep.subr.bf16.mxu0 %v2117_v0 }
 0x870   :  { %1953 = vmatmul.mubr.msk.bf16.vlgmr.msra.gmra.mrb[12].mxu1 %vm86_vm2, %v979_v4 }
 0x871   :  { %1968 = vmatprep.mubr.msk.bf16.mxu1 %vm2118_vm1, %v2117_v0  ;;  %v1827_v24 = vld.sshfl [vmem:[#allocation5] sm:$0x3 pattern:$0x76325410]  ;;  %1965 = vmatpush3.bf16.msra.mxu1 %v2014_v53 }
 0x872   :  { %1959 = vmatpush3.bf16.msra.mxu0 %v2015_v54  ;;  %1966 = vmatprep.subr.bf16.mxu1 %v2117_v0 }
 0x873   :  { %1972 = vmatprep.subr.bf16.mxu0 %v2117_v0 }
 0x875   :  { %1967 = vmatpush3.bf16.msra.mxu1 %v2016_v56 }
 0x876   :  { %1980 = vmatprep.subr.bf16.mxu1 %v2117_v0 }
 0x93f   :  { %v968_v9 = vpop.f32.mrb[12].mxu0 }
 0x940   :  { %v974_v10 = vadd.f32 %v968_v9, %v912_v7  ;;  %v1946_v12 = vpop.f32.mrb[13].mxu0  ;;  %v1098_v7 = vld [vmem:[#allocation3] sm:$0x3]  ;;  %v1148_v9 = vld [vmem:[#allocation4] sm:$0x3] }
 0x941   :  { %v971_v15 = vpop.f32.mrb[14].mxu0 }
 0x942   :  { %2069 = vtanh.f32 %v974_v10  ;;  %v1947_v16 = vpop.f32.mrb[15].mxu0  ;;  %v1824_v26 = vmul.f32 -1.442695, %v974_v10 }
 0x943   :  { %v1033_v17 = vpop.f32.mrb[12].mxu1  ;;  %v1167_v16 = vld [vmem:[#allocation5] sm:$0x3] }
 0x944   :  { %v1039_v18 = vadd.f32 %v1033_v17, %v977_v14  ;;  %v1954_v19 = vpop.f32.mrb[13].mxu1 }
 0x945   :  { %v1036_v20 = vpop.f32.mrb[14].mxu1 }
 0x946   :  { %2071 = vtanh.f32 %v1039_v18  ;;  %v1955_v21 = vpop.f32.mrb[15].mxu1  ;;  %v1826_v27 = vmul.f32 -1.442695, %v1039_v18 }
 0x947   :  { %2073 = vpow2.f32 %v1824_v26 }
 0x948   :  { %2075 = vpow2.f32 %v1826_v27 }
 0x94c   :  { %v2070_v5 = vpop.eup %2069 }
 0x94d   :  { %1065 = vrot.lane.b32.xlu1 %v2070_v5, %s2120_s10 }
 0x950   :  { %v2072_v22 = vpop.eup %2071 }
 0x951   :  { %1060 = vrot.lane.b32.xlu1 %v1825_v23, %s2119_s29  ;;  %1133 = vrot.lane.b32.xlu0 %v2072_v22, %s2120_s10  ;;  %v2074_v28 = vpop.eup %2073  ;;  %v1830_v22 = vld [vmem:[%s2580_s0 + $0x4] sm:$0x1] }
 0x952   :  { %v1047_v29 = vadd.f32 1.0, %v2074_v28  ;;  %v2076_v31 = vpop.eup %2075  ;;  %v1193_v23 = vunpack.c.l.bf16 %v1830_v22 }
 0x953   :  { %v1115_v33 = vadd.f32 1.0, %v2076_v31 }
 0x954   :  { %2077 = vrcp.f32 %v1047_v29 }
 0x955   :  { %1128 = vrot.lane.b32.xlu0 %v1827_v24, %s2119_s29  ;;  %2079 = vrcp.f32 %v1115_v33  ;;  %v1834_v24 = vld [vmem:[%s2581_s1 + $0x1] sm:$0x1] }
 0x956   :  { %v1258_v29 = vunpack.c.l.bf16 %v1834_v24 }
 0x95e   :  { %v2078_v48 = vpop.eup %2077 }
 0x95f   :  { %v2080_v39 = vpop.eup %2079 }
 0x9bf   :  { %v1066_v34 = vpop.permute.xlu1 %1065 }
 0x9c0   :  { %v1068_v35 = vmul.f32 %v2078_v48, %v1066_v34 }
 0x9c2   :  { %1070 = vrot.lane.b32.xlu1 %v1068_v35, %s2119_s29 }
 0x9c3   :  { %v1134_v36 = vpop.permute.xlu0 %1133  ;;  %v1061_v38 = vpop.permute.xlu1 %1060 }
 0x9c4   :  { %v1136_v37 = vmul.f32 %v2080_v39, %v1134_v36  ;;  %v1063_v25 = vmul.f32 %v2078_v48, %v1061_v38 }
 0x9c6   :  { %1138 = vrot.lane.b32.xlu0 %v1136_v37, %s2119_s29 }
 0x9c7   :  { %v1129_v40 = vpop.permute.xlu0 %1128 }
 0x9c8   :  { %v1131_v44 = vmul.f32 %v2080_v39, %v1129_v40 }
 0xa34   :  { %v1071_v41 = vpop.permute.xlu1 %1070 }
 0xa35   :  { %v1073_v42 = vadd.f32 %v1071_v41, %v1063_v25 }
 0xa37   :  { %2081 = vtanh.f32 %v1073_v42  ;;  %v1106_v59 = vrot.slane %v1073_v42, %v2240_v62 }
 0xa38   :  { %v1139_v45 = vpop.permute.xlu0 %1138 }
 0xa39   :  { %v1141_v46 = vadd.f32 %v1139_v45, %v1131_v44 }
 0xa3b   :  { %2083 = vtanh.f32 %v1141_v46  ;;  %v1175_v60 = vrot.slane %v1141_v46, %v2240_v62 }
 0xa41   :  { %v2082_v47 = vpop.eup %2081 }
 0xa42   :  { %1076 = vrot.lane.b32.xlu1 %v2082_v47, %s2120_s10 }
 0xa45   :  { %v2084_v49 = vpop.eup %2083 }
 0xa46   :  { %1082 = vperm.xlu1 %1996, %v2371_v32   ;;  %1144 = vrot.lane.b32.xlu0 %v2084_v49, %s2120_s10 }
 0xa4a   :  { %1151 = vperm.xlu0 %1995, %v2365_v30  }
 0xab4   :  { %v1077_v32 = vpop.permute.xlu1 %1076 }
 0xab5   :  { %v1079_v55 = vmul.f32 %v2078_v48, %v1077_v32 }
 0xab7   :  { %v1092_v30 = vrot.slane %v1079_v55, %v2240_v62 }
 0xab8   :  { %v1145_v57 = vpop.permute.xlu0 %1144 }
 0xab9   :  { %v1147_v58 = vmul.f32 %v2080_v39, %v1145_v57  ;;  %1093 = vrot.lane.b32.xlu1 %v1092_v30, %s2119_s29 }
 0xabb   :  { %v1161_v43 = vrot.slane %v1147_v58, %v2240_v62 }
 0xabd   :  { %1107 = vrot.lane.b32.xlu1 %v1106_v59, %s2123_s20  ;;  %1162 = vrot.lane.b32.xlu0 %v1161_v43, %s2119_s29 }
 0xac1   :  { %1176 = vrot.lane.b32.xlu0 %v1175_v60, %s2123_s20 }
 0xac5   :  { %v1083_v61 = vpop.permute.xlu1 %1082 }
 0xac6   :  { %vm1084_vm3 = vcmp.eq.s32.totalorder %v1083_v61, 1 }
 0xac9   :  { %v1152_v63 = vpop.permute.xlu0 %1151 }
 0xaca   :  { %vm1153_vm4 = vcmp.eq.s32.totalorder %v1152_v63, 1 }
 0xb2b   :  { %v1094_v2 = vpop.permute.xlu1 %1093 }
 0xb2c   :  { %v1096_v3 = vsel %vm1084_vm3, %v1094_v2, %v2410_v1  ;;  %v1181_v4 = vsel %vm1084_vm3, %v1094_v2, 0.0 }
 0xb2d   :  { %1097 = vst.msk [vmem:[#allocation2] sm:$0x3] %vm58_vm0, %v1096_v3  ;;  %v1182_v6 = vpack.c.bf16 %v1181_v4, %v1181_v4  ;;  %v2017_v3 = vld [vmem:[%s2578_s3] sm:$0xff]  }
 0xb2e   :  { %v2018_v4 = vld [vmem:[%s2579_s4] sm:$0xff]  }
 0xb2f   :  { %1828 = vst.msk [vmem:[%s2583_s5 + $0x3] sm:$0x1] %vm340_vm6, %v1182_v6  ;;  %v1108_v8 = vpop.permute.xlu1 %1107  ;;  %v1163_v10 = vpop.permute.xlu0 %1162  ;;  %v2019_v6 = vld [vmem:[%s2578_s3 + $0x8] sm:$0xff]  }
 0xb30   :  { %v1110_v12 = vsel %vm1084_vm3, %v1108_v8, %v1098_v7  ;;  %v1165_v14 = vsel %vm1153_vm4, %v1163_v10, %v1148_v9  ;;  %v1185_v15 = vsel %vm1153_vm4, %v1163_v10, 0.0  ;;  %v2020_v8 = vld [vmem:[%s2579_s4 + $0x8] sm:$0xff]  }
 0xb31   :  { %1111 = vst.msk [vmem:[#allocation3] sm:$0x3] %vm58_vm0, %v1110_v12  ;;  %1166 = vst.msk [vmem:[#allocation4] sm:$0x3] %vm58_vm0, %v1165_v14  ;;  %v1186_v1 = vpack.c.bf16 %v1185_v15, %v1185_v15 }
 0xb33   :  { %1829 = vst.msk [vmem:[%s2584_s6 + $0x2] sm:$0x1] %vm340_vm6, %v1186_v1  ;;  %v1177_v17 = vpop.permute.xlu0 %1176 }
 0xb34   :  { %v1179_v18 = vsel %vm1153_vm4, %v1177_v17, %v1167_v16  ;;  %v2473_v19 = vld [vmem:[#allocation2] sm:$0x3] }
 0xb35   :  { %1180 = vst.msk [vmem:[#allocation5] sm:$0x3] %vm58_vm0, %v1179_v18  ;;  %v1195_v20 = vpack.c.bf16 %v2473_v19, %v2473_v19 }
 0xb37   :  { %1961 = vmatmul.mubr.msk.bf16.vlgmr.msra.gmra.mrb[16].mxu0 %vm86_vm2, %v1195_v20 }
 0xb38   :  { %v1259_v21 = vld [vmem:[#allocation4] sm:$0x3]  ;;  %1976 = vmatprep.mubr.msk.bf16.mxu0 %vm2118_vm1, %v2117_v0  ;;  %v1839_v25 = vld.sshfl [vmem:[#allocation3] sm:$0x3 pattern:$0x76325410]  ;;  %1973 = vmatpush3.bf16.msra.mxu0 %v2017_v3 }
 0xb39   :  { %v1260_v5 = vpack.c.bf16 %v1259_v21, %v1259_v21  ;;  %1974 = vmatprep.subr.bf16.mxu0 %v2117_v0  ;;  %v1379_v21 = vld [vmem:[#allocation3] sm:$0x3]  ;;  %v1429_v22 = vld [vmem:[#allocation4] sm:$0x3] }
 0xb3b   :  { %1969 = vmatmul.mubr.msk.bf16.vlgmr.msra.gmra.mrb[16].mxu1 %vm86_vm2, %v1260_v5 }
 0xb3c   :  { %1984 = vmatprep.mubr.msk.bf16.mxu1 %vm2118_vm1, %v2117_v0  ;;  %v1841_v40 = vld.sshfl [vmem:[#allocation5] sm:$0x3 pattern:$0x76325410]  ;;  %1981 = vmatpush3.bf16.msra.mxu1 %v2018_v4 }
 0xb3d   :  { %1975 = vmatpush3.bf16.msra.mxu0 %v2019_v6  ;;  %1982 = vmatprep.subr.bf16.mxu1 %v2117_v0 }
 0xb40   :  { %1983 = vmatpush3.bf16.msra.mxu1 %v2020_v8 }
 0xc0a   :  { %v1249_v26 = vpop.f32.mrb[16].mxu0 }
 0xc0b   :  { %v1255_v27 = vadd.f32 %v1249_v26, %v1193_v23  ;;  %v1962_v28 = vpop.f32.mrb[17].mxu0 }
 0xc0c   :  { %v1252_v31 = vpop.f32.mrb[18].mxu0  ;;  %v1448_v28 = vld [vmem:[#allocation5] sm:$0x3] }
 0xc0d   :  { %2085 = vtanh.f32 %v1255_v27  ;;  %v1963_v33 = vpop.f32.mrb[19].mxu0  ;;  %v1838_v41 = vmul.f32 -1.442695, %v1255_v27 }
 0xc0e   :  { %v1314_v48 = vpop.f32.mrb[16].mxu1 }
 0xc0f   :  { %v1320_v34 = vadd.f32 %v1314_v48, %v1258_v29  ;;  %v1970_v35 = vpop.f32.mrb[17].mxu1 }
 0xc10   :  { %v1317_v39 = vpop.f32.mrb[18].mxu1 }
 0xc11   :  { %2087 = vtanh.f32 %v1320_v34  ;;  %v1971_v36 = vpop.f32.mrb[19].mxu1  ;;  %v1840_v42 = vmul.f32 -1.442695, %v1320_v34  ;;  %v1844_v39 = vld [vmem:[%s2580_s0 + $0x5] sm:$0x1] }
 0xc12   :  { %2089 = vpow2.f32 %v1838_v41  ;;  %v1474_v36 = vunpack.c.l.bf16 %v1844_v39 }
 0xc13   :  { %2091 = vpow2.f32 %v1840_v42 }
 0xc17   :  { %v2086_v37 = vpop.eup %2085 }
 0xc18   :  { %1346 = vrot.lane.b32.xlu1 %v2086_v37, %s2120_s10  ;;  %v1537_v37 = vld [vmem:[%s2581_s1] sm:$0x1] }
 0xc19   :  { %v1538_v41 = vunpack.c.l.bf16 %v1537_v37 }
 0xc1b   :  { %v2088_v38 = vpop.eup %2087 }
 0xc1c   :  { %1341 = vrot.lane.b32.xlu1 %v1839_v25, %s2119_s29  ;;  %1414 = vrot.lane.b32.xlu0 %v2088_v38, %s2120_s10  ;;  %v2090_v44 = vpop.eup %2089 }
 0xc1d   :  { %v1328_v45 = vadd.f32 1.0, %v2090_v44  ;;  %v2092_v46 = vpop.eup %2091 }
 0xc1e   :  { %v1396_v47 = vadd.f32 1.0, %v2092_v46 }
 0xc1f   :  { %2093 = vrcp.f32 %v1328_v45 }
 0xc20   :  { %1409 = vrot.lane.b32.xlu0 %v1841_v40, %s2119_s29  ;;  %2095 = vrcp.f32 %v1396_v47 }
 0xc29   :  { %v2094_v49 = vpop.eup %2093 }
 0xc2a   :  { %v2096_v54 = vpop.eup %2095 }
 0xc8a   :  { %v1347_v51 = vpop.permute.xlu1 %1346 }
 0xc8b   :  { %v1349_v53 = vmul.f32 %v2094_v49, %v1347_v51 }
 0xc8d   :  { %1351 = vrot.lane.b32.xlu1 %v1349_v53, %s2119_s29 }
 0xc8e   :  { %v1415_v32 = vpop.permute.xlu0 %1414  ;;  %v1342_v30 = vpop.permute.xlu1 %1341 }
 0xc8f   :  { %v1417_v55 = vmul.f32 %v2096_v54, %v1415_v32  ;;  %v1344_v56 = vmul.f32 %v2094_v49, %v1342_v30 }
 0xc91   :  { %1419 = vrot.lane.b32.xlu0 %v1417_v55, %s2119_s29 }
 0xc92   :  { %v1410_v57 = vpop.permute.xlu0 %1409 }
 0xc93   :  { %v1412_v43 = vmul.f32 %v2096_v54, %v1410_v57 }
 0xcff   :  { %v1352_v58 = vpop.permute.xlu1 %1351 }
 0xd00   :  { %v1354_v59 = vadd.f32 %v1352_v58, %v1344_v56 }
 0xd02   :  { %2097 = vtanh.f32 %v1354_v59  ;;  %v1387_v12 = vrot.slane %v1354_v59, %v2240_v62 }
 0xd03   :  { %v1420_v60 = vpop.permute.xlu0 %1419 }
 0xd04   :  { %v1422_v61 = vadd.f32 %v1420_v60, %v1412_v43 }
 0xd06   :  { %2099 = vtanh.f32 %v1422_v61  ;;  %v1456_v0 = vrot.slane %v1422_v61, %v2240_v62 }
 0xd0c   :  { %v2098_v63 = vpop.eup %2097 }
 0xd0d   :  { %1357 = vrot.lane.b32.xlu1 %v2098_v63, %s2120_s10 }
 0xd10   :  { %v2100_v2 = vpop.eup %2099 }
 0xd11   :  { %1363 = vperm.xlu1 %1996, %v2300_v13   ;;  %1425 = vrot.lane.b32.xlu0 %v2100_v2, %s2120_s10 }
 0xd15   :  { %1432 = vperm.xlu0 %1995, %v2294_v11  }
 0xd7f   :  { %v1358_v13 = vpop.permute.xlu1 %1357 }
 0xd80   :  { %v1360_v7 = vmul.f32 %v2094_v49, %v1358_v13 }
 0xd82   :  { %v1373_v11 = vrot.slane %v1360_v7, %v2240_v62 }
 0xd83   :  { %v1426_v9 = vpop.permute.xlu0 %1425 }
 0xd84   :  { %v1428_v10 = vmul.f32 %v2096_v54, %v1426_v9  ;;  %1374 = vrot.lane.b32.xlu1 %v1373_v11, %s2119_s29 }
 0xd86   :  { %v1442_v14 = vrot.slane %v1428_v10, %v2240_v62 }
 0xd88   :  { %1388 = vrot.lane.b32.xlu1 %v1387_v12, %s2123_s20  ;;  %1443 = vrot.lane.b32.xlu0 %v1442_v14, %s2119_s29 }
 0xd8c   :  { %1457 = vrot.lane.b32.xlu0 %v1456_v0, %s2123_s20 }
 0xd90   :  { %v1364_v15 = vpop.permute.xlu1 %1363 }
 0xd91   :  { %vm1365_vm1 = vcmp.eq.s32.totalorder %v1364_v15, 1 }
 0xd94   :  { %v1433_v1 = vpop.permute.xlu0 %1432 }
 0xd95   :  { %vm1434_vm5 = vcmp.eq.s32.totalorder %v1433_v1, 1 }
 0xdf6   :  { %v1375_v16 = vpop.permute.xlu1 %1374 }
 0xdf7   :  { %v1377_v17 = vsel %vm1365_vm1, %v1375_v16, %v2473_v19  ;;  %v1462_v18 = vsel %vm1365_vm1, %v1375_v16, 0.0 }
 0xdf8   :  { %1378 = vst.msk [vmem:[#allocation2] sm:$0x3] %vm58_vm0, %v1377_v17  ;;  %v1463_v20 = vpack.c.bf16 %v1462_v18, %v1462_v18 }
 0xdfa   :  { %1842 = vst.msk [vmem:[%s2583_s5 + $0x4] sm:$0x1] %vm340_vm6, %v1463_v20  ;;  %v1389_v5 = vpop.permute.xlu1 %1388  ;;  %v1444_v23 = vpop.permute.xlu0 %1443 }
 0xdfb   :  { %v1391_v24 = vsel %vm1365_vm1, %v1389_v5, %v1379_v21  ;;  %v1446_v26 = vsel %vm1434_vm5, %v1444_v23, %v1429_v22  ;;  %v1466_v27 = vsel %vm1434_vm5, %v1444_v23, 0.0 }
 0xdfc   :  { %1392 = vst.msk [vmem:[#allocation3] sm:$0x3] %vm58_vm0, %v1391_v24  ;;  %1447 = vst.msk [vmem:[#allocation4] sm:$0x3] %vm58_vm0, %v1446_v26  ;;  %v1467_v19 = vpack.c.bf16 %v1466_v27, %v1466_v27 }
 0xdfe   :  { %1843 = vst.msk [vmem:[%s2584_s6 + $0x1] sm:$0x1] %vm340_vm6, %v1467_v19  ;;  %v1458_v29 = vpop.permute.xlu0 %1457 }
 0xdff   :  { %v1460_v31 = vsel %vm1434_vm5, %v1458_v29, %v1448_v28  ;;  %v2534_v33 = vld [vmem:[#allocation2] sm:$0x3] }
 0xe00   :  { %1461 = vst.msk [vmem:[#allocation5] sm:$0x3] %vm58_vm0, %v1460_v31  ;;  %v1476_v48 = vpack.c.bf16 %v2534_v33, %v2534_v33 }
 0xe02   :  { %1977 = vmatmul.mubr.msk.bf16.vlgmr.msra.gmra.mrb[20].mxu0 %vm86_vm2, %v1476_v48 }
 0xe03   :  { %v1539_v34 = vld [vmem:[#allocation4] sm:$0x3]  ;;  %v1852_v32 = vld.sshfl [vmem:[#allocation3] sm:$0x3 pattern:$0x76325410] }
 0xe04   :  { %v1540_v35 = vpack.c.bf16 %v1539_v34, %v1539_v34  ;;  %v1659_v27 = vld [vmem:[#allocation3] sm:$0x3]  ;;  %v1709_v19 = vld [vmem:[#allocation4] sm:$0x3] }
 0xe06   :  { %1985 = vmatmul.mubr.msk.bf16.vlgmr.msra.gmra.mrb[20].mxu1 %vm86_vm2, %v1540_v35 }
 0xe07   :  { %v1854_v55 = vld.sshfl [vmem:[#allocation5] sm:$0x3 pattern:$0x76325410] }
 0xe08   :  { %v1728_v34 = vld [vmem:[#allocation5] sm:$0x3] }
 0xed5   :  { %v1530_v38 = vpop.f32.mrb[20].mxu0 }
 0xed6   :  { %v1536_v25 = vadd.f32 %v1530_v38, %v1474_v36  ;;  %v1978_v40 = vpop.f32.mrb[21].mxu0 }
 0xed7   :  { %v1533_v42 = vpop.f32.mrb[22].mxu0 }
 0xed8   :  { %2101 = vtanh.f32 %v1536_v25  ;;  %v1979_v44 = vpop.f32.mrb[23].mxu0  ;;  %v1851_v30 = vmul.f32 -1.442695, %v1536_v25 }
 0xed9   :  { %v1594_v45 = vpop.f32.mrb[20].mxu1 }
 0xeda   :  { %v1600_v46 = vadd.f32 %v1594_v45, %v1538_v41  ;;  %v1986_v47 = vpop.f32.mrb[21].mxu1 }
 0xedb   :  { %v1597_v49 = vpop.f32.mrb[22].mxu1 }
 0xedc   :  { %2103 = vtanh.f32 %v1600_v46  ;;  %v1987_v51 = vpop.f32.mrb[23].mxu1  ;;  %v1853_v56 = vmul.f32 -1.442695, %v1600_v46 }
 0xedd   :  { %2105 = vpow2.f32 %v1851_v30 }
 0xede   :  { %2107 = vpow2.f32 %v1853_v56 }
 0xee2   :  { %v2102_v53 = vpop.eup %2101 }
 0xee3   :  { %1626 = vrot.lane.b32.xlu1 %v2102_v53, %s2120_s10 }
 0xee6   :  { %v2104_v54 = vpop.eup %2103 }
 0xee7   :  { %1621 = vrot.lane.b32.xlu1 %v1852_v32, %s2119_s29  ;;  %1694 = vrot.lane.b32.xlu0 %v2104_v54, %s2120_s10  ;;  %v2106_v57 = vpop.eup %2105 }
 0xee8   :  { %v1608_v58 = vadd.f32 1.0, %v2106_v57  ;;  %v2108_v59 = vpop.eup %2107 }
 0xee9   :  { %v1676_v43 = vadd.f32 1.0, %v2108_v59 }
 0xeea   :  { %2109 = vrcp.f32 %v1608_v58 }
 0xeeb   :  { %1689 = vrot.lane.b32.xlu0 %v1854_v55, %s2119_s29  ;;  %2111 = vrcp.f32 %v1676_v43 }
 0xef4   :  { %v2110_v60 = vpop.eup %2109 }
 0xef5   :  { %v2112_v2 = vpop.eup %2111 }
 0xf55   :  { %v1627_v61 = vpop.permute.xlu1 %1626 }
 0xf56   :  { %v1629_v63 = vmul.f32 %v2110_v60, %v1627_v61 }
 0xf58   :  { %1631 = vrot.lane.b32.xlu1 %v1629_v63, %s2119_s29 }
 0xf59   :  { %v1695_v3 = vpop.permute.xlu0 %1694  ;;  %v1622_v6 = vpop.permute.xlu1 %1621 }
 0xf5a   :  { %v1697_v4 = vmul.f32 %v2112_v2, %v1695_v3  ;;  %v1624_v13 = vmul.f32 %v2110_v60, %v1622_v6 }
 0xf5c   :  { %1699 = vrot.lane.b32.xlu0 %v1697_v4, %s2119_s29 }
 0xf5d   :  { %v1690_v7 = vpop.permute.xlu0 %1689 }
 0xf5e   :  { %v1692_v9 = vmul.f32 %v2112_v2, %v1690_v7 }
 0xfca   :  { %v1632_v11 = vpop.permute.xlu1 %1631 }
 0xfcb   :  { %v1634_v8 = vadd.f32 %v1632_v11, %v1624_v13 }
 0xfcd   :  { %2113 = vtanh.f32 %v1634_v8  ;;  %v1667_v20 = vrot.slane %v1634_v8, %v2240_v62 }
 0xfce   :  { %v1700_v10 = vpop.permute.xlu0 %1699 }
 0xfcf   :  { %v1702_v12 = vadd.f32 %v1700_v10, %v1692_v9 }
 0xfd1   :  { %2115 = vtanh.f32 %v1702_v12 }
 0xfd7   :  { %v2114_v14 = vpop.eup %2113 }
 0xfd8   :  { %1637 = vrot.lane.b32.xlu1 %v2114_v14, %s2120_s10 }
 0xfdb   :  { %v2116_v0 = vpop.eup %2115 }
 0xfdc   :  { %1643 = vperm.xlu1 %1996, %v2227_v52   ;;  %1705 = vrot.lane.b32.xlu0 %v2116_v0, %s2120_s10  ;;  %v1736_v52 = vrot.slane %v1702_v12, %v2240_v62 }
 0xfe0   :  { %1712 = vperm.xlu0 %1995, %v2221_v50  }
0x104a   :  { %v1638_v15 = vpop.permute.xlu1 %1637 }
0x104b   :  { %v1640_v1 = vmul.f32 %v2110_v60, %v1638_v15 }
0x104d   :  { %v1653_v16 = vrot.slane %v1640_v1, %v2240_v62 }
0x104e   :  { %v1706_v17 = vpop.permute.xlu0 %1705 }
0x104f   :  { %v1708_v18 = vmul.f32 %v2112_v2, %v1706_v17  ;;  %1654 = vrot.lane.b32.xlu1 %v1653_v16, %s2119_s29 }
0x1051   :  { %v1722_v21 = vrot.slane %v1708_v18, %v2240_v62 }
0x1053   :  { %1668 = vrot.lane.b32.xlu1 %v1667_v20, %s2123_s20  ;;  %1723 = vrot.lane.b32.xlu0 %v1722_v21, %s2119_s29 }
0x1057   :  { %1737 = vrot.lane.b32.xlu0 %v1736_v52, %s2123_s20 }
0x105b   :  { %v1644_v50 = vpop.permute.xlu1 %1643 }
0x105c   :  { %vm1645_vm2 = vcmp.eq.s32.totalorder %v1644_v50, 1 }
0x105f   :  { %v1713_v5 = vpop.permute.xlu0 %1712 }
0x1060   :  { %vm1714_vm7 = vcmp.eq.s32.totalorder %v1713_v5, 1 }
0x10c1   :  { %v1655_v22 = vpop.permute.xlu1 %1654 }
0x10c2   :  { %v1657_v23 = vsel %vm1645_vm2, %v1655_v22, %v2534_v33  ;;  %v1742_v24 = vsel %vm1645_vm2, %v1655_v22, 0.0 }
0x10c3   :  { %1658 = vst.msk [vmem:[#allocation2] sm:$0x3] %vm58_vm0, %v1657_v23  ;;  %v1743_v26 = vpack.c.bf16 %v1742_v24, %v1742_v24 }
0x10c5   :  { %1855 = vst.msk [vmem:[%s2583_s5 + $0x5] sm:$0x1] %vm340_vm6, %v1743_v26  ;;  %v1669_v62 = vpop.permute.xlu1 %1668  ;;  %v1724_v28 = vpop.permute.xlu0 %1723 }
0x10c6   :  { %v1671_v29 = vsel %vm1645_vm2, %v1669_v62, %v1659_v27  ;;  %v1726_v31 = vsel %vm1714_vm7, %v1724_v28, %v1709_v19  ;;  %v1746_v48 = vsel %vm1714_vm7, %v1724_v28, 0.0 }
0x10c7   :  { %1672 = vst.msk [vmem:[#allocation3] sm:$0x3] %vm58_vm0, %v1671_v29  ;;  %1727 = vst.msk [vmem:[#allocation4] sm:$0x3] %vm58_vm0, %v1726_v31  ;;  %v1747_v33 = vpack.c.bf16 %v1746_v48, %v1746_v48 }
0x10c9   :  { %1748 = vst.msk [vmem:[%s2584_s6] sm:$0x1] %vm340_vm6, %v1747_v33  ;;  %v1738_v35 = vpop.permute.xlu0 %1737 }
0x10ca   :  { %v1740_v39 = vsel %vm1714_vm7, %v1738_v35, %v1728_v34 }
0x10cb   :  { %1741 = vst.msk [vmem:[#allocation5] sm:$0x3] %vm58_vm0, %v1740_v39 }

</bundles_post_ra>
